<compile_context>
chip_gen: v6e
topology: v6e:2x2x1
jax: 0.10.0
libtpu: 0.0.40
codegen_flags: <defaults>
</compile_context>

<pallas_src>
import functools

import jax
import jax.numpy as jnp
from jax import lax
from jax.experimental import pallas as pl
from jax.experimental.pallas import tpu as pltpu

BN_EPS = 1e-5
LANE = 128
_ROW_CAP = 8192                     # hard cap on flattened rows per tile


def _round_up(x, m):
    return (x + m - 1) // m * m


def _vmem_budget():
    """Returns (scoped-VMEM limit for Mosaic, per-tile working-set budget) in bytes."""
    try:
        cap = int(pltpu.get_tpu_info().vmem_capacity_bytes)
    except Exception:               # conservative fallback (covers v7x's 64 MiB)
        cap = 64 * 1024 * 1024
    limit = min(cap // 2, 64 * 1024 * 1024)
    return limit, int(limit * 0.6)


def _pick_tile_h(h, w_pad, n_images, bytes_per_row, budget):
    """Largest divisor of H whose (tile_h * w_pad) rows fit the VMEM budget.

    Only divisors giving a sublane-aligned row count (or the full image) are
    allowed (BlockSpec (8,128) rule); among fitting candidates an even total
    tile count is preferred so a 'parallel' grid splits evenly across v7x's
    two TensorCores.
    """
    cands = [d for d in range(1, h + 1)
             if h % d == 0 and (d == h or (d * w_pad) % 8 == 0)]
    fitting = [d for d in cands
               if d * w_pad * bytes_per_row <= budget and d * w_pad <= _ROW_CAP]
    if not fitting:
        return min(cands)
    best = max(fitting)
    if (n_images * (h // best)) % 2 == 1:
        even = [d for d in fitting if (n_images * (h // d)) % 2 == 0 and 2 * d >= best]
        if even:
            best = max(even)
    return best


# --------------------------------------------------------------------------- #
# Kernels
# --------------------------------------------------------------------------- #
def _conv1_kernel(xcol_ref, w_ref, y_ref, st_ref, *, w_pad, w_valid):
    """First conv: ONE MXU matmul over the tap-packed im2col block + BN partial sums.

    xcol_ref: (1, L, 9*Cin)   bf16   wrapper-built im2col rows (halo absorbed)
    w_ref:    (9*Cin, Cp_out) bf16   tap-packed weights (resident)
    y_ref:    (1, L, Cp_out)  bf16   un-normalized conv output
    st_ref:   (1, 1, 2, Cp_out) f32  per-tile [sum, sum-of-squares]
    """
    acc = jnp.dot(xcol_ref[0], w_ref[...], preferred_element_type=jnp.float32)
    col = lax.broadcasted_iota(jnp.int32, (acc.shape[0], 1), 0) % w_pad
    accm = jnp.where(col < w_valid, acc, 0.0)          # mask junk width columns
    st = jnp.concatenate([jnp.sum(accm, axis=0, keepdims=True),
                          jnp.sum(accm * accm, axis=0, keepdims=True)], axis=0)
    st_ref[...] = st[None, None]
    y_ref[0] = acc.astype(y_ref.dtype)


def _fused_conv2_kernel(yt_ref, sc_ref, sh_ref, w_ref, y_ref, st_ref,
                        xn_ref, xcol_ref, *, w_pad, w_valid, l_out, l_in,
                        rows_total, cp_in):
    """Fused BN1+ReLU (with conv zero-pad masking) + second 3x3 conv + BN partial sums.

    yt_ref:  (1, 1, l_in, Cp_in) bf16  halo'd un-normalized conv-1 output tile
    sc/sh:   (1, Cp_in) f32            BN1 scale / shift (resident)
    w_ref:   (9*Cp_in, Cp_out) bf16    tap-packed conv-2 weights (resident)
    y_ref:   (1, l_out, Cp_out) bf16   un-normalized conv-2 output
    st_ref:  (1, 1, 2, Cp_out) f32     per-tile BN2 partial sums
    xn_ref:  (l_in, Cp_in) bf16        scratch: normalized+masked input
    xcol_ref:(l_out, 9*Cp_in) bf16     scratch: im2col operand (MXU sums the taps)
    """
    t = pl.program_id(1)
    j = lax.broadcasted_iota(jnp.int32, (l_in, 1), 0)
    gy = t * l_out + j - (w_pad + 1)        # global flattened row in conv-1 output space
    valid = (gy >= 0) & (gy < rows_total) & (gy % w_pad < w_valid)

    xn = jnp.maximum(yt_ref[0, 0].astype(jnp.float32) * sc_ref[...] + sh_ref[...], 0.0)
    xn_ref[...] = jnp.where(valid, xn, 0.0).astype(xn_ref.dtype)

    # Lane-aligned im2col: column offsets are multiples of 128, so the 9 taps
    # are accumulated by the MXU over K instead of 9 f32 RMW passes on y_ref.
    for tap in range(9):
        ky, kx = divmod(tap, 3)
        off = ky * w_pad + kx
        xcol_ref[:, tap * cp_in:(tap + 1) * cp_in] = xn_ref[pl.ds(off, l_out), :]

    acc = jnp.dot(xcol_ref[...], w_ref[...], preferred_element_type=jnp.float32)
    col = lax.broadcasted_iota(jnp.int32, (l_out, 1), 0) % w_pad
    accm = jnp.where(col < w_valid, acc, 0.0)
    st = jnp.concatenate([jnp.sum(accm, axis=0, keepdims=True),
                          jnp.sum(accm * accm, axis=0, keepdims=True)], axis=0)
    st_ref[...] = st[None, None]
    y_ref[0] = acc.astype(y_ref.dtype)


def _bn_relu_kernel(y_ref, sc_ref, sh_ref, o_ref):
    """Final BN + ReLU: y*scale + shift, ReLU (lane-dense, large blocks)."""
    o_ref[...] = jnp.maximum(
        y_ref[...].astype(jnp.float32) * sc_ref[...] + sh_ref[...], 0.0
    ).astype(o_ref.dtype)


# --------------------------------------------------------------------------- #
# Wrapper
# --------------------------------------------------------------------------- #
def _bn_scale_shift(stats, gamma, beta, count, cp):
    """Finalize training-mode BN stats (tiny per-channel reduction, plain JAX)."""
    # TODO(synk): for very large N*H*W switch to per-tile mean-shifted sums to
    # avoid E[y^2]-E[y]^2 cancellation.
    s = jnp.sum(stats, axis=(0, 1))                      # (2, Cp)
    mean = s[0] / count
    var = jnp.maximum(s[1] / count - mean * mean, 0.0)
    inv = lax.rsqrt(var + BN_EPS)
    g = jnp.pad(gamma.astype(jnp.float32), (0, cp - gamma.shape[0]))
    b = jnp.pad(beta.astype(jnp.float32), (0, cp - beta.shape[0]))
    return (g * inv).reshape(1, cp), (b - mean * g * inv).reshape(1, cp)


@jax.jit
def double_conv(x_nchw, w1_hwio, g1, b1, w2_hwio, g2, b2):
    """DoubleConv forward: NCHW in, NCHW out (training-mode BatchNorm stats)."""
    N, Cin, H, W = x_nchw.shape
    Cmid, Cout = w1_hwio.shape[3], w2_hwio.shape[3]
    Cp_m = _round_up(Cmid, LANE)
    Cp_o = _round_up(Cout, LANE)
    w_pad = W + 2
    rows = H * w_pad                                     # flattened output rows / image
    count = jnp.float32(N * H * W)
    vmem_limit, budget = _vmem_budget()

    def cparams():
        return pltpu.CompilerParams(
            dimension_semantics=("parallel", "parallel"),
            vmem_limit_bytes=vmem_limit)

    x = jnp.transpose(x_nchw, (0, 2, 3, 1)).astype(jnp.float32)   # NHWC

    # ----- block 1: conv via wrapper tap-packed im2col (K = 9*Cin, no 128 pad) -
    k1 = 9 * Cin
    k1p = _round_up(k1, 8)
    xp = jnp.pad(x, ((0, 0), (1, 1), (1, 1), (0, 0))).astype(jnp.bfloat16)
    flat = jnp.pad(xp.reshape(N, (H + 2) * w_pad, Cin), ((0, 0), (0, 2), (0, 0)))
    xcol = jnp.concatenate(
        [flat[:, ky * w_pad + kx: ky * w_pad + kx + rows, :]
         for ky in range(3) for kx in range(3)], axis=-1)          # (N, rows, 9*Cin)
    xcol = jnp.pad(xcol, ((0, 0), (0, 0), (0, k1p - k1)))
    w1p = jnp.pad(w1_hwio.reshape(k1, Cmid),
                  ((0, k1p - k1), (0, Cp_m - Cmid))).astype(jnp.bfloat16)

    th1 = _pick_tile_h(H, w_pad, N, 4 * k1p + 8 * Cp_m, budget)
    lo1, t1 = th1 * w_pad, H // th1
    y1, st1 = pl.pallas_call(
        functools.partial(_conv1_kernel, w_pad=w_pad, w_valid=W),
        out_shape=(jax.ShapeDtypeStruct((N, rows, Cp_m), jnp.bfloat16),
                   jax.ShapeDtypeStruct((N, t1, 2, Cp_m), jnp.float32)),
        grid=(N, t1),
        in_specs=[pl.BlockSpec((1, lo1, k1p), lambda n, t: (n, t, 0)),
                  pl.BlockSpec((k1p, Cp_m), lambda n, t: (0, 0))],
        out_specs=(pl.BlockSpec((1, lo1, Cp_m), lambda n, t: (n, t, 0)),
                   pl.BlockSpec((1, 1, 2, Cp_m), lambda n, t: (n, t, 0, 0))),
        compiler_params=cparams(),
    )(xcol, w1p)
    scale1, shift1 = _bn_scale_shift(st1, g1, b1, count, Cp_m)

    # ----- block 2: fused BN1+ReLU + conv (single MXU matmul per tile) --------
    w2p = jnp.pad(w2_hwio, ((0, 0), (0, 0), (0, Cp_m - Cmid), (0, Cp_o - Cout)))
    w2p = w2p.reshape(9 * Cp_m, Cp_o).astype(jnp.bfloat16)
    fixed = 9 * Cp_m * Cp_o * 2 * 2                      # resident weight block
    th2 = _pick_tile_h(H, w_pad, N, 28 * Cp_m + 8 * Cp_o,
                       max(budget - fixed, budget // 4))
    lo2, t2 = th2 * w_pad, H // th2
    li2 = lo2 + 2 * (w_pad + 1)

    # TODO(synk): replace this pad+stack (one extra bf16 copy of y1) with a
    # manual double-buffered make_async_copy from a pl.ANY ref so the halo'd
    # windows are DMA'd straight out of the un-padded y1.
    y1p = jnp.pad(y1, ((0, 0), (w_pad + 1, w_pad + 1), (0, 0)))
    tiles = jnp.stack([y1p[:, t * lo2: t * lo2 + li2, :] for t in range(t2)], axis=1)

    y2, st2 = pl.pallas_call(
        functools.partial(_fused_conv2_kernel, w_pad=w_pad, w_valid=W, l_out=lo2,
                          l_in=li2, rows_total=rows, cp_in=Cp_m),
        out_shape=(jax.ShapeDtypeStruct((N, rows, Cp_o), jnp.bfloat16),
                   jax.ShapeDtypeStruct((N, t2, 2, Cp_o), jnp.float32)),
        grid=(N, t2),
        in_specs=[pl.BlockSpec((1, 1, li2, Cp_m), lambda n, t: (n, t, 0, 0)),
                  pl.BlockSpec((1, Cp_m), lambda n, t: (0, 0)),
                  pl.BlockSpec((1, Cp_m), lambda n, t: (0, 0)),
                  pl.BlockSpec((9 * Cp_m, Cp_o), lambda n, t: (0, 0))],
        out_specs=(pl.BlockSpec((1, lo2, Cp_o), lambda n, t: (n, t, 0)),
                   pl.BlockSpec((1, 1, 2, Cp_o), lambda n, t: (n, t, 0, 0))),
        scratch_shapes=[pltpu.VMEM((li2, Cp_m), jnp.bfloat16),
                        pltpu.VMEM((lo2, 9 * Cp_m), jnp.bfloat16)],
        compiler_params=cparams(),
    )(tiles, scale1, shift1, w2p)
    scale2, shift2 = _bn_scale_shift(st2, g2, b2, count, Cp_o)

    # ----- final BN2 + ReLU (standalone, large lane-dense blocks) -------------
    th3 = _pick_tile_h(H, w_pad, N, 12 * Cp_o, budget)
    lo3, t3 = th3 * w_pad, H // th3
    out = pl.pallas_call(
        _bn_relu_kernel,
        out_shape=jax.ShapeDtypeStruct((N, rows, Cp_o), jnp.float32),
        grid=(N, t3),
        in_specs=[pl.BlockSpec((1, lo3, Cp_o), lambda n, t: (n, t, 0)),
                  pl.BlockSpec((1, Cp_o), lambda n, t: (0, 0)),
                  pl.BlockSpec((1, Cp_o), lambda n, t: (0, 0))],
        out_specs=pl.BlockSpec((1, lo3, Cp_o), lambda n, t: (n, t, 0)),
        compiler_params=cparams(),
    )(y2, scale2, shift2)

    # crop the junk width columns / padded channels and go back to NCHW (XLA pass)
    out = out.reshape(N, H, w_pad, Cp_o)[:, :, :W, :Cout]
    return jnp.transpose(out, (0, 3, 1, 2))


# --------------------------------------------------------------------------- #
# Reference + test harness
# --------------------------------------------------------------------------- #
def _reference_double_conv(x_nchw, w1_hwio, g1, b1, w2_hwio, g2, b2):
    """Pure-JAX f32 reference (NHWC conv + training-mode BN + ReLU)."""
    def block(x_nhwc, w_hwio, g, b):
        y = lax.conv_general_dilated(
            x_nhwc, w_hwio, window_strides=(1, 1), padding="SAME",
            dimension_numbers=("NHWC", "HWIO", "NHWC"),
            precision=lax.Precision.HIGHEST)
        mean = jnp.mean(y, axis=(0, 1, 2), keepdims=True)
        var = jnp.mean((y - mean) ** 2, axis=(0, 1, 2), keepdims=True)
        return jnp.maximum((y - mean) * lax.rsqrt(var + BN_EPS) * g + b, 0.0)

    x = jnp.transpose(x_nchw, (0, 2, 3, 1)).astype(jnp.float32)
    h1 = block(x, w1_hwio, g1, b1)
    h2 = block(h1, w2_hwio, g2, b2)
    return jnp.transpose(h2, (0, 3, 1, 2))


def _run_case(key, n, cin, h, w, cmid, cout):
    ks = jax.random.split(key, 7)
    bound1 = 1.0 / (cin * 9) ** 0.5
    bound2 = 1.0 / (cmid * 9) ** 0.5
    w1 = jax.random.uniform(ks[0], (3, 3, cin, cmid), jnp.float32, -bound1, bound1)
    w2 = jax.random.uniform(ks[1], (3, 3, cmid, cout), jnp.float32, -bound2, bound2)
    g1 = 1.0 + 0.1 * jax.random.normal(ks[2], (cmid,), jnp.float32)
    b1 = 0.1 * jax.random.normal(ks[3], (cmid,), jnp.float32)
    g2 = 1.0 + 0.1 * jax.random.normal(ks[4], (cout,), jnp.float32)
    b2 = 0.1 * jax.random.normal(ks[5], (cout,), jnp.float32)
    x = jax.random.normal(ks[6], (n, cin, h, w), jnp.float32)

    out = jax.block_until_ready(double_conv(x, w1, g1, b1, w2, g2, b2))
    ref = _reference_double_conv(x, w1, g1, b1, w2, g2, b2)

    assert out.shape == (n, cout, h, w), out.shape
    err = jnp.abs(out - ref)
    # bf16 MXU operands + bf16 intermediates through two conv+BN layers:
    # loose max-error, tight mean-error.
    assert float(jnp.mean(err)) < 1.5e-2, float(jnp.mean(err))
    assert jnp.allclose(out, ref, atol=5e-2, rtol=5e-2), float(jnp.max(err))


if __name__ == "__main__":
    key = jax.random.PRNGKey(0)
    k1, k2 = jax.random.split(key)
    # Required toy shape (single row-tile per image).
    _run_case(k1, n=2, cin=4, h=16, w=16, cmid=8, cout=8)
    # Larger case exercising the multi-row-tile grid, halo'd block-2 tiles and
    # the partial-sum BN reduction across tiles.
    _run_case(k2, n=1, cin=3, h=64, w=32, cmid=8, cout=5)
    print("KERNEL_OK")
</pallas_src>

<mosaic_0001>
module attributes {stable_mosaic.version = 11 : i64} {
  func.func @_conv1_kernel(%arg0: i32, %arg1: i32, %arg2: memref<1x288x40xbf16, #tpu.memory_space<vmem>>, %arg3: memref<40x128xbf16, #tpu.memory_space<vmem>>, %arg4: memref<1x288x128xbf16, #tpu.memory_space<vmem>>, %arg5: memref<1x1x2x128xf32, #tpu.memory_space<vmem>>) attributes {dimension_semantics = [#tpu.dimension_semantics<parallel>, #tpu.dimension_semantics<parallel>], iteration_bounds = array<i64: 2, 1>, scalar_prefetch = 0 : i64, scratch_operands = 0 : i64, tpu.core_type = #tpu.core_type<tc>, window_params = [{transform_indices = @transform_0, window_bounds = array<i64: 1, 288, 40>}, {pipeline_mode = #tpu.pipeline_mode<synchronous>, transform_indices = @transform_1, window_bounds = array<i64: 40, 128>}, {transform_indices = @transform_2, window_bounds = array<i64: 1, 288, 128>}, {transform_indices = @transform_3, window_bounds = array<i64: 1, 1, 2, 128>}]} {
    %c0 = arith.constant 0 : index
    %c0_0 = arith.constant 0 : index
    %c0_1 = arith.constant 0 : index
    %0 = vector.load %arg2[%c0, %c0_0, %c0_1] : memref<1x288x40xbf16, #tpu.memory_space<vmem>>, vector<1x288x40xbf16>
    %1 = vector.shape_cast %0 : vector<1x288x40xbf16> to vector<288x40xbf16>
    %c0_2 = arith.constant 0 : index
    %c0_3 = arith.constant 0 : index
    %2 = vector.load %arg3[%c0_2, %c0_3] : memref<40x128xbf16, #tpu.memory_space<vmem>>, vector<40x128xbf16>
    %cst = arith.constant dense<0.000000e+00> : vector<288x128xf32>
    %3 = tpu.matmul %1, %2, %cst {dimension_numbers = #tpu.dot_dimension_numbers<[1], [0], [0], [1], [0, 0, 1, 1], [], []>} : vector<288x40xbf16>, vector<40x128xbf16>, vector<288x128xf32> -> vector<288x128xf32>
    %4 = tpu.iota {dimensions = array<i32: 0>} : vector<288x1xi32>
    %c18_i32 = arith.constant 18 : i32
    %c0_i32 = arith.constant 0 : i32
    %5 = arith.cmpi eq, %c18_i32, %c0_i32 : i32
    %c1_i32 = arith.constant 1 : i32
    %6 = arith.select %5, %c1_i32, %c18_i32 : i32
    %7 = vector.broadcast %6 : i32 to vector<288x1xi32>
    %8 = arith.remsi %4, %7 : vector<288x1xi32>
    %c0_i32_4 = arith.constant 0 : i32
    %9 = vector.broadcast %c0_i32_4 : i32 to vector<288x1xi32>
    %10 = arith.cmpi ne, %8, %9 : vector<288x1xi32>
    %c0_i32_5 = arith.constant 0 : i32
    %11 = vector.broadcast %c0_i32_5 : i32 to vector<288x1xi32>
    %12 = arith.cmpi slt, %8, %11 : vector<288x1xi32>
    %c0_i32_6 = arith.constant 0 : i32
    %13 = arith.cmpi slt, %6, %c0_i32_6 : i32
    %14 = vector.broadcast %13 : i1 to vector<288x1xi1>
    %15 = vector.broadcast %14 : vector<288x1xi1> to vector<288x1xi1>
    %16 = arith.xori %12, %15 : vector<288x1xi1>
    %17 = arith.andi %16, %10 : vector<288x1xi1>
    %18 = vector.broadcast %6 : i32 to vector<288x1xi32>
    %19 = arith.addi %8, %18 : vector<288x1xi32>
    %20 = arith.select %17, %19, %8 : vector<288x1xi1>, vector<288x1xi32>
    %c16_i32 = arith.constant 16 : i32
    %21 = vector.broadcast %c16_i32 : i32 to vector<288x1xi32>
    %22 = arith.cmpi slt, %20, %21 : vector<288x1xi32>
    %cst_7 = arith.constant 0.000000e+00 : f32
    %23 = vector.shape_cast %22 : vector<288x1xi1> to vector<288x1xi1>
    %24 = vector.broadcast %23 : vector<288x1xi1> to vector<288x128xi1>
    %25 = vector.broadcast %cst_7 : f32 to vector<288x128xf32>
    %26 = arith.select %24, %3, %25 : vector<288x128xi1>, vector<288x128xf32>
    %cst_8 = arith.constant dense<0.000000e+00> : vector<128xf32>
    %27 = vector.multi_reduction <add>, %26, %cst_8 [0] : vector<288x128xf32> to vector<128xf32>
    %28 = vector.shape_cast %27 : vector<128xf32> to vector<1x128xf32>
    %29 = arith.mulf %26, %26 : vector<288x128xf32>
    %cst_9 = arith.constant dense<0.000000e+00> : vector<128xf32>
    %30 = vector.multi_reduction <add>, %29, %cst_9 [0] : vector<288x128xf32> to vector<128xf32>
    %31 = vector.shape_cast %30 : vector<128xf32> to vector<1x128xf32>
    %32 = tpu.concatenate %28, %31 in 0 : vector<1x128xf32>, vector<1x128xf32> -> vector<2x128xf32>
    %33 = vector.shape_cast %32 : vector<2x128xf32> to vector<1x1x2x128xf32>
    %c0_10 = arith.constant 0 : index
    %c0_11 = arith.constant 0 : index
    %c0_12 = arith.constant 0 : index
    %c0_13 = arith.constant 0 : index
    %34 = vector.load %arg5[%c0_10, %c0_11, %c0_12, %c0_13] : memref<1x1x2x128xf32, #tpu.memory_space<vmem>>, vector<1x1x2x128xf32>
    tpu.vector_store %arg5[%c0_10, %c0_11, %c0_12, %c0_13], %33 {strides = array<i32>} : memref<1x1x2x128xf32, #tpu.memory_space<vmem>>, vector<1x1x2x128xf32>,
    %35 = arith.truncf %3 : vector<288x128xf32> to vector<288x128xbf16>
    %c0_14 = arith.constant 0 : index
    %c0_15 = arith.constant 0 : index
    %c0_16 = arith.constant 0 : index
    %36 = vector.load %arg4[%c0_14, %c0_15, %c0_16] : memref<1x288x128xbf16, #tpu.memory_space<vmem>>, vector<1x288x128xbf16>
    %37 = vector.shape_cast %36 : vector<1x288x128xbf16> to vector<288x128xbf16>
    %38 = vector.shape_cast %35 : vector<288x128xbf16> to vector<1x288x128xbf16>
    tpu.vector_store %arg4[%c0_14, %c0_15, %c0_16], %38 {strides = array<i32>} : memref<1x288x128xbf16, #tpu.memory_space<vmem>>, vector<1x288x128xbf16>,
    return
  }
  func.func @transform_0(%arg0: i32, %arg1: i32) -> (i32, i32, i32) {
    %c0_i32 = arith.constant 0 : i32
    %c0_i32_0 = arith.constant 0 : i32
    return %arg0, %arg1, %c0_i32 : i32, i32, i32
  }
  func.func @transform_1(%arg0: i32, %arg1: i32) -> (i32, i32) {
    %c0_i32 = arith.constant 0 : i32
    %c0_i32_0 = arith.constant 0 : i32
    %c0_i32_1 = arith.constant 0 : i32
    return %c0_i32, %c0_i32_0 : i32, i32
  }
  func.func @transform_2(%arg0: i32, %arg1: i32) -> (i32, i32, i32) {
    %c0_i32 = arith.constant 0 : i32
    %c0_i32_0 = arith.constant 0 : i32
    return %arg0, %arg1, %c0_i32 : i32, i32, i32
  }
  func.func @transform_3(%arg0: i32, %arg1: i32) -> (i32, i32, i32, i32) {
    %c0_i32 = arith.constant 0 : i32
    %c0_i32_0 = arith.constant 0 : i32
    %c0_i32_1 = arith.constant 0 : i32
    return %arg0, %arg1, %c0_i32, %c0_i32_0 : i32, i32, i32, i32
  }
}

module attributes {stable_mosaic.version = 11 : i64} {
  func.func @_fused_conv2_kernel(%arg0: i32, %arg1: i32, %arg2: memref<1x1x326x128xbf16, #tpu.memory_space<vmem>>, %arg3: memref<1x128xf32, #tpu.memory_space<vmem>>, %arg4: memref<1x128xf32, #tpu.memory_space<vmem>>, %arg5: memref<1152x128xbf16, #tpu.memory_space<vmem>>, %arg6: memref<1x288x128xbf16, #tpu.memory_space<vmem>>, %arg7: memref<1x1x2x128xf32, #tpu.memory_space<vmem>>, %arg8: memref<326x128xbf16, #tpu.memory_space<vmem>>, %arg9: memref<288x1152xbf16, #tpu.memory_space<vmem>>) attributes {dimension_semantics = [#tpu.dimension_semantics<parallel>, #tpu.dimension_semantics<parallel>], iteration_bounds = array<i64: 2, 1>, scalar_prefetch = 0 : i64, scratch_operands = 2 : i64, tpu.core_type = #tpu.core_type<tc>, window_params = [{transform_indices = @transform_0, window_bounds = array<i64: 1, 1, 326, 128>}, {pipeline_mode = #tpu.pipeline_mode<synchronous>, transform_indices = @transform_1, window_bounds = array<i64: 1, 128>}, {pipeline_mode = #tpu.pipeline_mode<synchronous>, transform_indices = @transform_2, window_bounds = array<i64: 1, 128>}, {pipeline_mode = #tpu.pipeline_mode<synchronous>, transform_indices = @transform_3, window_bounds = array<i64: 1152, 128>}, {transform_indices = @transform_4, window_bounds = array<i64: 1, 288, 128>}, {transform_indices = @transform_5, window_bounds = array<i64: 1, 1, 2, 128>}]} {
    %0 = tpu.iota {dimensions = array<i32: 0>} : vector<326x1xi32>
    %c288_i32 = arith.constant 288 : i32
    %1 = arith.muli %arg1, %c288_i32 : i32
    %2 = vector.broadcast %1 : i32 to vector<326x1xi32>
    %3 = arith.addi %2, %0 : vector<326x1xi32>
    %c19_i32 = arith.constant 19 : i32
    %4 = vector.broadcast %c19_i32 : i32 to vector<326x1xi32>
    %5 = arith.subi %3, %4 : vector<326x1xi32>
    %c0_i32 = arith.constant 0 : i32
    %6 = vector.broadcast %c0_i32 : i32 to vector<326x1xi32>
    %7 = arith.cmpi sge, %5, %6 : vector<326x1xi32>
    %c288_i32_0 = arith.constant 288 : i32
    %8 = vector.broadcast %c288_i32_0 : i32 to vector<326x1xi32>
    %9 = arith.cmpi slt, %5, %8 : vector<326x1xi32>
    %10 = arith.andi %7, %9 : vector<326x1xi1>
    %c18_i32 = arith.constant 18 : i32
    %c0_i32_1 = arith.constant 0 : i32
    %11 = arith.cmpi eq, %c18_i32, %c0_i32_1 : i32
    %c1_i32 = arith.constant 1 : i32
    %12 = arith.select %11, %c1_i32, %c18_i32 : i32
    %13 = vector.broadcast %12 : i32 to vector<326x1xi32>
    %14 = arith.remsi %5, %13 : vector<326x1xi32>
    %c0_i32_2 = arith.constant 0 : i32
    %15 = vector.broadcast %c0_i32_2 : i32 to vector<326x1xi32>
    %16 = arith.cmpi ne, %14, %15 : vector<326x1xi32>
    %c0_i32_3 = arith.constant 0 : i32
    %17 = vector.broadcast %c0_i32_3 : i32 to vector<326x1xi32>
    %18 = arith.cmpi slt, %14, %17 : vector<326x1xi32>
    %c0_i32_4 = arith.constant 0 : i32
    %19 = arith.cmpi slt, %12, %c0_i32_4 : i32
    %20 = vector.broadcast %19 : i1 to vector<326x1xi1>
    %21 = vector.broadcast %20 : vector<326x1xi1> to vector<326x1xi1>
    %22 = arith.xori %18, %21 : vector<326x1xi1>
    %23 = arith.andi %22, %16 : vector<326x1xi1>
    %24 = vector.broadcast %12 : i32 to vector<326x1xi32>
    %25 = arith.addi %14, %24 : vector<326x1xi32>
    %26 = arith.select %23, %25, %14 : vector<326x1xi1>, vector<326x1xi32>
    %c16_i32 = arith.constant 16 : i32
    %27 = vector.broadcast %c16_i32 : i32 to vector<326x1xi32>
    %28 = arith.cmpi slt, %26, %27 : vector<326x1xi32>
    %29 = arith.andi %10, %28 : vector<326x1xi1>
    %c0 = arith.constant 0 : index
    %c0_5 = arith.constant 0 : index
    %c0_6 = arith.constant 0 : index
    %c0_7 = arith.constant 0 : index
    %30 = vector.load %arg2[%c0, %c0_5, %c0_6, %c0_7] : memref<1x1x326x128xbf16, #tpu.memory_space<vmem>>, vector<1x1x326x128xbf16>
    %31 = vector.shape_cast %30 : vector<1x1x326x128xbf16> to vector<326x128xbf16>
    %32 = arith.extf %31 : vector<326x128xbf16> to vector<326x128xf32>
    %c0_8 = arith.constant 0 : index
    %c0_9 = arith.constant 0 : index
    %33 = vector.load %arg3[%c0_8, %c0_9] : memref<1x128xf32, #tpu.memory_space<vmem>>, vector<1x128xf32>
    %34 = vector.broadcast %33 : vector<1x128xf32> to vector<326x128xf32>
    %35 = arith.mulf %32, %34 : vector<326x128xf32>
    %c0_10 = arith.constant 0 : index
    %c0_11 = arith.constant 0 : index
    %36 = vector.load %arg4[%c0_10, %c0_11] : memref<1x128xf32, #tpu.memory_space<vmem>>, vector<1x128xf32>
    %37 = vector.broadcast %36 : vector<1x128xf32> to vector<326x128xf32>
    %38 = arith.addf %35, %37 : vector<326x128xf32>
    %cst = arith.constant 0.000000e+00 : f32
    %39 = vector.broadcast %cst : f32 to vector<326x128xf32>
    %40 = arith.maximumf %38, %39 : vector<326x128xf32>
    %cst_12 = arith.constant 0.000000e+00 : f32
    %41 = vector.shape_cast %29 : vector<326x1xi1> to vector<326x1xi1>
    %42 = vector.broadcast %41 : vector<326x1xi1> to vector<326x128xi1>
    %43 = vector.broadcast %cst_12 : f32 to vector<326x128xf32>
    %44 = arith.select %42, %40, %43 : vector<326x128xi1>, vector<326x128xf32>
    %45 = arith.truncf %44 : vector<326x128xf32> to vector<326x128xbf16>
    %c0_13 = arith.constant 0 : index
    %c0_14 = arith.constant 0 : index
    %46 = vector.load %arg8[%c0_13, %c0_14] : memref<326x128xbf16, #tpu.memory_space<vmem>>, vector<326x128xbf16>
    tpu.vector_store %arg8[%c0_13, %c0_14], %45 {strides = array<i32>} : memref<326x128xbf16, #tpu.memory_space<vmem>>, vector<326x128xbf16>,
    %c0_15 = arith.constant 0 : index
    %c0_16 = arith.constant 0 : index
    %47 = vector.load %arg8[%c0_15, %c0_16] : memref<326x128xbf16, #tpu.memory_space<vmem>>, vector<288x128xbf16>
    %c0_17 = arith.constant 0 : index
    %c0_18 = arith.constant 0 : index
    %48 = vector.load %arg9[%c0_17, %c0_18] : memref<288x1152xbf16, #tpu.memory_space<vmem>>, vector<288x128xbf16>
    tpu.vector_store %arg9[%c0_17, %c0_18], %47 {strides = array<i32>} : memref<288x1152xbf16, #tpu.memory_space<vmem>>, vector<288x128xbf16>,
    %c1 = arith.constant 1 : index
    %c0_19 = arith.constant 0 : index
    %49 = vector.load %arg8[%c1, %c0_19] : memref<326x128xbf16, #tpu.memory_space<vmem>>, vector<288x128xbf16>
    %c0_20 = arith.constant 0 : index
    %c128 = arith.constant 128 : index
    %50 = vector.load %arg9[%c0_20, %c128] : memref<288x1152xbf16, #tpu.memory_space<vmem>>, vector<288x128xbf16>
    tpu.vector_store %arg9[%c0_20, %c128], %49 {strides = array<i32>} : memref<288x1152xbf16, #tpu.memory_space<vmem>>, vector<288x128xbf16>,
    %c2 = arith.constant 2 : index
    %c0_21 = arith.constant 0 : index
    %51 = vector.load %arg8[%c2, %c0_21] : memref<326x128xbf16, #tpu.memory_space<vmem>>, vector<288x128xbf16>
    %c0_22 = arith.constant 0 : index
    %c256 = arith.constant 256 : index
    %52 = vector.load %arg9[%c0_22, %c256] : memref<288x1152xbf16, #tpu.memory_space<vmem>>, vector<288x128xbf16>
    tpu.vector_store %arg9[%c0_22, %c256], %51 {strides = array<i32>} : memref<288x1152xbf16, #tpu.memory_space<vmem>>, vector<288x128xbf16>,
    %c18 = arith.constant 18 : index
    %c0_23 = arith.constant 0 : index
    %53 = vector.load %arg8[%c18, %c0_23] : memref<326x128xbf16, #tpu.memory_space<vmem>>, vector<288x128xbf16>
    %c0_24 = arith.constant 0 : index
    %c384 = arith.constant 384 : index
    %54 = vector.load %arg9[%c0_24, %c384] : memref<288x1152xbf16, #tpu.memory_space<vmem>>, vector<288x128xbf16>
    tpu.vector_store %arg9[%c0_24, %c384], %53 {strides = array<i32>} : memref<288x1152xbf16, #tpu.memory_space<vmem>>, vector<288x128xbf16>,
    %c19 = arith.constant 19 : index
    %c0_25 = arith.constant 0 : index
    %55 = vector.load %arg8[%c19, %c0_25] : memref<326x128xbf16, #tpu.memory_space<vmem>>, vector<288x128xbf16>
    %c0_26 = arith.constant 0 : index
    %c512 = arith.constant 512 : index
    %56 = vector.load %arg9[%c0_26, %c512] : memref<288x1152xbf16, #tpu.memory_space<vmem>>, vector<288x128xbf16>
    tpu.vector_store %arg9[%c0_26, %c512], %55 {strides = array<i32>} : memref<288x1152xbf16, #tpu.memory_space<vmem>>, vector<288x128xbf16>,
    %c20 = arith.constant 20 : index
    %c0_27 = arith.constant 0 : index
    %57 = vector.load %arg8[%c20, %c0_27] : memref<326x128xbf16, #tpu.memory_space<vmem>>, vector<288x128xbf16>
    %c0_28 = arith.constant 0 : index
    %c640 = arith.constant 640 : index
    %58 = vector.load %arg9[%c0_28, %c640] : memref<288x1152xbf16, #tpu.memory_space<vmem>>, vector<288x128xbf16>
    tpu.vector_store %arg9[%c0_28, %c640], %57 {strides = array<i32>} : memref<288x1152xbf16, #tpu.memory_space<vmem>>, vector<288x128xbf16>,
    %c36 = arith.constant 36 : index
    %c0_29 = arith.constant 0 : index
    %59 = vector.load %arg8[%c36, %c0_29] : memref<326x128xbf16, #tpu.memory_space<vmem>>, vector<288x128xbf16>
    %c0_30 = arith.constant 0 : index
    %c768 = arith.constant 768 : index
    %60 = vector.load %arg9[%c0_30, %c768] : memref<288x1152xbf16, #tpu.memory_space<vmem>>, vector<288x128xbf16>
    tpu.vector_store %arg9[%c0_30, %c768], %59 {strides = array<i32>} : memref<288x1152xbf16, #tpu.memory_space<vmem>>, vector<288x128xbf16>,
    %c37 = arith.constant 37 : index
    %c0_31 = arith.constant 0 : index
    %61 = vector.load %arg8[%c37, %c0_31] : memref<326x128xbf16, #tpu.memory_space<vmem>>, vector<288x128xbf16>
    %c0_32 = arith.constant 0 : index
    %c896 = arith.constant 896 : index
    %62 = vector.load %arg9[%c0_32, %c896] : memref<288x1152xbf16, #tpu.memory_space<vmem>>, vector<288x128xbf16>
    tpu.vector_store %arg9[%c0_32, %c896], %61 {strides = array<i32>} : memref<288x1152xbf16, #tpu.memory_space<vmem>>, vector<288x128xbf16>,
    %c38 = arith.constant 38 : index
    %c0_33 = arith.constant 0 : index
    %63 = vector.load %arg8[%c38, %c0_33] : memref<326x128xbf16, #tpu.memory_space<vmem>>, vector<288x128xbf16>
    %c0_34 = arith.constant 0 : index
    %c1024 = arith.constant 1024 : index
    %64 = vector.load %arg9[%c0_34, %c1024] : memref<288x1152xbf16, #tpu.memory_space<vmem>>, vector<288x128xbf16>
    tpu.vector_store %arg9[%c0_34, %c1024], %63 {strides = array<i32>} : memref<288x1152xbf16, #tpu.memory_space<vmem>>, vector<288x128xbf16>,
    %c0_35 = arith.constant 0 : index
    %c0_36 = arith.constant 0 : index
    %65 = vector.load %arg9[%c0_35, %c0_36] : memref<288x1152xbf16, #tpu.memory_space<vmem>>, vector<288x1152xbf16>
    %c0_37 = arith.constant 0 : index
    %c0_38 = arith.constant 0 : index
    %66 = vector.load %arg5[%c0_37, %c0_38] : memref<1152x128xbf16, #tpu.memory_space<vmem>>, vector<1152x128xbf16>
    %cst_39 = arith.constant dense<0.000000e+00> : vector<288x128xf32>
    %67 = tpu.matmul %65, %66, %cst_39 {dimension_numbers = #tpu.dot_dimension_numbers<[1], [0], [0], [1], [0, 0, 1, 1], [], []>} : vector<288x1152xbf16>, vector<1152x128xbf16>, vector<288x128xf32> -> vector<288x128xf32>
    %68 = tpu.iota {dimensions = array<i32: 0>} : vector<288x1xi32>
    %c18_i32_40 = arith.constant 18 : i32
    %c0_i32_41 = arith.constant 0 : i32
    %69 = arith.cmpi eq, %c18_i32_40, %c0_i32_41 : i32
    %c1_i32_42 = arith.constant 1 : i32
    %70 = arith.select %69, %c1_i32_42, %c18_i32_40 : i32
    %71 = vector.broadcast %70 : i32 to vector<288x1xi32>
    %72 = arith.remsi %68, %71 : vector<288x1xi32>
    %c0_i32_43 = arith.constant 0 : i32
    %73 = vector.broadcast %c0_i32_43 : i32 to vector<288x1xi32>
    %74 = arith.cmpi ne, %72, %73 : vector<288x1xi32>
    %c0_i32_44 = arith.constant 0 : i32
    %75 = vector.broadcast %c0_i32_44 : i32 to vector<288x1xi32>
    %76 = arith.cmpi slt, %72, %75 : vector<288x1xi32>
    %c0_i32_45 = arith.constant 0 : i32
    %77 = arith.cmpi slt, %70, %c0_i32_45 : i32
    %78 = vector.broadcast %77 : i1 to vector<288x1xi1>
    %79 = vector.broadcast %78 : vector<288x1xi1> to vector<288x1xi1>
    %80 = arith.xori %76, %79 : vector<288x1xi1>
    %81 = arith.andi %80, %74 : vector<288x1xi1>
    %82 = vector.broadcast %70 : i32 to vector<288x1xi32>
    %83 = arith.addi %72, %82 : vector<288x1xi32>
    %84 = arith.select %81, %83, %72 : vector<288x1xi1>, vector<288x1xi32>
    %c16_i32_46 = arith.constant 16 : i32
    %85 = vector.broadcast %c16_i32_46 : i32 to vector<288x1xi32>
    %86 = arith.cmpi slt, %84, %85 : vector<288x1xi32>
    %cst_47 = arith.constant 0.000000e+00 : f32
    %87 = vector.shape_cast %86 : vector<288x1xi1> to vector<288x1xi1>
    %88 = vector.broadcast %87 : vector<288x1xi1> to vector<288x128xi1>
    %89 = vector.broadcast %cst_47 : f32 to vector<288x128xf32>
    %90 = arith.select %88, %67, %89 : vector<288x128xi1>, vector<288x128xf32>
    %cst_48 = arith.constant dense<0.000000e+00> : vector<128xf32>
    %91 = vector.multi_reduction <add>, %90, %cst_48 [0] : vector<288x128xf32> to vector<128xf32>
    %92 = vector.shape_cast %91 : vector<128xf32> to vector<1x128xf32>
    %93 = arith.mulf %90, %90 : vector<288x128xf32>
    %cst_49 = arith.constant dense<0.000000e+00> : vector<128xf32>
    %94 = vector.multi_reduction <add>, %93, %cst_49 [0] : vector<288x128xf32> to vector<128xf32>
    %95 = vector.shape_cast %94 : vector<128xf32> to vector<1x128xf32>
    %96 = tpu.concatenate %92, %95 in 0 : vector<1x128xf32>, vector<1x128xf32> -> vector<2x128xf32>
    %97 = vector.shape_cast %96 : vector<2x128xf32> to vector<1x1x2x128xf32>
    %c0_50 = arith.constant 0 : index
    %c0_51 = arith.constant 0 : index
    %c0_52 = arith.constant 0 : index
    %c0_53 = arith.constant 0 : index
    %98 = vector.load %arg7[%c0_50, %c0_51, %c0_52, %c0_53] : memref<1x1x2x128xf32, #tpu.memory_space<vmem>>, vector<1x1x2x128xf32>
    tpu.vector_store %arg7[%c0_50, %c0_51, %c0_52, %c0_53], %97 {strides = array<i32>} : memref<1x1x2x128xf32, #tpu.memory_space<vmem>>, vector<1x1x2x128xf32>,
    %99 = arith.truncf %67 : vector<288x128xf32> to vector<288x128xbf16>
    %c0_54 = arith.constant 0 : index
    %c0_55 = arith.constant 0 : index
    %c0_56 = arith.constant 0 : index
    %100 = vector.load %arg6[%c0_54, %c0_55, %c0_56] : memref<1x288x128xbf16, #tpu.memory_space<vmem>>, vector<1x288x128xbf16>
    %101 = vector.shape_cast %100 : vector<1x288x128xbf16> to vector<288x128xbf16>
    %102 = vector.shape_cast %99 : vector<288x128xbf16> to vector<1x288x128xbf16>
    tpu.vector_store %arg6[%c0_54, %c0_55, %c0_56], %102 {strides = array<i32>} : memref<1x288x128xbf16, #tpu.memory_space<vmem>>, vector<1x288x128xbf16>,
    return
  }
  func.func @transform_0(%arg0: i32, %arg1: i32) -> (i32, i32, i32, i32) {
    %c0_i32 = arith.constant 0 : i32
    %c0_i32_0 = arith.constant 0 : i32
    %c0_i32_1 = arith.constant 0 : i32
    return %arg0, %arg1, %c0_i32, %c0_i32_0 : i32, i32, i32, i32
  }
  func.func @transform_1(%arg0: i32, %arg1: i32) -> (i32, i32) {
    %c0_i32 = arith.constant 0 : i32
    %c0_i32_0 = arith.constant 0 : i32
    %c0_i32_1 = arith.constant 0 : i32
    return %c0_i32, %c0_i32_0 : i32, i32
  }
  func.func @transform_2(%arg0: i32, %arg1: i32) -> (i32, i32) {
    %c0_i32 = arith.constant 0 : i32
    %c0_i32_0 = arith.constant 0 : i32
    %c0_i32_1 = arith.constant 0 : i32
    return %c0_i32, %c0_i32_0 : i32, i32
  }
  func.func @transform_3(%arg0: i32, %arg1: i32) -> (i32, i32) {
    %c0_i32 = arith.constant 0 : i32
    %c0_i32_0 = arith.constant 0 : i32
    %c0_i32_1 = arith.constant 0 : i32
    return %c0_i32, %c0_i32_0 : i32, i32
  }
  func.func @transform_4(%arg0: i32, %arg1: i32) -> (i32, i32, i32) {
    %c0_i32 = arith.constant 0 : i32
    %c0_i32_0 = arith.constant 0 : i32
    return %arg0, %arg1, %c0_i32 : i32, i32, i32
  }
  func.func @transform_5(%arg0: i32, %arg1: i32) -> (i32, i32, i32, i32) {
    %c0_i32 = arith.constant 0 : i32
    %c0_i32_0 = arith.constant 0 : i32
    %c0_i32_1 = arith.constant 0 : i32
    return %arg0, %arg1, %c0_i32, %c0_i32_0 : i32, i32, i32, i32
  }
}

module attributes {stable_mosaic.version = 11 : i64} {
  func.func @_bn_relu_kernel(%arg0: i32, %arg1: i32, %arg2: memref<1x288x128xbf16, #tpu.memory_space<vmem>>, %arg3: memref<1x128xf32, #tpu.memory_space<vmem>>, %arg4: memref<1x128xf32, #tpu.memory_space<vmem>>, %arg5: memref<1x288x128xf32, #tpu.memory_space<vmem>>) attributes {dimension_semantics = [#tpu.dimension_semantics<parallel>, #tpu.dimension_semantics<parallel>], iteration_bounds = array<i64: 2, 1>, scalar_prefetch = 0 : i64, scratch_operands = 0 : i64, tpu.core_type = #tpu.core_type<tc>, window_params = [{transform_indices = @transform_0, window_bounds = array<i64: 1, 288, 128>}, {pipeline_mode = #tpu.pipeline_mode<synchronous>, transform_indices = @transform_1, window_bounds = array<i64: 1, 128>}, {pipeline_mode = #tpu.pipeline_mode<synchronous>, transform_indices = @transform_2, window_bounds = array<i64: 1, 128>}, {transform_indices = @transform_3, window_bounds = array<i64: 1, 288, 128>}]} {
    %c0 = arith.constant 0 : index
    %c0_0 = arith.constant 0 : index
    %c0_1 = arith.constant 0 : index
    %0 = vector.load %arg2[%c0, %c0_0, %c0_1] : memref<1x288x128xbf16, #tpu.memory_space<vmem>>, vector<1x288x128xbf16>
    %1 = arith.extf %0 : vector<1x288x128xbf16> to vector<1x288x128xf32>
    %c0_2 = arith.constant 0 : index
    %c0_3 = arith.constant 0 : index
    %2 = vector.load %arg3[%c0_2, %c0_3] : memref<1x128xf32, #tpu.memory_space<vmem>>, vector<1x128xf32>
    %3 = vector.shape_cast %2 : vector<1x128xf32> to vector<1x1x128xf32>
    %4 = vector.broadcast %3 : vector<1x1x128xf32> to vector<1x288x128xf32>
    %5 = arith.mulf %1, %4 : vector<1x288x128xf32>
    %c0_4 = arith.constant 0 : index
    %c0_5 = arith.constant 0 : index
    %6 = vector.load %arg4[%c0_4, %c0_5] : memref<1x128xf32, #tpu.memory_space<vmem>>, vector<1x128xf32>
    %7 = vector.shape_cast %6 : vector<1x128xf32> to vector<1x1x128xf32>
    %8 = vector.broadcast %7 : vector<1x1x128xf32> to vector<1x288x128xf32>
    %9 = arith.addf %5, %8 : vector<1x288x128xf32>
    %cst = arith.constant 0.000000e+00 : f32
    %10 = vector.broadcast %cst : f32 to vector<1x288x128xf32>
    %11 = arith.maximumf %9, %10 : vector<1x288x128xf32>
    %c0_6 = arith.constant 0 : index
    %c0_7 = arith.constant 0 : index
    %c0_8 = arith.constant 0 : index
    %12 = vector.load %arg5[%c0_6, %c0_7, %c0_8] : memref<1x288x128xf32, #tpu.memory_space<vmem>>, vector<1x288x128xf32>
    tpu.vector_store %arg5[%c0_6, %c0_7, %c0_8], %11 {strides = array<i32>} : memref<1x288x128xf32, #tpu.memory_space<vmem>>, vector<1x288x128xf32>,
    return
  }
  func.func @transform_0(%arg0: i32, %arg1: i32) -> (i32, i32, i32) {
    %c0_i32 = arith.constant 0 : i32
    %c0_i32_0 = arith.constant 0 : i32
    return %arg0, %arg1, %c0_i32 : i32, i32, i32
  }
  func.func @transform_1(%arg0: i32, %arg1: i32) -> (i32, i32) {
    %c0_i32 = arith.constant 0 : i32
    %c0_i32_0 = arith.constant 0 : i32
    %c0_i32_1 = arith.constant 0 : i32
    return %c0_i32, %c0_i32_0 : i32, i32
  }
  func.func @transform_2(%arg0: i32, %arg1: i32) -> (i32, i32) {
    %c0_i32 = arith.constant 0 : i32
    %c0_i32_0 = arith.constant 0 : i32
    %c0_i32_1 = arith.constant 0 : i32
    return %c0_i32, %c0_i32_0 : i32, i32
  }
  func.func @transform_3(%arg0: i32, %arg1: i32) -> (i32, i32, i32) {
    %c0_i32 = arith.constant 0 : i32
    %c0_i32_0 = arith.constant 0 : i32
    return %arg0, %arg1, %c0_i32 : i32, i32, i32
  }
}

</mosaic_0001>

<bundles_post_ra>
// kernel: double_conv.3
= control target key start
LH: loop header
LB: loop body
LE: loop exit
PB: predicated region body
PF: predicated region fallthrough
CT: control target
= control target key end

     0   :  { %s2259_s12 = smov 0   ;;  %s2261_s13 = smov 0   ;;  %s3666_s0 = inlined_call_operand.vmem [shape: bf16[2,288,40], index: 0, kind: input, shape index: {}]   ;;  %s3667_s1 = inlined_call_operand.vmem [shape: bf16[40,128], index: 1, kind: input, shape index: {}]   ;;  %s3668_s2 = inlined_call_operand.vmem [shape: bf16[2,288,128], index: 2, kind: output, shape index: {0}]   ;;  %s3669_s3 = inlined_call_operand.vmem [shape: f32[2,1,2,128], index: 3, kind: output, shape index: {1}]  }
   0x1   :  { %s2263_s14 = smov 0  }
   0x2 LB: > { %s26_s15 = sadd.s32 1, %s2233_s13  ;;  %p1802_p0 = scmp.ge.s32.totalorder %s2237_s14, 1  ;;  %s2237_s14 = sphi %s2263_s14, %s14_s14   ;;  %s2233_s13 = sphi %s2261_s13, %s3975_s13   ;;  %s2229_s12 = sphi %s2259_s12, %s3974_s12  }
   0x3   : > { %p28_p1 = scmp.ge.s32.totalorder %s26_s15, 2  ;;  %p163_p2 = scmp.lt.s32.totalorder %s2237_s14, 3 }
   0x5   : > { %s3977_s15 = smov (%p28_p1, %s26_s15), 0  ;;  %p164_p3 = pnand %p1802_p0, %p163_p2 }
   0x7   : > { %167 = sbr.rel (%p164_p3) target bundleno = 322 (0x142), region = 28 }
   0xc   : > { %v2194_v0 = vld [vmem:[%s3667_s1 + $0x10] ss:$0 sps:$4 sm:$0xff]   ;;  %vm431_vm0 = vcmask 1043456   ;;  %v2195_v1 = vld [vmem:[%s3667_s1 + $0x8] sm:$0xff]   ;;  %p203_p4 = scmp.lt.s32.totalorder %s2229_s12, 1  ;;  %v2196_v3 = vld [vmem:[%s3667_s1] sm:$0xff]   ;;  %v612_v22 = vlaneseq }
   0xd   : > { %2095 = vmatprep.subr.msk.bf16.mxu0 %vm431_vm0, %v2194_v0  ;;  %v433_v2 = vsel %vm431_vm0, %v2194_v0, 0  ;;  %2096 = vmatprep.subr.msk.bf16.mxu1 %vm431_vm0, %v2194_v0  ;;  %vm376_vm1 = vcmask 326656  }
   0xe   : > { %2048 = vmatpush3.bf16.msra.mxu0 %v433_v2  ;;  %2092 = vmatpush3.bf16.msra.mxu1 %v433_v2  ;;  %s3979_s12 = smov (!%p203_p4, %s2229_s12), 1  ;;  %v2332_v23 = vshrl.u32 %v612_v22, 7 }
   0xf   : > { %2049 = vmatprep.subr.bf16.mxu0 %v2195_v1  ;;  %2090 = vmatprep.subr.bf16.mxu1 %v2195_v1  ;;  %s2097_s22 = smul.u32 144, %s3979_s12  ;;  %s1805_s29 = sshll.u32 %s3979_s12, 1 }
  0x10   : > { %v615_v24 = vadd.s32 16, %v2332_v23  ;;  %v616_v25 = vadd.s32 24, %v2332_v23  ;;  %v614_v28 = vadd.s32 8, %v2332_v23  ;;  %v619_v29 = vadd.s32 48, %v2332_v23  ;;  %s228_s5 = scalar_lea.vmem %s3669_s3, %s1805_s29 }
  0x11   : > { %s2294_s25 = scalar_lea.vmem %s3666_s0, %s2097_s22  ;;  %v2342_v30 = vmul.u32.u64.low 3817748708, %v2332_v23  ;;  %v2343_v31 = vmul.u32.u64.high 3817748708, %v2332_v23, %v2342_v30  ;;  %v2356_v39 = vadd.s32 32, %v2332_v23  ;;  %v2360_v41 = vadd.s32 56, %v2332_v23  ;;  %s3035_s28 = scalar_lea.vmem %s3668_s2, %s2097_s22 }
  0x12   : > { %2050 = vmatpush3.bf16.msra.mxu0 %v2195_v1  ;;  %2093 = vmatpush3.bf16.msra.mxu1 %v2195_v1  ;;  %v2197_v4 = vld [vmem:[%s2294_s25] sm:$0xff]   ;;  %v2198_v5 = vld [vmem:[%s2294_s25 + $0x8] sm:$0xff]   ;;  %v2199_v6 = vld [vmem:[%s2294_s25 + $0x10] sm:$0xff]   ;;  %v2336_v26 = vmul.u32.u64.low 3817748708, %v615_v24  ;;  %v2337_v27 = vmul.u32.u64.high 3817748708, %v615_v24, %v2336_v26  ;;  %v2364_v43 = vadd.s32 40, %v2332_v23 }
  0x13   : > { %2051 = vmatprep.subr.bf16.mxu0 %v2196_v3  ;;  %2091 = vmatprep.subr.bf16.mxu1 %v2196_v3  ;;  %v2200_v7 = vld [vmem:[%s2294_s25 + $0x18] sm:$0xff]   ;;  %v2201_v8 = vld [vmem:[%s2294_s25 + $0x20] sm:$0xff]   ;;  %v2207_v9 = vld [vmem:[%s2294_s25 + $0x50] sm:$0xff]   ;;  %v2345_v32 = vmul.u32.u64.low 3817748708, %v616_v25  ;;  %v2346_v33 = vmul.u32.u64.high 3817748708, %v616_v25, %v2345_v32  ;;  %v655_v40 = vshrl.u32 %v2343_v31, 4 }
  0x14   : > { %2053 = vmatprep.mubr.msk.bf16.mxu0 %vm376_vm1, %v2197_v4  ;;  %v2208_v10 = vld [vmem:[%s2294_s25 + $0x58] sm:$0xff]   ;;  %2073 = vmatprep.mubr.msk.bf16.mxu1 %vm376_vm1, %v2207_v9  ;;  %v2209_v11 = vld [vmem:[%s2294_s25 + $0x60] sm:$0xff]   ;;  %v2202_v12 = vld [vmem:[%s2294_s25 + $0x28] sm:$0xff]   ;;  %v2348_v34 = vmul.u32.u64.low 3817748708, %v614_v28  ;;  %v2349_v35 = vmul.u32.u64.high 3817748708, %v614_v28, %v2348_v34  ;;  %v677_v38 = vshrl.u32 %v2337_v27, 4 }
  0x15   : > { %v2210_v13 = vld [vmem:[%s2294_s25 + $0x68] sm:$0xff]   ;;  %v2203_v14 = vld [vmem:[%s2294_s25 + $0x30] sm:$0xff]   ;;  %v2204_v16 = vld [vmem:[%s2294_s25 + $0x38] sm:$0xff]   ;;  %v2351_v36 = vmul.u32.u64.low 3817748708, %v619_v29  ;;  %v2352_v37 = vmul.u32.u64.high 3817748708, %v619_v29, %v2351_v36  ;;  %v688_v42 = vshrl.u32 %v2346_v33, 4 }
  0x16   : > { %2052 = vmatpush3.bf16.msra.mxu0 %v2196_v3  ;;  %2094 = vmatpush3.bf16.msra.mxu1 %v2196_v3  ;;  %v2211_v15 = vld [vmem:[%s2294_s25 + $0x70] sm:$0xff]   ;;  %v2212_v17 = vld [vmem:[%s2294_s25 + $0x78] sm:$0xff]   ;;  %v2205_v18 = vld [vmem:[%s2294_s25 + $0x40] sm:$0xff]   ;;  %v678_v44 = vmul.u32 18, %v677_v38  ;;  %v666_v45 = vshrl.u32 %v2349_v35, 4  ;;  %v2373_v49 = vadd.s32 80, %v2332_v23 }
  0x17   : > { %v2213_v19 = vld [vmem:[%s2294_s25 + $0x80] sm:$0xff]   ;;  %v2206_v20 = vld [vmem:[%s2294_s25 + $0x48] sm:$0xff]   ;;  %v721_v46 = vshrl.u32 %v2352_v37, 4  ;;  %v2369_v47 = vmul.u32.u64.low 3817748708, %v2356_v39  ;;  %v2370_v48 = vmul.u32.u64.high 3817748708, %v2356_v39, %v2369_v47  ;;  %v656_v50 = vmul.u32 18, %v655_v40 }
  0x18   : > { %v2214_v21 = vld [vmem:[%s2294_s25 + $0x88] sm:$0xff]   ;;  %v2376_v51 = vmul.u32.u64.low 3817748708, %v2360_v41  ;;  %v2377_v52 = vmul.u32.u64.high 3817748708, %v2360_v41, %v2376_v51  ;;  %v689_v53 = vmul.u32 18, %v688_v42  ;;  %v2384_v56 = vadd.s32 64, %v2332_v23 }
  0x19   : > { %2054 = vmatmul.mubr.msk.bf16.vlgmr.msra.gmra.mxu0 %vm376_vm1, %v2198_v5  ;;  %2074 = vmatmul.mubr.msk.bf16.vlgmr.msra.gmra.mxu1 %vm376_vm1, %v2208_v10  ;;  %v2380_v54 = vmul.u32.u64.low 3817748708, %v2364_v43  ;;  %v2381_v55 = vmul.u32.u64.high 3817748708, %v2364_v43, %v2380_v54  ;;  %v667_v57 = vmul.u32 18, %v666_v45  ;;  %v2386_v58 = vsub.s32 %v615_v24, %v678_v44 }
  0x1a   : > { %2057 = vmatprep.mubr.msk.bf16.mxu0 %vm376_vm1, %v2199_v6  ;;  %2077 = vmatprep.mubr.msk.bf16.mxu1 %vm376_vm1, %v2209_v11  ;;  %v722_v59 = vmul.u32 18, %v721_v46  ;;  %v2389_v60 = vmul.u32.u64.low 3817748708, %v2373_v49  ;;  %v2390_v61 = vmul.u32.u64.high 3817748708, %v2373_v49, %v2389_v60  ;;  %v2393_v62 = vsub.s32 %v2332_v23, %v656_v50 }
  0x1b   : > { %v2395_v63 = vsub.s32 %v616_v25, %v689_v53  ;;  %v2398_v0 = vmul.u32.u64.low 3817748708, %v2384_v56  ;;  %v2399_v1 = vmul.u32.u64.high 3817748708, %v2384_v56, %v2398_v0  ;;  %v2401_v2 = vsub.s32 %v614_v28, %v667_v57 }
  0x1c   : > { %v2404_v3 = vadd.s32 88, %v2332_v23  ;;  %vm1047_vm2 = vcmp.ne.s32.totalorder %v2386_v58, 0  ;;  %vm1083_vm3 = vcmp.lt.s32.totalorder %v2386_v58, 0  ;;  %v2408_v4 = vsub.s32 %v619_v29, %v722_v59 }
  0x1d   : > { %v699_v5 = vshrl.u32 %v2370_v48, 4  ;;  %v2412_v6 = vadd.s32 18, %v2386_v58  ;;  %vm1045_vm4 = vcmp.ne.s32.totalorder %v2393_v62, 0  ;;  %vm1081_vm5 = vcmp.lt.s32.totalorder %v2393_v62, 0  ;;  %vm2435_vm9 = vmand %vm1083_vm3, %vm1047_vm2 }
  0x1e   : > { %3711 = vst [vmem:[#allocation2_spill] sm:$0xff] %v2408_v4  ;;  %vm1048_vm6 = vcmp.ne.s32.totalorder %v2395_v63, 0  ;;  %vm1084_vm7 = vcmp.lt.s32.totalorder %v2395_v63, 0  ;;  %v710_v9 = vshrl.u32 %v2381_v55, 4  ;;  %vm1046_vm8 = vcmp.ne.s32.totalorder %v2401_v2, 0  ;;  %vm2444_vm12 = vmand %vm1081_vm5, %vm1045_vm4 }
  0x1f   : > { %v2425_v10 = vmul.u32.u64.low 3817748708, %v2404_v3  ;;  %v2426_v11 = vmul.u32.u64.high 3817748708, %v2404_v3, %v2425_v10  ;;  %vm1082_vm10 = vcmp.lt.s32.totalorder %v2401_v2, 0  ;;  %vm1051_vm11 = vcmp.ne.s32.totalorder %v2408_v4, 0  ;;  %vm2460_vm14 = vmand %vm1084_vm7, %vm1048_vm6 }
  0x20   : > { %vm1087_vm13 = vcmp.lt.s32.totalorder %v2408_v4, 0  ;;  %v2465_v22 = vadd.s32 18, %v2395_v63  ;;  %v711_v24 = vmul.u32 18, %v710_v9  ;;  %v743_v25 = vshrl.u32 %v2399_v1, 4  ;;  %vm2470_vm15 = vmand %vm1082_vm10, %vm1046_vm8 }
  0x21   : > { %2058 = vmatmul.mubr.msk.bf16.gmra.mxu0 %vm376_vm1, %v2200_v7  ;;  %2078 = vmatmul.mubr.msk.bf16.gmra.mxu1 %vm376_vm1, %v2210_v13  ;;  %v732_v7 = vshrl.u32 %v2377_v52, 4  ;;  %v2475_v27 = vadd.s32 18, %v2401_v2  ;;  %v2478_v28 = vadd.s32 18, %v2408_v4  ;;  %vm2486_vm0 = vmand %vm1087_vm13, %vm1051_vm11  ;;  %v3721_v31 = vmov 0 }
  0x22   : > { %2061 = vmatprep.mubr.msk.bf16.mxu0 %vm376_vm1, %v2201_v8  ;;  %2081 = vmatprep.mubr.msk.bf16.mxu1 %vm376_vm1, %v2211_v15  ;;  %v2417_v8 = vadd.s32 72, %v2332_v23  ;;  %v765_v15 = vshrl.u32 %v2390_v61, 4  ;;  %v3722_v31 = vsel %vm2486_vm0, 4294967295, %v3721_v31  ;;  %v2505_v37 = vsub.s32 %v2364_v43, %v711_v24 }
  0x23   : > { %3720 = vst [vmem:[#allocation3_spill] sm:$0xff] %v2478_v28  ;;  %3723 = vst [vmem:[#allocation4_spill] sm:$0xff] %v3722_v31  ;;  %v744_v38 = vmul.u32 18, %v743_v25  ;;  %v776_v42 = vshrl.u32 %v2426_v11, 4  ;;  %v2529_v45 = vadd.s32 96, %v2332_v23  ;;  %v2550_v53 = vadd.s32 104, %v2332_v23 }
  0x24   : > { %v766_v33 = vmul.u32 18, %v765_v15  ;;  %vm1050_vm5 = vcmp.ne.s32.totalorder %v2505_v37, 0  ;;  %vm1086_vm6 = vcmp.lt.s32.totalorder %v2505_v37, 0  ;;  %v2546_v50 = vadd.s32 18, %v2505_v37 }
  0x25   : > { %v2540_v48 = vsub.s32 %v2384_v56, %v744_v38  ;;  %v777_v51 = vmul.u32 18, %v776_v42  ;;  %v2554_v54 = vmul.u32.u64.low 3817748708, %v2529_v45  ;;  %v2555_v55 = vmul.u32.u64.high 3817748708, %v2529_v45, %v2554_v54 }
  0x26   : > { %v2526_v44 = vsub.s32 %v2373_v49, %v766_v33  ;;  %v2543_v49 = vadd.s32 120, %v2332_v23  ;;  %v2558_v56 = vadd.s32 144, %v2332_v23  ;;  %v2565_v60 = vadd.s32 128, %v2332_v23 }
  0x27   : > { %v2573_v1 = vadd.s32 176, %v2332_v23  ;;  %v2579_v9 = vmul.u32.u64.low 3817748708, %v2550_v53  ;;  %v2580_v10 = vmul.u32.u64.high 3817748708, %v2550_v53, %v2579_v9  ;;  %v2588_v15 = vadd.s32 152, %v2332_v23 }
  0x28   : > { %3725 = vst [vmem:[#allocation6_spill] sm:$0xff] %v2526_v44  ;;  %vm1055_vm7 = vcmp.ne.s32.totalorder %v2526_v44, 0  ;;  %v2562_v57 = vadd.s32 18, %v2526_v44  ;;  %v2569_v61 = vmul.u32.u64.low 3817748708, %v2543_v49  ;;  %v2570_v0 = vmul.u32.u64.high 3817748708, %v2543_v49, %v2569_v61 }
  0x29   : > { %2062 = vmatmul.mubr.msk.bf16.gmra.mxu0 %vm376_vm1, %v2202_v12  ;;  %2082 = vmatmul.mubr.msk.bf16.gmra.mxu1 %vm376_vm1, %v2212_v17  ;;  %v2429_v12 = vadd.s32 112, %v2332_v23  ;;  %v733_v17 = vmul.u32 18, %v732_v7  ;;  %v2601_v24 = vadd.s32 18, %v2540_v48  ;;  %v2624_v38 = vadd.s32 184, %v2332_v23 }
  0x2a   : > { %2065 = vmatprep.mubr.msk.bf16.mxu0 %vm376_vm1, %v2203_v14  ;;  %2085 = vmatprep.mubr.msk.bf16.mxu1 %vm376_vm1, %v2213_v19  ;;  %v700_v14 = vmul.u32 18, %v699_v5  ;;  %v2576_v5 = vsub.s32 %v2404_v3, %v777_v51  ;;  %v3730_v42 = vmov 0  ;;  %v820_v9 = vshrl.u32 %v2570_v0, 4 }
  0x2b   : > { %v2481_v29 = vmul.u32.u64.low 3817748708, %v2429_v12  ;;  %v2482_v30 = vmul.u32.u64.high 3817748708, %v2429_v12, %v2481_v29  ;;  %v2494_v34 = vsub.s32 %v2360_v41, %v733_v17  ;;  %v3744_v0 = vmov 0 }
  0x2c   : > { %v2491_v32 = vsub.s32 %v2356_v39, %v700_v14  ;;  %3726 = vst [vmem:[#allocation7_spill] sm:$0xff] %v2576_v5  ;;  %v2584_v11 = vmul.u32.u64.low 3817748708, %v2558_v56  ;;  %v2585_v14 = vmul.u32.u64.high 3817748708, %v2558_v56, %v2584_v11  ;;  %vm1056_vm11 = vcmp.ne.s32.totalorder %v2576_v5, 0 }
  0x2d   : > { %3724 = vst [vmem:[#allocation5_spill] sm:$0xff] %v2494_v34  ;;  %vm1052_vm3 = vcmp.ne.s32.totalorder %v2494_v34, 0  ;;  %vm1088_vm4 = vcmp.lt.s32.totalorder %v2494_v34, 0  ;;  %v2534_v46 = vadd.s32 18, %v2494_v34  ;;  %v809_v52 = vshrl.u32 %v2482_v30, 4 }
  0x2e   : > { %vm1085_vm2 = vcmp.lt.s32.totalorder %v2491_v32, 0  ;;  %v2523_v43 = vadd.s32 18, %v2491_v32  ;;  %v2604_v25 = vmul.u32.u64.low 3817748708, %v2573_v1  ;;  %v2605_v29 = vmul.u32.u64.high 3817748708, %v2573_v1, %v2604_v25  ;;  %vm2630_vm8 = vmand %vm1088_vm4, %vm1052_vm3 }
  0x2f   : > { %v810_v7 = vmul.u32 18, %v809_v52  ;;  %v2608_v30 = vadd.s32 136, %v2332_v23  ;;  %v3731_v42 = vsel %vm2630_vm8, 4294967295, %v3730_v42  ;;  %vm3735_vm3 = vcmp.lt.s32.totalorder %v2526_v44, 0 }
  0x30   : > { %v2636_v51 = vmul.u32.u64.low 3817748708, %v2588_v15  ;;  %v2637_v52 = vmul.u32.u64.high 3817748708, %v2588_v15, %v2636_v51  ;;  %vm2662_vm4 = vmand %vm3735_vm3, %vm1055_vm7  ;;  %v3741_v25 = vmov 0  ;;  %v798_v41 = vshrl.u32 %v2580_v10, 4 }
  0x31   : > { %2066 = vmatmul.mubr.msk.bf16.gmra.mxu0 %vm376_vm1, %v2204_v16  ;;  %2086 = vmatmul.mubr.msk.bf16.gmra.mxu1 %vm376_vm1, %v2214_v21  ;;  %v2621_v33 = vsub.s32 %v2429_v12, %v810_v7  ;;  %v2640_v12 = vadd.s32 168, %v2332_v23  ;;  %v3736_v7 = vmov 0  ;;  %v3749_v35 = vmov 0 }
  0x32   : > { %2069 = vmatprep.mubr.msk.bf16.mxu0 %vm376_vm1, %v2205_v18  ;;  %v2450_v18 = vmul.u32.u64.low 3817748708, %v2417_v8  ;;  %v2451_v19 = vmul.u32.u64.high 3817748708, %v2417_v8, %v2450_v18  ;;  %v3737_v7 = vsel %vm2662_vm4, 4294967295, %v3736_v7  ;;  %v3752_v36 = vmov 0 }
  0x33   : > { %v2594_v3 = vmul.u32.u64.low 3817748708, %v2565_v60  ;;  %v2595_v18 = vmul.u32.u64.high 3817748708, %v2565_v60, %v2594_v3  ;;  %3729 = vst [vmem:[#allocation8_spill] sm:$0xff] %v2621_v33  ;;  %3738 = vst [vmem:[#allocation10_spill] sm:$0xff] %v3737_v7  ;;  %vm1059_vm7 = vcmp.ne.s32.totalorder %v2621_v33, 0  ;;  %vm1095_vm3 = vcmp.lt.s32.totalorder %v2621_v33, 0 }
  0x34   : > { %v754_v47 = vshrl.u32 %v2451_v19, 4  ;;  %v2598_v19 = vadd.s32 160, %v2332_v23  ;;  %v2669_v11 = vmul.u32.u64.low 3817748708, %v2608_v30  ;;  %v2670_v3 = vmul.u32.u64.high 3817748708, %v2608_v30, %v2669_v11 }
  0x35   : > { %v2696_v39 = vmul.u32.u64.low 3817748708, %v2640_v12  ;;  %v2697_v40 = vmul.u32.u64.high 3817748708, %v2640_v12, %v2696_v39  ;;  %v2715_v10 = vadd.s32 18, %v2621_v33  ;;  %v821_v4 = vmul.u32 18, %v820_v9 }
  0x36   : > { %v755_v59 = vmul.u32 18, %v754_v47  ;;  %v787_v47 = vshrl.u32 %v2555_v55, 4  ;;  %v2655_v55 = vmul.u32.u64.low 3817748708, %v2598_v19  ;;  %v2656_v61 = vmul.u32.u64.high 3817748708, %v2598_v19, %v2655_v55 }
  0x37   : > { %v2683_v51 = vmul.u32.u64.low 3817748708, %v2624_v38  ;;  %v2684_v55 = vmul.u32.u64.high 3817748708, %v2624_v38, %v2683_v51  ;;  %3751 = vst [vmem:[#allocation12_spill] sm:$0xff] %v2715_v10  ;;  %v853_v39 = vshrl.u32 %v2585_v14, 4  ;;  %v831_v28 = vshrl.u32 %v2595_v18, 4 }
  0x38   : > { %v2591_v17 = vsub.s32 %v2417_v8, %v755_v59  ;;  %v2651_v59 = vadd.s32 18, %v2576_v5  ;;  %v788_v11 = vmul.u32 18, %v787_v47  ;;  %v897_v31 = vshrl.u32 %v2605_v29, 4 }
  0x39   : > { %2070 = vmatmul.mubr.msk.bf16.gmra.mxu0 %vm376_vm1, %v2206_v20  ;;  %v2454_v20 = vadd.s32 18, %v2393_v62  ;;  %vm1049_vm1 = vcmp.ne.s32.totalorder %v2491_v32, 0  ;;  %v2743_v9 = vadd.s32 208, %v2332_v23  ;;  %v799_v14 = vmul.u32 18, %v798_v41 }
  0x3a   : > { %vm2614_vm13 = vmand %vm1085_vm2, %vm1049_vm1  ;;  %3734 = vst [vmem:[#allocation9_spill] sm:$0xff] %v2651_v59  ;;  %vm3740_vm2 = vcmp.lt.s32.totalorder %v2540_v48, 0  ;;  %v2712_v47 = vadd.s32 18, %v2591_v17  ;;  %v2750_v29 = vsub.s32 %v2529_v45, %v788_v11  ;;  %v864_v7 = vshrl.u32 %v2637_v52, 4 }
  0x3b   : > { %vm2646_vm1 = vmand %vm1086_vm6, %vm1050_vm5  ;;  %vm3739_vm6 = vcmp.ne.s32.totalorder %v2540_v48, 0  ;;  %vm3743_vm5 = vcmp.lt.s32.totalorder %v2576_v5, 0  ;;  %v854_v44 = vmul.u32 18, %v853_v39  ;;  %v2763_v18 = vsub.s32 %v2543_v49, %v821_v4 }
  0x3c   : > { %vm2676_vm10 = vmand %vm3740_vm2, %vm3739_vm6  ;;  %vm3747_vm2 = vcmp.ne.s32.totalorder %v2591_v17, 0  ;;  %vm3748_vm6 = vcmp.lt.s32.totalorder %v2591_v17, 0  ;;  %3755 = vst [vmem:[#allocation14_spill] sm:$0xff] %v2750_v29  ;;  %v832_v45 = vmul.u32 18, %v831_v28  ;;  %v898_v41 = vmul.u32 18, %v897_v31 }
  0x3d   : > { %v3742_v25 = vsel %vm2676_vm10, 4294967295, %v3741_v25  ;;  %vm2690_vm0 = vmand %vm3743_vm5, %vm1056_vm11  ;;  %v842_v52 = vshrl.u32 %v2670_v3, 4  ;;  %v908_v11 = vshrl.u32 %v2684_v55, 4  ;;  %v2772_v59 = vadd.s32 192, %v2332_v23 }
  0x3e   : > { %v3745_v0 = vsel %vm2690_vm0, 4294967295, %v3744_v0  ;;  %vm2707_vm11 = vmand %vm3748_vm6, %vm3747_vm2  ;;  %v2768_v5 = vmul.u32.u64.low 3817748708, %v2743_v9  ;;  %v2769_v51 = vmul.u32.u64.high 3817748708, %v2743_v9, %v2768_v5  ;;  %v865_v4 = vmul.u32 18, %v864_v7 }
  0x3f   : > { %3746 = vst [vmem:[#allocation11_spill] sm:$0xff] %v3745_v0  ;;  %v3750_v35 = vsel %vm2707_vm11, 4294967295, %v3749_v35  ;;  %vm2724_vm5 = vmand %vm1095_vm3, %vm1059_vm7  ;;  %v875_v0 = vshrl.u32 %v2656_v61, 4  ;;  %v2776_v61 = vsub.s32 %v2550_v53, %v799_v14  ;;  %v886_v28 = vshrl.u32 %v2697_v40, 4 }
  0x40   : > { %v3753_v36 = vsel %vm2724_vm5, 4294967295, %v3752_v36  ;;  %v2781_v31 = vadd.s32 18, %v2750_v29  ;;  %v2784_v49 = vsub.s32 %v2558_v56, %v854_v44  ;;  %v2789_v3 = vsub.s32 %v2565_v60, %v832_v45 }
  0x41   : > { %3754 = vst [vmem:[#allocation13_spill] sm:$0xff] %v3753_v36  ;;  %v876_v5 = vmul.u32 18, %v875_v0  ;;  %v843_v53 = vmul.u32 18, %v842_v52  ;;  %v2792_v7 = vsub.s32 %v2573_v1, %v898_v41  ;;  %vm1094_vm7 = vcmp.lt.s32.totalorder %v2776_v61, 0 }
  0x42   : > { %3756 = vst [vmem:[#allocation15_spill] sm:$0xff] %v2784_v49  ;;  %v909_v40 = vmul.u32 18, %v908_v11  ;;  %v2795_v55 = vmul.u32.u64.low 3817748708, %v2772_v59  ;;  %v2796_v39 = vmul.u32.u64.high 3817748708, %v2772_v59, %v2795_v55  ;;  %v2801_v44 = vsub.s32 %v2588_v15, %v865_v4 }
  0x43   : > { %3757 = vst [vmem:[#allocation16_spill] sm:$0xff] %v2792_v7  ;;  %v887_v56 = vmul.u32 18, %v886_v28  ;;  %vm3758_vm6 = vcmp.ne.s32.totalorder %v2750_v29, 0  ;;  %vm3759_vm2 = vcmp.lt.s32.totalorder %v2750_v29, 0  ;;  %v3760_v60 = vmov 0 }
  0x44   : > { %vm2807_vm5 = vmand %vm3759_vm2, %vm3758_vm6  ;;  %v2812_v1 = vadd.s32 18, %v2763_v18  ;;  %vm1099_vm3 = vcmp.lt.s32.totalorder %v2784_v49, 0  ;;  %v2817_v0 = vsub.s32 %v2598_v19, %v876_v5  ;;  %vm3762_vm11 = vcmp.ne.s32.totalorder %v2763_v18, 0 }
  0x45   : > { %v3761_v60 = vsel %vm2807_vm5, 4294967295, %v3760_v60  ;;  %vm3763_vm4 = vcmp.lt.s32.totalorder %v2763_v18, 0  ;;  %v2828_v14 = vadd.s32 18, %v2776_v61  ;;  %v2833_v45 = vsub.s32 %v2608_v30, %v843_v53 }
  0x46   : > { %vm2823_vm10 = vmand %vm3763_vm4, %vm3762_vm11  ;;  %v3766_v19 = vsel %vm2444_vm12, %v2454_v20, %v2393_v62  ;;  %v3767_v41 = vmov 0  ;;  %vm3769_vm4 = vcmp.ne.s32.totalorder %v2776_v61, 0  ;;  %v2853_v30 = vsub.s32 %v2624_v38, %v909_v40 }
  0x47   : > { %vm2840_vm0 = vcmp.lt.s32.totalorder %v3766_v19, 16  ;;  %vm2846_vm11 = vmand %vm1094_vm7, %vm3769_vm4  ;;  %v941_v16 = vshrl.u32 %v2769_v51, 4  ;;  %vm3773_vm12 = vcmp.ne.s32.totalorder %v2784_v49, 0  ;;  %v3774_v62 = vmov 0 }
  0x48   : > { %v3768_v41 = vsel %vm2840_vm0, 4294967295, %v3767_v41  ;;  %3772 = vst [vmem:[#allocation17_spill] sm:$0xff] %v2853_v30  ;;  %vm2858_vm8 = vmand %vm1099_vm3, %vm3773_vm12  ;;  %v2863_v20 = vadd.s32 18, %v2784_v49  ;;  %v2868_v11 = vsub.s32 %v2640_v12, %v887_v56  ;;  %v3779_v38 = vsel %vm2435_vm9, %v2412_v6, %v2386_v58  ;;  %v3824_v49 = vld [vmem:[#allocation2_spill] sm:$0xff] }
  0x49   : > { %v3775_v62 = vsel %vm2858_vm8, 4294967295, %v3774_v62  ;;  %vm2875_vm2 = vcmp.lt.s32.totalorder %v3779_v38, 16  ;;  %v3780_v51 = vmov 0  ;;  %v3782_v4 = vsel %vm2470_vm15, %v2475_v27, %v2401_v2 }
  0x4a   : > { %3776 = vst [vmem:[#allocation18_spill] sm:$0xff] %v3775_v62  ;;  %3777 = vst [vmem:[#allocation19_spill] sm:$0xff] %v2863_v20  ;;  %v3781_v51 = vsel %vm2875_vm2, 4294967295, %v3780_v51  ;;  %vm2884_vm3 = vcmp.lt.s32.totalorder %v3782_v4, 16  ;;  %v3783_v28 = vmov 0  ;;  %vm3785_vm12 = vcmp.ne.s32.totalorder %v2789_v3, 0 }
  0x4b   : > { %3778 = vst [vmem:[#allocation20_spill] sm:$0xff] %v2868_v11  ;;  %v3784_v28 = vsel %vm2884_vm3, 4294967295, %v3783_v28  ;;  %vm3786_vm4 = vcmp.lt.s32.totalorder %v2789_v3, 0  ;;  %v2897_v58 = vadd.s32 18, %v2789_v3  ;;  %vm1101_vm6 = vcmp.lt.s32.totalorder %v2817_v0, 0  ;;  %v3823_v4 = vld [vmem:[#allocation3_spill] sm:$0xff] }
  0x4c   : > { %vm2892_vm7 = vmand %vm3786_vm4, %vm3785_vm12  ;;  %v2902_v2 = vadd.s32 216, %v2332_v23  ;;  %vm3790_vm15 = vcmp.ne.s32.totalorder %v2792_v7, 0  ;;  %vm3791_vm3 = vcmp.lt.s32.totalorder %v2792_v7, 0  ;;  %v3792_v6 = vmov 0 }
  0x4d   : > { %vm2908_vm2 = vmand %vm3791_vm3, %vm3790_vm15  ;;  %v2913_v26 = vadd.s32 18, %v2792_v7  ;;  %v2918_v27 = vadd.s32 200, %v2332_v23  ;;  %v3796_v12 = vsel %vm2460_vm14, %v2465_v22, %v2395_v63  ;;  %v3797_v5 = vmov 0 }
  0x4e   : > { %3789 = vst [vmem:[#allocation21_spill] sm:$0xff] %v2902_v2  ;;  %v3793_v6 = vsel %vm2908_vm2, 4294967295, %v3792_v6  ;;  %vm2925_vm9 = vcmp.lt.s32.totalorder %v3796_v12, 16  ;;  %vm3799_vm3 = vcmp.ne.s32.totalorder %v2801_v44, 0  ;;  %vm3800_vm15 = vcmp.lt.s32.totalorder %v2801_v44, 0 }
  0x4f   : > { %3794 = vst [vmem:[#allocation22_spill] sm:$0xff] %v3793_v6  ;;  %3795 = vst [vmem:[#allocation23_spill] sm:$0xff] %v2913_v26  ;;  %v3798_v5 = vsel %vm2925_vm9, 4294967295, %v3797_v5  ;;  %v942_v21 = vmul.u32 18, %v941_v16  ;;  %v919_v40 = vshrl.u32 %v2796_v39, 4  ;;  %v2941_v63 = vadd.s32 18, %v2801_v44 }
  0x50   : > { %vm2933_vm0 = vmand %vm3800_vm15, %vm3799_vm3  ;;  %vm3803_vm14 = vcmp.ne.s32.totalorder %v2817_v0, 0  ;;  %v3804_v22 = vmov 0  ;;  %v2950_v55 = vadd.s32 18, %v2817_v0  ;;  %vm1066_vm3 = vcmp.ne.s32.totalorder %v2868_v11, 0 }
  0x51   : > { %vm2945_vm9 = vmand %vm1101_vm6, %vm3803_vm14  ;;  %vm1102_vm15 = vcmp.lt.s32.totalorder %v2868_v11, 0  ;;  %v3806_v39 = vsel %vm2614_vm13, %v2523_v43, %v2491_v32  ;;  %vm3809_vm6 = vcmp.ne.s32.totalorder %v2833_v45, 0  ;;  %vm3810_vm14 = vcmp.lt.s32.totalorder %v2833_v45, 0 }
  0x52   : > { %v3805_v22 = vsel %vm2945_vm9, 4294967295, %v3804_v22  ;;  %vm2959_vm4 = vcmp.lt.s32.totalorder %v3806_v39, 16  ;;  %vm2967_vm12 = vmand %vm3810_vm14, %vm3809_vm6  ;;  %v2972_v38 = vadd.s32 18, %v2833_v45  ;;  %v2975_v8 = vadd.s32 18, %v2853_v30 }
  0x53   : > { %v2978_v32 = vmul.u32.u64.low 3817748708, %v2902_v2  ;;  %v2979_v43 = vmul.u32.u64.high 3817748708, %v2902_v2, %v2978_v32  ;;  %vm3814_vm13 = vcmp.ne.s32.totalorder %v2853_v30, 0  ;;  %vm3815_vm6 = vcmp.lt.s32.totalorder %v2853_v30, 0  ;;  %vm3004_vm5 = vmand %vm1102_vm15, %vm1066_vm3 }
  0x54   : > { %3813 = vst [vmem:[#allocation24_spill] sm:$0xff] %v2975_v8  ;;  %vm2989_vm14 = vmand %vm3815_vm6, %vm3814_vm13  ;;  %v3816_v12 = vmov 0  ;;  %v2994_v39 = vadd.s32 18, %v2868_v11  ;;  %v2997_v34 = vmul.u32.u64.low 3817748708, %v2918_v27  ;;  %v2998_v33 = vmul.u32.u64.high 3817748708, %v2918_v27, %v2997_v34 }
  0x55   : > { %v3817_v12 = vsel %vm2989_vm14, 4294967295, %v3816_v12  ;;  %v3819_v10 = vmov 0  ;;  %v3009_v36 = vsub.s32 %v2743_v9, %v942_v21  ;;  %v920_v2 = vmul.u32 18, %v919_v40  ;;  %v3821_v34 = vld [vmem:[#allocation4_spill] sm:$0xff] }
  0x56   : > { %3818 = vst [vmem:[#allocation25_spill] sm:$0xff] %v3817_v12  ;;  %v3820_v10 = vsel %vm3004_vm5, 4294967295, %v3819_v10  ;;  %v3012_v29 = vadd.s32 240, %v2332_v23  ;;  %vm3822_vm3 = vnez %v3821_v34  ;;  %v3828_v21 = vsel %vm2646_vm1, %v2546_v50, %v2505_v37  ;;  %v3834_v34 = vld [vmem:[#allocation5_spill] sm:$0xff] }
  0x57   : > { %v3825_v20 = vsel %vm3822_vm3, %v3823_v4, %v3824_v49  ;;  %vm3051_vm13 = vcmp.lt.s32.totalorder %v3828_v21, 16  ;;  %vm3831_vm1 = vnez %v3768_v41  ;;  %v3078_v21 = vadd.s32 224, %v2332_v23 }
  0x58   : > { %vm3042_vm15 = vcmp.lt.s32.totalorder %v3825_v20, 16  ;;  %vm3833_vm6 = vnez %v3731_v42  ;;  %v3090_v41 = vadd.s32 18, %v3009_v36  ;;  %v3093_v30 = vsub.s32 %v2772_v59, %v920_v2 }
  0x59   : > { %3832 = vst [vmem:[#allocation4_spill] sm:$0xff] %v3078_v21  ;;  %v3835_v37 = vsel %vm3833_vm6, %v2534_v46, %v3834_v34  ;;  %v3096_v4 = vmul.u32.u64.low 3817748708, %v3012_v29  ;;  %v3097_v8 = vmul.u32.u64.high 3817748708, %v3012_v29, %v3096_v4  ;;  %vm3839_vm6 = vnez %v3784_v28 }
  0x5a   : > { %vm3085_vm3 = vcmp.lt.s32.totalorder %v3835_v37, 16  ;;  %v3105_v37 = vadd.s32 248, %v2332_v23  ;;  %vm3841_vm14 = vnez %v3742_v25  ;;  %v952_v28 = vshrl.u32 %v2979_v43, 4 }
  0x5b   : > { %v3842_v2 = vsel %vm3841_vm14, %v2601_v24, %v2540_v48  ;;  %vm3888_vm9 = vcmp.lt.s32.totalorder %v3093_v30, 0 }
  0x5c   : > { %3840 = vst [vmem:[#allocation3_spill] sm:$0xff] %v3105_v37  ;;  %vm3112_vm2 = vcmp.lt.s32.totalorder %v3842_v2, 16  ;;  %v3848_v2 = vld [vmem:[#allocation6_spill] sm:$0xff] }
  0xd9   : > { %v2055_v56 = vpop.f32.mrf.mxu0 }
  0xdb   : > { %v469_v32 = vpop.f32.mrf.mxu0 }
  0xdc   : > { %v1333_v54 = vsel %vm3831_vm1, %v469_v32, 0.0  ;;  %vm3838_vm1 = vnez %v3781_v51 }
  0xdd   : > { %v2056_v40 = vpop.f32.mrf.mxu0  ;;  %v1335_v42 = vsel %vm3838_vm1, %v2055_v56, 0.0  ;;  %v1410_v12 = vmul.f32 %v1333_v54, %v1333_v54  ;;  %vm3845_vm1 = vnez %v3798_v5  ;;  %v3132_v5 = vadd.s32 232, %v2332_v23 }
  0xde   : > { %v1927_v20 = vpack.c.bf16 %v2056_v40, %v2055_v56  ;;  %v3116_v56 = vpop.f32.mrf.mxu1 }
  0xdf   : > { %v472_v49 = vpop.f32.mrf.mxu0 }
  0xe0   : > { %2009 = vst [vmem:[%s3035_s28 + $0x8] sm:$0xff] %v1927_v20   ;;  %v1334_v46 = vsel %vm3839_vm6, %v472_v49, 0.0  ;;  %v1922_v34 = vpack.c.bf16 %v472_v49, %v469_v32  ;;  %v1336_v32 = vsel %vm3845_vm1, %v2056_v40, 0.0  ;;  %v930_v49 = vshrl.u32 %v2998_v33, 4 }
  0xe1   : > { %v1369_v7 = vadd.f32 %v1334_v46, %v1333_v54  ;;  %v1411_v26 = vmul.f32 %v1334_v46, %v1334_v46  ;;  %v2059_v59 = vpop.f32.mrf.mxu0  ;;  %v3124_v54 = vmul.u32.u64.low 3817748708, %v3078_v21  ;;  %v3125_v25 = vmul.u32.u64.high 3817748708, %v3078_v21, %v3124_v54  ;;  %v3127_v46 = vpop.f32.mrf.mxu1 }
  0xe2   : > { %1923 = vst [vmem:[%s3035_s28] sm:$0xff] %v1922_v34   ;;  %v1412_v20 = vmul.f32 %v1335_v42, %v1335_v42  ;;  %v3138_v43 = vmul.u32.u64.low 3817748708, %v3105_v37  ;;  %v3139_v40 = vmul.u32.u64.high 3817748708, %v3105_v37, %v3138_v43  ;;  %v3846_v34 = vld [vmem:[#allocation10_spill] sm:$0xff]  ;;  %v3891_v21 = vsel %vm2892_vm7, %v2897_v58, %v2789_v3 }
  0xe3   : > { %v1370_v48 = vadd.f32 %v1369_v7, %v1335_v42  ;;  %v1446_v24 = vadd.f32 %v1411_v26, %v1410_v12  ;;  %v485_v4 = vpop.f32.mrf.mxu0  ;;  %v1413_v7 = vmul.f32 %v1336_v32, %v1336_v32  ;;  %vm3847_vm14 = vnez %v3846_v34 }
  0xe4   : > { %v1337_v33 = vsel %vm2959_vm4, %v485_v4, 0.0  ;;  %v3849_v54 = vsel %vm3847_vm14, %v2562_v57, %v3848_v2  ;;  %vm3852_vm4 = vnez %v3750_v35 }
  0xe5   : > { %v1447_v26 = vadd.f32 %v1446_v24, %v1412_v20  ;;  %v1371_v12 = vadd.f32 %v1370_v48, %v1336_v32  ;;  %v2060_v42 = vpop.f32.mrf.mxu0  ;;  %vm3146_vm6 = vcmp.lt.s32.totalorder %v3849_v54, 16  ;;  %v3853_v19 = vsel %vm3852_vm4, %v2712_v47, %v2591_v17  ;;  %v3159_v32 = vpop.f32.mrf.mxu1  ;;  %v3857_v47 = vld [vmem:[#allocation11_spill] sm:$0xff]  ;;  %v3859_v54 = vld [vmem:[#allocation9_spill] sm:$0xff] }
  0xe6   : > { %vm3155_vm1 = vcmp.lt.s32.totalorder %v3853_v19, 16  ;;  %3856 = vst [vmem:[#allocation2_spill] sm:$0xff] %v3159_v32  ;;  %v1937_v57 = vpack.c.bf16 %v2060_v42, %v2059_v59  ;;  %v1977_v20 = vpack.c.bf16 %v3159_v32, %v3116_v56  ;;  %v953_v48 = vmul.u32 18, %v952_v28  ;;  %v3860_v19 = vld [vmem:[#allocation7_spill] sm:$0xff] }
  0xe7   : > { %v931_v24 = vmul.u32 18, %v930_v49  ;;  %v1372_v35 = vadd.f32 %v1371_v12, %v1337_v33  ;;  %v1414_v34 = vmul.f32 %v1337_v33, %v1337_v33  ;;  %v1448_v2 = vadd.f32 %v1447_v26, %v1413_v7  ;;  %v488_v17 = vpop.f32.mrf.mxu0  ;;  %v3173_v11 = vpop.f32.mrf.mxu1 }
  0xe8   : > { %vm3858_vm14 = vnez %v3857_v47  ;;  %v3176_v32 = vadd.s32 272, %v2332_v23  ;;  %v1339_v28 = vsel %vm3042_vm15, %v2059_v59, 0.0  ;;  %2011 = vst [vmem:[%s3035_s28 + $0x18] sm:$0xff] %v1937_v57   ;;  %v1338_v49 = vsel %vm3051_vm13, %v488_v17, 0.0  ;;  %2019 = vst [vmem:[%s3035_s28 + $0x58] sm:$0xff] %v1977_v20   ;;  %v3898_v59 = vld [vmem:[#allocation19_spill] sm:$0xff] }
  0xe9   : > { %v3861_v37 = vsel %vm3858_vm14, %v3859_v54, %v3860_v19  ;;  %v1932_v33 = vpack.c.bf16 %v488_v17, %v485_v4  ;;  %v1449_v7 = vadd.f32 %v1448_v2, %v1414_v34  ;;  %v1373_v26 = vadd.f32 %v1372_v35, %v1338_v49  ;;  %v2063_v47 = vpop.f32.mrf.mxu0  ;;  %v3865_v54 = vld [vmem:[#allocation14_spill] sm:$0xff]  ;;  %v3195_v9 = vpop.f32.mrf.mxu1 }
  0xea   : > { %vm3169_vm4 = vcmp.lt.s32.totalorder %v3861_v37, 16  ;;  %v1972_v37 = vpack.c.bf16 %v3173_v11, %v3127_v46  ;;  %v1415_v12 = vmul.f32 %v1338_v49, %v1338_v49  ;;  %vm3864_vm14 = vnez %v3761_v60 }
  0xeb   : > { %v3866_v62 = vsel %vm3864_vm14, %v2781_v31, %v3865_v54  ;;  %v985_v4 = vshrl.u32 %v3097_v8, 4  ;;  %v1340_v57 = vsel %vm3085_vm3, %v2060_v42, 0.0  ;;  %2010 = vst [vmem:[%s3035_s28 + $0x10] sm:$0xff] %v1932_v33   ;;  %v3203_v20 = vsub.s32 %v2918_v27, %v931_v24  ;;  %v501_v17 = vpop.f32.mrf.mxu0  ;;  %v3209_v19 = vpop.f32.mrf.mxu1  ;;  %v3869_v42 = vld [vmem:[#allocation21_spill] sm:$0xff]  ;;  %v3873_v54 = vld [vmem:[#allocation8_spill] sm:$0xff] }
  0xec   : > { %vm3191_vm5 = vcmp.lt.s32.totalorder %v3866_v62, 16  ;;  %2018 = vst [vmem:[%s3035_s28 + $0x50] sm:$0xff] %v1972_v37   ;;  %v3206_v60 = vmul.u32.u64.low 3817748708, %v3132_v5  ;;  %v3207_v35 = vmul.u32.u64.high 3817748708, %v3132_v5, %v3206_v60  ;;  %v1416_v31 = vmul.f32 %v1339_v28, %v1339_v28 }
  0xed   : > { %v1374_v34 = vadd.f32 %v1373_v26, %v1339_v28  ;;  %v1450_v2 = vadd.f32 %v1449_v7, %v1415_v12  ;;  %v3212_v8 = vadd.s32 18, %v3093_v30  ;;  %v1341_v50 = vsel %vm3112_vm2, %v501_v17, 0.0  ;;  %v2064_v7 = vpop.f32.mrf.mxu0  ;;  %v3870_v26 = vld [vmem:[#allocation13_spill] sm:$0xff]  ;;  %v3872_v12 = vld [vmem:[#allocation12_spill] sm:$0xff] }
  0xee   : > { %v3217_v49 = vsub.s32 %v3869_v42, %v953_v48  ;;  %v3220_v27 = vmul.u32.u64.low 3817748708, %v3176_v32  ;;  %v3221_v24 = vmul.u32.u64.high 3817748708, %v3176_v32, %v3220_v27  ;;  %v1417_v33 = vmul.f32 %v1340_v57, %v1340_v57 }
  0xef   : > { %v1451_v28 = vadd.f32 %v1450_v2, %v1416_v31  ;;  %v1375_v37 = vadd.f32 %v1374_v34, %v1340_v57  ;;  %vm3871_vm15 = vnez %v3870_v26  ;;  %v3877_v48 = vsel %vm2846_vm11, %v2828_v14, %v2776_v61  ;;  %v3242_v57 = vpop.f32.mrf.mxu1  ;;  %v504_v27 = vpop.f32.mrf.mxu0 }
  0xf0   : > { %v3874_v62 = vsel %vm3871_vm15, %v3872_v12, %v3873_v54  ;;  %vm3238_vm2 = vcmp.lt.s32.totalorder %v3877_v48, 16  ;;  %v3878_v60 = vmov 0  ;;  %v986_v31 = vmul.u32 18, %v985_v4 }
  0xf1   : > { %vm3229_vm13 = vcmp.lt.s32.totalorder %v3874_v62, 16  ;;  %v3879_v60 = vsel %vm3238_vm2, 4294967295, %v3878_v60  ;;  %v1947_v34 = vpack.c.bf16 %v2064_v7, %v2063_v47  ;;  %vm3880_vm3 = vcmp.ne.s32.totalorder %v3009_v36, 0  ;;  %v2067_v62 = vpop.f32.mrf.mxu0 }
  0xf2   : > { %vm3881_vm14 = vcmp.lt.s32.totalorder %v3009_v36, 0  ;;  %v1987_v61 = vpack.c.bf16 %v3242_v57, %v3195_v9  ;;  %v963_v14 = vshrl.u32 %v3125_v25, 4  ;;  %v1376_v52 = vadd.f32 %v1375_v37, %v1341_v50  ;;  %v3273_v25 = vpop.f32.mrf.mxu1 }
  0xf3   : > { %vm3248_vm15 = vmand %vm3881_vm14, %vm3880_vm3  ;;  %v1418_v42 = vmul.f32 %v1341_v50, %v1341_v50  ;;  %v1452_v4 = vadd.f32 %v1451_v28, %v1417_v33  ;;  %v3884_v26 = vsel %vm2823_vm10, %v2812_v1, %v2763_v18  ;;  %vm3887_vm14 = vcmp.ne.s32.totalorder %v3093_v30, 0  ;;  %2013 = vst [vmem:[%s3035_s28 + $0x28] sm:$0xff] %v1947_v34   ;;  %v517_v6 = vpop.f32.mrf.mxu0 }
  0xf4   : > { %vm3261_vm3 = vcmp.lt.s32.totalorder %v3884_v26, 16  ;;  %vm3269_vm11 = vmand %vm3888_vm9, %vm3887_vm14  ;;  %vm1106_vm2 = vcmp.lt.s32.totalorder %v3203_v20, 0  ;;  %v1343_v18 = vsel %vm3146_vm6, %v2063_v47, 0.0  ;;  %v1342_v1 = vsel %vm3155_vm1, %v504_v27, 0.0  ;;  %2021 = vst [vmem:[%s3035_s28 + $0x68] sm:$0xff] %v1987_v61   ;;  %v3293_v43 = vpop.f32.mrf.mxu1 }
  0xf5   : > { %v1942_v15 = vpack.c.bf16 %v504_v27, %v501_v17  ;;  %v1982_v50 = vpack.c.bf16 %v3273_v25, %v3209_v19  ;;  %v1453_v33 = vadd.f32 %v1452_v4, %v1418_v42  ;;  %v1377_v28 = vadd.f32 %v1376_v52, %v1342_v1 }
  0xf6   : > { %v1419_v37 = vmul.f32 %v1342_v1, %v1342_v1  ;;  %vm3289_vm10 = vcmp.lt.s32.totalorder %v3891_v21, 16  ;;  %v996_v17 = vshrl.u32 %v3139_v40, 4  ;;  %v1344_v48 = vsel %vm3169_vm4, %v2064_v7, 0.0  ;;  %v3322_v42 = vpop.f32.mrf.mxu1 }
  0xf7   : > { %2012 = vst [vmem:[%s3035_s28 + $0x20] sm:$0xff] %v1942_v15   ;;  %v3308_v58 = vadd.s32 18, %v3203_v20  ;;  %2020 = vst [vmem:[%s3035_s28 + $0x60] sm:$0xff] %v1982_v50   ;;  %v1420_v34 = vmul.f32 %v1343_v18, %v1343_v18  ;;  %v1378_v40 = vadd.f32 %v1377_v28, %v1343_v18  ;;  %v3312_v7 = vadd.s32 18, %v3217_v49 }
  0xf8   : > { %v1454_v61 = vadd.f32 %v1453_v33, %v1419_v37  ;;  %vm3894_vm7 = vcmp.ne.s32.totalorder %v3203_v20, 0  ;;  %v1345_v4 = vsel %vm3191_vm5, %v517_v6, 0.0  ;;  %vm1072_vm6 = vcmp.ne.s32.totalorder %v3217_v49, 0  ;;  %v2068_v33 = vpop.f32.mrf.mxu0  ;;  %v3899_v37 = vld [vmem:[#allocation15_spill] sm:$0xff] }
  0xf9   : > { %vm3318_vm9 = vmand %vm1106_vm2, %vm3894_vm7  ;;  %vm1108_vm1 = vcmp.lt.s32.totalorder %v3217_v49, 0  ;;  %v3329_v27 = vsub.s32 %v3012_v29, %v986_v31  ;;  %v3331_v26 = vmul.u32 18, %v963_v14  ;;  %v3334_v18 = vadd.s32 256, %v2332_v23  ;;  %v3354_v14 = vpop.f32.mrf.mxu1 }
  0xfa   : > { %v1421_v1 = vmul.f32 %v1344_v48, %v1344_v48  ;;  %v1455_v15 = vadd.f32 %v1454_v61, %v1420_v34  ;;  %v1379_v50 = vadd.f32 %v1378_v40, %v1344_v48  ;;  %v3900_v21 = vsel %vm2858_vm8, %v3898_v59, %v3899_v37  ;;  %v520_v59 = vpop.f32.mrf.mxu0  ;;  %v3931_v40 = vld [vmem:[#allocation17_spill] sm:$0xff] }
  0xfb   : > { %vm3341_vm5 = vcmp.lt.s32.totalorder %v3900_v21, 16  ;;  %v3903_v29 = vsel %vm2967_vm12, %v2972_v38, %v2833_v45  ;;  %v3356_v48 = vmul.u32 18, %v996_v17  ;;  %v1957_v34 = vpack.c.bf16 %v2068_v33, %v2067_v62  ;;  %v3374_v21 = vpop.f32.mrf.mxu1 }
  0xfc   : > { %vm3350_vm4 = vcmp.lt.s32.totalorder %v3903_v29, 16  ;;  %v1997_v16 = vpack.c.bf16 %v3354_v14, %v3293_v43  ;;  %v1380_v38 = vadd.f32 %v1379_v50, %v1345_v4  ;;  %v1422_v61 = vmul.f32 %v1345_v4, %v1345_v4 }
  0xfd   : > { %v1456_v28 = vadd.f32 %v1455_v15, %v1421_v1  ;;  %v3906_v17 = vsel %vm2933_vm0, %v2941_v63, %v2801_v44  ;;  %v3377_v29 = vadd.s32 280, %v2332_v23  ;;  %v1347_v4 = vsel %vm3229_vm13, %v2067_v62, 0.0  ;;  %2015 = vst [vmem:[%s3035_s28 + $0x38] sm:$0xff] %v1957_v34  }
  0xfe   : > { %vm3370_vm8 = vcmp.lt.s32.totalorder %v3906_v17, 16  ;;  %vm3909_vm12 = vnez %v3879_v60  ;;  %v1952_v1 = vpack.c.bf16 %v520_v59, %v517_v6  ;;  %2023 = vst [vmem:[%s3035_s28 + $0x78] sm:$0xff] %v1997_v16   ;;  %v1992_v44 = vpack.c.bf16 %v3374_v21, %v3322_v42  ;;  %v2071_v17 = vpop.f32.mrf.mxu0  ;;  %v3396_v60 = vpop.f32.mrf.mxu1 }
  0xff   : > { %v1346_v53 = vsel %vm3909_vm12, %v520_v59, 0.0  ;;  %v1457_v63 = vadd.f32 %v1456_v28, %v1422_v61  ;;  %vm3910_vm0 = vnez %v3805_v22  ;;  %3914 = vst [vmem:[#allocation5_spill] sm:$0xff] %v3396_v60  ;;  %v1029_v6 = vshrl.u32 %v3221_v24, 4  ;;  %v3916_v24 = vld [vmem:[#allocation20_spill] sm:$0xff] }
 0x100   : > { %v1381_v15 = vadd.f32 %v1380_v38, %v1346_v53  ;;  %v1423_v50 = vmul.f32 %v1346_v53, %v1346_v53  ;;  %v3911_v51 = vsel %vm3910_vm0, %v2950_v55, %v2817_v0  ;;  %v1348_v34 = vsel %vm3261_vm3, %v2068_v33, 0.0  ;;  %2014 = vst [vmem:[%s3035_s28 + $0x30] sm:$0xff] %v1952_v1   ;;  %2022 = vst [vmem:[%s3035_s28 + $0x70] sm:$0xff] %v1992_v44   ;;  %v533_v28 = vpop.f32.mrf.mxu0  ;;  %v3420_v33 = vpop.f32.mrf.mxu1  ;;  %v3920_v44 = vld [vmem:[#allocation22_spill] sm:$0xff] }
 0x101   : > { %vm3392_vm2 = vcmp.lt.s32.totalorder %v3911_v51, 16  ;;  %v3404_v16 = vmul.u32.u64.low 3817748708, %v3334_v18  ;;  %v3405_v38 = vmul.u32.u64.high 3817748708, %v3334_v18, %v3404_v16  ;;  %v3408_v22 = vadd.s32 264, %v2332_v23 }
 0x102   : > { %v1424_v0 = vmul.f32 %v1347_v4, %v1347_v4  ;;  %v1382_v55 = vadd.f32 %v1381_v15, %v1347_v4  ;;  %v1458_v61 = vadd.f32 %v1457_v63, %v1423_v50  ;;  %vm3915_vm13 = vnez %v3820_v10  ;;  %v3922_v63 = vld [vmem:[#allocation23_spill] sm:$0xff]  ;;  %v3923_v15 = vld [vmem:[#allocation16_spill] sm:$0xff]  ;;  %v2072_v47 = vpop.f32.mrf.mxu0 }
 0x103   : > { %v3917_v59 = vsel %vm3915_vm13, %v2994_v39, %v3916_v24  ;;  %vm1075_vm3 = vcmp.ne.s32.totalorder %v3329_v27, 0  ;;  %v1349_v23 = vsel %vm3289_vm10, %v533_v28, 0.0  ;;  %vm1111_vm7 = vcmp.lt.s32.totalorder %v3329_v27, 0  ;;  %v3441_v24 = vpop.f32.mrf.mxu1 }
 0x104   : > { %vm3415_vm14 = vcmp.lt.s32.totalorder %v3917_v59, 16  ;;  %v3426_v4 = vmul.u32.u64.low 3817748708, %v3377_v29  ;;  %v3427_v53 = vmul.u32.u64.high 3817748708, %v3377_v29, %v3426_v4  ;;  %v1425_v10 = vmul.f32 %v1348_v34, %v1348_v34  ;;  %3927 = vst [vmem:[#allocation10_spill] sm:$0xff] %v3441_v24 }
 0x105   : > { %v1459_v1 = vadd.f32 %v1458_v61, %v1424_v0  ;;  %v1383_v39 = vadd.f32 %v1382_v55, %v1348_v34  ;;  %vm3921_vm12 = vnez %v3920_v44  ;;  %v3439_v16 = vadd.s32 18, %v3329_v27 }
 0x106   : > { %v3924_v50 = vsel %vm3921_vm12, %v3922_v63, %v3923_v15  ;;  %v1967_v59 = vpack.c.bf16 %v2072_v47, %v2071_v17  ;;  %v2007_v34 = vpack.c.bf16 %v3441_v24, %v3396_v60  ;;  %v1426_v4 = vmul.f32 %v1349_v23, %v1349_v23  ;;  %v536_v63 = vpop.f32.mrf.mxu0  ;;  %v3928_v15 = vld [vmem:[#allocation25_spill] sm:$0xff]  ;;  %vm3462_vm12 = vmand %vm1108_vm1, %vm1072_vm6 }
 0x107   : > { %vm3434_vm0 = vcmp.lt.s32.totalorder %v3924_v50, 16  ;;  %v3446_v0 = vmul.u32.u64.low 3817748708, %v3408_v22  ;;  %v3447_v55 = vmul.u32.u64.high 3817748708, %v3408_v22, %v3446_v0  ;;  %v1384_v61 = vadd.f32 %v1383_v39, %v1349_v23  ;;  %v3930_v50 = vld [vmem:[#allocation24_spill] sm:$0xff]  ;;  %vm3493_vm1 = vmand %vm1111_vm7, %vm1075_vm3 }
 0x108   : > { %v1460_v44 = vadd.f32 %v1459_v1, %v1425_v10  ;;  %vm3929_vm10 = vnez %v3928_v15  ;;  %v3937_v23 = vld [vmem:[#allocation4_spill] sm:$0xff]  ;;  %v3470_v1 = vpop.f32.mrf.mxu1  ;;  %2017 = vst [vmem:[%s3035_s28 + $0x48] sm:$0xff] %v1967_v59   ;;  %v1962_v39 = vpack.c.bf16 %v536_v63, %v533_v28  ;;  %2025 = vst [vmem:[%s3035_s28 + $0x88] sm:$0xff] %v2007_v34   ;;  %v3944_v28 = vshrl.u32 %v3207_v35, 4  ;;  %v3953_v0 = vld [vmem:[#allocation2_spill] sm:$0xff] }
 0x109   : > { %v3932_v45 = vsel %vm3929_vm10, %v3930_v50, %v3931_v40  ;;  %v3468_v10 = vsub.s32 %v3937_v23, %v3331_v26  ;;  %v1351_v40 = vsel %vm3341_vm5, %v2071_v17, 0.0  ;;  %v2002_v15 = vpack.c.bf16 %v3470_v1, %v3420_v33 }
 0x10a   : > { %vm3454_vm13 = vcmp.lt.s32.totalorder %v3932_v45, 16  ;;  %v1350_v45 = vsel %vm3350_vm4, %v536_v63, 0.0  ;;  %v1461_v50 = vadd.f32 %v1460_v44, %v1426_v4  ;;  %v3938_v26 = vsel %vm3269_vm11, %v3212_v8, %v3093_v30  ;;  %2016 = vst [vmem:[%s3035_s28 + $0x40] sm:$0xff] %v1962_v39   ;;  %v3943_v8 = vld [vmem:[#allocation3_spill] sm:$0xff] }
 0x10b   : > { %v1385_v24 = vadd.f32 %v1384_v61, %v1350_v45  ;;  %v1427_v60 = vmul.f32 %v1350_v45, %v1350_v45  ;;  %vm3485_vm6 = vcmp.lt.s32.totalorder %v3938_v26, 16  ;;  %v1352_v17 = vsel %vm3370_vm8, %v2072_v47, 0.0  ;;  %2024 = vst [vmem:[%s3035_s28 + $0x80] sm:$0xff] %v2002_v15  }
 0x10c   : > { %v1216_v30 = vsel %vm3462_vm12, %v3312_v7, %v3217_v49  ;;  %v3506_v54 = vsub.s32 %v3943_v8, %v3356_v48  ;;  %v975_v59 = vmul.u32 18, %v3944_v28  ;;  %v1428_v34 = vmul.f32 %v1351_v40, %v1351_v40 }
 0x10d   : > { %v1386_v61 = vadd.f32 %v1385_v24, %v1351_v40  ;;  %v1462_v4 = vadd.f32 %v1461_v50, %v1427_v60  ;;  %v3945_v37 = vsel %vm3318_vm9, %v3308_v58, %v3203_v20  ;;  %v1030_v49 = vmul.u32 18, %v1029_v6 }
 0x10e   : > { %vm3516_vm11 = vcmp.lt.s32.totalorder %v3945_v37, 16  ;;  %v1353_v7 = vsel %vm3392_vm2, %v3127_v46, 0.0  ;;  %v1219_v35 = vsel %vm3493_vm1, %v3439_v16, %v3329_v27  ;;  %vm1073_vm5 = vcmp.ne.s32.totalorder %v3468_v10, 0 }
 0x10f   : > { %v1007_v52 = vshrl.u32 %v3405_v38, 4  ;;  %v1429_v48 = vmul.f32 %v1352_v17, %v1352_v17  ;;  %v1387_v20 = vadd.f32 %v1386_v61, %v1352_v17  ;;  %v1463_v58 = vadd.f32 %v1462_v4, %v1428_v34 }
 0x110   : > { %v3948_v60 = vsel %vm3248_vm15, %v3090_v41, %v3009_v36  ;;  %vm1109_vm4 = vcmp.lt.s32.totalorder %v3468_v10, 0  ;;  %v1354_v46 = vsel %vm3415_vm14, %v3173_v11, 0.0  ;;  %v1181_v27 = vadd.s32 18, %v3468_v10 }
 0x111   : > { %vm3534_vm9 = vcmp.lt.s32.totalorder %v3948_v60, 16  ;;  %v976_v6 = vsub.s32 %v3132_v5, %v975_v59  ;;  %v1018_v38 = vshrl.u32 %v3447_v55, 4  ;;  %v1430_v2 = vmul.f32 %v1353_v7, %v1353_v7  ;;  %vm3551_vm8 = vmand %vm1109_vm4, %vm1073_vm5 }
 0x112   : > { %v1464_v16 = vadd.f32 %v1463_v58, %v1429_v48  ;;  %v1388_v24 = vadd.f32 %v1387_v20, %v1353_v7  ;;  %vm1076_vm15 = vcmp.ne.s32.totalorder %v3506_v54, 0  ;;  %v1355_v36 = vsel %vm3434_vm0, %v3116_v56, 0.0 }
 0x113   : > { %vm1112_vm2 = vcmp.lt.s32.totalorder %v3506_v54, 0  ;;  %v3557_v11 = vadd.s32 18, %v3506_v54  ;;  %v1008_v5 = vmul.u32 18, %v1007_v52  ;;  %v1431_v55 = vmul.f32 %v1354_v46, %v1354_v46 }
 0x114   : > { %v1389_v12 = vadd.f32 %v1388_v24, %v1354_v46  ;;  %v1465_v44 = vadd.f32 %v1464_v16, %v1430_v2  ;;  %v1040_v63 = vshrl.u32 %v3427_v53, 4  ;;  %v1356_v56 = vsel %vm3454_vm13, %v3953_v0, 0.0  ;;  %vm3577_vm0 = vmand %vm1112_vm2, %vm1076_vm15 }
 0x115   : > { %vm1074_vm14 = vcmp.ne.s32.totalorder %v976_v6, 0  ;;  %vm1110_vm3 = vcmp.lt.s32.totalorder %v976_v6, 0  ;;  %v1019_v51 = vmul.u32 18, %v1018_v38  ;;  %v1432_v23 = vmul.f32 %v1355_v36, %v1355_v36 }
 0x116   : > { %v1390_v40 = vadd.f32 %v1389_v12, %v1355_v36  ;;  %v1466_v45 = vadd.f32 %v1465_v44, %v1431_v55  ;;  %v1217_v39 = vsel %vm3551_vm8, %v1181_v27, %v3468_v10  ;;  %v1357_v15 = vsel %vm3485_vm6, %v3209_v19, 0.0  ;;  %vm3588_vm13 = vmand %vm1110_vm3, %vm1074_vm14  ;;  %v3973_v19 = vld [vmem:[#allocation10_spill] sm:$0xff] }
 0x117   : > { %vm3569_vm7 = vcmp.lt.s32.totalorder %v1216_v30, 16  ;;  %v1182_v50 = vadd.s32 18, %v976_v6  ;;  %v1009_v26 = vsub.s32 %v3334_v18, %v1008_v5  ;;  %v1433_v10 = vmul.f32 %v1356_v56, %v1356_v56 }
 0x118   : > { %v1467_v31 = vadd.f32 %v1466_v45, %v1432_v23  ;;  %v1391_v17 = vadd.f32 %v1390_v40, %v1356_v56  ;;  %vm3582_vm10 = vcmp.lt.s32.totalorder %v1219_v35, 16  ;;  %v1041_v30 = vmul.u32 18, %v1040_v63 }
 0x119   : > { %v1358_v8 = vsel %vm3516_vm11, %v3273_v25, 0.0  ;;  %vm3595_vm12 = vcmp.lt.s32.totalorder %v1217_v39, 16  ;;  %v1031_v28 = vsub.s32 %v3176_v32, %v1030_v49  ;;  %v1020_v59 = vsub.s32 %v3408_v22, %v1019_v51 }
 0x11a   : > { %v1392_v34 = vadd.f32 %v1391_v17, %v1357_v15  ;;  %v1434_v61 = vmul.f32 %v1357_v15, %v1357_v15  ;;  %v1468_v4 = vadd.f32 %v1467_v31, %v1433_v10  ;;  %v1220_v37 = vsel %vm3577_vm0, %v3557_v11, %v3506_v54 }
 0x11b   : > { %v1359_v25 = vsel %vm3534_vm9, %v3195_v9, 0.0  ;;  %v1218_v47 = vsel %vm3588_vm13, %v1182_v50, %v976_v6  ;;  %vm1077_vm6 = vcmp.ne.s32.totalorder %v1009_v26, 0  ;;  %vm1113_vm1 = vcmp.lt.s32.totalorder %v1009_v26, 0  ;;  %v3972_v50 = vld [vmem:[#allocation5_spill] sm:$0xff] }
 0x11c   : > { %v1469_v32 = vadd.f32 %v1468_v4, %v1434_v61  ;;  %v1393_v49 = vadd.f32 %v1392_v34, %v1358_v8  ;;  %v1435_v22 = vmul.f32 %v1358_v8, %v1358_v8  ;;  %v1042_v7 = vsub.s32 %v3377_v29, %v1041_v30  ;;  %vm3614_vm4 = vmand %vm1113_vm1, %vm1077_vm6 }
 0x11d   : > { %v1360_v35 = vsel %vm3569_vm7, %v3242_v57, 0.0  ;;  %v1185_v52 = vadd.s32 18, %v1009_v26  ;;  %vm1078_vm11 = vcmp.ne.s32.totalorder %v1020_v59, 0  ;;  %vm1114_vm5 = vcmp.lt.s32.totalorder %v1020_v59, 0 }
 0x11e   : > { %v1436_v54 = vmul.f32 %v1359_v25, %v1359_v25  ;;  %v1394_v48 = vadd.f32 %v1393_v49, %v1359_v25  ;;  %v1470_v9 = vadd.f32 %v1469_v32, %v1435_v22  ;;  %vm1254_vm9 = vcmp.lt.s32.totalorder %v1218_v47, 16  ;;  %vm3622_vm2 = vmand %vm1114_vm5, %vm1078_vm11 }
 0x11f   : > { %v1361_v58 = vsel %vm3595_vm12, %v3322_v42, 0.0  ;;  %vm1079_vm15 = vcmp.ne.s32.totalorder %v1031_v28, 0  ;;  %vm1115_vm8 = vcmp.lt.s32.totalorder %v1031_v28, 0  ;;  %v1186_v29 = vadd.s32 18, %v1020_v59 }
 0x120   : > { %v1437_v60 = vmul.f32 %v1360_v35, %v1360_v35  ;;  %v1471_v57 = vadd.f32 %v1470_v9, %v1436_v54  ;;  %v1395_v62 = vadd.f32 %v1394_v48, %v1360_v35  ;;  %v1187_v46 = vadd.s32 18, %v1031_v28  ;;  %vm3631_vm0 = vmand %vm1115_vm8, %vm1079_vm15 }
 0x121   : > { %v1362_v6 = vsel %vm1254_vm9, %v3374_v21, 0.0  ;;  %v1221_v38 = vsel %vm3614_vm4, %v1185_v52, %v1009_v26  ;;  %vm1080_vm14 = vcmp.ne.s32.totalorder %v1042_v7, 0  ;;  %vm1116_vm3 = vcmp.lt.s32.totalorder %v1042_v7, 0 }
 0x122   : > { %v1396_v42 = vadd.f32 %v1395_v62, %v1361_v58  ;;  %v1438_v2 = vmul.f32 %v1361_v58, %v1361_v58  ;;  %v1472_v16 = vadd.f32 %v1471_v57, %v1437_v60  ;;  %vm1256_vm7 = vcmp.lt.s32.totalorder %v1220_v37, 16  ;;  %vm3640_vm12 = vmand %vm1116_vm3, %vm1080_vm14 }
 0x123   : > { %v1363_v36 = vsel %vm3582_vm10, %v3293_v43, 0.0  ;;  %v1188_v21 = vadd.s32 18, %v1042_v7  ;;  %v1222_v41 = vsel %vm3622_vm2, %v1186_v29, %v1020_v59  ;;  %v1439_v12 = vmul.f32 %v1362_v6, %v1362_v6 }
 0x124   : > { %v1473_v11 = vadd.f32 %v1472_v16, %v1438_v2  ;;  %v1397_v5 = vadd.f32 %v1396_v42, %v1362_v6  ;;  %vm1257_vm13 = vcmp.lt.s32.totalorder %v1221_v38, 16  ;;  %v1364_v44 = vsel %vm1256_vm7, %v3354_v14, 0.0 }
 0x125   : > { %v1223_v63 = vsel %vm3631_vm0, %v1187_v46, %v1031_v28  ;;  %v1440_v0 = vmul.f32 %v1363_v36, %v1363_v36  ;;  %vm1258_vm10 = vcmp.lt.s32.totalorder %v1222_v41, 16  ;;  %v1365_v51 = vsel %vm1257_vm13, %v3420_v33, 0.0 }
 0x126   : > { %v1398_v56 = vadd.f32 %v1397_v5, %v1363_v36  ;;  %v1474_v43 = vadd.f32 %v1473_v11, %v1439_v12  ;;  %v1224_v23 = vsel %vm3640_vm12, %v1188_v21, %v1042_v7  ;;  %v1441_v40 = vmul.f32 %v1364_v44, %v1364_v44 }
 0x127   : > { %vm1259_vm6 = vcmp.lt.s32.totalorder %v1223_v63, 16  ;;  %v1366_v15 = vsel %vm1258_vm10, %v3470_v1, 0.0  ;;  %v1442_v14 = vmul.f32 %v1365_v51, %v1365_v51  ;;  %vm1260_vm1 = vcmp.lt.s32.totalorder %v1224_v23, 16 }
 0x128   : > { %v1475_v45 = vadd.f32 %v1474_v43, %v1440_v0  ;;  %v1399_v39 = vadd.f32 %v1398_v56, %v1364_v44  ;;  %v1367_v26 = vsel %vm1259_vm6, %v3972_v50, 0.0  ;;  %v1443_v17 = vmul.f32 %v1366_v15, %v1366_v15 }
 0x129   : > { %v1368_v33 = vsel %vm1260_vm1, %v3973_v19, 0.0  ;;  %v1444_v13 = vmul.f32 %v1367_v26, %v1367_v26  ;;  %vm1487_vm11 = vcmask 1040384  }
 0x12a   : > { %v1400_v53 = vadd.f32 %v1399_v39, %v1365_v51  ;;  %v1476_v3 = vadd.f32 %v1475_v45, %v1441_v40  ;;  %v1445_v18 = vmul.f32 %v1368_v33, %v1368_v33 }
 0x12c   : > { %v1477_v10 = vadd.f32 %v1476_v3, %v1442_v14  ;;  %v1401_v31 = vadd.f32 %v1400_v53, %v1366_v15 }
 0x12e   : > { %v1402_v30 = vadd.f32 %v1401_v31, %v1367_v26  ;;  %v1478_v8 = vadd.f32 %v1477_v10, %v1443_v17 }
 0x130   : > { %v1403_v28 = vadd.f32 %v1402_v30, %v1368_v33  ;;  %v1479_v59 = vadd.f32 %v1478_v8, %v1444_v13 }
 0x132   : > { %v1404_v34 = vrot.slane %v1403_v28, 4  ;;  %v1480_v1 = vadd.f32 %v1479_v59, %v1445_v18 }
 0x134   : > { %v1405_v61 = vadd.f32 %v1404_v34, %v1403_v28  ;;  %v1481_v4 = vrot.slane %v1480_v1, 4 }
 0x136   : > { %v1406_v37 = vrot.slane %v1405_v61, 2  ;;  %v1482_v25 = vadd.f32 %v1481_v4, %v1480_v1 }
 0x138   : > { %v1407_v47 = vadd.f32 %v1406_v37, %v1405_v61  ;;  %v1483_v32 = vrot.slane %v1482_v25, 2 }
 0x13a   : > { %v1408_v49 = vrot.slane %v1407_v47, 1  ;;  %v1484_v22 = vadd.f32 %v1483_v32, %v1482_v25 }
 0x13c   : > { %v1485_v7 = vrot.slane %v1484_v22, 1  ;;  %v1409_v35 = vadd.f32 %v1408_v49, %v1407_v47 }
 0x13e   : > { %v1486_v52 = vadd.f32 %v1485_v7, %v1484_v22 }
 0x140   : > { %v1488_v54 = vsel %vm1487_vm11, %v1409_v35, %v1486_v52 }
 0x141   : > { %1489 = vst [vmem:[%s228_s5] sm:$0x3] %v1488_v54 }
 0x142 PF: > { %s14_s14 = sadd.s32 1, %s2237_s14   ;;  %s3974_s12 = smov %s2233_s13 }
 0x143   : > { %p11_p5 = scmp.ge.s32.totalorder %s14_s14, 4   ;;  %s3975_s13 = smov %s3977_s15 }
 0x145   :  { %13 = sbr.rel (!%p11_p5) target bundleno = 2 (0x2), region = 70 }

// kernel: double_conv.5
= control target key start
LH: loop header
LB: loop body
LE: loop exit
PB: predicated region body
PF: predicated region fallthrough
CT: control target
= control target key end

     0   :  { %s697_s12 = smov 0   ;;  %s699_s13 = smov 0   ;;  %s874_s0 = inlined_call_operand.vmem [shape: bf16[2,288,128], index: 0, kind: input, shape index: {}]   ;;  %s875_s1 = inlined_call_operand.vmem [shape: f32[1,128], index: 1, kind: input, shape index: {}]   ;;  %s876_s2 = inlined_call_operand.vmem [shape: f32[1,128], index: 2, kind: input, shape index: {}]   ;;  %s877_s3 = inlined_call_operand.vmem [shape: f32[2,288,128], index: 3, kind: output, shape index: {}]  }
   0x1   :  { %s701_s14 = smov 0  }
   0x2 LB: > { %s25_s15 = sadd.s32 1, %s671_s13  ;;  %p531_p0 = scmp.ge.s32.totalorder %s675_s14, 1  ;;  %s675_s14 = sphi %s701_s14, %s13_s14   ;;  %s671_s13 = sphi %s699_s13, %s879_s13   ;;  %s667_s12 = sphi %s697_s12, %s878_s12  }
   0x3   : > { %p27_p1 = scmp.ge.s32.totalorder %s25_s15, 2  ;;  %p158_p2 = scmp.lt.s32.totalorder %s675_s14, 3 }
   0x5   : > { %s881_s15 = smov (%p27_p1, %s25_s15), 0  ;;  %p159_p3 = pnand %p531_p0, %p158_p2 }
   0x6   : > { %p191_p4 = scmp.lt.s32.totalorder (!%p159_p3), %s667_s12, 1 }
   0x7   : > { %162 = sbr.rel (%p159_p3) target bundleno = 58 (0x3a), region = 32 }
   0xc   : > { %s883_s12 = smov (!%p191_p4, %s667_s12), 1  ;;  %v726_v0 = vld [vmem:[%s875_s1] ss:$0 sm:$0xff] }
   0xd   : > { %s627_s16 = smul.u32 144, %s883_s12  ;;  %v736_v9 = vld [vmem:[%s876_s2] ss:$0 sm:$0xff] }
   0xe   : > { %s628_s22 = smul.u32 288, %s883_s12 }
   0xf   : > { %s721_s19 = scalar_lea.vmem %s874_s0, %s627_s16 }
  0x10   : > { %v539_v1 = vld [vmem:[%s721_s19] sm:$0xff]   ;;  %v610_v2 = vld [vmem:[%s721_s19 + $0x8] sm:$0xff]   ;;  %v611_v3 = vld [vmem:[%s721_s19 + $0x10] sm:$0xff]   ;;  %s753_s27 = scalar_lea.vmem %s877_s3, %s628_s22 }
  0x11   : > { %v540_v4 = vunpack.c.l.bf16 %v539_v1  ;;  %v541_v5 = vunpack.c.h.bf16 %v539_v1  ;;  %v544_v6 = vunpack.c.l.bf16 %v610_v2  ;;  %v545_v7 = vunpack.c.h.bf16 %v610_v2  ;;  %v612_v8 = vld [vmem:[%s721_s19 + $0x18] sm:$0xff]   ;;  %v613_v30 = vld [vmem:[%s721_s19 + $0x20] sm:$0xff]   ;;  %v614_v31 = vld [vmem:[%s721_s19 + $0x28] sm:$0xff]  }
  0x12   : > { %v548_v10 = vunpack.c.l.bf16 %v611_v3  ;;  %v549_v11 = vunpack.c.h.bf16 %v611_v3  ;;  %v552_v12 = vunpack.c.l.bf16 %v612_v8  ;;  %v553_v13 = vunpack.c.h.bf16 %v612_v8  ;;  %v615_v36 = vld [vmem:[%s721_s19 + $0x30] sm:$0xff]   ;;  %v616_v37 = vld [vmem:[%s721_s19 + $0x38] sm:$0xff]   ;;  %v617_v3 = vld [vmem:[%s721_s19 + $0x40] sm:$0xff]  }
  0x13   : > { %v289_v14 = vmul.f32 %v540_v4, %v726_v0  ;;  %v290_v15 = vmul.f32 %v541_v5, %v726_v0  ;;  %v291_v16 = vmul.f32 %v544_v6, %v726_v0  ;;  %v292_v17 = vmul.f32 %v545_v7, %v726_v0  ;;  %v618_v4 = vld [vmem:[%s721_s19 + $0x48] sm:$0xff]  }
  0x14   : > { %v293_v18 = vmul.f32 %v548_v10, %v726_v0  ;;  %v294_v19 = vmul.f32 %v549_v11, %v726_v0  ;;  %v295_v20 = vmul.f32 %v552_v12, %v726_v0  ;;  %v296_v21 = vmul.f32 %v553_v13, %v726_v0  ;;  %v619_v10 = vld [vmem:[%s721_s19 + $0x50] sm:$0xff]   ;;  %v620_v11 = vld [vmem:[%s721_s19 + $0x58] sm:$0xff]  }
  0x15   : > { %v332_v22 = vadd.f32 %v736_v9, %v289_v14  ;;  %v333_v23 = vadd.f32 %v736_v9, %v290_v15  ;;  %v334_v24 = vadd.f32 %v736_v9, %v291_v16  ;;  %v335_v25 = vadd.f32 %v736_v9, %v292_v17 }
  0x16   : > { %v336_v26 = vadd.f32 %v736_v9, %v293_v18  ;;  %v337_v27 = vadd.f32 %v736_v9, %v294_v19  ;;  %v338_v28 = vadd.f32 %v736_v9, %v295_v20  ;;  %v339_v29 = vadd.f32 %v736_v9, %v296_v21 }
  0x17   : > { %v368_v32 = vmax.f32 %v332_v22, 0.0  ;;  %v369_v33 = vmax.f32 %v333_v23, 0.0  ;;  %v370_v34 = vmax.f32 %v334_v24, 0.0  ;;  %v371_v35 = vmax.f32 %v335_v25, 0.0 }
  0x18   : > { %v372_v38 = vmax.f32 %v336_v26, 0.0  ;;  %v373_v39 = vmax.f32 %v337_v27, 0.0  ;;  %v374_v40 = vmax.f32 %v338_v28, 0.0  ;;  %v375_v41 = vmax.f32 %v339_v29, 0.0 }
  0x19   : > { %404 = vst [vmem:[%s753_s27] sm:$0xff] %v368_v32  ;;  %405 = vst [vmem:[%s753_s27 + $0x8] sm:$0xff] %v369_v33  ;;  %v556_v42 = vunpack.c.l.bf16 %v613_v30  ;;  %v557_v43 = vunpack.c.h.bf16 %v613_v30  ;;  %v560_v44 = vunpack.c.l.bf16 %v614_v31  ;;  %v561_v45 = vunpack.c.h.bf16 %v614_v31 }
  0x1a   : > { %406 = vst [vmem:[%s753_s27 + $0x10] sm:$0xff] %v370_v34  ;;  %407 = vst [vmem:[%s753_s27 + $0x18] sm:$0xff] %v371_v35  ;;  %v564_v46 = vunpack.c.l.bf16 %v615_v36  ;;  %v565_v47 = vunpack.c.h.bf16 %v615_v36  ;;  %v568_v48 = vunpack.c.l.bf16 %v616_v37  ;;  %v569_v49 = vunpack.c.h.bf16 %v616_v37 }
  0x1b   : > { %408 = vst [vmem:[%s753_s27 + $0x20] sm:$0xff] %v372_v38  ;;  %409 = vst [vmem:[%s753_s27 + $0x28] sm:$0xff] %v373_v39  ;;  %v297_v50 = vmul.f32 %v556_v42, %v726_v0  ;;  %v298_v51 = vmul.f32 %v557_v43, %v726_v0  ;;  %v299_v52 = vmul.f32 %v560_v44, %v726_v0  ;;  %v572_v16 = vunpack.c.l.bf16 %v617_v3 }
  0x1c   : > { %410 = vst [vmem:[%s753_s27 + $0x30] sm:$0xff] %v374_v40  ;;  %411 = vst [vmem:[%s753_s27 + $0x38] sm:$0xff] %v375_v41  ;;  %v300_v53 = vmul.f32 %v561_v45, %v726_v0  ;;  %v301_v54 = vmul.f32 %v564_v46, %v726_v0  ;;  %v302_v55 = vmul.f32 %v565_v47, %v726_v0  ;;  %v573_v17 = vunpack.c.h.bf16 %v617_v3  ;;  %v621_v40 = vld [vmem:[%s721_s19 + $0x60] sm:$0xff]   ;;  %v622_v41 = vld [vmem:[%s721_s19 + $0x68] sm:$0xff]  }
  0x1d   : > { %v303_v56 = vmul.f32 %v568_v48, %v726_v0  ;;  %v304_v57 = vmul.f32 %v569_v49, %v726_v0  ;;  %v340_v58 = vadd.f32 %v736_v9, %v297_v50  ;;  %v341_v59 = vadd.f32 %v736_v9, %v298_v51  ;;  %v623_v46 = vld [vmem:[%s721_s19 + $0x70] sm:$0xff]   ;;  %v624_v47 = vld [vmem:[%s721_s19 + $0x78] sm:$0xff]  }
  0x1e   : > { %v342_v60 = vadd.f32 %v736_v9, %v299_v52  ;;  %v343_v61 = vadd.f32 %v736_v9, %v300_v53  ;;  %v344_v62 = vadd.f32 %v736_v9, %v301_v54  ;;  %v345_v63 = vadd.f32 %v736_v9, %v302_v55 }
  0x1f   : > { %v346_v1 = vadd.f32 %v736_v9, %v303_v56  ;;  %v347_v2 = vadd.f32 %v736_v9, %v304_v57  ;;  %v376_v5 = vmax.f32 %v340_v58, 0.0  ;;  %v377_v6 = vmax.f32 %v341_v59, 0.0 }
  0x20   : > { %v378_v7 = vmax.f32 %v342_v60, 0.0  ;;  %v379_v8 = vmax.f32 %v343_v61, 0.0  ;;  %v380_v12 = vmax.f32 %v344_v62, 0.0  ;;  %v381_v13 = vmax.f32 %v345_v63, 0.0 }
  0x21   : > { %v382_v14 = vmax.f32 %v346_v1, 0.0  ;;  %v383_v15 = vmax.f32 %v347_v2, 0.0  ;;  %412 = vst [vmem:[%s753_s27 + $0x40] sm:$0xff] %v376_v5  ;;  %413 = vst [vmem:[%s753_s27 + $0x48] sm:$0xff] %v377_v6  ;;  %v576_v18 = vunpack.c.l.bf16 %v618_v4  ;;  %v577_v19 = vunpack.c.h.bf16 %v618_v4 }
  0x22   : > { %414 = vst [vmem:[%s753_s27 + $0x50] sm:$0xff] %v378_v7  ;;  %415 = vst [vmem:[%s753_s27 + $0x58] sm:$0xff] %v379_v8  ;;  %v580_v20 = vunpack.c.l.bf16 %v619_v10  ;;  %v581_v21 = vunpack.c.h.bf16 %v619_v10  ;;  %v584_v22 = vunpack.c.l.bf16 %v620_v11  ;;  %v585_v23 = vunpack.c.h.bf16 %v620_v11 }
  0x23   : > { %416 = vst [vmem:[%s753_s27 + $0x60] sm:$0xff] %v380_v12  ;;  %417 = vst [vmem:[%s753_s27 + $0x68] sm:$0xff] %v381_v13  ;;  %v305_v24 = vmul.f32 %v572_v16, %v726_v0  ;;  %v306_v25 = vmul.f32 %v573_v17, %v726_v0  ;;  %v307_v26 = vmul.f32 %v576_v18, %v726_v0  ;;  %v588_v52 = vunpack.c.l.bf16 %v621_v40 }
  0x24   : > { %418 = vst [vmem:[%s753_s27 + $0x70] sm:$0xff] %v382_v14  ;;  %419 = vst [vmem:[%s753_s27 + $0x78] sm:$0xff] %v383_v15  ;;  %v308_v27 = vmul.f32 %v577_v19, %v726_v0  ;;  %v309_v28 = vmul.f32 %v580_v20, %v726_v0  ;;  %v310_v29 = vmul.f32 %v581_v21, %v726_v0  ;;  %v589_v53 = vunpack.c.h.bf16 %v621_v40  ;;  %v625_v14 = vld [vmem:[%s721_s19 + $0x80] sm:$0xff]   ;;  %v626_v15 = vld [vmem:[%s721_s19 + $0x88] sm:$0xff]  }
  0x25   : > { %v311_v30 = vmul.f32 %v584_v22, %v726_v0  ;;  %v312_v31 = vmul.f32 %v585_v23, %v726_v0  ;;  %v348_v32 = vadd.f32 %v736_v9, %v305_v24  ;;  %v349_v33 = vadd.f32 %v736_v9, %v306_v25 }
  0x26   : > { %v350_v34 = vadd.f32 %v736_v9, %v307_v26  ;;  %v351_v35 = vadd.f32 %v736_v9, %v308_v27  ;;  %v352_v36 = vadd.f32 %v736_v9, %v309_v28  ;;  %v353_v37 = vadd.f32 %v736_v9, %v310_v29 }
  0x27   : > { %v354_v38 = vadd.f32 %v736_v9, %v311_v30  ;;  %v355_v39 = vadd.f32 %v736_v9, %v312_v31  ;;  %v384_v42 = vmax.f32 %v348_v32, 0.0  ;;  %v385_v43 = vmax.f32 %v349_v33, 0.0 }
  0x28   : > { %v386_v44 = vmax.f32 %v350_v34, 0.0  ;;  %v387_v45 = vmax.f32 %v351_v35, 0.0  ;;  %v388_v48 = vmax.f32 %v352_v36, 0.0  ;;  %v389_v49 = vmax.f32 %v353_v37, 0.0 }
  0x29   : > { %v390_v50 = vmax.f32 %v354_v38, 0.0  ;;  %v391_v51 = vmax.f32 %v355_v39, 0.0  ;;  %420 = vst [vmem:[%s753_s27 + $0x80] sm:$0xff] %v384_v42  ;;  %421 = vst [vmem:[%s753_s27 + $0x88] sm:$0xff] %v385_v43  ;;  %v592_v54 = vunpack.c.l.bf16 %v622_v41  ;;  %v593_v55 = vunpack.c.h.bf16 %v622_v41 }
  0x2a   : > { %422 = vst [vmem:[%s753_s27 + $0x90] sm:$0xff] %v386_v44  ;;  %423 = vst [vmem:[%s753_s27 + $0x98] sm:$0xff] %v387_v45  ;;  %v596_v56 = vunpack.c.l.bf16 %v623_v46  ;;  %v597_v57 = vunpack.c.h.bf16 %v623_v46  ;;  %v600_v58 = vunpack.c.l.bf16 %v624_v47  ;;  %v601_v59 = vunpack.c.h.bf16 %v624_v47 }
  0x2b   : > { %424 = vst [vmem:[%s753_s27 + $0xa0] sm:$0xff] %v388_v48  ;;  %425 = vst [vmem:[%s753_s27 + $0xa8] sm:$0xff] %v389_v49  ;;  %v313_v60 = vmul.f32 %v588_v52, %v726_v0  ;;  %v314_v61 = vmul.f32 %v589_v53, %v726_v0  ;;  %v315_v62 = vmul.f32 %v592_v54, %v726_v0  ;;  %v604_v24 = vunpack.c.l.bf16 %v625_v14 }
  0x2c   : > { %426 = vst [vmem:[%s753_s27 + $0xb0] sm:$0xff] %v390_v50  ;;  %427 = vst [vmem:[%s753_s27 + $0xb8] sm:$0xff] %v391_v51  ;;  %v316_v63 = vmul.f32 %v593_v55, %v726_v0  ;;  %v317_v1 = vmul.f32 %v596_v56, %v726_v0  ;;  %v318_v2 = vmul.f32 %v597_v57, %v726_v0  ;;  %v605_v25 = vunpack.c.h.bf16 %v625_v14 }
  0x2d   : > { %v319_v3 = vmul.f32 %v600_v58, %v726_v0  ;;  %v320_v4 = vmul.f32 %v601_v59, %v726_v0  ;;  %v356_v5 = vadd.f32 %v736_v9, %v313_v60  ;;  %v357_v6 = vadd.f32 %v736_v9, %v314_v61 }
  0x2e   : > { %v358_v7 = vadd.f32 %v736_v9, %v315_v62  ;;  %v359_v8 = vadd.f32 %v736_v9, %v316_v63  ;;  %v360_v10 = vadd.f32 %v736_v9, %v317_v1  ;;  %v361_v11 = vadd.f32 %v736_v9, %v318_v2 }
  0x2f   : > { %v362_v12 = vadd.f32 %v736_v9, %v319_v3  ;;  %v363_v13 = vadd.f32 %v736_v9, %v320_v4  ;;  %v392_v16 = vmax.f32 %v356_v5, 0.0  ;;  %v393_v17 = vmax.f32 %v357_v6, 0.0 }
  0x30   : > { %v394_v18 = vmax.f32 %v358_v7, 0.0  ;;  %v395_v19 = vmax.f32 %v359_v8, 0.0  ;;  %v396_v20 = vmax.f32 %v360_v10, 0.0  ;;  %v397_v21 = vmax.f32 %v361_v11, 0.0 }
  0x31   : > { %v398_v22 = vmax.f32 %v362_v12, 0.0  ;;  %v399_v23 = vmax.f32 %v363_v13, 0.0  ;;  %428 = vst [vmem:[%s753_s27 + $0xc0] sm:$0xff] %v392_v16  ;;  %429 = vst [vmem:[%s753_s27 + $0xc8] sm:$0xff] %v393_v17  ;;  %v608_v26 = vunpack.c.l.bf16 %v626_v15  ;;  %v609_v27 = vunpack.c.h.bf16 %v626_v15 }
  0x32   : > { %430 = vst [vmem:[%s753_s27 + $0xd0] sm:$0xff] %v394_v18  ;;  %431 = vst [vmem:[%s753_s27 + $0xd8] sm:$0xff] %v395_v19  ;;  %v321_v28 = vmul.f32 %v604_v24, %v726_v0  ;;  %v322_v29 = vmul.f32 %v605_v25, %v726_v0 }
  0x33   : > { %432 = vst [vmem:[%s753_s27 + $0xe0] sm:$0xff] %v396_v20  ;;  %433 = vst [vmem:[%s753_s27 + $0xe8] sm:$0xff] %v397_v21  ;;  %v323_v30 = vmul.f32 %v608_v26, %v726_v0  ;;  %v324_v31 = vmul.f32 %v609_v27, %v726_v0 }
  0x34   : > { %434 = vst [vmem:[%s753_s27 + $0xf0] sm:$0xff] %v398_v22  ;;  %435 = vst [vmem:[%s753_s27 + $0xf8] sm:$0xff] %v399_v23  ;;  %v364_v32 = vadd.f32 %v736_v9, %v321_v28  ;;  %v365_v33 = vadd.f32 %v736_v9, %v322_v29 }
  0x35   : > { %v366_v34 = vadd.f32 %v736_v9, %v323_v30  ;;  %v367_v35 = vadd.f32 %v736_v9, %v324_v31 }
  0x36   : > { %v400_v36 = vmax.f32 %v364_v32, 0.0  ;;  %v401_v37 = vmax.f32 %v365_v33, 0.0 }
  0x37   : > { %v402_v38 = vmax.f32 %v366_v34, 0.0  ;;  %v403_v39 = vmax.f32 %v367_v35, 0.0 }
  0x38   : > { %436 = vst [vmem:[%s753_s27 + $0x100] sm:$0xff] %v400_v36  ;;  %437 = vst [vmem:[%s753_s27 + $0x108] sm:$0xff] %v401_v37 }
  0x39   : > { %438 = vst [vmem:[%s753_s27 + $0x110] sm:$0xff] %v402_v38  ;;  %439 = vst [vmem:[%s753_s27 + $0x118] sm:$0xff] %v403_v39 }
  0x3a PF: > { %s13_s14 = sadd.s32 1, %s675_s14   ;;  %s878_s12 = smov %s671_s13 }
  0x3b   : > { %p10_p5 = scmp.ge.s32.totalorder %s13_s14, 4   ;;  %s879_s13 = smov %s881_s15 }
  0x3d   :  { %12 = sbr.rel (!%p10_p5) target bundleno = 2 (0x2), region = 62 }

// kernel: double_conv.4
= control target key start
LH: loop header
LB: loop body
LE: loop exit
PB: predicated region body
PF: predicated region fallthrough
CT: control target
= control target key end

     0   :  { %s9597_s18 = smov 0   ;;  %s9599_s19 = smov 0   ;;  %s13529_s0 = inlined_call_operand.vmem [shape: bf16[2,1,326,128], index: 0, kind: input, shape index: {}]   ;;  %s13530_s1 = inlined_call_operand.vmem [shape: f32[1,128], index: 1, kind: input, shape index: {}]   ;;  %s13531_s2 = inlined_call_operand.vmem [shape: f32[1,128], index: 2, kind: input, shape index: {}]   ;;  %s13532_s3 = inlined_call_operand.vmem [shape: bf16[1152,128], index: 3, kind: input, shape index: {}]   ;;  %s13533_s4 = inlined_call_operand.vmem [shape: bf16[2,288,128], index: 4, kind: output, shape index: {0}]   ;;  %s13534_s5 = inlined_call_operand.vmem [shape: f32[2,1,2,128], index: 5, kind: output, shape index: {1}]  }
   0x1   :  { %s9601_s20 = smov 0  }
   0x2 LB: > { %s28_s21 = sadd.s32 1, %s9558_s19  ;;  %p8234_p0 = scmp.ge.s32.totalorder %s9562_s20, 1  ;;  %s9562_s20 = sphi %s9601_s20, %s16_s20   ;;  %s9558_s19 = sphi %s9599_s19, %s14148_s19   ;;  %s9554_s18 = sphi %s9597_s18, %s14147_s18  }
   0x3   : > { %p30_p1 = scmp.ge.s32.totalorder %s28_s21, 2  ;;  %p212_p2 = scmp.lt.s32.totalorder %s9562_s20, 3 }
   0x5   : > { %s14150_s21 = smov (%p30_p1, %s28_s21), 0  ;;  %p213_p3 = pnand %p8234_p0, %p212_p2 }
   0x7   : > { %216 = sbr.rel (%p213_p3) target bundleno = 891 (0x37b), region = 36 }
   0xc   : > { %v9253_v0 = vld [vmem:[%s13532_s3 + $0x38] sm:$0xff]   ;;  %v13535_v1 = vmov 0   ;;  %v9255_v3 = vld [vmem:[%s13532_s3 + $0x30] sm:$0xff]   ;;  %v282_v5 = vlaneseq  ;;  %v9257_v6 = vld [vmem:[%s13532_s3 + $0x28] sm:$0xff]   ;;  %p255_p4 = scmp.lt.s32.totalorder %s9554_s18, 1  ;;  %v9565_v12 = vmov 0.0|0.0  }
   0xd   : > { %6193 = vmatprep.subr.bf16.mxu0 %v13535_v1  ;;  %6370 = vmatprep.subr.bf16.mxu1 %v13535_v1  ;;  %v9254_v2 = vld [vmem:[%s13532_s3 + $0xb8] sm:$0xff]   ;;  %v9256_v4 = vld [vmem:[%s13532_s3 + $0xb0] sm:$0xff]   ;;  %v9258_v7 = vld [vmem:[%s13532_s3 + $0xa8] sm:$0xff]   ;;  %v8282_v13 = vcombine.low %v9565_v12, %v9565_v12  ;;  %v8283_v14 = vcombine.high %v9565_v12, %v9565_v12  ;;  %vm1926_vm1 = vsmask.f32 3328  ;;  %vm2439_vm3 = vcmask 1042432  }
   0xe   : > { %6194 = vmatpush1.bf16.msra.mxu0 %v9253_v0  ;;  %6371 = vmatpush1.bf16.msra.mxu1 %v9254_v2  ;;  %v9641_v8 = vshrl.u32 %v282_v5, 7  ;;  %v9259_v9 = vld [vmem:[%s13532_s3 + $0x20] sm:$0xff]   ;;  %v9261_v15 = vld [vmem:[%s13532_s3 + $0x18] sm:$0xff]   ;;  %s14152_s18 = smov (!%p255_p4, %s9554_s18), 1  ;;  %v9263_v19 = vld [vmem:[%s13532_s3 + $0x10] sm:$0xff]   ;;  %vm2440_vm4 = vcmask 1046532  }
   0xf   : > { %6195 = vmatprep.subr.bf16.mxu0 %v13535_v1  ;;  %6372 = vmatprep.subr.bf16.mxu1 %v13535_v1  ;;  %v9260_v10 = vld [vmem:[%s13532_s3 + $0xa0] sm:$0xff]   ;;  %v9262_v16 = vld [vmem:[%s13532_s3 + $0x98] sm:$0xff]   ;;  %1776 = vst [vmem:[#allocation2] sm:$0xf] %v8282_v13  ;;  %1777 = vst [vmem:[#allocation2 + $0x4] sm:$0xf] %v8283_v14 }
  0x10   : > { %13651 = vst [vmem:[#allocation4_spill] sm:$0xff] %v9641_v8  ;;  %v9653_v11 = vadd.s32 16, %v9641_v8  ;;  %1816 = vst [vmem:[#allocation2 + $0xa0] sm:$0x7] %v8282_v13  ;;  %v9669_v17 = vadd.s32 24, %v9641_v8  ;;  %v9264_v20 = vld [vmem:[%s13532_s3 + $0x90] sm:$0xff]  }
  0x11   : > { %s9078_s25 = smul.u32 164, %s14152_s18  ;;  %v9265_v23 = vld [vmem:[%s13532_s3 + $0x8] sm:$0xff]   ;;  %v9691_v24 = vadd.s32 32, %v9641_v8  ;;  %v9698_v26 = vadd.s32 40, %v9641_v8  ;;  %v9267_v27 = vld [vmem:[%s13532_s3] sm:$0xff]   ;;  %v9705_v28 = vadd.s32 48, %v9641_v8  ;;  %vm9873_vm14 = vmor %vm2439_vm3, %vm2440_vm4 }
  0x12   : > { %6196 = vmatpush1.bf16.msra.mxu0 %v9255_v3  ;;  %6373 = vmatpush1.bf16.msra.mxu1 %v9256_v4  ;;  %13652 = vst [vmem:[#allocation5_spill] sm:$0xff] %v9669_v17  ;;  %v9672_v18 = vadd.s32 4294967277, %v9653_v11  ;;  %v9684_v21 = vadd.s32 4294967277, %v9669_v17  ;;  %v9266_v25 = vld [vmem:[%s13532_s3 + $0x88] sm:$0xff]   ;;  %v9268_v29 = vld [vmem:[%s13532_s3 + $0x80] sm:$0xff]   ;;  %v9711_v30 = vadd.s32 56, %v9641_v8 }
  0x13   : > { %6197 = vmatprep.subr.bf16.mxu0 %v13535_v1  ;;  %6374 = vmatprep.subr.bf16.mxu1 %v13535_v1  ;;  %13653 = vst [vmem:[#allocation6_spill] sm:$0xff] %v9691_v24  ;;  %13654 = vst [vmem:[#allocation7_spill] sm:$0xff] %v9698_v26  ;;  %v9714_v31 = vadd.s32 64, %v9641_v8  ;;  %v9717_v32 = vadd.s32 4294967277, %v9691_v24  ;;  %v9720_v33 = vadd.s32 72, %v9641_v8  ;;  %v9724_v34 = vadd.s32 4294967277, %v9698_v26  ;;  %s9750_s15 = scalar_lea.vmem %s13529_s0, %s9078_s25 }
  0x14   : > { %v554_v22 = vsub.s32 0, %v9672_v18  ;;  %13655 = vst [vmem:[#allocation8_spill] sm:$0xff] %v9705_v28  ;;  %13656 = vst [vmem:[#allocation9_spill] sm:$0xff] %v9711_v30  ;;  %v9727_v35 = vadd.s32 80, %v9641_v8  ;;  %v9269_v36 = vld [vmem:[%s13532_s3 + $0x78] sm:$0xff]   ;;  %v9737_v38 = vadd.s32 4294967277, %v9705_v28 }
  0x15   : > { %13657 = vst [vmem:[#allocation10_spill] sm:$0xff] %v9714_v31  ;;  %13658 = vst [vmem:[#allocation11_spill] sm:$0xff] %v9720_v33  ;;  %v9740_v39 = vadd.s32 88, %v9641_v8  ;;  %v9270_v40 = vld [vmem:[%s13532_s3 + $0xf8] sm:$0xff]   ;;  %v9753_v41 = vadd.s32 4294967277, %v9711_v30  ;;  %v9756_v42 = vadd.s32 4294967277, %v9714_v31 }
  0x16   : > { %6198 = vmatpush1.bf16.msra.mxu0 %v9257_v6  ;;  %6375 = vmatpush1.bf16.msra.mxu1 %v9258_v7  ;;  %13659 = vst [vmem:[#allocation12_spill] sm:$0xff] %v9727_v35  ;;  %v9734_v37 = vmin.u32 %v9672_v18, %v554_v22  ;;  %v9759_v43 = vadd.s32 4294967277, %v9720_v33  ;;  %v9762_v44 = vadd.s32 4294967277, %v9727_v35  ;;  %v9769_v46 = vadd.s32 96, %v9641_v8  ;;  %v9271_v47 = vld [vmem:[%s13532_s3 + $0x70] sm:$0xff]   ;;  %v8930_v52 = vld [vmem:[%s9750_s15 + $0x8] sm:$0xff]  }
  0x17   : > { %6199 = vmatprep.subr.bf16.mxu0 %v13535_v1  ;;  %6376 = vmatprep.subr.bf16.mxu1 %v13535_v1  ;;  %13660 = vst [vmem:[#allocation13_spill] sm:$0xff] %v9740_v39  ;;  %v9766_v45 = vadd.s32 4294967277, %v9740_v39  ;;  %v9780_v50 = vmul.u32.u64.low 3817748708, %v9684_v21  ;;  %v9781_v51 = vmul.u32.u64.high 3817748708, %v9684_v21, %v9780_v50  ;;  %v8931_v53 = vld [vmem:[%s9750_s15 + $0x10] sm:$0xff]   ;;  %vm553_vm0 = vcmp.lt.s32.totalorder %v9672_v18, 0 }
  0x18   : > { %13661 = vst [vmem:[#allocation14_spill] sm:$0xff] %v9769_v46  ;;  %v9776_v48 = vmul.u32.u64.low 3817748708, %v9734_v37  ;;  %v9777_v49 = vmul.u32.u64.high 3817748708, %v9734_v37, %v9776_v48  ;;  %v8676_v54 = vunpack.c.l.bf16 %v8930_v52  ;;  %v8677_v55 = vunpack.c.h.bf16 %v8930_v52  ;;  %v9789_v56 = vld [vmem:[%s13530_s1] ss:$0 sm:$0xff]  ;;  %v9272_v0 = vld [vmem:[%s13532_s3 + $0xf0] sm:$0xff]  }
  0x19   : > { %v9794_v57 = vld [vmem:[%s13531_s2] ss:$0 sm:$0xff]  ;;  %v1818_v59 = vld [vmem:[#allocation2 + $0x4] sm:$0xf]  ;;  %v8680_v62 = vunpack.c.l.bf16 %v8931_v53  ;;  %v8681_v63 = vunpack.c.h.bf16 %v8931_v53  ;;  %vm1927_vm2 = vsmask.f32 7440 }
  0x1a   : > { %6200 = vmatpush1.bf16.msra.mxu0 %v9259_v9  ;;  %6377 = vmatpush1.bf16.msra.mxu1 %v9260_v10  ;;  %v1817_v58 = vld [vmem:[#allocation2] sm:$0xf]  ;;  %v1890_v61 = vld [vmem:[#allocation2 + $0x4] sm:$0xf]  ;;  %v1360_v2 = vmul.f32 %v8676_v54, %v9789_v56  ;;  %v1361_v3 = vmul.f32 %v8677_v55, %v9789_v56  ;;  %1854 = vst [vmem:[#allocation3 + $0x24] sm:$0xf] %v1818_v59  ;;  %vm9835_vm8 = vmor %vm1926_vm1, %vm1927_vm2 }
  0x1b   : > { %6201 = vmatprep.subr.bf16.mxu0 %v13535_v1  ;;  %6378 = vmatprep.subr.bf16.mxu1 %v13535_v1  ;;  %1853 = vst [vmem:[#allocation3] sm:$0xf] %v1817_v58  ;;  %v1889_v60 = vld [vmem:[#allocation2] sm:$0xf]  ;;  %v559_v4 = vshrl.u32 %v9777_v49, 4  ;;  %v570_v5 = vshrl.u32 %v9781_v51, 4  ;;  %v1362_v49 = vmul.f32 %v8680_v62, %v9789_v56  ;;  %v1363_v54 = vmul.f32 %v8681_v63, %v9789_v56 }
  0x1c   : > { %v1930_v6 = vshrl.u32 %v1889_v60, 16  ;;  %v1933_v7 = vshll.u32 %v1889_v60, 16  ;;  %v9806_v9 = vadd.f32 %v9794_v57, %v1360_v2  ;;  %v1409_v10 = vadd.f32 %v9794_v57, %v1361_v3  ;;  %v9273_v14 = vld [vmem:[%s13532_s3 + $0x68] sm:$0xff]   ;;  %v9276_v50 = vld [vmem:[%s13532_s3 + $0xe0] sm:$0xff]   ;;  %s9079_s25 = smul.u32 144, %s14152_s18  ;;  %s8237_s28 = sshll.u32 %s14152_s18, 1 }
  0x1d   : > { %v1939_v12 = vshll.u32 %v1890_v61, 16  ;;  %v1943_v13 = vshrl.u32 %v1890_v61, 16  ;;  %vm410_vm5 = vcmp.ge.s32.totalorder %v9672_v18, 0  ;;  %v2365_v58 = vld [vmem:[#allocation2] sm:$0xe]  ;;  %v9850_v2 = vadd.f32 %v9794_v57, %v1362_v49  ;;  %s280_s6 = scalar_lea.vmem %s13534_s5, %s8237_s28 }
  0x1e   : > { %6202 = vmatpush1.bf16.msra.mxu0 %v9261_v15  ;;  %6379 = vmatpush1.bf16.msra.mxu1 %v9262_v16  ;;  %v9274_v15 = vld [vmem:[%s13532_s3 + $0xe8] sm:$0xff]   ;;  %v560_v16 = vmul.u32 18, %v559_v4  ;;  %v1935_v22 = vrot.slane %v1933_v7, 5  ;;  %v9829_v52 = vmul.u32.u64.low 3817748708, %v9717_v32  ;;  %v9830_v53 = vmul.u32.u64.high 3817748708, %v9717_v32, %v9829_v52  ;;  %v9277_v7 = vld [vmem:[%s13532_s3 + $0x58] sm:$0xff]   ;;  %s12918_s27 = scalar_lea.vmem %s13533_s4, %s9079_s25 }
  0x1f   : > { %6203 = vmatprep.subr.bf16.mxu0 %v13535_v1  ;;  %6380 = vmatprep.subr.bf16.mxu1 %v13535_v1  ;;  %v9843_v61 = vmul.u32.u64.low 3817748708, %v9724_v34  ;;  %v9844_v62 = vmul.u32.u64.high 3817748708, %v9724_v34, %v9843_v61  ;;  %v9853_v3 = vadd.f32 %v9794_v57, %v1363_v54  ;;  %v2366_v4 = vld [vmem:[#allocation2 + $0x4] sm:$0xf] }
  0x22   : > { %6204 = vmatpush1.bf16.msra.mxu0 %v9263_v19  ;;  %6381 = vmatpush1.bf16.msra.mxu1 %v9264_v20  ;;  %v571_v19 = vmul.u32 18, %v570_v5  ;;  %v1932_v20 = vrot.slane %v1930_v6, 4  ;;  %v9856_v5 = vld [vmem:[%s9750_s15 + $0x18] sm:$0xff]  }
  0x23   : > { %6205 = vmatprep.subr.bf16.mxu0 %v13535_v1  ;;  %6382 = vmatprep.subr.bf16.mxu1 %v13535_v1 }
  0x24   : > { %v1936_v48 = vor.u32 %v1935_v22, %v1932_v20  ;;  %v1452_v20 = vmax.f32 %v9853_v3, 0.0 }
  0x26   : > { %6206 = vmatpush1.bf16.msra.mxu0 %v9265_v23  ;;  %6383 = vmatpush1.bf16.msra.mxu1 %v9266_v25  ;;  %v1449_v23 = vmax.f32 %v9806_v9, 0.0  ;;  %v1450_v25 = vmax.f32 %v1409_v10, 0.0  ;;  %v1937_v59 = vrot.slane %v1936_v48, 4 }
  0x27   : > { %6207 = vmatprep.subr.bf16.mxu0 %v13535_v1  ;;  %6384 = vmatprep.subr.bf16.mxu1 %v13535_v1  ;;  %v9885_v48 = vmul.u32.u64.low 3817748708, %v9737_v38  ;;  %v9886_v49 = vmul.u32.u64.high 3817748708, %v9737_v38, %v9885_v48 }
  0x2a   : > { %6208 = vmatpush1.bf16.msra.mxu0 %v9267_v27  ;;  %6385 = vmatpush1.bf16.msra.mxu1 %v9268_v29  ;;  %v1941_v27 = vrot.slane %v1939_v12, 5  ;;  %v1945_v29 = vrot.slane %v1943_v13, 4  ;;  %v581_v13 = vshrl.u32 %v9830_v53, 4 }
  0x2b   : > { %6209 = vmatprep.subr.bf16.mxu0 %v13535_v1  ;;  %6386 = vmatprep.subr.bf16.mxu1 %v13535_v1 }
  0x2c   : > { %v1946_v51 = vor.u32 %v1945_v29, %v1941_v27  ;;  %v1942_v12 = vsel %vm9835_vm8, %v1937_v59, %v1941_v27  ;;  %v582_v27 = vmul.u32 18, %v581_v13  ;;  %v2444_v29 = vrot.slane %v2366_v4, 5  ;;  %v9282_v4 = vld [vmem:[%s13532_s3 + $0xc8] sm:$0xff]  }
  0x2d   : > { %2329 = vst [vmem:[#allocation3 + $0x4] sm:$0xf] %v1942_v12  ;;  %v9905_v59 = vmul.u32.u64.low 3817748708, %v9753_v41  ;;  %v9906_v9 = vmul.u32.u64.high 3817748708, %v9753_v41, %v9905_v59 }
  0x2e   : > { %6210 = vmatpush2.bf16.msra.mxu0 %v9269_v36  ;;  %6387 = vmatpush2.bf16.msra.mxu1 %v9270_v40  ;;  %v9275_v36 = vld [vmem:[%s13532_s3 + $0x60] sm:$0xff]   ;;  %v561_v40 = vsub.s32 %v9734_v37, %v560_v16  ;;  %v9840_v60 = vrot.slane %v1946_v51, 4  ;;  %v9280_v51 = vld [vmem:[%s13532_s3 + $0xd0] sm:$0xff]   ;;  %v583_v53 = vsub.s32 %v9717_v32, %v582_v27  ;;  %v9897_v54 = vrot.slane %v2444_v29, 4  ;;  %v9281_v32 = vld [vmem:[%s13532_s3 + $0x48] sm:$0xff]  }
  0x2f   : > { %6211 = vmatprep.subr.bf16.mxu0 %v13535_v1  ;;  %6388 = vmatprep.subr.bf16.mxu1 %v13535_v1 }
  0x30   : > { %v562_v55 = vsub.s32 0, %v561_v40  ;;  %vm986_vm1 = vcmp.ne.s32.totalorder %v583_v53, 0  ;;  %vm1027_vm2 = vcmp.lt.s32.totalorder %v583_v53, 0 }
  0x32   : > { %6212 = vmatpush2.bf16.msra.mxu0 %v9271_v47  ;;  %6389 = vmatpush2.bf16.msra.mxu1 %v9272_v0  ;;  %v572_v47 = vsub.s32 %v9684_v21, %v571_v19  ;;  %v563_v63 = vsel %vm553_vm0, %v562_v55, %v561_v40  ;;  %v592_v19 = vshrl.u32 %v9844_v62, 4  ;;  %v9279_v40 = vld [vmem:[%s13532_s3 + $0x50] sm:$0xff]   ;;  %v9900_v55 = vld [vmem:[%s9750_s15 + $0x20] sm:$0xff]   ;;  %v603_v62 = vshrl.u32 %v9886_v49, 4 }
  0x33   : > { %6213 = vmatprep.subr.bf16.mxu0 %v13535_v1  ;;  %6390 = vmatprep.subr.bf16.mxu1 %v13535_v1  ;;  %vm984_vm10 = vcmp.ne.s32.totalorder %v563_v63, 0  ;;  %vm1025_vm11 = vcmp.lt.s32.totalorder %v563_v63, 0  ;;  %v1107_v6 = vadd.s32 18, %v563_v63  ;;  %v8688_v3 = vunpack.c.l.bf16 %v9900_v55 }
  0x34   : > { %vm985_vm6 = vcmp.ne.s32.totalorder %v572_v47, 0  ;;  %vm1026_vm7 = vcmp.lt.s32.totalorder %v572_v47, 0  ;;  %v1108_v21 = vadd.s32 18, %v572_v47  ;;  %vm1066_vm13 = vmand %vm1025_vm11, %vm984_vm10  ;;  %v8689_v27 = vunpack.c.h.bf16 %v9900_v55 }
  0x35   : > { %vm1067_vm9 = vmand %vm1026_vm7, %vm985_vm6  ;;  %v1148_v16 = vsel %vm1066_vm13, %v1107_v6, %v563_v63  ;;  %v604_v6 = vmul.u32 18, %v603_v62 }
  0x36   : > { %6214 = vmatpush2.bf16.msra.mxu0 %v9273_v14  ;;  %6391 = vmatpush2.bf16.msra.mxu1 %v9274_v15  ;;  %v1149_v0 = vsel %vm1067_vm9, %v1108_v21, %v572_v47  ;;  %v1451_v14 = vmax.f32 %v9850_v2, 0.0  ;;  %v9278_v15 = vld [vmem:[%s13532_s3 + $0xd8] sm:$0xff]   ;;  %vm1189_vm15 = vcmp.lt.s32.totalorder %v1148_v16, 16  ;;  %v593_v47 = vmul.u32 18, %v592_v19 }
  0x37   : > { %6215 = vmatprep.subr.bf16.mxu0 %v13535_v1  ;;  %6392 = vmatprep.subr.bf16.mxu1 %v13535_v1  ;;  %vm1190_vm12 = vcmp.lt.s32.totalorder %v1149_v0, 16  ;;  %vm1230_vm0 = vmand %vm410_vm5, %vm1189_vm15  ;;  %v605_v19 = vsub.s32 %v9737_v38, %v604_v6  ;;  %v9284_v38 = vld [vmem:[%s13532_s3 + $0xc0] sm:$0xff]  }
  0x38   : > { %v1573_v10 = vsel %vm1190_vm12, %v1450_v25, 0.0  ;;  %v8323_v25 = vrot.slane %v2365_v58, 9  ;;  %v1572_v52 = vsel %vm1230_vm0, %v1449_v23, 0.0  ;;  %v594_v58 = vsub.s32 %v9724_v34, %v593_v47  ;;  %vm1068_vm5 = vmand %vm1027_vm2, %vm986_vm1 }
  0x39   : > { %v8749_v21 = vpack.c.bf16 %v1573_v10, %v1572_v52  ;;  %v1109_v23 = vadd.s32 18, %v583_v53  ;;  %vm988_vm10 = vcmp.ne.s32.totalorder %v605_v19, 0  ;;  %vm1029_vm11 = vcmp.lt.s32.totalorder %v605_v19, 0 }
  0x3a   : > { %6216 = vmatpush2.bf16.msra.mxu0 %v9275_v36  ;;  %6393 = vmatpush2.bf16.msra.mxu1 %v9276_v50  ;;  %v8684_v36 = vunpack.c.l.bf16 %v9856_v5  ;;  %v8685_v50 = vunpack.c.h.bf16 %v9856_v5  ;;  %v2445_v18 = vsel %vm9873_vm14, %v8323_v25, %v2444_v29  ;;  %vm987_vm3 = vcmp.ne.s32.totalorder %v594_v58, 0  ;;  %v9283_v29 = vld [vmem:[%s13532_s3 + $0x40] sm:$0xff]   ;;  %vm9957_vm12 = vmand %vm1029_vm11, %vm988_vm10 }
  0x3b   : > { %6217 = vmatprep.subr.bf16.mxu0 %v13535_v1  ;;  %6394 = vmatprep.subr.bf16.mxu1 %v13535_v1  ;;  %2587 = vst [vmem:[#allocation3 + $0x8] sm:$0xf] %v2445_v18  ;;  %8948 = vst [vmem:[#allocation2 + $0x8] sm:$0xff] %v8749_v21   ;;  %vm1028_vm4 = vcmp.lt.s32.totalorder %v594_v58, 0  ;;  %v1110_v34 = vadd.s32 18, %v594_v58  ;;  %v1150_v63 = vsel %vm1068_vm5, %v1109_v23, %v583_v53  ;;  %v1111_v48 = vadd.s32 18, %v605_v19 }
  0x3c   : > { %v1364_v61 = vmul.f32 %v8684_v36, %v9789_v56  ;;  %vm1069_vm6 = vmand %vm1028_vm4, %vm987_vm3  ;;  %v1365_v0 = vmul.f32 %v8685_v50, %v9789_v56  ;;  %vm1191_vm7 = vcmp.lt.s32.totalorder %v1150_v63, 16  ;;  %v1366_v52 = vmul.f32 %v8688_v3, %v9789_v56 }
  0x3d   : > { %v1151_v5 = vsel %vm1069_vm6, %v1110_v34, %v594_v58  ;;  %v1574_v10 = vsel %vm1191_vm7, %v1451_v14, 0.0  ;;  %v1367_v53 = vmul.f32 %v8689_v27, %v9789_v56  ;;  %v1152_v62 = vsel %vm9957_vm12, %v1111_v48, %v605_v19 }
  0x3e   : > { %6218 = vmatpush2.bf16.msra.mxu0 %v9277_v7  ;;  %6395 = vmatpush2.bf16.msra.mxu1 %v9278_v15  ;;  %v9916_v2 = vadd.f32 %v9794_v57, %v1364_v61  ;;  %v614_v7 = vshrl.u32 %v9906_v9, 4  ;;  %vm1192_vm9 = vcmp.lt.s32.totalorder %v1151_v5, 16  ;;  %v9926_v12 = vadd.f32 %v9794_v57, %v1365_v0  ;;  %v9930_v15 = vld [vmem:[%s9750_s15 + $0x28] sm:$0xff]  }
  0x3f   : > { %6219 = vmatprep.subr.bf16.mxu0 %v13535_v1  ;;  %6396 = vmatprep.subr.bf16.mxu1 %v13535_v1  ;;  %v1575_v16 = vsel %vm1192_vm9, %v1452_v20, 0.0  ;;  %v8692_v18 = vunpack.c.l.bf16 %v9930_v15  ;;  %v8693_v55 = vunpack.c.h.bf16 %v9930_v15  ;;  %v9965_v63 = vadd.f32 %v9794_v57, %v1366_v52 }
  0x40   : > { %v1453_v13 = vmax.f32 %v9916_v2, 0.0  ;;  %v615_v25 = vmul.u32 18, %v614_v7  ;;  %v8754_v36 = vpack.c.bf16 %v1575_v16, %v1574_v10  ;;  %v1454_v14 = vmax.f32 %v9926_v12, 0.0 }
  0x41   : > { %vm1193_vm1 = vcmp.lt.s32.totalorder %v1152_v62, 16  ;;  %v9985_v52 = vadd.f32 %v9794_v57, %v1367_v53 }
  0x42   : > { %6220 = vmatpush2.bf16.msra.mxu0 %v9279_v40  ;;  %6397 = vmatpush2.bf16.msra.mxu1 %v9280_v51  ;;  %v9939_v40 = vmul.u32.u64.low 3817748708, %v9756_v42  ;;  %v9940_v47 = vmul.u32.u64.high 3817748708, %v9756_v42, %v9939_v40  ;;  %v9948_v20 = vsub.s32 %v9753_v41, %v615_v25  ;;  %v1891_v49 = vld [vmem:[#allocation2 + $0x8] sm:$0xf]  ;;  %8949 = vst [vmem:[#allocation2 + $0x10] sm:$0xff] %v8754_v36  }
  0x43   : > { %6221 = vmatprep.subr.bf16.mxu0 %v13535_v1  ;;  %6398 = vmatprep.subr.bf16.mxu1 %v13535_v1  ;;  %v2367_v50 = vld [vmem:[#allocation2 + $0x8] sm:$0xf]  ;;  %v1949_v21 = vshll.u32 %v1891_v49, 16  ;;  %v1953_v41 = vshrl.u32 %v1891_v49, 16  ;;  %v2624_v59 = vld [vmem:[#allocation2 + $0xc] sm:$0xf] }
  0x44   : > { %v2623_v51 = vld [vmem:[#allocation2 + $0x8] sm:$0xe]  ;;  %v2447_v58 = vrot.slane %v2367_v50, 5  ;;  %v2699_v23 = vrot.slane %v2624_v59, 5  ;;  %v1820_v34 = vld [vmem:[#allocation2 + $0xc] sm:$0xf] }
  0x45   : > { %v8324_v9 = vrot.slane %v2623_v51, 9  ;;  %v1819_v61 = vld [vmem:[#allocation2 + $0x8] sm:$0xf]  ;;  %vm989_vm13 = vcmp.ne.s32.totalorder %v9948_v20, 0  ;;  %v1951_v0 = vrot.slane %v1949_v21, 5  ;;  %v1955_v3 = vrot.slane %v1953_v41, 4 }
  0x46   : > { %6222 = vmatpush2.bf16.msra.mxu0 %v9281_v32  ;;  %6399 = vmatpush2.bf16.msra.mxu1 %v9282_v4  ;;  %v2448_v4 = vsel %vm9873_vm14, %v9897_v54, %v2447_v58  ;;  %v2449_v5 = vrot.slane %v2447_v58, 4  ;;  %1855 = vst [vmem:[#allocation3 + $0x48] sm:$0xf] %v1819_v61  ;;  %1856 = vst [vmem:[#allocation3 + $0x6c] sm:$0xf] %v1820_v34  ;;  %v2701_v10 = vrot.slane %v2699_v23, 4 }
  0x47   : > { %6223 = vmatprep.subr.bf16.mxu0 %v13535_v1  ;;  %6400 = vmatprep.subr.bf16.mxu1 %v13535_v1  ;;  %v1892_v6 = vld [vmem:[#allocation2 + $0xc] sm:$0xf]  ;;  %2588 = vst [vmem:[#allocation3 + $0x2c] sm:$0xf] %v2448_v4  ;;  %v2700_v7 = vsel %vm9873_vm14, %v8324_v9, %v2699_v23  ;;  %v1952_v54 = vsel %vm9835_vm8, %v9840_v60, %v1951_v0  ;;  %vm1030_vm15 = vcmp.lt.s32.totalorder %v9948_v20, 0  ;;  %v1576_v60 = vsel %vm1193_vm1, %v1453_v13, 0.0 }
  0x48   : > { %v1959_v16 = vshll.u32 %v1892_v6, 16  ;;  %v1963_v19 = vshrl.u32 %v1892_v6, 16  ;;  %v2368_v25 = vld [vmem:[#allocation2 + $0xc] sm:$0xf]  ;;  %v1956_v27 = vor.u32 %v1955_v3, %v1951_v0  ;;  %2842 = vst [vmem:[#allocation3 + $0xc] sm:$0xf] %v2700_v7  ;;  %vm1071_vm0 = vmand %vm1030_vm15, %vm989_vm13 }
  0x49   : > { %2330 = vst [vmem:[#allocation3 + $0x28] sm:$0xf] %v1952_v54  ;;  %v2625_v49 = vld [vmem:[#allocation2 + $0x10] sm:$0xf]  ;;  %v1822_v0 = vld [vmem:[#allocation2 + $0x14] sm:$0xf] }
  0x4a   : > { %6224 = vmatpush2.bf16.msra.mxu0 %v9283_v29  ;;  %6401 = vmatpush2.bf16.msra.mxu1 %v9284_v38  ;;  %v1112_v29 = vadd.s32 18, %v9948_v20  ;;  %v1961_v36 = vrot.slane %v1959_v16, 5  ;;  %v1965_v40 = vrot.slane %v1963_v19, 4  ;;  %v2450_v38 = vrot.slane %v2368_v25, 5  ;;  %v1893_v50 = vld [vmem:[#allocation2 + $0x10] sm:$0xf] }
  0x4b   : > { %6547 = vmatprep.subr.bf16.mxu0 %v13535_v1  ;;  %6724 = vmatprep.subr.bf16.mxu1 %v13535_v1  ;;  %v1957_v48 = vrot.slane %v1956_v27, 4  ;;  %v2702_v21 = vrot.slane %v2625_v49, 5  ;;  %v1969_v58 = vshll.u32 %v1893_v50, 16  ;;  %v1973_v59 = vshrl.u32 %v1893_v50, 16  ;;  %v2369_v9 = vld [vmem:[#allocation2 + $0x10] sm:$0xf] }
  0x4c   : > { %v1153_v51 = vsel %vm1071_vm0, %v1112_v29, %v9948_v20  ;;  %v1966_v41 = vor.u32 %v1965_v40, %v1961_v36  ;;  %v2451_v23 = vsel %vm9873_vm14, %v2449_v5, %v2450_v38  ;;  %v2452_v61 = vrot.slane %v2450_v38, 4  ;;  %v2626_v20 = vld [vmem:[#allocation2 + $0x14] sm:$0xf]  ;;  %v1821_v34 = vld [vmem:[#allocation2 + $0x10] sm:$0xf] }
  0x4d   : > { %v1962_v32 = vsel %vm9835_vm8, %v1957_v48, %v1961_v36  ;;  %vm1194_vm2 = vcmp.lt.s32.totalorder %v1153_v51, 16  ;;  %v2703_v2 = vsel %vm9873_vm14, %v2701_v10, %v2702_v21  ;;  %v2704_v13 = vrot.slane %v2702_v21, 4  ;;  %2589 = vst [vmem:[#allocation3 + $0x50] sm:$0xf] %v2451_v23  ;;  %1857 = vst [vmem:[#allocation3 + $0x90] sm:$0xf] %v1821_v34 }
  0x4e   : > { %v1967_v53 = vrot.slane %v1966_v41, 4  ;;  %v1971_v62 = vrot.slane %v1969_v58, 5  ;;  %2331 = vst [vmem:[#allocation3 + $0x4c] sm:$0xf] %v1962_v32  ;;  %2843 = vst [vmem:[#allocation3 + $0x30] sm:$0xf] %v2703_v2 }
  0x4f   : > { %v1577_v3 = vsel %vm1194_vm2, %v1454_v14, 0.0  ;;  %v2453_v4 = vrot.slane %v2369_v9, 5  ;;  %v2705_v6 = vrot.slane %v2626_v20, 5  ;;  %1858 = vst [vmem:[#allocation3 + $0xb4] sm:$0xf] %v1822_v0  ;;  %v1975_v7 = vrot.slane %v1973_v59, 4 }
  0x50   : > { %v1894_v5 = vld [vmem:[#allocation2 + $0x14] sm:$0xf]  ;;  %v9291_v10 = vld [vmem:[%s13532_s3 + $0x138] sm:$0xff]   ;;  %v1972_v16 = vsel %vm9835_vm8, %v1967_v53, %v1971_v62  ;;  %v8759_v19 = vpack.c.bf16 %v1577_v3, %v1576_v60  ;;  %v9285_v29 = vld [vmem:[#allocation3] ss:$36 sps:$4 sm:$0xff]   ;;  %v625_v50 = vshrl.u32 %v9940_v47, 4 }
  0x51   : > { %v1979_v25 = vshll.u32 %v1894_v5, 16  ;;  %v1983_v54 = vshrl.u32 %v1894_v5, 16  ;;  %v2370_v27 = vld [vmem:[#allocation2 + $0x14] sm:$0xf]  ;;  %v9287_v36 = vld [vmem:[#allocation3 + $0x4] ss:$36 sps:$4 sm:$0xff]   ;;  %v2454_v12 = vsel %vm9873_vm14, %v2452_v61, %v2453_v4  ;;  %v2706_v14 = vsel %vm9873_vm14, %v2704_v13, %v2705_v6 }
  0x52   : > { %2332 = vst [vmem:[#allocation3 + $0x70] sm:$0xf] %v1972_v16  ;;  %v10004_v40 = vrot.slane %v2705_v6, 4  ;;  %v1976_v38 = vor.u32 %v1975_v7, %v1971_v62  ;;  %8950 = vst [vmem:[#allocation2 + $0x18] sm:$0xff] %v8759_v19   ;;  %v1455_v51 = vmax.f32 %v9965_v63, 0.0  ;;  %6225 = vmatprep.mubr.bf16.mxu0 %v9287_v36  ;;  %v1456_v58 = vmax.f32 %v9985_v52, 0.0 }
  0x53   : > { %2590 = vst [vmem:[#allocation3 + $0x74] sm:$0xf] %v2454_v12  ;;  %2844 = vst [vmem:[#allocation3 + $0x54] sm:$0xf] %v2706_v14  ;;  %v1981_v48 = vrot.slane %v1979_v25, 5  ;;  %v1985_v49 = vrot.slane %v1983_v54, 4  ;;  %6226 = vmatmul.mubr.bf16.vlgmr.msra.gmra.mxu0 %v9285_v29  ;;  %v1368_v13 = vmul.f32 %v8692_v18, %v9789_v56  ;;  %v1369_v18 = vmul.f32 %v8693_v55, %v9789_v56 }
  0x54   : > { %v1977_v60 = vrot.slane %v1976_v38, 4  ;;  %v10009_v21 = vmul.u32.u64.low 3817748708, %v9759_v43  ;;  %v10010_v41 = vmul.u32.u64.high 3817748708, %v9759_v43, %v10009_v21  ;;  %v9297_v59 = vld [vmem:[%s13532_s3 + $0x130] sm:$0xff]   ;;  %v626_v32 = vmul.u32 18, %v625_v50  ;;  %6548 = vmatpush1.bf16.msra.mxu0 %v9291_v10  ;;  %v9321_v62 = vld [vmem:[%s13532_s3 + $0x1b8] sm:$0xff]  }
  0x55   : > { %v1986_v9 = vor.u32 %v1985_v49, %v1981_v48  ;;  %v2455_v23 = vrot.slane %v2453_v4, 4  ;;  %v2456_v47 = vrot.slane %v2370_v27, 5  ;;  %v4619_v61 = vld [vmem:[#allocation3 + $0x48] sm:$0xff]  ;;  %6549 = vmatprep.subr.bf16.mxu0 %v13535_v1  ;;  %v10049_v15 = vadd.f32 %v9794_v57, %v1368_v13  ;;  %v9342_v52 = vld [vmem:[%s13532_s3 + $0x1a0] sm:$0xff]  }
  0x56   : > { %v1982_v20 = vsel %vm9835_vm8, %v1977_v60, %v1981_v48  ;;  %v10019_v34 = vmul.u32.u64.low 3817748708, %v9762_v44  ;;  %v10020_v2 = vmul.u32.u64.high 3817748708, %v9762_v44, %v10019_v34  ;;  %v10026_v53 = vld [vmem:[%s9750_s15 + $0x30] sm:$0xff]   ;;  %v627_v6 = vsub.s32 %v9756_v42, %v626_v32  ;;  %v9303_v16 = vld [vmem:[%s13532_s3 + $0x128] sm:$0xff]  }
  0x57   : > { %v9288_v0 = vld [vmem:[#allocation3 + $0x8] ss:$36 sps:$4 sm:$0xff]   ;;  %v10032_v4 = vrot.slane %v1986_v9, 4  ;;  %2333 = vst [vmem:[#allocation3 + $0x94] sm:$0xf] %v1982_v20  ;;  %v2457_v5 = vsel %vm9873_vm14, %v2455_v23, %v2456_v47  ;;  %v636_v7 = vshrl.u32 %v10010_v41, 4  ;;  %v10052_v14 = vadd.f32 %v9794_v57, %v1369_v18 }
  0x58   : > { %v9290_v3 = vld [vmem:[#allocation3 + $0xc] ss:$36 sps:$4 sm:$0xff]   ;;  %v2458_v10 = vrot.slane %v2456_v47, 4  ;;  %2591 = vst [vmem:[#allocation3 + $0x98] sm:$0xf] %v2457_v5  ;;  %vm990_vm3 = vcmp.ne.s32.totalorder %v627_v6, 0  ;;  %6550 = vmatpush1.bf16.msra.mxu0 %v9297_v59  ;;  %v8696_v38 = vunpack.c.l.bf16 %v10026_v53 }
  0x59   : > { %v10045_v19 = vmul.u32.u64.low 3817748708, %v9766_v45  ;;  %v10046_v25 = vmul.u32.u64.high 3817748708, %v9766_v45, %v10045_v19  ;;  %6402 = vmatprep.mubr.bf16.mxu1 %v9290_v3  ;;  %v4624_v42 = vld [vmem:[#allocation3 + $0x6c] sm:$0xff]  ;;  %vm1031_vm4 = vcmp.lt.s32.totalorder %v627_v6, 0  ;;  %v1113_v27 = vadd.s32 18, %v627_v6  ;;  %6551 = vmatprep.subr.bf16.mxu0 %v13535_v1 }
  0x5a   : > { %v9292_v54 = vld [vmem:[#allocation3 + $0x4c] ss:$36 sps:$4 sm:$0xff]   ;;  %6403 = vmatmul.mubr.bf16.vlgmr.msra.gmra.mxu1 %v9288_v0  ;;  %v2627_v55 = vld [vmem:[#allocation2 + $0x18] sm:$0xf]  ;;  %v8337_v29 = vcombine.low %v4619_v61, %v4624_v42  ;;  %v637_v12 = vmul.u32 18, %v636_v7  ;;  %vm1072_vm5 = vmand %vm1031_vm4, %vm990_vm3  ;;  %v647_v41 = vshrl.u32 %v10020_v2, 4 }
  0x5b   : > { %v1895_v36 = vld [vmem:[#allocation2 + $0x18] sm:$0xf]  ;;  %v9328_v48 = vld [vmem:[%s13532_s3 + $0x1b0] sm:$0xff]   ;;  %6233 = vmatprep.mubr.bf16.mxu0 %v9292_v54  ;;  %v2708_v49 = vrot.slane %v2627_v55, 5  ;;  %v1154_v9 = vsel %vm1072_vm5, %v1113_v27, %v627_v6  ;;  %v2628_v23 = vld [vmem:[#allocation2 + $0x1c] sm:$0xf]  ;;  %6725 = vmatpush1.bf16.msra.mxu1 %v9321_v62 }
  0x5c   : > { %v1989_v50 = vshll.u32 %v1895_v36, 16  ;;  %v1993_v60 = vshrl.u32 %v1895_v36, 16  ;;  %v10060_v21 = vld [vmem:[#allocation2 + $0x18] sm:$0xf]  ;;  %v638_v59 = vsub.s32 %v9759_v43, %v637_v12  ;;  %v658_v61 = vshrl.u32 %v10046_v25, 4  ;;  %6234 = vmatmul.mubr.bf16.gmra.mxu0 %v8337_v29  ;;  %6726 = vmatprep.subr.bf16.mxu1 %v13535_v1 }
  0x5d   : > { %v2459_v32 = vrot.slane %v10060_v21, 5  ;;  %v1823_v47 = vld [vmem:[#allocation2 + $0x18] sm:$0xf]  ;;  %v2709_v20 = vsel %vm9873_vm14, %v10004_v40, %v2708_v49  ;;  %vm1195_vm6 = vcmp.lt.s32.totalorder %v1154_v9, 16  ;;  %v2710_v13 = vrot.slane %v2708_v49, 4  ;;  %6552 = vmatpush1.bf16.msra.mxu0 %v9303_v16  ;;  %v9309_v40 = vld [vmem:[%s13532_s3 + $0x120] sm:$0xff]  }
  0x5e   : > { %v1991_v34 = vrot.slane %v1989_v50, 5  ;;  %v1824_v0 = vld [vmem:[#allocation2 + $0x1c] sm:$0xf]  ;;  %1859 = vst [vmem:[#allocation3 + $0xd8] sm:$0xf] %v1823_v47  ;;  %vm991_vm7 = vcmp.ne.s32.totalorder %v638_v59, 0  ;;  %6553 = vmatprep.subr.bf16.mxu0 %v13535_v1  ;;  %v8697_v47 = vunpack.c.h.bf16 %v10026_v53 }
  0x5f   : > { %2845 = vst [vmem:[#allocation3 + $0x78] sm:$0xf] %v2709_v20  ;;  %vm1032_vm9 = vcmp.lt.s32.totalorder %v638_v59, 0  ;;  %v1114_v43 = vadd.s32 18, %v638_v59  ;;  %v1578_v2 = vsel %vm1195_vm6, %v1455_v51, 0.0  ;;  %v2460_v3 = vsel %vm9873_vm14, %v2458_v10, %v2459_v32  ;;  %6727 = vmatpush1.bf16.msra.mxu1 %v9328_v48  ;;  %v9315_v36 = vld [vmem:[%s13532_s3 + $0x118] sm:$0xff]  }
  0x60   : > { %1860 = vst [vmem:[#allocation3 + $0xfc] sm:$0xf] %v1824_v0  ;;  %v1992_v62 = vsel %vm9835_vm8, %v10032_v4, %v1991_v34  ;;  %vm1073_vm10 = vmand %vm1032_vm9, %vm991_vm7  ;;  %v2711_v6 = vrot.slane %v2628_v23, 5  ;;  %v1896_v5 = vld [vmem:[#allocation2 + $0x1c] sm:$0xf]  ;;  %v1995_v63 = vrot.slane %v1993_v60, 4  ;;  %6728 = vmatprep.subr.bf16.mxu1 %v13535_v1 }
  0x61   : > { %2334 = vst [vmem:[#allocation3 + $0xb8] sm:$0xf] %v1992_v62  ;;  %v1155_v51 = vsel %vm1073_vm10, %v1114_v43, %v638_v59  ;;  %2592 = vst [vmem:[#allocation3 + $0xbc] sm:$0xf] %v2460_v3  ;;  %v1999_v18 = vshll.u32 %v1896_v5, 16  ;;  %v2003_v7 = vshrl.u32 %v1896_v5, 16  ;;  %6554 = vmatpush1.bf16.msra.mxu0 %v9309_v40 }
  0x62   : > { %v648_v16 = vmul.u32 18, %v647_v41  ;;  %v9335_v4 = vld [vmem:[%s13532_s3 + $0x1a8] sm:$0xff]   ;;  %vm1196_vm11 = vcmp.lt.s32.totalorder %v1155_v51, 16  ;;  %v2712_v10 = vsel %vm9873_vm14, %v2710_v13, %v2711_v6  ;;  %v10089_v19 = vrot.slane %v2711_v6, 4  ;;  %v2372_v42 = vld [vmem:[#allocation2 + $0x1c] sm:$0xf]  ;;  %6555 = vmatprep.subr.bf16.mxu0 %v13535_v1 }
  0x63   : > { %v1996_v25 = vor.u32 %v1995_v63, %v1991_v34  ;;  %v1579_v54 = vsel %vm1196_vm11, %v1456_v58, 0.0  ;;  %2846 = vst [vmem:[#allocation3 + $0x9c] sm:$0xf] %v2712_v10  ;;  %v2001_v27 = vrot.slane %v1999_v18, 5  ;;  %v2005_v55 = vrot.slane %v2003_v7, 4  ;;  %v4629_v58 = vld [vmem:[#allocation3 + $0x90] sm:$0xff]  ;;  %6729 = vmatpush1.bf16.msra.mxu1 %v9335_v4 }
  0x64   : > { %v649_v29 = vsub.s32 %v9762_v44, %v648_v16  ;;  %v8764_v12 = vpack.c.bf16 %v1579_v54, %v1578_v2  ;;  %v659_v49 = vmul.u32 18, %v658_v61  ;;  %v1457_v50 = vmax.f32 %v10049_v15, 0.0  ;;  %v9296_v59 = vld [vmem:[#allocation3 + $0x50] ss:$36 sps:$4 sm:$0xff]   ;;  %6730 = vmatprep.subr.bf16.mxu1 %v13535_v1  ;;  %v10148_v16 = vld [vmem:[%s9750_s15 + $0x40] sm:$0xff]   ;;  %v9333_v4 = vld [vmem:[%s13532_s3 + $0x108] sm:$0xff]  }
  0x65   : > { %v1997_v48 = vrot.slane %v1996_v25, 4  ;;  %v2006_v60 = vor.u32 %v2005_v55, %v2001_v27  ;;  %v1458_v23 = vmax.f32 %v10052_v14, 0.0  ;;  %v9322_v61 = vld [vmem:[%s13532_s3 + $0x110] sm:$0xff]   ;;  %v2462_v14 = vrot.slane %v2372_v42, 5  ;;  %6556 = vmatpush1.bf16.msra.mxu0 %v9315_v36  ;;  %v10134_v6 = vld [vmem:[%s9750_s15 + $0x38] sm:$0xff]  }
  0x66   : > { %vm992_vm12 = vcmp.ne.s32.totalorder %v649_v29, 0  ;;  %vm1033_vm13 = vcmp.lt.s32.totalorder %v649_v29, 0  ;;  %v1115_v44 = vadd.s32 18, %v649_v29  ;;  %v9294_v41 = vld [vmem:[#allocation3 + $0x54] ss:$36 sps:$4 sm:$0xff]   ;;  %8951 = vst [vmem:[#allocation2 + $0x20] sm:$0xff] %v8764_v12   ;;  %v660_v15 = vsub.s32 %v9766_v45, %v659_v49  ;;  %6557 = vmatprep.subr.bf16.mxu0 %v13535_v1 }
  0x67   : > { %v2002_v9 = vsel %vm9835_vm8, %v1997_v48, %v2001_v27  ;;  %v10112_v20 = vrot.slane %v2006_v60, 4  ;;  %vm10115_vm15 = vmand %vm1033_vm13, %vm992_vm12  ;;  %v2461_v45 = vrot.slane %v2459_v32, 4  ;;  %v10122_v13 = vadd.s32 104, %v9641_v8  ;;  %6410 = vmatprep.mubr.bf16.mxu1 %v9294_v41  ;;  %v9349_v5 = vld [vmem:[%s13532_s3 + $0x198] sm:$0xff]   ;;  %6731 = vmatpush1.bf16.msra.mxu1 %v9342_v52  ;;  %v9341_v41 = vld [vmem:[%s13532_s3 + $0x100] sm:$0xff]  }
  0x68   : > { %2335 = vst [vmem:[#allocation3 + $0xdc] sm:$0xf] %v2002_v9  ;;  %v4634_v0 = vld [vmem:[#allocation3 + $0xb4] sm:$0xff]  ;;  %vm993_vm0 = vcmp.ne.s32.totalorder %v660_v15, 0  ;;  %vm1034_vm1 = vcmp.lt.s32.totalorder %v660_v15, 0  ;;  %v1116_v2 = vadd.s32 18, %v660_v15  ;;  %v1156_v40 = vsel %vm10115_vm15, %v1115_v44, %v649_v29  ;;  %6411 = vmatmul.mubr.bf16.gmra.mxu1 %v9296_v59  ;;  %6732 = vmatprep.subr.bf16.mxu1 %v13535_v1 }
  0x69   : > { %13670 = vst [vmem:[#allocation15_spill] sm:$0xff] %v10122_v13  ;;  %v9298_v43 = vld [vmem:[#allocation3 + $0x94] ss:$36 sps:$4 sm:$0xff]   ;;  %v8346_v21 = vcombine.low %v4629_v58, %v4634_v0  ;;  %vm10127_vm2 = vmand %vm1034_vm1, %vm993_vm0  ;;  %vm1197_vm3 = vcmp.lt.s32.totalorder %v1156_v40, 16  ;;  %v2463_v62 = vsel %vm9873_vm14, %v2461_v45, %v2462_v14  ;;  %v2464_v3 = vrot.slane %v2462_v14, 4  ;;  %6558 = vmatpush1.bf16.msra.mxu0 %v9322_v61 }
  0x6a   : > { %6241 = vmatprep.mubr.bf16.mxu0 %v9298_v43  ;;  %v1157_v63 = vsel %vm10127_vm2, %v1116_v2, %v660_v15  ;;  %v1580_v51 = vsel %vm1197_vm3, %v1457_v50, 0.0  ;;  %2593 = vst [vmem:[#allocation3 + $0xe0] sm:$0xf] %v2463_v62  ;;  %v10142_v18 = vadd.s32 4294967277, %v9769_v46  ;;  %v10145_v7 = vadd.s32 4294967277, %v10122_v13  ;;  %6559 = vmatprep.subr.bf16.mxu0 %v13535_v1 }
  0x6b   : > { %6242 = vmatmul.mubr.bf16.gmra.mxu0 %v8346_v21  ;;  %vm1198_vm4 = vcmp.lt.s32.totalorder %v1157_v63, 16  ;;  %v1370_v10 = vmul.f32 %v8696_v38, %v9789_v56  ;;  %v1371_v25 = vmul.f32 %v8697_v47, %v9789_v56  ;;  %v10158_v42 = vadd.s32 112, %v9641_v8  ;;  %6733 = vmatpush1.bf16.msra.mxu1 %v9349_v5  ;;  %v9348_v63 = vld [vmem:[%s13532_s3 + $0x178] sm:$0xff]   ;;  %v11198_v13 = vld [vmem:[#allocation2 + $0x10] sm:$0xf] }
  0x6c   : > { %v1581_v54 = vsel %vm1198_vm4, %v1458_v23, 0.0  ;;  %v10162_v27 = vmul.u32.u64.low 3817748708, %v10142_v18  ;;  %v10163_v55 = vmul.u32.u64.high 3817748708, %v10142_v18, %v10162_v27  ;;  %v10166_v29 = vadd.s32 120, %v9641_v8  ;;  %6734 = vmatprep.subr.bf16.mxu1 %v13535_v1  ;;  %v3619_v33 = vld [vmem:[#allocation2 + $0x1c] sm:$0xf] }
  0x6d   : > { %13673 = vst [vmem:[#allocation16_spill] sm:$0xff] %v10158_v42  ;;  %v2629_v36 = vld [vmem:[#allocation2 + $0x20] sm:$0xf]  ;;  %v8769_v53 = vpack.c.bf16 %v1581_v54, %v1580_v51  ;;  %v10169_v48 = vadd.f32 %v9794_v57, %v1370_v10  ;;  %v10172_v49 = vadd.f32 %v9794_v57, %v1371_v25  ;;  %v8700_v50 = vunpack.c.l.bf16 %v10134_v6  ;;  %v2630_v59 = vld [vmem:[#allocation2 + $0x24] sm:$0xf]  ;;  %6560 = vmatpush1.bf16.msra.mxu0 %v9333_v4 }
  0x6e   : > { %13674 = vst [vmem:[#allocation17_spill] sm:$0xff] %v10166_v29  ;;  %v1897_v12 = vld [vmem:[#allocation2 + $0x20] sm:$0xf]  ;;  %v2714_v52 = vrot.slane %v2629_v36, 5  ;;  %v1826_v15 = vld [vmem:[#allocation2 + $0x24] sm:$0xf]  ;;  %v8701_v57 = vunpack.c.h.bf16 %v10134_v6  ;;  %v8704_v47 = vunpack.c.l.bf16 %v10148_v16  ;;  %v8705_v61 = vunpack.c.h.bf16 %v10148_v16  ;;  %6561 = vmatprep.subr.bf16.mxu0 %v13535_v1 }
  0x6f   : > { %v2373_v38 = vld [vmem:[#allocation2 + $0x20] sm:$0xf]  ;;  %v2009_v58 = vshll.u32 %v1897_v12, 16  ;;  %v2013_v60 = vshrl.u32 %v1897_v12, 16  ;;  %8952 = vst [vmem:[#allocation2 + $0x28] sm:$0xff] %v8769_v53   ;;  %v10181_v23 = vmul.f32 %v8700_v50, %v9789_v56  ;;  %v2717_v2 = vrot.slane %v2630_v59, 5 }
  0x70   : > { %v2465_v44 = vrot.slane %v2373_v38, 5  ;;  %v1825_v9 = vld [vmem:[#allocation2 + $0x20] sm:$0xf]  ;;  %v2715_v34 = vsel %vm9873_vm14, %v10089_v19, %v2714_v52  ;;  %v2716_v0 = vrot.slane %v2714_v52, 4  ;;  %1862 = vst [vmem:[#allocation3 + $0x144] sm:$0xf] %v1826_v15 }
  0x71   : > { %v2011_v45 = vrot.slane %v2009_v58, 5  ;;  %1861 = vst [vmem:[#allocation3 + $0x120] sm:$0xf] %v1825_v9  ;;  %v1898_v43 = vld [vmem:[#allocation2 + $0x24] sm:$0xf]  ;;  %v2015_v40 = vrot.slane %v2013_v60, 4  ;;  %6562 = vmatpush1.bf16.msra.mxu0 %v9341_v41 }
  0x72   : > { %v2466_v14 = vsel %vm9873_vm14, %v2464_v3, %v2465_v44  ;;  %v10191_v56 = vld [vmem:[#allocation2 + $0x24] sm:$0xf]  ;;  %2847 = vst [vmem:[#allocation3 + $0xc0] sm:$0xf] %v2715_v34  ;;  %v2019_v21 = vshll.u32 %v1898_v43, 16  ;;  %v2023_v32 = vshrl.u32 %v1898_v43, 16  ;;  %v2718_v51 = vsel %vm9873_vm14, %v2716_v0, %v2717_v2  ;;  %6563 = vmatprep.subr.bf16.mxu0 %v13535_v1 }
  0x73   : > { %2594 = vst [vmem:[#allocation3 + $0x104] sm:$0xf] %v2466_v14  ;;  %v2012_v19 = vsel %vm9835_vm8, %v10112_v20, %v2011_v45  ;;  %v669_v62 = vshrl.u32 %v10163_v55, 4  ;;  %v10199_v3 = vmul.u32.u64.low 3817748708, %v10145_v7  ;;  %v10200_v5 = vmul.u32.u64.high 3817748708, %v10145_v7, %v10199_v3  ;;  %v9356_v50 = vld [vmem:[%s13532_s3 + $0x190] sm:$0xff]  }
  0x74   : > { %2336 = vst [vmem:[#allocation3 + $0x100] sm:$0xf] %v2012_v19  ;;  %v2719_v4 = vrot.slane %v2717_v2, 4  ;;  %v2016_v10 = vor.u32 %v2015_v40, %v2011_v45  ;;  %v2021_v25 = vrot.slane %v2019_v21, 5  ;;  %2848 = vst [vmem:[#allocation3 + $0xe4] sm:$0xf] %v2718_v51  ;;  %6735 = vmatpush1.bf16.msra.mxu1 %v9356_v50 }
  0x75   : > { %v2025_v54 = vrot.slane %v2023_v32, 4  ;;  %v670_v20 = vmul.u32 18, %v669_v62  ;;  %v1459_v27 = vmax.f32 %v10169_v48, 0.0  ;;  %v1460_v55 = vmax.f32 %v10172_v49, 0.0  ;;  %v4639_v52 = vld [vmem:[#allocation3 + $0xd8] sm:$0xff]  ;;  %v9355_v43 = vld [vmem:[%s13532_s3 + $0x170] sm:$0xff]   ;;  %6564 = vmatpush2.bf16.msra.mxu0 %v9348_v63  ;;  %6736 = vmatprep.subr.bf16.mxu1 %v13535_v1 }
  0x76   : > { %v2017_v36 = vrot.slane %v2016_v10, 4  ;;  %v2467_v12 = vrot.slane %v2465_v44, 4  ;;  %v2468_v53 = vrot.slane %v10191_v56, 5  ;;  %v10211_v38 = vadd.s32 4294967277, %v10158_v42  ;;  %v2631_v58 = vld [vmem:[#allocation2 + $0x28] sm:$0xf]  ;;  %6565 = vmatprep.subr.bf16.mxu0 %v13535_v1 }
  0x77   : > { %v10217_v60 = vld [vmem:[#allocation2 + $0x28] sm:$0xf]  ;;  %v2026_v59 = vor.u32 %v2025_v54, %v2021_v25  ;;  %v671_v41 = vsub.s32 %v10142_v18, %v670_v20  ;;  %v680_v44 = vshrl.u32 %v10200_v5, 4  ;;  %v10222_v9 = vadd.s32 4294967277, %v10166_v29  ;;  %v9302_v56 = vld [vmem:[#allocation3 + $0x98] ss:$36 sps:$4 sm:$0xff]  }
  0x78   : > { %v2720_v15 = vrot.slane %v2631_v58, 5  ;;  %v2022_v34 = vsel %vm9835_vm8, %v2017_v36, %v2021_v25  ;;  %v2029_v45 = vshll.u32 %v10217_v60, 16  ;;  %v2033_v14 = vshrl.u32 %v10217_v60, 16  ;;  %v10228_v0 = vld [vmem:[#allocation2 + $0x28] sm:$0xf] }
  0x79   : > { %v9300_v18 = vld [vmem:[#allocation3 + $0x9c] ss:$36 sps:$4 sm:$0xff]   ;;  %v2027_v2 = vrot.slane %v2026_v59, 4  ;;  %2337 = vst [vmem:[#allocation3 + $0x124] sm:$0xf] %v2022_v34  ;;  %v2469_v40 = vsel %vm9873_vm14, %v2467_v12, %v2468_v53  ;;  %v681_v6 = vmul.u32 18, %v680_v44  ;;  %6566 = vmatpush2.bf16.msra.mxu0 %v9355_v43 }
  0x7a   : > { %v10238_v21 = vld [vmem:[%s13530_s1] ss:$0 sm:$0xff]  ;;  %v2721_v3 = vsel %vm9873_vm14, %v2719_v4, %v2720_v15  ;;  %v10255_v5 = vrot.slane %v2029_v45, 5  ;;  %vm994_vm5 = vcmp.ne.s32.totalorder %v671_v41, 0  ;;  %2595 = vst [vmem:[#allocation3 + $0x128] sm:$0xf] %v2469_v40  ;;  %6418 = vmatprep.mubr.bf16.mxu1 %v9300_v18  ;;  %6567 = vmatprep.subr.bf16.mxu0 %v13535_v1 }
  0x7b   : > { %v1373_v32 = vmul.f32 %v10238_v21, %v8701_v57  ;;  %v10246_v19 = vld [vmem:[%s13531_s2] ss:$0 sm:$0xff]  ;;  %v2632_v57 = vld [vmem:[#allocation2 + $0x2c] sm:$0xf]  ;;  %2849 = vst [vmem:[#allocation3 + $0x108] sm:$0xf] %v2721_v3  ;;  %6419 = vmatmul.mubr.bf16.gmra.mxu1 %v9302_v56  ;;  %v682_v20 = vsub.s32 %v10145_v7, %v681_v6  ;;  %v1374_v7 = vmul.f32 %v10238_v21, %v8704_v47 }
  0x7c   : > { %v10250_v62 = vadd.f32 %v10246_v19, %v10181_v23  ;;  %v4644_v51 = vld [vmem:[#allocation3 + $0xfc] sm:$0xff]  ;;  %vm1035_vm6 = vcmp.lt.s32.totalorder %v671_v41, 0  ;;  %v1117_v23 = vadd.s32 18, %v671_v41  ;;  %v2470_v63 = vrot.slane %v2468_v53, 4  ;;  %v1827_v50 = vld [vmem:[#allocation2 + $0x28] sm:$0xf] }
  0x7d   : > { %v9304_v10 = vld [vmem:[#allocation3 + $0xdc] ss:$36 sps:$4 sm:$0xff]   ;;  %v10259_v25 = vadd.f32 %v10246_v19, %v1373_v32  ;;  %v8355_v4 = vcombine.low %v4639_v52, %v4644_v51  ;;  %v2032_v54 = vsel %vm9835_vm8, %v2027_v2, %v10255_v5  ;;  %vm10266_vm7 = vmand %vm1035_vm6, %vm994_vm5  ;;  %v2471_v12 = vrot.slane %v10228_v0, 5  ;;  %v1828_v60 = vld [vmem:[#allocation2 + $0x2c] sm:$0xf] }
  0x7e   : > { %6249 = vmatprep.mubr.bf16.mxu0 %v9304_v10  ;;  %2338 = vst [vmem:[#allocation3 + $0x148] sm:$0xf] %v2032_v54  ;;  %v1158_v53 = vsel %vm10266_vm7, %v1117_v23, %v671_v41  ;;  %v2722_v52 = vrot.slane %v2720_v15, 4  ;;  %v2723_v58 = vrot.slane %v2632_v57, 5  ;;  %1863 = vst [vmem:[#allocation3 + $0x168] sm:$0xf] %v1827_v50  ;;  %v10297_v51 = vadd.f32 %v10246_v19, %v1374_v7 }
  0x7f   : > { %v1900_v59 = vld [vmem:[#allocation2 + $0x2c] sm:$0xf]  ;;  %6250 = vmatmul.mubr.bf16.gmra.mxu0 %v8355_v4  ;;  %vm995_vm9 = vcmp.ne.s32.totalorder %v682_v20, 0  ;;  %vm1036_vm10 = vcmp.lt.s32.totalorder %v682_v20, 0  ;;  %v1118_v44 = vadd.s32 18, %v682_v20  ;;  %vm1199_vm11 = vcmp.lt.s32.totalorder %v1158_v53, 16 }
  0x80   : > { %1864 = vst [vmem:[#allocation3 + $0x18c] sm:$0xf] %v1828_v60  ;;  %vm1077_vm12 = vmand %vm1036_vm10, %vm995_vm9  ;;  %v1582_v41 = vsel %vm1199_vm11, %v1459_v27, 0.0  ;;  %v2472_v15 = vsel %vm9873_vm14, %v2470_v63, %v2471_v12  ;;  %v2724_v34 = vsel %vm9873_vm14, %v2722_v52, %v2723_v58  ;;  %v10283_v47 = vrot.slane %v2723_v58, 4  ;;  %v4649_v45 = vld [vmem:[#allocation3 + $0x120] sm:$0xff] }
  0x81   : > { %v1159_v0 = vsel %vm1077_vm12, %v1118_v44, %v682_v20  ;;  %2596 = vst [vmem:[#allocation3 + $0x14c] sm:$0xf] %v2472_v15  ;;  %2850 = vst [vmem:[#allocation3 + $0x12c] sm:$0xf] %v2724_v34  ;;  %v2035_v43 = vrot.slane %v2033_v14, 4  ;;  %v2039_v18 = vshll.u32 %v1900_v59, 16  ;;  %v1375_v14 = vmul.f32 %v10238_v21, %v8705_v61 }
  0x82   : > { %v2043_v56 = vshrl.u32 %v1900_v59, 16  ;;  %vm1200_vm13 = vcmp.lt.s32.totalorder %v1159_v0, 16  ;;  %v10286_v2 = vmul.u32.u64.low 3817748708, %v10211_v38  ;;  %v10287_v48 = vmul.u32.u64.high 3817748708, %v10211_v38, %v10286_v2  ;;  %v2376_v40 = vld [vmem:[#allocation2 + $0x2c] sm:$0xf] }
  0x83   : > { %v1461_v27 = vmax.f32 %v10250_v62, 0.0  ;;  %v9306_v32 = vld [vmem:[#allocation3 + $0xe4] ss:$36 sps:$4 sm:$0xff]   ;;  %v1583_v6 = vsel %vm1200_vm13, %v1460_v55, 0.0  ;;  %v2036_v57 = vor.u32 %v2035_v43, %v10255_v5  ;;  %v2041_v23 = vrot.slane %v2039_v18, 5 }
  0x84   : > { %v9308_v3 = vld [vmem:[#allocation3 + $0xe0] ss:$36 sps:$4 sm:$0xff]   ;;  %v8774_v10 = vpack.c.bf16 %v1583_v6, %v1582_v41  ;;  %v2045_v63 = vrot.slane %v2043_v56, 4  ;;  %v1462_v4 = vmax.f32 %v10259_v25, 0.0  ;;  %6426 = vmatprep.mubr.bf16.mxu1 %v9306_v32  ;;  %v10305_v16 = vadd.f32 %v10246_v19, %v1375_v14  ;;  %v10374_v25 = vld [vmem:[%s9750_s15 + $0x50] sm:$0xff]  }
  0x85   : > { %v4654_v54 = vld [vmem:[#allocation3 + $0x144] sm:$0xff]  ;;  %v2037_v36 = vrot.slane %v2036_v57, 4  ;;  %v10301_v49 = vmul.u32.u64.low 3817748708, %v10222_v9  ;;  %v10302_v55 = vmul.u32.u64.high 3817748708, %v10222_v9, %v10301_v49  ;;  %6427 = vmatmul.mubr.bf16.gmra.mxu1 %v9308_v3  ;;  %v691_v50 = vshrl.u32 %v10287_v48, 4 }
  0x86   : > { %v9310_v20 = vld [vmem:[#allocation3 + $0x124] ss:$36 sps:$4 sm:$0xff]   ;;  %8953 = vst [vmem:[#allocation2 + $0x30] sm:$0xff] %v8774_v10   ;;  %v8364_v61 = vcombine.low %v4649_v45, %v4654_v54  ;;  %v2046_v5 = vor.u32 %v2045_v63, %v2041_v23  ;;  %v2473_v53 = vrot.slane %v2471_v12, 4  ;;  %v2474_v60 = vrot.slane %v2376_v40, 5 }
  0x87   : > { %v9362_v52 = vld [vmem:[%s13532_s3 + $0x168] sm:$0xff]   ;;  %6257 = vmatprep.mubr.bf16.mxu0 %v9310_v20  ;;  %v2042_v58 = vsel %vm9835_vm8, %v2037_v36, %v2041_v23  ;;  %v10314_v59 = vadd.s32 128, %v9641_v8  ;;  %v10317_v7 = vadd.s32 136, %v9641_v8  ;;  %v692_v41 = vmul.u32 18, %v691_v50 }
  0x88   : > { %6258 = vmatmul.mubr.bf16.gmra.mxu0 %v8364_v61  ;;  %v2047_v44 = vrot.slane %v2046_v5, 4  ;;  %2339 = vst [vmem:[#allocation3 + $0x16c] sm:$0xf] %v2042_v58  ;;  %v1463_v12 = vmax.f32 %v10297_v51, 0.0  ;;  %v1464_v15 = vmax.f32 %v10305_v16, 0.0  ;;  %v10322_v34 = vld [vmem:[%s9750_s15 + $0x48] sm:$0xff]   ;;  %v2475_v0 = vsel %vm9873_vm14, %v2473_v53, %v2474_v60 }
  0x89   : > { %13677 = vst [vmem:[#allocation18_spill] sm:$0xff] %v10314_v59  ;;  %13678 = vst [vmem:[#allocation19_spill] sm:$0xff] %v10317_v7  ;;  %v702_v45 = vshrl.u32 %v10302_v55, 4  ;;  %v2476_v43 = vrot.slane %v2474_v60, 4  ;;  %v10328_v18 = vadd.s32 4294967277, %v10314_v59  ;;  %6568 = vmatpush2.bf16.msra.mxu0 %v9362_v52  ;;  %v693_v56 = vsub.s32 %v10211_v38, %v692_v41 }
  0x8a   : > { %2597 = vst [vmem:[#allocation3 + $0x170] sm:$0xf] %v2475_v0  ;;  %v10332_v2 = vadd.s32 4294967277, %v10317_v7  ;;  %v10335_v48 = vadd.s32 144, %v9641_v8  ;;  %v10338_v40 = vadd.s32 152, %v9641_v8  ;;  %6569 = vmatprep.subr.bf16.mxu0 %v13535_v1  ;;  %v8708_v57 = vunpack.c.l.bf16 %v10322_v34 }
  0x8b   : > { %v703_v32 = vmul.u32 18, %v702_v45  ;;  %v10342_v3 = vmul.u32.u64.low 3817748708, %v10328_v18  ;;  %v10343_v6 = vmul.u32.u64.high 3817748708, %v10328_v18, %v10342_v3  ;;  %vm996_vm15 = vcmp.ne.s32.totalorder %v693_v56, 0  ;;  %v3877_v39 = vld [vmem:[#allocation2 + $0x28] sm:$0xf] }
  0x8c   : > { %13679 = vst [vmem:[#allocation20_spill] sm:$0xff] %v10335_v48  ;;  %13680 = vst [vmem:[#allocation21_spill] sm:$0xff] %v10338_v40  ;;  %vm1037_vm0 = vcmp.lt.s32.totalorder %v693_v56, 0  ;;  %v1119_v38 = vadd.s32 18, %v693_v56  ;;  %v10347_v14 = vadd.s32 4294967277, %v10335_v48  ;;  %v8709_v36 = vunpack.c.h.bf16 %v10322_v34 }
  0x8d   : > { %v2633_v10 = vld [vmem:[#allocation2 + $0x30] sm:$0xf]  ;;  %v704_v63 = vsub.s32 %v10222_v9, %v703_v32  ;;  %vm1078_vm1 = vmand %vm1037_vm0, %vm996_vm15  ;;  %v10351_v54 = vmul.u32.u64.low 3817748708, %v10332_v2  ;;  %v10352_v20 = vmul.u32.u64.high 3817748708, %v10332_v2, %v10351_v54  ;;  %v2634_v41 = vld [vmem:[#allocation2 + $0x34] sm:$0xf]  ;;  %v1376_v3 = vmul.f32 %v10238_v21, %v8708_v57 }
  0x8e   : > { %v1901_v23 = vld [vmem:[#allocation2 + $0x30] sm:$0xf]  ;;  %v2726_v49 = vrot.slane %v2633_v10, 5  ;;  %v1160_v5 = vsel %vm1078_vm1, %v1119_v38, %v693_v56  ;;  %v2729_v0 = vrot.slane %v2634_v41, 5  ;;  %v1830_v32 = vld [vmem:[#allocation2 + $0x34] sm:$0xf] }
  0x8f   : > { %v2049_v55 = vshll.u32 %v1901_v23, 16  ;;  %v2053_v61 = vshrl.u32 %v1901_v23, 16  ;;  %v2377_v50 = vld [vmem:[#allocation2 + $0x30] sm:$0xf]  ;;  %vm997_vm2 = vcmp.ne.s32.totalorder %v704_v63, 0  ;;  %vm1038_vm3 = vcmp.lt.s32.totalorder %v704_v63, 0 }
  0x90   : > { %v1120_v53 = vadd.s32 18, %v704_v63  ;;  %vm1201_vm4 = vcmp.lt.s32.totalorder %v1160_v5, 16  ;;  %v2727_v9 = vsel %vm9873_vm14, %v10283_v47, %v2726_v49  ;;  %vm1079_vm5 = vmand %vm1038_vm3, %vm997_vm2  ;;  %v2477_v60 = vrot.slane %v2377_v50, 5  ;;  %v1829_v56 = vld [vmem:[#allocation2 + $0x30] sm:$0xf] }
  0x91   : > { %v2051_v52 = vrot.slane %v2049_v55, 5  ;;  %v1584_v58 = vsel %vm1201_vm4, %v1461_v27, 0.0  ;;  %2851 = vst [vmem:[#allocation3 + $0x150] sm:$0xf] %v2727_v9  ;;  %v2728_v45 = vrot.slane %v2726_v49, 4  ;;  %v2055_v27 = vrot.slane %v2053_v61, 4 }
  0x92   : > { %v1161_v34 = vsel %vm1079_vm5, %v1120_v53, %v704_v63  ;;  %v2478_v47 = vsel %vm9873_vm14, %v2476_v43, %v2477_v60  ;;  %1865 = vst [vmem:[#allocation3 + $0x1b0] sm:$0xf] %v1829_v56  ;;  %1866 = vst [vmem:[#allocation3 + $0x1d4] sm:$0xf] %v1830_v32  ;;  %v1902_v62 = vld [vmem:[#allocation2 + $0x34] sm:$0xf] }
  0x93   : > { %v2052_v38 = vsel %vm9835_vm8, %v2047_v44, %v2051_v52  ;;  %vm1202_vm6 = vcmp.lt.s32.totalorder %v1161_v34, 16  ;;  %v2378_v10 = vld [vmem:[#allocation2 + $0x34] sm:$0xf]  ;;  %2598 = vst [vmem:[#allocation3 + $0x194] sm:$0xf] %v2478_v47  ;;  %v2730_v57 = vsel %vm9873_vm14, %v2728_v45, %v2729_v0  ;;  %v10369_v63 = vrot.slane %v2729_v0, 4 }
  0x94   : > { %2340 = vst [vmem:[#allocation3 + $0x190] sm:$0xf] %v2052_v38  ;;  %v1585_v23 = vsel %vm1202_vm6, %v1462_v4, 0.0  ;;  %v2059_v44 = vshll.u32 %v1902_v62, 16  ;;  %2852 = vst [vmem:[#allocation3 + $0x174] sm:$0xf] %v2730_v57  ;;  %v2056_v43 = vor.u32 %v2055_v27, %v2051_v52 }
  0x95   : > { %v8779_v54 = vpack.c.bf16 %v1585_v23, %v1584_v58  ;;  %v2063_v49 = vshrl.u32 %v1902_v62, 16  ;;  %v713_v55 = vshrl.u32 %v10343_v6, 4  ;;  %v724_v5 = vshrl.u32 %v10352_v20, 4  ;;  %v4659_v58 = vld [vmem:[#allocation3 + $0x168] sm:$0xff]  ;;  %v10402_v57 = vld [vmem:[%s9750_s15 + $0x58] sm:$0xff]  }
  0x96   : > { %v2061_v61 = vrot.slane %v2059_v44, 5  ;;  %v2479_v50 = vrot.slane %v2477_v60, 4  ;;  %v2480_v53 = vrot.slane %v2378_v10, 5  ;;  %v2057_v4 = vrot.slane %v2056_v43, 4  ;;  %v9367_v60 = vld [vmem:[%s13532_s3 + $0x188] sm:$0xff]  }
  0x97   : > { %8954 = vst [vmem:[#allocation2 + $0x38] sm:$0xff] %v8779_v54   ;;  %v2065_v9 = vrot.slane %v2063_v49, 4  ;;  %v714_v41 = vmul.u32 18, %v713_v55  ;;  %v10377_v34 = vadd.s32 4294967277, %v10338_v40  ;;  %v725_v45 = vmul.u32 18, %v724_v5  ;;  %6737 = vmatpush1.bf16.msra.mxu1 %v9367_v60 }
  0x98   : > { %v2481_v6 = vsel %vm9873_vm14, %v2479_v50, %v2480_v53  ;;  %v10381_v52 = vrot.slane %v2480_v53, 4  ;;  %v1377_v20 = vmul.f32 %v10238_v21, %v8709_v36  ;;  %v9312_v0 = vld [vmem:[#allocation3 + $0x12c] ss:$36 sps:$4 sm:$0xff]   ;;  %v2062_v32 = vsel %vm9835_vm8, %v2057_v4, %v2061_v61  ;;  %6738 = vmatprep.subr.bf16.mxu1 %v13535_v1 }
  0x99   : > { %v9314_v56 = vld [vmem:[#allocation3 + $0x128] ss:$36 sps:$4 sm:$0xff]   ;;  %v2066_v38 = vor.u32 %v2065_v9, %v2061_v61  ;;  %v715_v47 = vsub.s32 %v10328_v18, %v714_v41  ;;  %2599 = vst [vmem:[#allocation3 + $0x1b8] sm:$0xf] %v2481_v6  ;;  %v10391_v62 = vadd.f32 %v10246_v19, %v1376_v3  ;;  %2341 = vst [vmem:[#allocation3 + $0x1b4] sm:$0xf] %v2062_v32  ;;  %6434 = vmatprep.mubr.bf16.mxu1 %v9312_v0 }
  0x9a   : > { %v726_v27 = vsub.s32 %v10332_v2, %v725_v45  ;;  %v10395_v36 = vmul.u32.u64.low 3817748708, %v10347_v14  ;;  %v10396_v10 = vmul.u32.u64.high 3817748708, %v10347_v14, %v10395_v36  ;;  %v10399_v23 = vadd.f32 %v10246_v19, %v1377_v20  ;;  %v9369_v18 = vld [vmem:[%s13532_s3 + $0x160] sm:$0xff]   ;;  %6435 = vmatmul.mubr.bf16.gmra.mxu1 %v9314_v56 }
  0x9b   : > { %v4664_v3 = vld [vmem:[#allocation3 + $0x18c] sm:$0xff]  ;;  %v2067_v54 = vrot.slane %v2066_v38, 4  ;;  %vm998_vm7 = vcmp.ne.s32.totalorder %v715_v47, 0  ;;  %vm1039_vm9 = vcmp.lt.s32.totalorder %v715_v47, 0  ;;  %v8712_v2 = vunpack.c.l.bf16 %v10374_v25  ;;  %6570 = vmatpush2.bf16.msra.mxu0 %v9369_v18 }
  0x9c   : > { %v9316_v44 = vld [vmem:[#allocation3 + $0x16c] ss:$36 sps:$4 sm:$0xff]   ;;  %v8373_v43 = vcombine.low %v4659_v58, %v4664_v3  ;;  %vm999_vm10 = vcmp.ne.s32.totalorder %v726_v27, 0  ;;  %vm1040_vm11 = vcmp.lt.s32.totalorder %v726_v27, 0  ;;  %vm10409_vm12 = vmand %vm1039_vm9, %vm998_vm7  ;;  %v1121_v55 = vadd.s32 18, %v715_v47  ;;  %6571 = vmatprep.subr.bf16.mxu0 %v13535_v1 }
  0x9d   : > { %6265 = vmatprep.mubr.bf16.mxu0 %v9316_v44  ;;  %vm10413_vm13 = vmand %vm1040_vm11, %vm999_vm10  ;;  %v1122_v5 = vadd.s32 18, %v726_v27  ;;  %v10418_v50 = vmul.u32.u64.low 3817748708, %v10377_v34  ;;  %v10419_v53 = vmul.u32.u64.high 3817748708, %v10377_v34, %v10418_v50  ;;  %v1465_v4 = vmax.f32 %v10391_v62, 0.0 }
  0x9e   : > { %v2635_v9 = vld [vmem:[#allocation2 + $0x38] sm:$0xf]  ;;  %6266 = vmatmul.mubr.bf16.gmra.mxu0 %v8373_v43  ;;  %v1162_v58 = vsel %vm10409_vm12, %v1121_v55, %v715_v47  ;;  %v8713_v6 = vunpack.c.h.bf16 %v10374_v25  ;;  %v10427_v20 = vmul.f32 %v10238_v21, %v8712_v2  ;;  %v8716_v60 = vunpack.c.l.bf16 %v10402_v57  ;;  %v2636_v36 = vld [vmem:[#allocation2 + $0x3c] sm:$0xf] }
  0x9f   : > { %v1903_v41 = vld [vmem:[#allocation2 + $0x38] sm:$0xf]  ;;  %v2732_v0 = vrot.slane %v2635_v9, 5  ;;  %v1163_v38 = vsel %vm10413_vm13, %v1122_v5, %v726_v27  ;;  %vm1203_vm15 = vcmp.lt.s32.totalorder %v1162_v58, 16  ;;  %v2735_v3 = vrot.slane %v2636_v36, 5 }
  0xa0   : > { %v2379_v45 = vld [vmem:[#allocation2 + $0x38] sm:$0xf]  ;;  %v2069_v56 = vshll.u32 %v1903_v41, 16  ;;  %v2073_v32 = vshrl.u32 %v1903_v41, 16  ;;  %vm1204_vm0 = vcmp.lt.s32.totalorder %v1163_v38, 16  ;;  %v1586_v2 = vsel %vm1203_vm15, %v1463_v12, 0.0 }
  0xa1   : > { %v2483_v18 = vrot.slane %v2379_v45, 5  ;;  %v1831_v47 = vld [vmem:[#allocation2 + $0x38] sm:$0xf]  ;;  %v2733_v25 = vsel %vm9873_vm14, %v10369_v63, %v2732_v0  ;;  %v1587_v43 = vsel %vm1204_vm0, %v1464_v15, 0.0  ;;  %v1832_v49 = vld [vmem:[#allocation2 + $0x3c] sm:$0xf] }
  0xa2   : > { %v2071_v44 = vrot.slane %v2069_v56, 5  ;;  %1867 = vst [vmem:[#allocation3 + $0x1f8] sm:$0xf] %v1831_v47  ;;  %2853 = vst [vmem:[#allocation3 + $0x198] sm:$0xf] %v2733_v25  ;;  %v8784_v27 = vpack.c.bf16 %v1587_v43, %v1586_v2  ;;  %v2734_v61 = vrot.slane %v2732_v0, 4 }
  0xa3   : > { %v2484_v55 = vsel %vm9873_vm14, %v10381_v52, %v2483_v18  ;;  %v10442_v5 = vrot.slane %v2735_v3, 4  ;;  %1868 = vst [vmem:[#allocation3 + $0x21c] sm:$0xf] %v1832_v49  ;;  %v1904_v63 = vld [vmem:[#allocation2 + $0x3c] sm:$0xf]  ;;  %v2075_v16 = vrot.slane %v2073_v32, 4 }
  0xa4   : > { %v2380_v50 = vld [vmem:[#allocation2 + $0x3c] sm:$0xf]  ;;  %v2072_v51 = vsel %vm9835_vm8, %v2067_v54, %v2071_v44  ;;  %2600 = vst [vmem:[#allocation3 + $0x1dc] sm:$0xf] %v2484_v55  ;;  %v2079_v12 = vshll.u32 %v1904_v63, 16  ;;  %v2083_v15 = vshrl.u32 %v1904_v63, 16  ;;  %v2736_v9 = vsel %vm9873_vm14, %v2734_v61, %v2735_v3 }
  0xa5   : > { %2342 = vst [vmem:[#allocation3 + $0x1d8] sm:$0xf] %v2072_v51  ;;  %8955 = vst [vmem:[#allocation2 + $0x40] sm:$0xff] %v8784_v27   ;;  %v735_v52 = vshrl.u32 %v10396_v10, 4  ;;  %v746_v41 = vshrl.u32 %v10419_v53, 4  ;;  %v1466_v58 = vmax.f32 %v10399_v23, 0.0  ;;  %v2076_v45 = vor.u32 %v2075_v16, %v2071_v44 }
  0xa6   : > { %2854 = vst [vmem:[#allocation3 + $0x1bc] sm:$0xf] %v2736_v9  ;;  %v2081_v0 = vrot.slane %v2079_v12, 5  ;;  %v2085_v54 = vrot.slane %v2083_v15, 4  ;;  %v2485_v56 = vrot.slane %v2483_v18, 4  ;;  %v2486_v36 = vrot.slane %v2380_v50, 5 }
  0xa7   : > { %v736_v32 = vmul.u32 18, %v735_v52  ;;  %v747_v38 = vmul.u32 18, %v746_v41  ;;  %v10452_v47 = vadd.s32 160, %v9641_v8  ;;  %v10455_v25 = vld [vmem:[%s9750_s15 + $0x60] sm:$0xff]   ;;  %v2077_v3 = vrot.slane %v2076_v45, 4  ;;  %v4669_v43 = vld [vmem:[#allocation3 + $0x1b0] sm:$0xff] }
  0xa8   : > { %v2086_v2 = vor.u32 %v2085_v54, %v2081_v0  ;;  %v10458_v10 = vadd.s32 168, %v9641_v8  ;;  %v1379_v53 = vmul.f32 %v10238_v21, %v8713_v6  ;;  %v2487_v49 = vsel %vm9873_vm14, %v2485_v56, %v2486_v36  ;;  %v9320_v61 = vld [vmem:[#allocation3 + $0x170] ss:$36 sps:$4 sm:$0xff]  }
  0xa9   : > { %13685 = vst [vmem:[#allocation22_spill] sm:$0xff] %v10452_v47  ;;  %v737_v44 = vsub.s32 %v10347_v14, %v736_v32  ;;  %v748_v18 = vsub.s32 %v10377_v34, %v747_v38  ;;  %v2488_v27 = vrot.slane %v2486_v36, 4  ;;  %v9318_v55 = vld [vmem:[#allocation3 + $0x174] ss:$36 sps:$4 sm:$0xff]   ;;  %v2082_v63 = vsel %vm9835_vm8, %v2077_v3, %v2081_v0  ;;  %2601 = vst [vmem:[#allocation3 + $0x200] sm:$0xf] %v2487_v49 }
  0xaa   : > { %13686 = vst [vmem:[#allocation23_spill] sm:$0xff] %v10458_v10  ;;  %v10467_v50 = vrot.slane %v2086_v2, 4  ;;  %v10471_v6 = vadd.f32 %v10246_v19, %v10427_v20  ;;  %v10474_v14 = vadd.f32 %v10246_v19, %v1379_v53  ;;  %2343 = vst [vmem:[#allocation3 + $0x1fc] sm:$0xf] %v2082_v63  ;;  %v9375_v34 = vld [vmem:[%s13532_s3 + $0x180] sm:$0xff]   ;;  %v9376_v51 = vld [vmem:[%s13532_s3 + $0x158] sm:$0xff]   ;;  %6442 = vmatprep.mubr.bf16.mxu1 %v9318_v55  ;;  %v8717_v9 = vunpack.c.h.bf16 %v10402_v57 }
  0xab   : > { %vm1000_vm1 = vcmp.ne.s32.totalorder %v737_v44, 0  ;;  %vm1001_vm2 = vcmp.ne.s32.totalorder %v748_v18, 0  ;;  %vm1041_vm3 = vcmp.lt.s32.totalorder %v737_v44, 0  ;;  %vm1042_vm4 = vcmp.lt.s32.totalorder %v748_v18, 0  ;;  %6443 = vmatmul.mubr.bf16.gmra.mxu1 %v9320_v61  ;;  %6572 = vmatpush2.bf16.msra.mxu0 %v9376_v51 }
  0xac   : > { %v4674_v16 = vld [vmem:[#allocation3 + $0x1d4] sm:$0xff]  ;;  %v2637_v12 = vld [vmem:[#allocation2 + $0x40] sm:$0xf]  ;;  %v1123_v15 = vadd.s32 18, %v737_v44  ;;  %v10486_v52 = vmul.f32 %v10238_v21, %v8716_v60  ;;  %v8720_v41 = vunpack.c.l.bf16 %v10455_v25  ;;  %vm10491_vm5 = vmand %vm1041_vm3, %vm1000_vm1  ;;  %v1124_v32 = vadd.s32 18, %v748_v18  ;;  %6739 = vmatpush1.bf16.msra.mxu1 %v9375_v34  ;;  %6573 = vmatprep.subr.bf16.mxu0 %v13535_v1 }
  0xad   : > { %v9323_v20 = vld [vmem:[#allocation3 + $0x1b4] ss:$36 sps:$4 sm:$0xff]   ;;  %v2738_v45 = vrot.slane %v2637_v12, 5  ;;  %v8382_v0 = vcombine.low %v4669_v43, %v4674_v16  ;;  %v1905_v54 = vld [vmem:[#allocation2 + $0x40] sm:$0xf]  ;;  %v10496_v38 = vadd.s32 4294967277, %v10452_v47  ;;  %vm10500_vm6 = vmand %vm1042_vm4, %vm1001_vm2  ;;  %v1381_v43 = vmul.f32 %v10238_v21, %v8717_v9  ;;  %6740 = vmatprep.subr.bf16.mxu1 %v13535_v1 }
  0xae   : > { %6273 = vmatprep.mubr.bf16.mxu0 %v9323_v20  ;;  %v2089_v57 = vshll.u32 %v1905_v54, 16  ;;  %v2093_v60 = vshrl.u32 %v1905_v54, 16  ;;  %v1164_v3 = vsel %vm10491_vm5, %v1123_v15, %v737_v44  ;;  %v2381_v2 = vld [vmem:[#allocation2 + $0x40] sm:$0xf]  ;;  %v2638_v53 = vld [vmem:[#allocation2 + $0x44] sm:$0xf]  ;;  %v1165_v55 = vsel %vm10500_vm6, %v1124_v32, %v748_v18 }
  0xaf   : > { %v2739_v49 = vsel %vm9873_vm14, %v10442_v5, %v2738_v45  ;;  %6274 = vmatmul.mubr.bf16.gmra.mxu0 %v8382_v0  ;;  %vm1205_vm7 = vcmp.lt.s32.totalorder %v1164_v3, 16  ;;  %v2489_v61 = vrot.slane %v2381_v2, 5  ;;  %v1833_v63 = vld [vmem:[#allocation2 + $0x40] sm:$0xf]  ;;  %v1834_v51 = vld [vmem:[#allocation2 + $0x44] sm:$0xf] }
  0xb0   : > { %2855 = vst [vmem:[#allocation3 + $0x1e0] sm:$0xf] %v2739_v49  ;;  %v2091_v44 = vrot.slane %v2089_v57, 5  ;;  %vm1206_vm9 = vcmp.lt.s32.totalorder %v1165_v55, 16  ;;  %v1588_v34 = vsel %vm1205_vm7, %v1465_v4, 0.0  ;;  %v2740_v16 = vrot.slane %v2738_v45, 4 }
  0xb1   : > { %1869 = vst [vmem:[#allocation3 + $0x240] sm:$0xf] %v1833_v63  ;;  %1870 = vst [vmem:[#allocation3 + $0x264] sm:$0xf] %v1834_v51  ;;  %v1906_v5 = vld [vmem:[#allocation2 + $0x44] sm:$0xf]  ;;  %v2490_v20 = vsel %vm9873_vm14, %v2488_v27, %v2489_v61 }
  0xb2   : > { %v1589_v18 = vsel %vm1206_vm9, %v1466_v58, 0.0  ;;  %v2741_v12 = vrot.slane %v2638_v53, 5  ;;  %v2095_v15 = vrot.slane %v2093_v60, 4  ;;  %v2092_v9 = vsel %vm9835_vm8, %v10467_v50, %v2091_v44  ;;  %2602 = vst [vmem:[#allocation3 + $0x224] sm:$0xf] %v2490_v20  ;;  %v10538_v51 = vld [vmem:[%s9750_s15 + $0x68] sm:$0xff]  }
  0xb3   : > { %v8789_v62 = vpack.c.bf16 %v1589_v18, %v1588_v34  ;;  %v2099_v4 = vshll.u32 %v1906_v5, 16  ;;  %v2103_v45 = vshrl.u32 %v1906_v5, 16  ;;  %v2382_v0 = vld [vmem:[#allocation2 + $0x44] sm:$0xf]  ;;  %2344 = vst [vmem:[#allocation3 + $0x220] sm:$0xf] %v2092_v9  ;;  %v10550_v20 = vadd.f32 %v10246_v19, %v10486_v52 }
  0xb4   : > { %v2742_v54 = vsel %vm9873_vm14, %v2740_v16, %v2741_v12  ;;  %v10525_v23 = vrot.slane %v2741_v12, 4  ;;  %v2096_v58 = vor.u32 %v2095_v15, %v2091_v44  ;;  %v8259_v27 = vadd.s32 4294967277, %v10458_v10  ;;  %v9382_v44 = vld [vmem:[%s13532_s3 + $0x1f8] sm:$0xff]   ;;  %v9384_v52 = vld [vmem:[%s13532_s3 + $0x150] sm:$0xff]  }
  0xb5   : > { %8956 = vst [vmem:[#allocation2 + $0x48] sm:$0xff] %v8789_v62   ;;  %2856 = vst [vmem:[#allocation3 + $0x204] sm:$0xf] %v2742_v54  ;;  %v2101_v56 = vrot.slane %v2099_v4, 5  ;;  %v2105_v32 = vrot.slane %v2103_v45, 4  ;;  %v1467_v2 = vmax.f32 %v10471_v6, 0.0  ;;  %6741 = vmatpush2.bf16.msra.mxu1 %v9382_v44  ;;  %6574 = vmatpush2.bf16.msra.mxu0 %v9384_v52  ;;  %v10583_v44 = vmul.f32 %v10238_v21, %v8720_v41 }
  0xb6   : > { %v10529_v50 = vmul.u32.u64.low 3817748708, %v10496_v38  ;;  %v10530_v57 = vmul.u32.u64.high 3817748708, %v10496_v38, %v10529_v50  ;;  %v2097_v60 = vrot.slane %v2096_v58, 4  ;;  %v1468_v49 = vmax.f32 %v10474_v14, 0.0  ;;  %v9327_v16 = vld [vmem:[#allocation3 + $0x1b8] ss:$36 sps:$4 sm:$0xff]   ;;  %6742 = vmatprep.subr.bf16.mxu1 %v13535_v1  ;;  %6575 = vmatprep.subr.bf16.mxu0 %v13535_v1 }
  0xb7   : > { %v10532_v36 = vmul.u32.u64.low 3817748708, %v8259_v27  ;;  %v10533_v3 = vmul.u32.u64.high 3817748708, %v8259_v27, %v10532_v36  ;;  %v2106_v53 = vor.u32 %v2105_v32, %v2101_v56  ;;  %v2491_v55 = vrot.slane %v2489_v61, 4  ;;  %v9325_v34 = vld [vmem:[#allocation3 + $0x1bc] ss:$36 sps:$4 sm:$0xff]   ;;  %v9383_v45 = vld [vmem:[%s13532_s3 + $0x1f0] sm:$0xff]  }
  0xb8   : > { %v2492_v63 = vrot.slane %v2382_v0, 5  ;;  %v2102_v5 = vsel %vm9835_vm8, %v2097_v60, %v2101_v56  ;;  %v10546_v18 = vadd.s32 176, %v9641_v8  ;;  %v10553_v61 = vadd.f32 %v10246_v19, %v1381_v43  ;;  %v4679_v12 = vld [vmem:[#allocation3 + $0x1f8] sm:$0xff]  ;;  %6450 = vmatprep.mubr.bf16.mxu1 %v9325_v34 }
  0xb9   : > { %v10555_v15 = vrot.slane %v2106_v53, 4  ;;  %2345 = vst [vmem:[#allocation3 + $0x244] sm:$0xf] %v2102_v5  ;;  %v757_v9 = vshrl.u32 %v10530_v57, 4  ;;  %v768_v43 = vshrl.u32 %v10533_v3, 4  ;;  %v10568_v0 = vadd.s32 184, %v9641_v8  ;;  %6451 = vmatmul.mubr.bf16.gmra.mxu1 %v9327_v16 }
  0xba   : > { %v2493_v62 = vsel %vm9873_vm14, %v2491_v55, %v2492_v63  ;;  %v2494_v4 = vrot.slane %v2492_v63, 4  ;;  %v10571_v54 = vadd.s32 4294967277, %v10546_v18  ;;  %v4684_v56 = vld [vmem:[#allocation3 + $0x21c] sm:$0xff]  ;;  %v10577_v60 = vadd.s32 192, %v9641_v8  ;;  %6743 = vmatpush2.bf16.msra.mxu1 %v9383_v45 }
  0xbb   : > { %2603 = vst [vmem:[#allocation3 + $0x248] sm:$0xf] %v2493_v62  ;;  %13691 = vst [vmem:[#allocation24_spill] sm:$0xff] %v10568_v0  ;;  %v9329_v32 = vld [vmem:[#allocation3 + $0x1fc] ss:$36 sps:$4 sm:$0xff]   ;;  %v758_v50 = vmul.u32 18, %v757_v9  ;;  %v8721_v36 = vunpack.c.h.bf16 %v10455_v25  ;;  %v8391_v53 = vcombine.low %v4679_v12, %v4684_v56  ;;  %v8724_v34 = vunpack.c.l.bf16 %v10538_v51  ;;  %6744 = vmatprep.subr.bf16.mxu1 %v13535_v1 }
  0xbc   : > { %13692 = vst [vmem:[#allocation25_spill] sm:$0xff] %v10577_v60  ;;  %v2639_v3 = vld [vmem:[#allocation2 + $0x48] sm:$0xf]  ;;  %v769_v63 = vmul.u32 18, %v768_v43  ;;  %6281 = vmatprep.mubr.bf16.mxu0 %v9329_v32  ;;  %v2640_v56 = vld [vmem:[#allocation2 + $0x4c] sm:$0xf] }
  0xbd   : > { %v1907_v55 = vld [vmem:[#allocation2 + $0x48] sm:$0xf]  ;;  %v2744_v16 = vrot.slane %v2639_v3, 5  ;;  %v759_v62 = vsub.s32 %v10496_v38, %v758_v50  ;;  %6282 = vmatmul.mubr.bf16.gmra.mxu0 %v8391_v53  ;;  %v10589_v41 = vadd.s32 4294967277, %v10568_v0  ;;  %v1383_v57 = vmul.f32 %v10238_v21, %v8721_v36  ;;  %v1836_v38 = vld [vmem:[#allocation2 + $0x4c] sm:$0xf] }
  0xbe   : > { %v2109_v5 = vshll.u32 %v1907_v55, 16  ;;  %v2113_v9 = vshrl.u32 %v1907_v55, 16  ;;  %v2383_v52 = vld [vmem:[#allocation2 + $0x48] sm:$0xf]  ;;  %v770_v12 = vsub.s32 %v8259_v27, %v769_v63  ;;  %1872 = vst [vmem:[#allocation3 + $0x2ac] sm:$0xf] %v1836_v38 }
  0xbf   : > { %v2495_v43 = vrot.slane %v2383_v52, 5  ;;  %v1835_v25 = vld [vmem:[#allocation2 + $0x48] sm:$0xf]  ;;  %v2745_v32 = vsel %vm9873_vm14, %v10525_v23, %v2744_v16  ;;  %vm1002_vm10 = vcmp.ne.s32.totalorder %v759_v62, 0  ;;  %vm1043_vm11 = vcmp.lt.s32.totalorder %v759_v62, 0 }
  0xc0   : > { %v2111_v3 = vrot.slane %v2109_v5, 5  ;;  %1871 = vst [vmem:[#allocation3 + $0x288] sm:$0xf] %v1835_v25  ;;  %2857 = vst [vmem:[#allocation3 + $0x228] sm:$0xf] %v2745_v32  ;;  %vm1003_vm12 = vcmp.ne.s32.totalorder %v770_v12, 0 }
  0xc1   : > { %vm1044_vm13 = vcmp.lt.s32.totalorder %v770_v12, 0  ;;  %vm10596_vm15 = vmand %vm1043_vm11, %vm1002_vm10  ;;  %v1125_v45 = vadd.s32 18, %v759_v62  ;;  %v1126_v21 = vadd.s32 18, %v770_v12  ;;  %v2496_v23 = vsel %vm9873_vm14, %v2494_v4, %v2495_v43  ;;  %v1908_v55 = vld [vmem:[#allocation2 + $0x4c] sm:$0xf] }
  0xc2   : > { %v2112_v50 = vsel %vm9835_vm8, %v10555_v15, %v2111_v3  ;;  %vm1085_vm0 = vmand %vm1044_vm13, %vm1003_vm12  ;;  %v2746_v36 = vrot.slane %v2744_v16, 4  ;;  %v2747_v53 = vrot.slane %v2640_v56, 5  ;;  %2604 = vst [vmem:[#allocation3 + $0x26c] sm:$0xf] %v2496_v23  ;;  %v2115_v52 = vrot.slane %v2113_v9, 4  ;;  %v9390_v9 = vld [vmem:[%s13532_s3 + $0x1e8] sm:$0xff]  }
  0xc3   : > { %2346 = vst [vmem:[#allocation3 + $0x268] sm:$0xf] %v2112_v50  ;;  %v1166_v63 = vsel %vm10596_vm15, %v1125_v45, %v759_v62  ;;  %v1167_v5 = vsel %vm1085_vm0, %v1126_v21, %v770_v12  ;;  %v2119_v25 = vshll.u32 %v1908_v55, 16  ;;  %v2123_v38 = vshrl.u32 %v1908_v55, 16  ;;  %v2384_v21 = vld [vmem:[#allocation2 + $0x4c] sm:$0xf]  ;;  %6745 = vmatpush2.bf16.msra.mxu1 %v9390_v9 }
  0xc4   : > { %vm1207_vm1 = vcmp.lt.s32.totalorder %v1166_v63, 16  ;;  %vm1208_vm2 = vcmp.lt.s32.totalorder %v1167_v5, 16  ;;  %v2748_v15 = vsel %vm9873_vm14, %v2746_v36, %v2747_v53  ;;  %v10609_v32 = vrot.slane %v2747_v53, 4  ;;  %v4689_v50 = vld [vmem:[#allocation3 + $0x240] sm:$0xff]  ;;  %6746 = vmatprep.subr.bf16.mxu1 %v13535_v1 }
  0xc5   : > { %v1590_v4 = vsel %vm1207_vm1, %v1467_v2, 0.0  ;;  %v1591_v16 = vsel %vm1208_vm2, %v1468_v49, 0.0  ;;  %2858 = vst [vmem:[#allocation3 + $0x24c] sm:$0xf] %v2748_v15  ;;  %v2116_v56 = vor.u32 %v2115_v52, %v2111_v3  ;;  %v2121_v62 = vrot.slane %v2119_v25, 5  ;;  %v9391_v3 = vld [vmem:[%s13532_s3 + $0x1e0] sm:$0xff]  }
  0xc6   : > { %v8794_v12 = vpack.c.bf16 %v1591_v16, %v1590_v4  ;;  %v10619_v27 = vmul.u32.u64.low 3817748708, %v10571_v54  ;;  %v10620_v45 = vmul.u32.u64.high 3817748708, %v10571_v54, %v10619_v27  ;;  %v2497_v49 = vrot.slane %v2495_v43, 4  ;;  %v9334_v36 = vld [vmem:[#allocation3 + $0x200] ss:$36 sps:$4 sm:$0xff]  }
  0xc7   : > { %v2117_v6 = vrot.slane %v2116_v56, 4  ;;  %v10623_v2 = vmul.u32.u64.low 3817748708, %v10589_v41  ;;  %v10624_v14 = vmul.u32.u64.high 3817748708, %v10589_v41, %v10623_v2  ;;  %v9331_v23 = vld [vmem:[#allocation3 + $0x204] ss:$36 sps:$4 sm:$0xff]   ;;  %v2125_v53 = vrot.slane %v2123_v38, 4  ;;  %6747 = vmatpush2.bf16.msra.mxu1 %v9391_v3 }
  0xc8   : > { %8957 = vst [vmem:[#allocation2 + $0x50] sm:$0xff] %v8794_v12   ;;  %v10631_v55 = vadd.f32 %v10246_v19, %v10583_v44  ;;  %v10634_v63 = vadd.f32 %v10246_v19, %v1383_v57  ;;  %v8725_v5 = vunpack.c.h.bf16 %v10538_v51  ;;  %v2498_v52 = vrot.slane %v2384_v21, 5  ;;  %6458 = vmatprep.mubr.bf16.mxu1 %v9331_v23  ;;  %6748 = vmatprep.subr.bf16.mxu1 %v13535_v1  ;;  %v10675_v3 = vld [vmem:[%s9750_s15 + $0x70] sm:$0xff]  }
  0xc9   : > { %v2122_v43 = vsel %vm9835_vm8, %v2117_v6, %v2121_v62  ;;  %v10641_v25 = vadd.s32 200, %v9641_v8  ;;  %v10644_v15 = vadd.s32 4294967277, %v10577_v60  ;;  %v2126_v16 = vor.u32 %v2125_v53, %v2121_v62  ;;  %6459 = vmatmul.mubr.bf16.gmra.mxu1 %v9334_v36 }
  0xca   : > { %v4694_v44 = vld [vmem:[#allocation3 + $0x264] sm:$0xff]  ;;  %2347 = vst [vmem:[#allocation3 + $0x28c] sm:$0xf] %v2122_v43  ;;  %v779_v19 = vshrl.u32 %v10620_v45, 4  ;;  %v790_v12 = vshrl.u32 %v10624_v14, 4  ;;  %v2499_v38 = vsel %vm9873_vm14, %v2497_v49, %v2498_v52  ;;  %v2500_v27 = vrot.slane %v2498_v52, 4 }
  0xcb   : > { %13695 = vst [vmem:[#allocation26_spill] sm:$0xff] %v10641_v25  ;;  %v9336_v4 = vld [vmem:[#allocation3 + $0x244] ss:$36 sps:$4 sm:$0xff]   ;;  %v8400_v9 = vcombine.low %v4689_v50, %v4694_v44  ;;  %v2127_v21 = vrot.slane %v2126_v16, 4  ;;  %2605 = vst [vmem:[#allocation3 + $0x290] sm:$0xf] %v2499_v38 }
  0xcc   : > { %6289 = vmatprep.mubr.bf16.mxu0 %v9336_v4  ;;  %v780_v6 = vmul.u32 18, %v779_v19  ;;  %v10653_v62 = vadd.s32 4294967277, %v10641_v25  ;;  %v10656_v45 = vadd.s32 208, %v9641_v8  ;;  %v791_v50 = vmul.u32 18, %v790_v12  ;;  %v10681_v19 = vld [vmem:[%s13530_s1] ss:$0 sm:$0xff] }
  0xcd   : > { %6290 = vmatmul.mubr.bf16.gmra.mxu0 %v8400_v9  ;;  %v10659_v2 = vmul.u32.u64.low 3817748708, %v10644_v15  ;;  %v10660_v14 = vmul.u32.u64.high 3817748708, %v10644_v15, %v10659_v2  ;;  %v10663_v49 = vadd.s32 216, %v9641_v8  ;;  %v10687_v9 = vmul.f32 %v10681_v19, %v8725_v5 }
  0xce   : > { %13696 = vst [vmem:[#allocation27_spill] sm:$0xff] %v10656_v45  ;;  %v781_v23 = vsub.s32 %v10571_v54, %v780_v6  ;;  %v10668_v36 = vmul.u32.u64.low 3817748708, %v10653_v62  ;;  %v10669_v53 = vmul.u32.u64.high 3817748708, %v10653_v62, %v10668_v36  ;;  %v10672_v43 = vadd.s32 4294967277, %v10656_v45 }
  0xcf   : > { %13697 = vst [vmem:[#allocation28_spill] sm:$0xff] %v10663_v49  ;;  %v2641_v52 = vld [vmem:[#allocation2 + $0x50] sm:$0xf]  ;;  %v792_v4 = vsub.s32 %v10589_v41, %v791_v50  ;;  %v1384_v54 = vmul.f32 %v10681_v19, %v8724_v34  ;;  %v2642_v2 = vld [vmem:[#allocation2 + $0x54] sm:$0xf] }
  0xd0   : > { %v1909_v44 = vld [vmem:[#allocation2 + $0x50] sm:$0xf]  ;;  %v2750_v12 = vrot.slane %v2641_v52, 5  ;;  %vm1004_vm3 = vcmp.ne.s32.totalorder %v781_v23, 0  ;;  %vm1045_vm5 = vcmp.lt.s32.totalorder %v781_v23, 0  ;;  %v1127_v41 = vadd.s32 18, %v781_v23 }
  0xd1   : > { %v2385_v16 = vld [vmem:[#allocation2 + $0x50] sm:$0xf]  ;;  %v2129_v38 = vshll.u32 %v1909_v44, 16  ;;  %v2133_v6 = vshrl.u32 %v1909_v44, 16  ;;  %vm1005_vm4 = vcmp.ne.s32.totalorder %v792_v4, 0  ;;  %vm1046_vm6 = vcmp.lt.s32.totalorder %v792_v4, 0  ;;  %vm10692_vm7 = vmand %vm1045_vm5, %vm1004_vm3 }
  0xd2   : > { %v2751_v50 = vsel %vm9873_vm14, %v10609_v32, %v2750_v12  ;;  %v1128_v34 = vadd.s32 18, %v792_v4  ;;  %v2501_v5 = vrot.slane %v2385_v16, 5  ;;  %v1837_v52 = vld [vmem:[#allocation2 + $0x50] sm:$0xf]  ;;  %vm10696_vm9 = vmand %vm1046_vm6, %vm1005_vm4  ;;  %v1168_v56 = vsel %vm10692_vm7, %v1127_v41, %v781_v23  ;;  %v1838_v58 = vld [vmem:[#allocation2 + $0x54] sm:$0xf] }
  0xd3   : > { %v2131_v36 = vrot.slane %v2129_v38, 5  ;;  %2859 = vst [vmem:[#allocation3 + $0x270] sm:$0xf] %v2751_v50  ;;  %v2752_v57 = vrot.slane %v2750_v12, 4  ;;  %v2753_v1 = vrot.slane %v2642_v2, 5  ;;  %vm1209_vm10 = vcmp.lt.s32.totalorder %v1168_v56, 16 }
  0xd4   : > { %1873 = vst [vmem:[#allocation3 + $0x2d0] sm:$0xf] %v1837_v52  ;;  %v1910_v32 = vld [vmem:[#allocation2 + $0x54] sm:$0xf]  ;;  %v1169_v16 = vsel %vm10696_vm9, %v1128_v34, %v792_v4  ;;  %v2502_v50 = vsel %vm9873_vm14, %v2500_v27, %v2501_v5  ;;  %1874 = vst [vmem:[#allocation3 + $0x2f4] sm:$0xf] %v1838_v58 }
  0xd5   : > { %v2132_v7 = vsel %vm9835_vm8, %v2127_v21, %v2131_v36  ;;  %vm1210_vm11 = vcmp.lt.s32.totalorder %v1169_v16, 16  ;;  %v13702_v23 = vmax.f32 %v10550_v20, 0.0  ;;  %2606 = vst [vmem:[#allocation3 + $0x2b4] sm:$0xf] %v2502_v50  ;;  %v2754_v2 = vsel %vm9873_vm14, %v2752_v57, %v2753_v1  ;;  %v2386_v41 = vld [vmem:[#allocation2 + $0x54] sm:$0xf] }
  0xd6   : > { %2348 = vst [vmem:[#allocation3 + $0x2b0] sm:$0xf] %v2132_v7  ;;  %v10716_v21 = vld [vmem:[%s13531_s2] ss:$0 sm:$0xff]  ;;  %v13703_v58 = vmax.f32 %v10553_v61, 0.0  ;;  %v2135_v27 = vrot.slane %v2133_v6, 4 }
  0xd7   : > { %v1592_v12 = vsel %vm1209_vm10, %v13702_v23, 0.0  ;;  %v10719_v56 = vadd.f32 %v10716_v21, %v1384_v54  ;;  %2860 = vst [vmem:[#allocation3 + $0x294] sm:$0xf] %v2754_v2  ;;  %v2139_v20 = vshll.u32 %v1910_v32, 16  ;;  %v2143_v4 = vshrl.u32 %v1910_v32, 16  ;;  %v4699_v38 = vld [vmem:[#allocation3 + $0x288] sm:$0xff] }
  0xd8   : > { %v1593_v7 = vsel %vm1210_vm11, %v13703_v58, 0.0  ;;  %v801_v34 = vshrl.u32 %v10660_v14, 4  ;;  %v812_v57 = vshrl.u32 %v10669_v53, 4  ;;  %v2503_v52 = vrot.slane %v2501_v5, 4 }
  0xd9   : > { %v8799_v51 = vpack.c.bf16 %v1593_v7, %v1592_v12  ;;  %v2136_v44 = vor.u32 %v2135_v27, %v2131_v36  ;;  %v2141_v16 = vrot.slane %v2139_v20, 5  ;;  %v2145_v50 = vrot.slane %v2143_v4, 4  ;;  %v9340_v12 = vld [vmem:[#allocation3 + $0x248] ss:$36 sps:$4 sm:$0xff]   ;;  %v9398_v20 = vld [vmem:[%s13532_s3 + $0x1d8] sm:$0xff]  }
  0xda   : > { %v2504_v23 = vrot.slane %v2386_v41, 5  ;;  %v10725_v54 = vrot.slane %v2753_v1, 4  ;;  %v802_v61 = vmul.u32 18, %v801_v34  ;;  %v813_v58 = vmul.u32 18, %v812_v57  ;;  %v9338_v32 = vld [vmem:[#allocation3 + $0x24c] ss:$36 sps:$4 sm:$0xff]   ;;  %6749 = vmatpush2.bf16.msra.mxu1 %v9398_v20 }
  0xdb   : > { %8958 = vst [vmem:[#allocation2 + $0x58] sm:$0xff] %v8799_v51   ;;  %v10728_v6 = vadd.s32 4294967277, %v10663_v49  ;;  %v2137_v2 = vrot.slane %v2136_v44, 4  ;;  %v2146_v14 = vor.u32 %v2145_v50, %v2141_v16  ;;  %v10734_v36 = vadd.f32 %v10716_v21, %v10687_v9  ;;  %v9396_v27 = vld [vmem:[%s13532_s3 + $0x148] sm:$0xff]   ;;  %6466 = vmatprep.mubr.bf16.mxu1 %v9338_v32 }
  0xdc   : > { %v2505_v53 = vsel %vm9873_vm14, %v2503_v52, %v2504_v23  ;;  %v803_v5 = vsub.s32 %v10644_v15, %v802_v61  ;;  %v814_v1 = vsub.s32 %v10653_v62, %v813_v58  ;;  %v10738_v41 = vrot.slane %v2504_v23, 4  ;;  %6467 = vmatmul.mubr.bf16.gmra.mxu1 %v9340_v12  ;;  %6576 = vmatpush2.bf16.msra.mxu0 %v9396_v27 }
  0xdd   : > { %2607 = vst [vmem:[#allocation3 + $0x2d8] sm:$0xf] %v2505_v53  ;;  %v4704_v9 = vld [vmem:[#allocation3 + $0x2ac] sm:$0xff]  ;;  %v2142_v15 = vsel %vm9835_vm8, %v2137_v2, %v2141_v16  ;;  %v10749_v62 = vrot.slane %v2146_v14, 4  ;;  %v10752_v51 = vmul.u32.u64.low 3817748708, %v10672_v43  ;;  %v10753_v34 = vmul.u32.u64.high 3817748708, %v10672_v43, %v10752_v51 }
  0xde   : > { %v9343_v4 = vld [vmem:[#allocation3 + $0x28c] ss:$36 sps:$4 sm:$0xff]   ;;  %v8409_v57 = vcombine.low %v4699_v38, %v4704_v9  ;;  %2349 = vst [vmem:[#allocation3 + $0x2d4] sm:$0xf] %v2142_v15  ;;  %vm1006_vm12 = vcmp.ne.s32.totalorder %v803_v5, 0  ;;  %vm1007_vm13 = vcmp.ne.s32.totalorder %v814_v1, 0  ;;  %v13711_v15 = vunpack.c.l.bf16 %v10675_v3 }
  0xdf   : > { %vm1047_vm15 = vcmp.lt.s32.totalorder %v803_v5, 0  ;;  %6297 = vmatprep.mubr.bf16.mxu0 %v9343_v4  ;;  %vm1048_vm0 = vcmp.lt.s32.totalorder %v814_v1, 0  ;;  %v1129_v44 = vadd.s32 18, %v803_v5  ;;  %v1130_v16 = vadd.s32 18, %v814_v1  ;;  %v9399_v38 = vld [vmem:[%s13532_s3 + $0x1d0] sm:$0xff]  }
  0xe0   : > { %vm10755_vm1 = vmand %vm1047_vm15, %vm1006_vm12  ;;  %6298 = vmatmul.mubr.bf16.gmra.mxu0 %v8409_v57  ;;  %v10768_v61 = vmul.u32.u64.low 3817748708, %v10728_v6  ;;  %v10769_v58 = vmul.u32.u64.high 3817748708, %v10728_v6, %v10768_v61  ;;  %v10772_v32 = vadd.s32 224, %v9641_v8  ;;  %v10775_v12 = vadd.s32 232, %v9641_v8 }
  0xe1   : > { %vm10763_vm2 = vmand %vm1048_vm0, %vm1007_vm13  ;;  %v13710_v2 = vmov 0   ;;  %v1170_v27 = vsel %vm10755_vm1, %v1129_v44, %v803_v5  ;;  %v8729_v4 = vunpack.c.h.bf16 %v10675_v3  ;;  %v1386_v51 = vmul.f32 %v10681_v19, %v13711_v15 }
  0xe2   : > { %13708 = vst [vmem:[#allocation29_spill] sm:$0xff] %v10772_v32  ;;  %13709 = vst [vmem:[#allocation30_spill] sm:$0xff] %v10775_v12  ;;  %6750 = vmatprep.subr.bf16.mxu1 %v13710_v2  ;;  %v2643_v14 = vld [vmem:[#allocation2 + $0x58] sm:$0xf]  ;;  %v1171_v20 = vsel %vm10763_vm2, %v1130_v16, %v814_v1  ;;  %6577 = vmatprep.subr.bf16.mxu0 %v13710_v2  ;;  %vm1211_vm3 = vcmp.lt.s32.totalorder %v1170_v27, 16  ;;  %v13712_v5 = vmax.f32 %v10631_v55, 0.0 }
  0xe3   : > { %v1911_v53 = vld [vmem:[#allocation2 + $0x58] sm:$0xf]  ;;  %v2756_v57 = vrot.slane %v2643_v14, 5  ;;  %v2644_v7 = vld [vmem:[#allocation2 + $0x5c] sm:$0xf]  ;;  %vm1212_vm4 = vcmp.lt.s32.totalorder %v1171_v20, 16  ;;  %6751 = vmatpush2.bf16.msra.mxu1 %v9399_v38 }
  0xe4   : > { %v2387_v9 = vld [vmem:[#allocation2 + $0x58] sm:$0xf]  ;;  %v2149_v61 = vshll.u32 %v1911_v53, 16  ;;  %v2153_v50 = vshrl.u32 %v1911_v53, 16  ;;  %v1594_v52 = vsel %vm1211_vm3, %v13712_v5, 0.0  ;;  %v2759_v1 = vrot.slane %v2644_v7, 5  ;;  %6752 = vmatprep.subr.bf16.mxu1 %v13710_v2 }
  0xe5   : > { %v2507_v44 = vrot.slane %v2387_v9, 5  ;;  %v1839_v16 = vld [vmem:[#allocation2 + $0x58] sm:$0xf]  ;;  %v2757_v3 = vsel %vm9873_vm14, %v10725_v54, %v2756_v57  ;;  %v13713_v15 = vmax.f32 %v10634_v63, 0.0  ;;  %v2758_v40 = vrot.slane %v2756_v57, 4 }
  0xe6   : > { %v2151_v23 = vrot.slane %v2149_v61, 5  ;;  %v1840_v53 = vld [vmem:[#allocation2 + $0x5c] sm:$0xf]  ;;  %1875 = vst [vmem:[#allocation3 + $0x318] sm:$0xf] %v1839_v16  ;;  %v2155_v27 = vrot.slane %v2153_v50, 4  ;;  %v1387_v54 = vmul.f32 %v10681_v19, %v8729_v4 }
  0xe7   : > { %v1595_v14 = vsel %vm1212_vm4, %v13713_v15, 0.0  ;;  %2861 = vst [vmem:[#allocation3 + $0x2b8] sm:$0xf] %v2757_v3  ;;  %v2508_v7 = vsel %vm9873_vm14, %v10738_v41, %v2507_v44  ;;  %1876 = vst [vmem:[#allocation3 + $0x33c] sm:$0xf] %v1840_v53  ;;  %v2760_v20 = vsel %vm9873_vm14, %v2758_v40, %v2759_v1  ;;  %v823_v50 = vshrl.u32 %v10753_v34, 4 }
  0xe8   : > { %v8804_v55 = vpack.c.bf16 %v1595_v14, %v1594_v52  ;;  %v1912_v38 = vld [vmem:[#allocation2 + $0x5c] sm:$0xf]  ;;  %v2152_v63 = vsel %vm9835_vm8, %v10749_v62, %v2151_v23  ;;  %2608 = vst [vmem:[#allocation3 + $0x2fc] sm:$0xf] %v2508_v7  ;;  %2862 = vst [vmem:[#allocation3 + $0x2dc] sm:$0xf] %v2760_v20  ;;  %v2156_v41 = vor.u32 %v2155_v27, %v2151_v23 }
  0xe9   : > { %v2159_v9 = vshll.u32 %v1912_v38, 16  ;;  %v2163_v57 = vshrl.u32 %v1912_v38, 16  ;;  %v2388_v61 = vld [vmem:[#allocation2 + $0x5c] sm:$0xf]  ;;  %2350 = vst [vmem:[#allocation3 + $0x2f8] sm:$0xf] %v2152_v63  ;;  %v10822_v63 = vadd.f32 %v10716_v21, %v1386_v51 }
  0xea   : > { %8959 = vst [vmem:[#allocation2 + $0x60] sm:$0xff] %v8804_v55   ;;  %v834_v4 = vshrl.u32 %v10769_v58, 4  ;;  %v2509_v5 = vrot.slane %v2507_v44, 4  ;;  %v2761_v52 = vrot.slane %v2759_v1, 4  ;;  %v2510_v3 = vrot.slane %v2388_v61, 5  ;;  %v8944_v7 = vld [vmem:[%s9750_s15 + $0x78] sm:$0xff]  }
  0xeb   : > { %v2161_v16 = vrot.slane %v2159_v9, 5  ;;  %v2165_v62 = vrot.slane %v2163_v57, 4  ;;  %v2157_v15 = vrot.slane %v2156_v41, 4  ;;  %v824_v40 = vmul.u32 18, %v823_v50  ;;  %v4709_v44 = vld [vmem:[#allocation3 + $0x2d0] sm:$0xff]  ;;  %v10825_v20 = vld [vmem:[%s9750_s15 + $0x80] sm:$0xff]  }
  0xec   : > { %v835_v14 = vmul.u32 18, %v834_v4  ;;  %v10807_v53 = vadd.s32 4294967277, %v10772_v32  ;;  %v2511_v23 = vsel %vm9873_vm14, %v2509_v5, %v2510_v3  ;;  %v10812_v34 = vrot.slane %v2510_v3, 4  ;;  %v9347_v57 = vld [vmem:[#allocation3 + $0x290] ss:$36 sps:$4 sm:$0xff]  }
  0xed   : > { %v2166_v55 = vor.u32 %v2165_v62, %v2161_v16  ;;  %v10815_v58 = vadd.s32 4294967277, %v10775_v12  ;;  %v2162_v1 = vsel %vm9835_vm8, %v2157_v15, %v2161_v16  ;;  %v825_v38 = vsub.s32 %v10672_v43, %v824_v40  ;;  %2609 = vst [vmem:[#allocation3 + $0x320] sm:$0xf] %v2511_v23  ;;  %v9405_v43 = vld [vmem:[%s13532_s3 + $0x140] sm:$0xff]  }
  0xee   : > { %v836_v27 = vsub.s32 %v10728_v6, %v835_v14  ;;  %v9345_v9 = vld [vmem:[#allocation3 + $0x294] ss:$36 sps:$4 sm:$0xff]   ;;  %2351 = vst [vmem:[#allocation3 + $0x31c] sm:$0xf] %v2162_v1  ;;  %v8732_v41 = vunpack.c.l.bf16 %v8944_v7  ;;  %v8733_v50 = vunpack.c.h.bf16 %v8944_v7  ;;  %v9406_v6 = vld [vmem:[%s13532_s3 + $0x1c8] sm:$0xff]   ;;  %v10834_v62 = vadd.f32 %v10716_v21, %v1387_v54  ;;  %6578 = vmatpush2.bf16.msra.mxu0 %v9405_v43 }
  0xef   : > { %v2167_v61 = vrot.slane %v2166_v55, 4  ;;  %vm1008_vm5 = vcmp.ne.s32.totalorder %v825_v38, 0  ;;  %vm1049_vm7 = vcmp.lt.s32.totalorder %v825_v38, 0  ;;  %6474 = vmatprep.mubr.bf16.mxu1 %v9345_v9  ;;  %v1131_v16 = vadd.s32 18, %v825_v38  ;;  %6753 = vmatpush2.bf16.msra.mxu1 %v9406_v6 }
  0xf0   : > { %vm1009_vm6 = vcmp.ne.s32.totalorder %v836_v27, 0  ;;  %vm1050_vm9 = vcmp.lt.s32.totalorder %v836_v27, 0  ;;  %v4714_v51 = vld [vmem:[#allocation3 + $0x2f4] sm:$0xff]  ;;  %v1388_v3 = vmul.f32 %v10681_v19, %v8732_v41  ;;  %6475 = vmatmul.mubr.bf16.gmra.mxu1 %v9347_v57  ;;  %vm10840_vm10 = vmand %vm1049_vm7, %vm1008_vm5  ;;  %v1132_v23 = vadd.s32 18, %v836_v27  ;;  %6754 = vmatprep.subr.bf16.mxu1 %v13710_v2 }
  0xf1   : > { %v9350_v4 = vld [vmem:[#allocation3 + $0x2d4] ss:$36 sps:$4 sm:$0xff]   ;;  %v2645_v5 = vld [vmem:[#allocation2 + $0x60] sm:$0xf]  ;;  %v8418_v14 = vcombine.low %v4709_v44, %v4714_v51  ;;  %vm10847_vm11 = vmand %vm1050_vm9, %vm1009_vm6  ;;  %v1172_v44 = vsel %vm10840_vm10, %v1131_v16, %v825_v38  ;;  %v13718_v16 = vmax.f32 %v10719_v56, 0.0 }
  0xf2   : > { %v2762_v40 = vrot.slane %v2645_v5, 5  ;;  %v1913_v7 = vld [vmem:[#allocation2 + $0x60] sm:$0xf]  ;;  %6305 = vmatprep.mubr.bf16.mxu0 %v9350_v4  ;;  %v2646_v51 = vld [vmem:[#allocation2 + $0x64] sm:$0xf]  ;;  %v1389_v5 = vmul.f32 %v10681_v19, %v8733_v50  ;;  %v1173_v4 = vsel %vm10847_vm11, %v1132_v23, %v836_v27  ;;  %vm1213_vm12 = vcmp.lt.s32.totalorder %v1172_v44, 16 }
  0xf3   : > { %v2169_v54 = vshll.u32 %v1913_v7, 16  ;;  %v2173_v9 = vshrl.u32 %v1913_v7, 16  ;;  %v2389_v41 = vld [vmem:[#allocation2 + $0x60] sm:$0xf]  ;;  %6306 = vmatmul.mubr.bf16.gmra.mxu0 %v8418_v14  ;;  %v1842_v15 = vld [vmem:[#allocation2 + $0x64] sm:$0xf] }
  0xf4   : > { %v2763_v43 = vsel %vm9873_vm14, %v2761_v52, %v2762_v40  ;;  %v2513_v7 = vrot.slane %v2389_v41, 5  ;;  %v1841_v1 = vld [vmem:[#allocation2 + $0x60] sm:$0xf]  ;;  %vm1214_vm13 = vcmp.lt.s32.totalorder %v1173_v4, 16  ;;  %v1596_v50 = vsel %vm1213_vm12, %v13718_v16, 0.0  ;;  %v9414_v4 = vld [vmem:[%s13532_s3 + $0x238] sm:$0xff]  }
  0xf5   : > { %2863 = vst [vmem:[#allocation3 + $0x300] sm:$0xf] %v2763_v43  ;;  %v2171_v38 = vrot.slane %v2169_v54, 5  ;;  %v2764_v6 = vrot.slane %v2762_v40, 4  ;;  %1877 = vst [vmem:[#allocation3 + $0x360] sm:$0xf] %v1841_v1  ;;  %9010 = vmatprep.subr.bf16.mxu0 %v9414_v4 }
  0xf6   : > { %1878 = vst [vmem:[#allocation3 + $0x384] sm:$0xf] %v1842_v15  ;;  %v1914_v52 = vld [vmem:[#allocation2 + $0x64] sm:$0xf]  ;;  %v13719_v14 = vmax.f32 %v10734_v36, 0.0  ;;  %v2514_v27 = vsel %vm9873_vm14, %v10812_v34, %v2513_v7  ;;  %v2765_v23 = vrot.slane %v2646_v51, 5 }
  0xf7   : > { %v2175_v57 = vrot.slane %v2173_v9, 4  ;;  %v2172_v2 = vsel %vm9835_vm8, %v2167_v61, %v2171_v38  ;;  %2610 = vst [vmem:[#allocation3 + $0x344] sm:$0xf] %v2514_v27  ;;  %v2179_v56 = vshll.u32 %v1914_v52, 16  ;;  %v2183_v44 = vshrl.u32 %v1914_v52, 16  ;;  %v9407_v15 = vld [vmem:[%s13532_s3 + $0x1c0] sm:$0xff]  }
  0xf8   : > { %v1597_v55 = vsel %vm1214_vm13, %v13719_v14, 0.0  ;;  %2352 = vst [vmem:[#allocation3 + $0x340] sm:$0xf] %v2172_v2  ;;  %v2766_v36 = vsel %vm9873_vm14, %v2764_v6, %v2765_v23  ;;  %v10873_v40 = vrot.slane %v2765_v23, 4  ;;  %v2390_v1 = vld [vmem:[#allocation2 + $0x64] sm:$0xf]  ;;  %v10876_v9 = vadd.f32 %v10716_v21, %v1388_v3  ;;  %6755 = vmatpush2.bf16.msra.mxu1 %v9407_v15 }
  0xf9   : > { %v8809_v54 = vpack.c.bf16 %v1597_v55, %v1596_v50  ;;  %v2176_v34 = vor.u32 %v2175_v57, %v2171_v38  ;;  %2864 = vst [vmem:[#allocation3 + $0x324] sm:$0xf] %v2766_v36  ;;  %v2181_v61 = vrot.slane %v2179_v56, 5  ;;  %v2185_v41 = vrot.slane %v2183_v44, 4  ;;  %9062 = vmatprep.subr.bf16.mxu1 %v9414_v4  ;;  %v9354_v23 = vld [vmem:[#allocation3 + $0x2d8] ss:$36 sps:$4 sm:$0xff]  }
  0xfa   : > { %v10879_v51 = vmul.u32.u64.low 3817748708, %v10807_v53  ;;  %v10880_v43 = vmul.u32.u64.high 3817748708, %v10807_v53, %v10879_v51  ;;  %v10886_v38 = vmul.u32.u64.low 3817748708, %v10815_v58  ;;  %v10887_v50 = vmul.u32.u64.high 3817748708, %v10815_v58, %v10886_v38  ;;  %v4719_v56 = vld [vmem:[#allocation3 + $0x318] sm:$0xff] }
  0xfb   : > { %8960 = vst [vmem:[#allocation2 + $0x68] sm:$0xff] %v8809_v54   ;;  %v2177_v16 = vrot.slane %v2176_v34, 4  ;;  %v2515_v3 = vrot.slane %v2513_v7, 4  ;;  %v2186_v6 = vor.u32 %v2185_v41, %v2181_v61  ;;  %v2516_v52 = vrot.slane %v2390_v1, 5 }
  0xfc   : > { %v10890_v14 = vadd.s32 240, %v9641_v8  ;;  %v10893_v55 = vadd.s32 248, %v9641_v8  ;;  %v9352_v27 = vld [vmem:[#allocation3 + $0x2dc] ss:$36 sps:$4 sm:$0xff]   ;;  %v10899_v54 = vadd.f32 %v10716_v21, %v1389_v5  ;;  %v8737_v7 = vunpack.c.h.bf16 %v10825_v20 }
  0xfd   : > { %v2182_v57 = vsel %vm9835_vm8, %v2177_v16, %v2181_v61  ;;  %v2187_v44 = vrot.slane %v2186_v6, 4  ;;  %v845_v15 = vshrl.u32 %v10880_v43, 4  ;;  %v2517_v36 = vsel %vm9873_vm14, %v2515_v3, %v2516_v52  ;;  %6482 = vmatprep.mubr.bf16.mxu1 %v9352_v27 }
  0xfe   : > { %13720 = vst [vmem:[#allocation31_spill] sm:$0xff] %v10890_v14  ;;  %13721 = vst [vmem:[#allocation32_spill] sm:$0xff] %v10893_v55  ;;  %v856_v1 = vshrl.u32 %v10887_v50, 4  ;;  %v2518_v61 = vrot.slane %v2516_v52, 4  ;;  %v10908_v5 = vadd.s32 4294967277, %v10890_v14  ;;  %v10911_v41 = vadd.s32 4294967277, %v10893_v55  ;;  %6483 = vmatmul.mubr.bf16.gmra.mxu1 %v9354_v23 }
  0xff   : > { %2353 = vst [vmem:[#allocation3 + $0x364] sm:$0xf] %v2182_v57  ;;  %2611 = vst [vmem:[#allocation3 + $0x368] sm:$0xf] %v2517_v36  ;;  %v4724_v51 = vld [vmem:[#allocation3 + $0x33c] sm:$0xff]  ;;  %v846_v43 = vmul.u32 18, %v845_v15  ;;  %v13723_v27 = vunpack.c.l.bf16 %v10825_v20  ;;  %v1391_v20 = vmul.f32 %v10681_v19, %v8737_v7 }
 0x100   : > { %v9357_v4 = vld [vmem:[#allocation3 + $0x31c] ss:$36 sps:$4 sm:$0xff]   ;;  %v10915_v38 = vadd.s32 256, %v9641_v8  ;;  %v8427_v6 = vcombine.low %v4719_v56, %v4724_v51  ;;  %v857_v52 = vmul.u32 18, %v856_v1  ;;  %v10922_v15 = vadd.s32 264, %v9641_v8 }
 0x101   : > { %v1390_v57 = vmul.f32 %v10681_v19, %v13723_v27  ;;  %6313 = vmatprep.mubr.bf16.mxu0 %v9357_v4  ;;  %v847_v23 = vsub.s32 %v10807_v53, %v846_v43  ;;  %v8946_v43 = vld [vmem:[%s9750_s15 + $0x88] sm:$0xff]  }
 0x102   : > { %13722 = vst [vmem:[#allocation33_spill] sm:$0xff] %v10915_v38  ;;  %v2647_v3 = vld [vmem:[#allocation2 + $0x68] sm:$0xf]  ;;  %13724 = vst [vmem:[#allocation34_spill] sm:$0xff] %v10922_v15  ;;  %6314 = vmatmul.mubr.bf16.gmra.mxu0 %v8427_v6  ;;  %v858_v59 = vsub.s32 %v10815_v58, %v857_v52  ;;  %v2648_v51 = vld [vmem:[#allocation2 + $0x6c] sm:$0xf] }
 0x103   : > { %v1915_v50 = vld [vmem:[#allocation2 + $0x68] sm:$0xf]  ;;  %v2768_v36 = vrot.slane %v2647_v3, 5  ;;  %vm1010_vm15 = vcmp.ne.s32.totalorder %v847_v23, 0  ;;  %vm1051_vm0 = vcmp.lt.s32.totalorder %v847_v23, 0  ;;  %v1133_v58 = vadd.s32 18, %v847_v23 }
 0x104   : > { %v2189_v34 = vshll.u32 %v1915_v50, 16  ;;  %v2391_v2 = vld [vmem:[#allocation2 + $0x68] sm:$0xf]  ;;  %v2193_v16 = vshrl.u32 %v1915_v50, 16  ;;  %v1844_v53 = vld [vmem:[#allocation2 + $0x6c] sm:$0xf]  ;;  %vm10929_vm3 = vmand %vm1051_vm0, %vm1010_vm15 }
 0x105   : > { %v2519_v56 = vrot.slane %v2391_v2, 5  ;;  %v1843_v1 = vld [vmem:[#allocation2 + $0x68] sm:$0xf]  ;;  %v2769_v4 = vsel %vm9873_vm14, %v10873_v40, %v2768_v36  ;;  %vm1011_vm1 = vcmp.ne.s32.totalorder %v858_v59, 0  ;;  %vm1052_vm2 = vcmp.lt.s32.totalorder %v858_v59, 0 }
 0x106   : > { %v2191_v3 = vrot.slane %v2189_v34, 5  ;;  %1879 = vst [vmem:[#allocation3 + $0x3a8] sm:$0xf] %v1843_v1  ;;  %2865 = vst [vmem:[#allocation3 + $0x348] sm:$0xf] %v2769_v4  ;;  %v1134_v2 = vadd.s32 18, %v858_v59  ;;  %v1174_v52 = vsel %vm10929_vm3, %v1133_v58, %v847_v23 }
 0x107   : > { %1880 = vst [vmem:[#allocation3 + $0x3cc] sm:$0xf] %v1844_v53  ;;  %vm1093_vm4 = vmand %vm1052_vm2, %vm1011_vm1  ;;  %v2520_v40 = vsel %vm9873_vm14, %v2518_v61, %v2519_v56  ;;  %v2770_v34 = vrot.slane %v2768_v36, 4  ;;  %v2771_v6 = vrot.slane %v2648_v51, 5  ;;  %v1916_v50 = vld [vmem:[#allocation2 + $0x6c] sm:$0xf] }
 0x108   : > { %v2192_v7 = vsel %vm9835_vm8, %v2187_v44, %v2191_v3  ;;  %v1175_v27 = vsel %vm1093_vm4, %v1134_v2, %v858_v59  ;;  %2612 = vst [vmem:[#allocation3 + $0x38c] sm:$0xf] %v2520_v40  ;;  %v2195_v1 = vrot.slane %v2193_v16, 4  ;;  %v2199_v4 = vshll.u32 %v1916_v50, 16 }
 0x109   : > { %2354 = vst [vmem:[#allocation3 + $0x388] sm:$0xf] %v2192_v7  ;;  %vm1215_vm5 = vcmp.lt.s32.totalorder %v1174_v52, 16  ;;  %vm1216_vm6 = vcmp.lt.s32.totalorder %v1175_v27, 16  ;;  %v2772_v44 = vsel %vm9873_vm14, %v2770_v34, %v2771_v6  ;;  %v10942_v53 = vadd.s32 4294967277, %v10915_v38  ;;  %v4729_v52 = vld [vmem:[#allocation3 + $0x360] sm:$0xff] }
 0x10a   : > { %v13727_v61 = vmax.f32 %v10822_v63, 0.0  ;;  %v13728_v51 = vmax.f32 %v10834_v62, 0.0  ;;  %2866 = vst [vmem:[#allocation3 + $0x36c] sm:$0xf] %v2772_v44  ;;  %v2196_v23 = vor.u32 %v2195_v1, %v2191_v3  ;;  %v2201_v59 = vrot.slane %v2199_v4, 5 }
 0x10b   : > { %v2203_v58 = vshrl.u32 %v1916_v50, 16  ;;  %v10950_v2 = vmul.u32.u64.low 3817748708, %v10908_v5  ;;  %v10951_v40 = vmul.u32.u64.high 3817748708, %v10908_v5, %v10950_v2  ;;  %v2392_v34 = vld [vmem:[#allocation2 + $0x6c] sm:$0xf]  ;;  %v10958_v1 = vadd.f32 %v10716_v21, %v1390_v57 }
 0x10c   : > { %v1598_v36 = vsel %vm1215_vm5, %v13727_v61, 0.0  ;;  %v1599_v7 = vsel %vm1216_vm6, %v13728_v51, 0.0  ;;  %v2197_v27 = vrot.slane %v2196_v23, 4  ;;  %v2521_v61 = vrot.slane %v2519_v56, 4  ;;  %v9361_v51 = vld [vmem:[#allocation3 + $0x320] ss:$36 sps:$4 sm:$0xff]  }
 0x10d   : > { %v8814_v16 = vpack.c.bf16 %v1599_v7, %v1598_v36  ;;  %v10954_v38 = vmul.u32.u64.low 3817748708, %v10911_v41  ;;  %v10955_v63 = vmul.u32.u64.high 3817748708, %v10911_v41, %v10954_v38  ;;  %v9359_v62 = vld [vmem:[#allocation3 + $0x324] ss:$36 sps:$4 sm:$0xff]   ;;  %v2205_v3 = vrot.slane %v2203_v58, 4 }
 0x10e   : > { %v10961_v50 = vadd.f32 %v10716_v21, %v1391_v20  ;;  %v8740_v4 = vunpack.c.l.bf16 %v8946_v43  ;;  %v2773_v44 = vrot.slane %v2771_v6, 4  ;;  %v2202_v36 = vsel %vm9835_vm8, %v2197_v27, %v2201_v59  ;;  %6490 = vmatprep.mubr.bf16.mxu1 %v9359_v62 }
 0x10f   : > { %8961 = vst [vmem:[#allocation2 + $0x70] sm:$0xff] %v8814_v16   ;;  %v2522_v7 = vrot.slane %v2392_v34, 5  ;;  %v10966_v23 = vadd.s32 4294967277, %v10922_v15  ;;  %v2206_v16 = vor.u32 %v2205_v3, %v2201_v59  ;;  %2355 = vst [vmem:[#allocation3 + $0x3ac] sm:$0xf] %v2202_v36  ;;  %v867_v57 = vshrl.u32 %v10951_v40, 4  ;;  %6491 = vmatmul.mubr.bf16.gmra.mxu1 %v9361_v51 }
 0x110   : > { %v4734_v38 = vld [vmem:[#allocation3 + $0x384] sm:$0xff]  ;;  %v10970_v58 = vmul.u32.u64.low 3817748708, %v10942_v53  ;;  %v10971_v20 = vmul.u32.u64.high 3817748708, %v10942_v53, %v10970_v58  ;;  %v878_v2 = vshrl.u32 %v10955_v63, 4  ;;  %v8741_v27 = vunpack.c.h.bf16 %v8946_v43 }
 0x111   : > { %v9363_v56 = vld [vmem:[#allocation3 + $0x364] ss:$36 sps:$4 sm:$0xff]   ;;  %v8436_v6 = vcombine.low %v4729_v52, %v4734_v38  ;;  %v2523_v34 = vsel %vm9873_vm14, %v2521_v61, %v2522_v7  ;;  %v2207_v62 = vrot.slane %v2206_v16, 4  ;;  %v868_v15 = vmul.u32 18, %v867_v57 }
 0x112   : > { %6321 = vmatprep.mubr.bf16.mxu0 %v9363_v56  ;;  %v2524_v12 = vrot.slane %v2522_v7, 4  ;;  %2613 = vst [vmem:[#allocation3 + $0x3b0] sm:$0xf] %v2523_v34  ;;  %v879_v40 = vmul.u32 18, %v878_v2  ;;  %v10978_v3 = vmul.u32.u64.low 3817748708, %v10966_v23  ;;  %v10979_v36 = vmul.u32.u64.high 3817748708, %v10966_v23, %v10978_v3 }
 0x113   : > { %6322 = vmatmul.mubr.bf16.gmra.mxu0 %v8436_v6  ;;  %v869_v63 = vsub.s32 %v10908_v5, %v868_v15  ;;  %v889_v61 = vshrl.u32 %v10971_v20, 4  ;;  %v10985_v43 = vadd.s32 272, %v9641_v8  ;;  %v10988_v51 = vadd.s32 280, %v9641_v8 }
 0x114   : > { %v880_v56 = vsub.s32 %v10911_v41, %v879_v40  ;;  %v1392_v57 = vmul.f32 %v10681_v19, %v8740_v4  ;;  %v10993_v58 = vmul.f32 %v10681_v19, %v8741_v27 }
 0x115   : > { %13729 = vst [vmem:[#allocation35_spill] sm:$0xff] %v10985_v43  ;;  %13730 = vst [vmem:[#allocation36_spill] sm:$0xff] %v10988_v51  ;;  %vm1012_vm7 = vcmp.ne.s32.totalorder %v869_v63, 0  ;;  %vm1053_vm10 = vcmp.lt.s32.totalorder %v869_v63, 0  ;;  %v1135_v2 = vadd.s32 18, %v869_v63 }
 0x116   : > { %v2649_v7 = vld [vmem:[#allocation2 + $0x70] sm:$0xf]  ;;  %v2650_v20 = vld [vmem:[#allocation2 + $0x74] sm:$0xf]  ;;  %vm1013_vm9 = vcmp.ne.s32.totalorder %v880_v56, 0  ;;  %vm1054_vm11 = vcmp.lt.s32.totalorder %v880_v56, 0  ;;  %vm10997_vm12 = vmand %vm1053_vm10, %vm1012_vm7 }
 0x117   : > { %v1917_v38 = vld [vmem:[#allocation2 + $0x70] sm:$0xf]  ;;  %v2774_v6 = vrot.slane %v2649_v7, 5  ;;  %v1136_v4 = vadd.s32 18, %v880_v56  ;;  %vm1095_vm13 = vmand %vm1054_vm11, %vm1013_vm9  ;;  %v1176_v40 = vsel %vm10997_vm12, %v1135_v2, %v869_v63  ;;  %v1846_v52 = vld [vmem:[#allocation2 + $0x74] sm:$0xf] }
 0x118   : > { %v2393_v16 = vld [vmem:[#allocation2 + $0x70] sm:$0xf]  ;;  %v2209_v5 = vshll.u32 %v1917_v38, 16  ;;  %v2213_v15 = vshrl.u32 %v1917_v38, 16  ;;  %v2777_v38 = vrot.slane %v2650_v20, 5  ;;  %vm1217_vm15 = vcmp.lt.s32.totalorder %v1176_v40, 16 }
 0x119   : > { %v2775_v34 = vsel %vm9873_vm14, %v2773_v44, %v2774_v6  ;;  %v2525_v19 = vrot.slane %v2393_v16, 5  ;;  %v1845_v27 = vld [vmem:[#allocation2 + $0x70] sm:$0xf]  ;;  %v2776_v7 = vrot.slane %v2774_v6, 4  ;;  %v1918_v59 = vld [vmem:[#allocation2 + $0x74] sm:$0xf]  ;;  %v11004_v44 = vadd.f32 %v10716_v21, %v1392_v57 }
 0x11a   : > { %v2211_v3 = vrot.slane %v2209_v5, 5  ;;  %2867 = vst [vmem:[#allocation3 + $0x390] sm:$0xf] %v2775_v34  ;;  %1881 = vst [vmem:[#allocation3 + $0x3f0] sm:$0xf] %v1845_v27  ;;  %v1177_v55 = vsel %vm1095_vm13, %v1136_v4, %v880_v56  ;;  %v13733_v63 = vmax.f32 %v10876_v9, 0.0 }
 0x11b   : > { %v2526_v16 = vsel %vm9873_vm14, %v2524_v12, %v2525_v19  ;;  %1882 = vst [vmem:[#allocation3 + $0x414] sm:$0xf] %v1846_v52  ;;  %vm1218_vm0 = vcmp.lt.s32.totalorder %v1177_v55, 16  ;;  %v2778_v20 = vsel %vm9873_vm14, %v2776_v7, %v2777_v38  ;;  %v11014_v57 = vrot.slane %v2777_v38, 4  ;;  %v2394_v2 = vld [vmem:[#allocation2 + $0x74] sm:$0xf] }
 0x11c   : > { %v2212_v5 = vsel %vm9835_vm8, %v2207_v62, %v2211_v3  ;;  %v1600_v6 = vsel %vm1217_vm15, %v13733_v63, 0.0  ;;  %2614 = vst [vmem:[#allocation3 + $0x3d4] sm:$0xf] %v2526_v16  ;;  %v13734_v62 = vmax.f32 %v10899_v54, 0.0  ;;  %2868 = vst [vmem:[#allocation3 + $0x3b4] sm:$0xf] %v2778_v20 }
 0x11d   : > { %2356 = vst [vmem:[#allocation3 + $0x3d0] sm:$0xf] %v2212_v5  ;;  %v2215_v34 = vrot.slane %v2213_v15, 4  ;;  %v2219_v41 = vshll.u32 %v1918_v59, 16  ;;  %v2223_v12 = vshrl.u32 %v1918_v59, 16  ;;  %v890_v4 = vmul.u32 18, %v889_v61 }
 0x11e   : > { %v1601_v56 = vsel %vm1218_vm0, %v13734_v62, 0.0  ;;  %v900_v55 = vshrl.u32 %v10979_v36, 4  ;;  %v2527_v9 = vrot.slane %v2525_v19, 4  ;;  %v2528_v16 = vrot.slane %v2394_v2, 5  ;;  %v4739_v7 = vld [vmem:[#allocation3 + $0x3a8] sm:$0xff] }
 0x11f   : > { %v8819_v52 = vpack.c.bf16 %v1601_v56, %v1600_v6  ;;  %v2216_v27 = vor.u32 %v2215_v34, %v2211_v3  ;;  %v2221_v40 = vrot.slane %v2219_v41, 5  ;;  %v2225_v5 = vrot.slane %v2223_v12, 4  ;;  %v9368_v61 = vld [vmem:[#allocation3 + $0x368] ss:$36 sps:$4 sm:$0xff]  }
 0x120   : > { %v891_v38 = vsub.s32 %v10942_v53, %v890_v4  ;;  %v901_v63 = vmul.u32 18, %v900_v55  ;;  %v11021_v54 = vadd.s32 4294967277, %v10985_v43  ;;  %v11024_v15 = vadd.s32 4294967277, %v10988_v51  ;;  %v11752_v28 = vld [vmem:[#allocation2 + $0x70] sm:$0xf] }
 0x121   : > { %8962 = vst [vmem:[#allocation2 + $0x78] sm:$0xff] %v8819_v52   ;;  %v9365_v59 = vld [vmem:[#allocation3 + $0x36c] ss:$36 sps:$4 sm:$0xff]   ;;  %v2217_v6 = vrot.slane %v2216_v27, 4  ;;  %v2226_v36 = vor.u32 %v2225_v5, %v2221_v40  ;;  %v2529_v3 = vsel %vm9873_vm14, %v2527_v9, %v2528_v16  ;;  %v11030_v19 = vadd.f32 %v10716_v21, %v10993_v58 }
 0x122   : > { %v902_v53 = vsub.s32 %v10966_v23, %v901_v63  ;;  %vm1014_vm1 = vcmp.ne.s32.totalorder %v891_v38, 0  ;;  %vm1055_vm2 = vcmp.lt.s32.totalorder %v891_v38, 0  ;;  %v1137_v20 = vadd.s32 18, %v891_v38  ;;  %2615 = vst [vmem:[#allocation3 + $0x3f8] sm:$0xf] %v2529_v3  ;;  %6498 = vmatprep.mubr.bf16.mxu1 %v9365_v59  ;;  %v11041_v52 = vld [vmem:[%s9750_s15 + $0x90] sm:$0xff]  }
 0x123   : > { %v2222_v56 = vsel %vm9835_vm8, %v2217_v6, %v2221_v40  ;;  %v2227_v34 = vrot.slane %v2226_v36, 4  ;;  %vm11035_vm3 = vmand %vm1055_vm2, %vm1014_vm1  ;;  %v2530_v21 = vrot.slane %v2528_v16, 4  ;;  %6499 = vmatmul.mubr.bf16.gmra.mxu1 %v9368_v61  ;;  %v8744_v6 = vunpack.c.l.bf16 %v11041_v52 }
 0x124   : > { %v4744_v2 = vld [vmem:[#allocation3 + $0x3cc] sm:$0xff]  ;;  %2357 = vst [vmem:[#allocation3 + $0x3f4] sm:$0xf] %v2222_v56  ;;  %vm1015_vm4 = vcmp.ne.s32.totalorder %v902_v53, 0  ;;  %vm1056_vm5 = vcmp.lt.s32.totalorder %v902_v53, 0  ;;  %v1138_v12 = vadd.s32 18, %v902_v53  ;;  %v1178_v4 = vsel %vm11035_vm3, %v1137_v20, %v891_v38 }
 0x125   : > { %v9370_v62 = vld [vmem:[#allocation3 + $0x3ac] ss:$36 sps:$4 sm:$0xff]   ;;  %v8445_v23 = vcombine.low %v4739_v7, %v4744_v2  ;;  %vm1097_vm6 = vmand %vm1056_vm5, %vm1015_vm4  ;;  %v11046_v55 = vmul.u32.u64.low 3817748708, %v11021_v54  ;;  %v11047_v9 = vmul.u32.u64.high 3817748708, %v11021_v54, %v11046_v55  ;;  %vm1219_vm7 = vcmp.lt.s32.totalorder %v1178_v4, 16 }
 0x126   : > { %6329 = vmatprep.mubr.bf16.mxu0 %v9370_v62  ;;  %v1179_v40 = vsel %vm1097_vm6, %v1138_v12, %v902_v53  ;;  %v11051_v5 = vmul.u32.u64.low 3817748708, %v11024_v15  ;;  %v11052_v16 = vmul.u32.u64.high 3817748708, %v11024_v15, %v11051_v5  ;;  %v11055_v7 = vld [vmem:[%s9750_s15 + $0x98] sm:$0xf]  ;;  %v13737_v38 = vmax.f32 %v10958_v1, 0.0 }
 0x127   : > { %6330 = vmatmul.mubr.bf16.gmra.mxu0 %v8445_v23  ;;  %vm1220_vm9 = vcmp.lt.s32.totalorder %v1179_v40, 16  ;;  %v8745_v36 = vunpack.c.h.bf16 %v11041_v52  ;;  %v13738_v2 = vmax.f32 %v10961_v50, 0.0  ;;  %v911_v55 = vshrl.u32 %v11047_v9, 4 }
 0x128   : > { %v2651_v63 = vld [vmem:[#allocation2 + $0x78] sm:$0xf]  ;;  %v1602_v61 = vsel %vm1219_vm7, %v13737_v38, 0.0  ;;  %v2652_v12 = vld [vmem:[#allocation2 + $0x7c] sm:$0xf]  ;;  %v1348_v1 = vunpack.c.l.bf16 %v11055_v7  ;;  %v13745_v52 = vmax.f32 %v11004_v44, 0.0 }
 0x129   : > { %v1919_v59 = vld [vmem:[#allocation2 + $0x78] sm:$0xf]  ;;  %v2780_v3 = vrot.slane %v2651_v63, 5  ;;  %v1603_v62 = vsel %vm1220_vm9, %v13738_v2, 0.0  ;;  %v2783_v38 = vrot.slane %v2652_v12, 5  ;;  %v912_v9 = vmul.u32 18, %v911_v55 }
 0x12a   : > { %v2229_v20 = vshll.u32 %v1919_v59, 16  ;;  %v2233_v53 = vshrl.u32 %v1919_v59, 16  ;;  %v2395_v56 = vld [vmem:[#allocation2 + $0x78] sm:$0xf]  ;;  %v8824_v41 = vpack.c.bf16 %v1603_v62, %v1602_v61  ;;  %v1848_v59 = vld [vmem:[#allocation2 + $0x7c] sm:$0xf] }
 0x12b   : > { %v2531_v23 = vrot.slane %v2395_v56, 5  ;;  %v1847_v4 = vld [vmem:[#allocation2 + $0x78] sm:$0xf]  ;;  %v2781_v40 = vsel %vm9873_vm14, %v11014_v57, %v2780_v3  ;;  %v2782_v63 = vrot.slane %v2780_v3, 4  ;;  %1884 = vst [vmem:[#allocation3 + $0x45c] sm:$0xf] %v1848_v59 }
 0x12c   : > { %v2231_v5 = vrot.slane %v2229_v20, 5  ;;  %1883 = vst [vmem:[#allocation3 + $0x438] sm:$0xf] %v1847_v4  ;;  %2869 = vst [vmem:[#allocation3 + $0x3d8] sm:$0xf] %v2781_v40  ;;  %v2235_v2 = vrot.slane %v2233_v53, 4  ;;  %v913_v4 = vsub.s32 %v11021_v54, %v912_v9 }
 0x12d   : > { %8963 = vst [vmem:[#allocation2 + $0x80] sm:$0xff] %v8824_v41   ;;  %v2532_v50 = vsel %vm9873_vm14, %v2530_v21, %v2531_v23  ;;  %v1920_v61 = vld [vmem:[#allocation2 + $0x7c] sm:$0xf]  ;;  %v922_v62 = vshrl.u32 %v11052_v16, 4  ;;  %v2784_v57 = vsel %vm9873_vm14, %v2782_v63, %v2783_v38  ;;  %v2785_v3 = vrot.slane %v2783_v38, 4 }
 0x12e   : > { %v2232_v56 = vsel %vm9835_vm8, %v2227_v34, %v2231_v5  ;;  %2616 = vst [vmem:[#allocation3 + $0x41c] sm:$0xf] %v2532_v50  ;;  %v2239_v20 = vshll.u32 %v1920_v61, 16  ;;  %v2396_v12 = vld [vmem:[#allocation2 + $0x7c] sm:$0xf]  ;;  %v2236_v41 = vor.u32 %v2235_v2, %v2231_v5  ;;  %v2243_v21 = vshrl.u32 %v1920_v61, 16 }
 0x12f   : > { %2358 = vst [vmem:[#allocation3 + $0x418] sm:$0xf] %v2232_v56  ;;  %2870 = vst [vmem:[#allocation3 + $0x3fc] sm:$0xf] %v2784_v57  ;;  %v923_v53 = vmul.u32 18, %v922_v62  ;;  %v2533_v40 = vrot.slane %v2531_v23, 4 }
 0x130   : > { %v2241_v55 = vrot.slane %v2239_v20, 5  ;;  %v2534_v16 = vrot.slane %v2396_v12, 5  ;;  %v11077_v59 = vadd.s32 288, %v9641_v8  ;;  %v2237_v34 = vrot.slane %v2236_v41, 4  ;;  %v4749_v2 = vld [vmem:[#allocation3 + $0x3f0] sm:$0xff]  ;;  %v6227_v41 = vpop.f32.mrf.mxu0 }
 0x131   : > { %v2245_v50 = vrot.slane %v2243_v21, 4  ;;  %v924_v63 = vsub.s32 %v11024_v15, %v923_v53  ;;  %vm1016_vm10 = vcmp.ne.s32.totalorder %v913_v4, 0  ;;  %vm1057_vm11 = vcmp.lt.s32.totalorder %v913_v4, 0  ;;  %v9374_v62 = vld [vmem:[#allocation3 + $0x3b0] ss:$36 sps:$4 sm:$0xff]   ;;  %v6404_v21 = vpop.f32.mrf.mxu1 }
 0x132   : > { %v1139_v38 = vadd.s32 18, %v913_v4  ;;  %v2535_v5 = vsel %vm9873_vm14, %v2533_v40, %v2534_v16  ;;  %v2536_v61 = vrot.slane %v2534_v16, 4  ;;  %v2242_v54 = vsel %vm9835_vm8, %v2237_v34, %v2241_v55  ;;  %vm11084_vm15 = vmand %vm1057_vm11, %vm1016_vm10  ;;  %v9537_v20 = vld [vmem:[%s13530_s1] ss:$0 sm:$0xff]  ;;  %v11795_v0 = vld [vmem:[#allocation2 + $0x78] sm:$0xf] }
 0x133   : > { %v2246_v23 = vor.u32 %v2245_v50, %v2241_v55  ;;  %vm1017_vm12 = vcmp.ne.s32.totalorder %v924_v63, 0  ;;  %vm1058_vm13 = vcmp.lt.s32.totalorder %v924_v63, 0  ;;  %2617 = vst [vmem:[#allocation3 + $0x440] sm:$0xf] %v2535_v5  ;;  %v9372_v15 = vld [vmem:[#allocation3 + $0x3b4] ss:$36 sps:$4 sm:$0xff]   ;;  %v1394_v12 = vmul.f32 %v9537_v20, %v8744_v6  ;;  %v6406_v27 = vpop.f32.mrf.mxu1 }
 0x134   : > { %2359 = vst [vmem:[#allocation3 + $0x43c] sm:$0xf] %v2242_v54  ;;  %v1140_v56 = vadd.s32 18, %v924_v63  ;;  %v1180_v57 = vsel %vm11084_vm15, %v1139_v38, %v913_v4  ;;  %v2653_v53 = vld [vmem:[#allocation2 + $0x80] sm:$0xf]  ;;  %vm11097_vm0 = vmand %vm1058_vm13, %vm1017_vm12  ;;  %v1395_v34 = vmul.f32 %v9537_v20, %v8745_v36  ;;  %v11107_v50 = vadd.f32 %v6404_v21, %v6227_v41  ;;  %6506 = vmatprep.mubr.bf16.mxu1 %v9372_v15 }
 0x135   : > { %v1921_v55 = vld [vmem:[#allocation2 + $0x80] sm:$0xf]  ;;  %v2247_v40 = vrot.slane %v2246_v23, 4  ;;  %vm11101_vm1 = vcmp.lt.s32.totalorder %v1180_v57, 16  ;;  %v2786_v5 = vrot.slane %v2653_v53, 5  ;;  %v1396_v9 = vmul.f32 %v9537_v20, %v1348_v1  ;;  %v6229_v57 = vpop.f32.mrf.mxu0  ;;  %6507 = vmatmul.mubr.bf16.gmra.mxu1 %v9374_v62 }
 0x136   : > { %v4754_v6 = vld [vmem:[#allocation3 + $0x414] sm:$0xff]  ;;  %v2249_v54 = vshll.u32 %v1921_v55, 16  ;;  %v1181_v23 = vsel %vm11097_vm0, %v1140_v56, %v924_v63  ;;  %v2253_v51 = vshrl.u32 %v1921_v55, 16  ;;  %v1604_v36 = vsel %vm11101_vm1, %v13745_v52, 0.0  ;;  %v2397_v15 = vld [vmem:[#allocation2 + $0x80] sm:$0xf] }
 0x137   : > { %v9377_v38 = vld [vmem:[#allocation3 + $0x3f4] ss:$36 sps:$4 sm:$0xff]   ;;  %v8454_v58 = vcombine.low %v4749_v2, %v4754_v6  ;;  %vm1222_vm2 = vcmp.lt.s32.totalorder %v1181_v23, 16  ;;  %v2787_v41 = vsel %vm9873_vm14, %v2785_v3, %v2786_v5  ;;  %v13746_v7 = vmax.f32 %v11030_v19, 0.0  ;;  %v2654_v27 = vld [vmem:[#allocation2 + $0x84] sm:$0xf]  ;;  %v6230_v62 = vpop.f32.mrf.mxu0  ;;  %v6407_v2 = vpop.f32.mrf.mxu1 }
 0x138   : > { %6337 = vmatprep.mubr.bf16.mxu0 %v9377_v38  ;;  %v2251_v63 = vrot.slane %v2249_v54, 5  ;;  %v2537_v56 = vrot.slane %v2397_v15, 5  ;;  %2871 = vst [vmem:[#allocation3 + $0x420] sm:$0xf] %v2787_v41  ;;  %v2788_v44 = vrot.slane %v2786_v5, 4  ;;  %v2789_v21 = vrot.slane %v2654_v27, 5 }
 0x139   : > { %v1605_v1 = vsel %vm1222_vm2, %v13746_v7, 0.0  ;;  %6338 = vmatmul.mubr.bf16.gmra.mxu0 %v8454_v58  ;;  %v1849_v53 = vld [vmem:[#allocation2 + $0x80] sm:$0xf]  ;;  %v1850_v55 = vld [vmem:[#allocation2 + $0x84] sm:$0xf]  ;;  %v11121_v16 = vadd.f32 %v6407_v2, %v6230_v62  ;;  %v2255_v6 = vrot.slane %v2253_v51, 4  ;;  %v6232_v58 = vpop.f32.mrf.mxu0  ;;  %v6409_v54 = vpop.f32.mrf.mxu1 }
 0x13a   : > { %v8829_v20 = vpack.c.bf16 %v1605_v1, %v1604_v36  ;;  %v2252_v3 = vsel %vm9835_vm8, %v2247_v40, %v2251_v63  ;;  %v2538_v19 = vsel %vm9873_vm14, %v2536_v61, %v2537_v56  ;;  %1885 = vst [vmem:[#allocation3 + $0x480] sm:$0xf] %v1849_v53  ;;  %1886 = vst [vmem:[#allocation3 + $0x4a4] sm:$0xf] %v1850_v55  ;;  %v1922_v4 = vld [vmem:[#allocation2 + $0x84] sm:$0xf] }
 0x13b   : > { %v320_v38 = vadd.s32 296, %v9641_v8  ;;  %2360 = vst [vmem:[#allocation3 + $0x460] sm:$0xf] %v2252_v3  ;;  %2618 = vst [vmem:[#allocation3 + $0x464] sm:$0xf] %v2538_v19  ;;  %v2790_v5 = vsel %vm9873_vm14, %v2788_v44, %v2789_v21  ;;  %v2259_v23 = vshll.u32 %v1922_v4, 16  ;;  %v2256_v51 = vor.u32 %v2255_v6, %v2251_v63  ;;  %v6412_v19 = vpop.f32.mrf.mxu1 }
 0x13c   : > { %8964 = vst [vmem:[#allocation2 + $0x88] sm:$0xff] %v8829_v20   ;;  %v2263_v57 = vshrl.u32 %v1922_v4, 16  ;;  %v9538_v61 = vld [vmem:[%s13531_s2] ss:$0 sm:$0xff]  ;;  %v2398_v52 = vld [vmem:[#allocation2 + $0x84] sm:$0xf] }
 0x13d   : > { %v11133_v40 = vadd.f32 %v9538_v61, %v1394_v12  ;;  %2872 = vst [vmem:[#allocation3 + $0x444] sm:$0xf] %v2790_v5  ;;  %v8274_v36 = vadd.s32 4294967277, %v11077_v59  ;;  %v11136_v15 = vadd.s32 4294967277, %v320_v38  ;;  %v11138_v41 = vadd.f32 %v9538_v61, %v1395_v34  ;;  %v4759_v53 = vld [vmem:[#allocation3 + $0x438] sm:$0xff]  ;;  %v6235_v34 = vpop.f32.mrf.mxu0 }
 0x13e   : > { %v2261_v7 = vrot.slane %v2259_v23, 5  ;;  %v2265_v1 = vrot.slane %v2263_v57, 4  ;;  %v2539_v27 = vrot.slane %v2537_v56, 4  ;;  %v11140_v62 = vadd.f32 %v9538_v61, %v1396_v9  ;;  %v9381_v6 = vld [vmem:[#allocation3 + $0x3f8] ss:$36 sps:$4 sm:$0xff]  }
 0x13f   : > { %v2257_v2 = vrot.slane %v2256_v51, 4  ;;  %v11142_v20 = vmul.u32.u64.low 3817748708, %v8274_v36  ;;  %v11143_v44 = vmul.u32.u64.high 3817748708, %v8274_v36, %v11142_v20  ;;  %v2540_v12 = vrot.slane %v2398_v52, 5  ;;  %v9379_v4 = vld [vmem:[#allocation3 + $0x3fc] ss:$36 sps:$4 sm:$0xff]   ;;  %v6237_v61 = vpop.f32.mrf.mxu0  ;;  %v6414_v52 = vpop.f32.mrf.mxu1 }
 0x140   : > { %v2266_v55 = vor.u32 %v2265_v1, %v2261_v7  ;;  %v11146_v63 = vmul.u32.u64.low 3817748708, %v11136_v15  ;;  %v11147_v3 = vmul.u32.u64.high 3817748708, %v11136_v15, %v11146_v63  ;;  %v321_v59 = vadd.s32 304, %v9641_v8  ;;  %6514 = vmatprep.mubr.bf16.mxu1 %v9379_v4  ;;  %v3900_v17 = vld [vmem:[#allocation2 + $0x84] sm:$0xf] }
 0x141   : > { %v2791_v56 = vrot.slane %v2789_v21, 4  ;;  %v2262_v9 = vsel %vm9835_vm8, %v2257_v2, %v2261_v7  ;;  %v2541_v38 = vsel %vm9873_vm14, %v2539_v27, %v2540_v12  ;;  %v11154_v58 = vadd.f32 %v6412_v19, %v6235_v34  ;;  %6515 = vmatmul.mubr.bf16.gmra.mxu1 %v9381_v6  ;;  %v6238_v34 = vpop.f32.mrf.mxu0  ;;  %v6415_v19 = vpop.f32.mrf.mxu1 }
 0x142   : > { %v2267_v54 = vrot.slane %v2266_v55, 4  ;;  %2361 = vst [vmem:[#allocation3 + $0x484] sm:$0xf] %v2262_v9  ;;  %v2542_v57 = vrot.slane %v2540_v12, 4  ;;  %2619 = vst [vmem:[#allocation3 + $0x488] sm:$0xf] %v2541_v38 }
 0x143   : > { %v4764_v21 = vld [vmem:[#allocation3 + $0x45c] sm:$0xff]  ;;  %v2655_v1 = vld [vmem:[#allocation2 + $0x88] sm:$0xf]  ;;  %v933_v7 = vshrl.u32 %v11143_v44, 4  ;;  %v944_v55 = vshrl.u32 %v11147_v3, 4  ;;  %v11160_v63 = vadd.s32 4294967277, %v321_v59  ;;  %v6240_v3 = vpop.f32.mrf.mxu0  ;;  %v6417_v59 = vpop.f32.mrf.mxu1 }
 0x144   : > { %v9385_v51 = vld [vmem:[#allocation3 + $0x43c] ss:$36 sps:$4 sm:$0xff]   ;;  %v2792_v27 = vrot.slane %v2655_v1, 5  ;;  %v8463_v2 = vcombine.low %v4759_v53, %v4764_v21  ;;  %v1923_v20 = vld [vmem:[#allocation2 + $0x88] sm:$0xf]  ;;  %v13747_v3 = vmax.f32 %v11133_v40, 0.0 }
 0x145   : > { %6345 = vmatprep.mubr.bf16.mxu0 %v9385_v51  ;;  %v2269_v12 = vshll.u32 %v1923_v20, 16  ;;  %v2273_v9 = vshrl.u32 %v1923_v20, 16  ;;  %v934_v38 = vmul.u32 18, %v933_v7  ;;  %v2399_v4 = vld [vmem:[#allocation2 + $0x88] sm:$0xf]  ;;  %v945_v6 = vmul.u32 18, %v944_v55 }
 0x146   : > { %v2793_v44 = vsel %vm9873_vm14, %v2791_v56, %v2792_v27  ;;  %6346 = vmatmul.mubr.bf16.gmra.mxu0 %v8463_v2  ;;  %v2543_v53 = vrot.slane %v2399_v4, 5  ;;  %v2656_v52 = vld [vmem:[#allocation2 + $0x8c] sm:$0xf]  ;;  %v2794_v21 = vrot.slane %v2792_v27, 4  ;;  %v1851_v5 = vld [vmem:[#allocation2 + $0x88] sm:$0xf]  ;;  %v11165_v7 = vadd.f32 %v6415_v19, %v6238_v34 }
 0x147   : > { %2873 = vst [vmem:[#allocation3 + $0x468] sm:$0xf] %v2793_v44  ;;  %v2271_v1 = vrot.slane %v2269_v12, 5  ;;  %v935_v23 = vsub.s32 %v8274_v36, %v934_v38  ;;  %v2795_v51 = vrot.slane %v2656_v52, 5  ;;  %v1852_v20 = vld [vmem:[#allocation2 + $0x8c] sm:$0xf]  ;;  %v946_v61 = vsub.s32 %v11136_v15, %v945_v6  ;;  %v6243_v38 = vpop.f32.mrf.mxu0  ;;  %v6420_v52 = vpop.f32.mrf.mxu1 }
 0x148   : > { %v2544_v56 = vsel %vm9873_vm14, %v2542_v57, %v2543_v53  ;;  %1887 = vst [vmem:[#allocation3 + $0x4c8] sm:$0xf] %v1851_v5  ;;  %1888 = vst [vmem:[#allocation3 + $0x4ec] sm:$0xf] %v1852_v20  ;;  %v1924_v2 = vld [vmem:[#allocation2 + $0x8c] sm:$0xf] }
 0x149   : > { %v2275_v55 = vrot.slane %v2273_v9, 4  ;;  %v2545_v27 = vrot.slane %v2543_v53, 4  ;;  %v11170_v4 = vld [vmem:[#allocation2 + $0x8] sm:$0xe]  ;;  %v2272_v36 = vsel %vm9835_vm8, %v2267_v54, %v2271_v1  ;;  %vm1018_vm3 = vcmp.ne.s32.totalorder %v935_v23, 0 }
 0x14a   : > { %vm1059_vm4 = vcmp.lt.s32.totalorder %v935_v23, 0  ;;  %v1141_v12 = vadd.s32 18, %v935_v23  ;;  %2620 = vst [vmem:[#allocation3 + $0x4ac] sm:$0xf] %v2544_v56  ;;  %v11174_v34 = vld [vmem:[#allocation2 + $0x8c] sm:$0xf]  ;;  %v2796_v5 = vsel %vm9873_vm14, %v2794_v21, %v2795_v51 }
 0x14b   : > { %2362 = vst [vmem:[#allocation3 + $0x4a8] sm:$0xf] %v2272_v36  ;;  %vm1019_vm5 = vcmp.ne.s32.totalorder %v946_v61, 0  ;;  %vm1060_vm6 = vcmp.lt.s32.totalorder %v946_v61, 0  ;;  %vm1100_vm7 = vmand %vm1059_vm4, %vm1018_vm3  ;;  %v1142_v15 = vadd.s32 18, %v946_v61  ;;  %v2276_v19 = vor.u32 %v2275_v55, %v2271_v1 }
 0x14c   : > { %vm1101_vm9 = vmand %vm1060_vm6, %vm1019_vm5  ;;  %v1182_v57 = vsel %vm1100_vm7, %v1141_v12, %v935_v23  ;;  %2874 = vst [vmem:[#allocation3 + $0x48c] sm:$0xf] %v2796_v5  ;;  %v2279_v9 = vshll.u32 %v1924_v2, 16  ;;  %v2919_v54 = vshrl.u32 %v11170_v4, 16  ;;  %v2283_v6 = vshrl.u32 %v1924_v2, 16  ;;  %v6245_v23 = vpop.f32.mrf.mxu0 }
 0x14d   : > { %v1183_v44 = vsel %vm1101_vm9, %v1142_v15, %v946_v61  ;;  %vm1223_vm10 = vcmp.lt.s32.totalorder %v1182_v57, 16  ;;  %v2546_v53 = vrot.slane %v11174_v34, 5  ;;  %v2277_v20 = vrot.slane %v2276_v19, 4  ;;  %v2879_v56 = vld [vmem:[#allocation2 + $0xc] sm:$0xf]  ;;  %v6422_v34 = vpop.f32.mrf.mxu1  ;;  %v4769_v15 = vld [vmem:[#allocation3 + $0x480] sm:$0xff] }
 0x14e   : > { %vm1224_vm11 = vcmp.lt.s32.totalorder %v1183_v44, 16  ;;  %v1606_v59 = vsel %vm1223_vm10, %v13747_v3, 0.0  ;;  %v2281_v21 = vrot.slane %v2279_v9, 5  ;;  %v9387_v36 = vld [vmem:[#allocation3 + $0x444] ss:$36 sps:$4 sm:$0xff]   ;;  %v13748_v55 = vmax.f32 %v11138_v41, 0.0  ;;  %v6246_v44 = vpop.f32.mrf.mxu0 }
 0x14f   : > { %v9389_v1 = vld [vmem:[#allocation3 + $0x440] ss:$36 sps:$4 sm:$0xff]   ;;  %v2547_v61 = vsel %vm9873_vm14, %v2545_v27, %v2546_v53  ;;  %v11186_v2 = vadd.f32 %v6420_v52, %v6243_v38  ;;  %v11188_v57 = vrot.slane %v2795_v51, 4  ;;  %v2285_v19 = vrot.slane %v2283_v6, 4  ;;  %v2880_v9 = vld [vmem:[#allocation2 + $0x10] sm:$0xf]  ;;  %6522 = vmatprep.mubr.bf16.mxu1 %v9387_v36  ;;  %v6423_v38 = vpop.f32.mrf.mxu1 }
 0x150   : > { %v1607_v12 = vsel %vm1224_vm11, %v13748_v55, 0.0  ;;  %v2282_v40 = vsel %vm9835_vm8, %v2277_v20, %v2281_v21  ;;  %2621 = vst [vmem:[#allocation3 + $0x4d0] sm:$0xf] %v2547_v61  ;;  %v11193_v41 = vmul.u32.u64.low 3817748708, %v11160_v63  ;;  %v11194_v3 = vmul.u32.u64.high 3817748708, %v11160_v63, %v11193_v41  ;;  %6523 = vmatmul.mubr.bf16.gmra.mxu1 %v9389_v1  ;;  %v6248_v55 = vpop.f32.mrf.mxu0 }
 0x151   : > { %v8834_v5 = vpack.c.bf16 %v1607_v12, %v1606_v59  ;;  %2363 = vst [vmem:[#allocation3 + $0x4cc] sm:$0xf] %v2282_v40  ;;  %vm2915_vm12 = vsmask.f32 2304  ;;  %vm2916_vm13 = vsmask.f32 6416  ;;  %v2286_v59 = vor.u32 %v2285_v19, %v2281_v21  ;;  %v6425_v41 = vpop.f32.mrf.mxu1 }
 0x152   : > { %v3358_v27 = vld [vmem:[#allocation2 + $0x8] sm:$0xc]  ;;  %v2921_v20 = vrot.slane %v2919_v54, 5  ;;  %v2922_v6 = vshll.u32 %v11170_v4, 16  ;;  %v2928_v23 = vshrl.u32 %v2879_v56, 16  ;;  %v2931_v12 = vshll.u32 %v2879_v56, 16  ;;  %vm11205_vm1 = vmor %vm2915_vm12, %vm2916_vm13  ;;  %v6251_v55 = vpop.f32.mrf.mxu0 }
 0x153   : > { %v4774_v51 = vld [vmem:[#allocation3 + $0x4a4] sm:$0xff]  ;;  %8965 = vst [vmem:[#allocation2 + $0x90] sm:$0xff] %v8834_v5   ;;  %v2938_v61 = vshrl.u32 %v2880_v9, 16  ;;  %v2941_v34 = vshll.u32 %v2880_v9, 16  ;;  %vm487_vm15 = vcmp.lt.s32.totalorder %v11160_v63, 288  ;;  %v2548_v43 = vrot.slane %v2546_v53, 4 }
 0x154   : > { %v9392_v52 = vld [vmem:[#allocation3 + $0x484] ss:$36 sps:$4 sm:$0xff]   ;;  %v8472_v36 = vcombine.low %v4769_v15, %v4774_v51  ;;  %v2924_v1 = vrot.slane %v2922_v6, 6  ;;  %v2930_v48 = vrot.slane %v2928_v23, 5  ;;  %vm3432_vm0 = vcmask 1041408  }
 0x155   : > { %v3359_v40 = vld [vmem:[#allocation2 + $0xc] sm:$0xf]  ;;  %6353 = vmatprep.mubr.bf16.mxu0 %v9392_v52  ;;  %v955_v4 = vshrl.u32 %v11194_v3, 4  ;;  %v2933_v54 = vrot.slane %v2931_v12, 6  ;;  %v2940_v21 = vrot.slane %v2938_v61, 5  ;;  %v2943_v15 = vrot.slane %v2941_v34, 6 }
 0x156   : > { %6354 = vmatmul.mubr.bf16.gmra.mxu0 %v8472_v36  ;;  %v11201_v56 = vld [vmem:[#allocation2 + $0x10] sm:$0xc]  ;;  %v2925_v53 = vor.u32 %v2924_v1, %v2921_v20  ;;  %vm3433_vm2 = vcmask 1045508   ;;  %v8325_v19 = vrot.slane %v3358_v27, 10  ;;  %v3437_v9 = vrot.slane %v3359_v40, 6  ;;  %v6428_v36 = vpop.f32.mrf.mxu1 }
 0x157   : > { %v2287_v51 = vrot.slane %v2286_v59, 4  ;;  %v956_v52 = vmul.u32 18, %v955_v4  ;;  %v2934_v6 = vor.u32 %v2933_v54, %v2930_v48  ;;  %vm11210_vm3 = vmor %vm3432_vm0, %vm3433_vm2  ;;  %v8326_v27 = vrot.slane %v11201_v56, 10  ;;  %v6253_v54 = vpop.f32.mrf.mxu0  ;;  %v3647_v47 = vld [vmem:[#allocation2 + $0x8c] sm:$0xf] }
 0x158   : > { %v2926_v12 = vrot.slane %v2925_v53, 4  ;;  %v3438_v61 = vsel %vm11210_vm3, %v8325_v19, %v3437_v9  ;;  %v3439_v20 = vrot.slane %v3437_v9, 4  ;;  %v11219_v41 = vor.u32 %v2943_v15, %v2940_v21  ;;  %v6430_v53 = vpop.f32.mrf.mxu1  ;;  %v3617_v21 = vld [vmem:[#allocation2 + $0x14] sm:$0xf]  ;;  %v4372_v5 = vld [vmem:[#allocation2 + $0x64] sm:$0xf] }
 0x159   : > { %v957_v48 = vsub.s32 %v11160_v63, %v956_v52  ;;  %3580 = vst [vmem:[#allocation3 + $0x14] sm:$0xf] %v3438_v61  ;;  %v11221_v1 = vadd.f32 %v6423_v38, %v6246_v44  ;;  %v11223_v4 = vadd.f32 %v6428_v36, %v6251_v55  ;;  %v6254_v15 = vpop.f32.mrf.mxu0  ;;  %v3871_v53 = vld [vmem:[#allocation2 + $0x10] sm:$0xc]  ;;  %vm3909_vm10 = vsmask.f32 5392 }
 0x15a   : > { %v2657_v34 = vld [vmem:[#allocation2 + $0x90] sm:$0xf]  ;;  %v2658_v9 = vld [vmem:[#allocation2 + $0x94] sm:$0xf]  ;;  %v2935_v56 = vsel %vm11205_vm1, %v2926_v12, %v2934_v6  ;;  %v6431_v44 = vpop.f32.mrf.mxu1  ;;  %v9566_v63 = vmov 0.0   ;;  %vm4426_vm12 = vcmask 1044484  }
 0x15b   : > { %v1925_v59 = vld [vmem:[#allocation2 + $0x90] sm:$0x1]  ;;  %v2798_v23 = vrot.slane %v2657_v34, 5  ;;  %vm1020_vm4 = vcmp.ne.s32.totalorder %v957_v48, 0  ;;  %vm1061_vm5 = vcmp.lt.s32.totalorder %v957_v48, 0  ;;  %v1143_v52 = vadd.s32 18, %v957_v48 }
 0x15c   : > { %v2401_v40 = vld [vmem:[#allocation2 + $0x90] sm:$0x1]  ;;  %v2289_v32 = vshll.u32 %v1925_v59, 16  ;;  %v2801_v29 = vrot.slane %v2658_v9, 5  ;;  %3322 = vst [vmem:[#allocation3 + $0x10] sm:$0xf] %v2935_v56  ;;  %vm1102_vm6 = vmand %vm1061_vm5, %vm1020_vm4  ;;  %v6256_v9 = vpop.f32.mrf.mxu0 }
 0x15d   : > { %v2549_v19 = vrot.slane %v2401_v40, 5  ;;  %v2799_v38 = vsel %vm9873_vm14, %v11188_v57, %v2798_v23  ;;  %v2800_v61 = vrot.slane %v2798_v23, 4  ;;  %v11232_v34 = vld [vmem:[#allocation2 + $0x18] sm:$0xf]  ;;  %v1184_v12 = vsel %vm1102_vm6, %v1143_v52, %v957_v48  ;;  %v6433_v57 = vpop.f32.mrf.mxu1  ;;  %v3872_v48 = vld [vmem:[#allocation2 + $0x14] sm:$0xf] }
 0x15e   : > { %v2291_v55 = vrot.slane %v2289_v32, 5  ;;  %2875 = vst [vmem:[#allocation3 + $0x4b0] sm:$0xf] %v2799_v38  ;;  %v2936_v59 = vrot.slane %v2934_v6, 4  ;;  %v13753_v40 = vrot.slane %v11198_v13, 6  ;;  %vm1225_vm7 = vcmp.lt.s32.totalorder %v1184_v12, 16 }
 0x15f   : > { %v2550_v36 = vsel %vm9873_vm14, %v2548_v43, %v2549_v19  ;;  %v2802_v43 = vsel %vm9873_vm14, %v2800_v61, %v2801_v29  ;;  %v3692_v23 = vrot.slane %v3617_v21, 6  ;;  %v3873_v19 = vld [vmem:[#allocation2 + $0x18] sm:$0xf]  ;;  %vm1266_vm9 = vmand %vm487_vm15, %vm1225_vm7  ;;  %v13563_v37 = vrot.slane %v11232_v34, 6  ;;  %v2881_v12 = vld [vmem:[#allocation2 + $0x14] sm:$0xf] }
 0x160   : > { %2622 = vst [vmem:[#allocation3 + $0x4f4] sm:$0xf] %v2550_v36  ;;  %v3441_v54 = vsel %vm11210_vm3, %v3439_v20, %v13753_v40  ;;  %v2292_v32 = vsel %vm9835_vm8, %v2287_v51, %v2291_v55  ;;  %2876 = vst [vmem:[#allocation3 + $0x4d4] sm:$0xf] %v2802_v43  ;;  %v2945_v6 = vsel %vm11205_vm1, %v2936_v59, %v11219_v41  ;;  %vm3908_vm8 = vsmask.f32 1280  ;;  %v11252_v59 = vpop.f32.mrf.mxu0 }
 0x161   : > { %3581 = vst [vmem:[#allocation3 + $0x38] sm:$0xf] %v3441_v54  ;;  %2364 = vst [vmem:[#allocation3 + $0x4f0] sm:$0xf] %v2292_v32  ;;  %v13754_v51 = vmax.f32 %v11140_v62, 0.0  ;;  %v3693_v56 = vsel %vm11210_vm3, %v8326_v27, %v3692_v23  ;;  %v3694_v52 = vrot.slane %v3692_v23, 4 }
 0x162   : > { %3323 = vst [vmem:[#allocation3 + $0x34] sm:$0xf] %v2945_v6  ;;  %v3912_v21 = vshrl.u32 %v3871_v53, 16  ;;  %3835 = vst [vmem:[#allocation3 + $0x18] sm:$0xf] %v3693_v56  ;;  %v3915_v55 = vshll.u32 %v3871_v53, 16  ;;  %v11260_v56 = vadd.f32 %v6431_v44, %v6254_v15 }
 0x163   : > { %v1608_v20 = vsel %vm1266_vm9, %v13754_v51, 0.0  ;;  %v3921_v36 = vshrl.u32 %v3872_v48, 16  ;;  %v3924_v61 = vshll.u32 %v3872_v48, 16  ;;  %v3696_v62 = vsel %vm11210_vm3, %v3694_v52, %v13563_v37  ;;  %v2882_v27 = vld [vmem:[#allocation2 + $0x18] sm:$0xf]  ;;  %v4779_v57 = vld [vmem:[#allocation3 + $0x4c8] sm:$0xff]  ;;  %v6261_v48 = vpop.f32.mrf.mxu0  ;;  %vm11264_vm11 = vmor %vm3908_vm8, %vm3909_vm10 }
 0x164   : > { %v8838_v38 = vpack.c.bf16 %v9566_v63, %v1608_v20  ;;  %v3914_v40 = vrot.slane %v3912_v21, 6  ;;  %v3931_v54 = vshrl.u32 %v3873_v19, 16  ;;  %v3934_v9 = vshll.u32 %v3873_v19, 16  ;;  %3836 = vst [vmem:[#allocation3 + $0x3c] sm:$0xf] %v3696_v62 }
 0x165   : > { %v11258_v32 = vrot.slane %v2801_v29, 4  ;;  %v3917_v53 = vrot.slane %v3915_v55, 7  ;;  %v3923_v43 = vrot.slane %v3921_v36, 6  ;;  %v3926_v23 = vrot.slane %v3924_v61, 7  ;;  %v9394_v6 = vld [vmem:[#allocation3 + $0x48c] ss:$36 sps:$4 sm:$0xff]   ;;  %v11270_v36 = vpop.f32.mrf.mxu0 }
 0x166   : > { %8966 = vst [vmem:[#allocation2 + $0x98] sm:$0xff] %v8838_v38   ;;  %v9397_v51 = vld [vmem:[#allocation3 + $0x488] ss:$36 sps:$4 sm:$0xff]   ;;  %v3933_v20 = vrot.slane %v3931_v54, 6  ;;  %v3936_v29 = vrot.slane %v3934_v9, 7  ;;  %v2948_v63 = vshrl.u32 %v2881_v12, 16  ;;  %6530 = vmatprep.mubr.bf16.mxu1 %v9394_v6 }
 0x167   : > { %v3918_v19 = vor.u32 %v3917_v53, %v3914_v40  ;;  %v3927_v21 = vor.u32 %v3926_v23, %v3923_v43  ;;  %v3361_v38 = vld [vmem:[#allocation2 + $0x14] sm:$0xf]  ;;  %v11268_v55 = vld [vmem:[#allocation2 + $0x18] sm:$0xf]  ;;  %v2951_v15 = vshll.u32 %v2881_v12, 16  ;;  %v2958_v44 = vshrl.u32 %v2882_v27, 16  ;;  %6531 = vmatmul.mubr.bf16.gmra.mxu1 %v9397_v51  ;;  %v6264_v9 = vpop.f32.mrf.mxu0 }
 0x168   : > { %v4784_v61 = vld [vmem:[#allocation3 + $0x4ec] sm:$0xff]  ;;  %v9410_v48 = vld [vmem:[#allocation3 + $0x14] ss:$36 sps:$4 sm:$0xff]   ;;  %v11272_v46 = vor.u32 %v3936_v29, %v3933_v20  ;;  %v2946_v40 = vrot.slane %v11219_v41, 4  ;;  %v2950_v43 = vrot.slane %v2948_v63, 5  ;;  %v2961_v6 = vshll.u32 %v2882_v27, 16 }
 0x169   : > { %v9400_v62 = vld [vmem:[#allocation3 + $0x4cc] ss:$36 sps:$4 sm:$0xff]   ;;  %v8481_v54 = vcombine.low %v4779_v57, %v4784_v61  ;;  %v3919_v37 = vrot.slane %v3918_v19, 4  ;;  %v3929_v53 = vrot.slane %v3927_v21, 4  ;;  %v2953_v23 = vrot.slane %v2951_v15, 6 }
 0x16a   : > { %6361 = vmatprep.mubr.bf16.mxu0 %v9400_v62  ;;  %v2960_v42 = vrot.slane %v2958_v44, 5  ;;  %v13757_v57 = vrot.slane %v11198_v13, 6  ;;  %v3443_v19 = vrot.slane %v3361_v38, 6  ;;  %v11279_v20 = vld [vmem:[#allocation2 + $0x20] sm:$0xf]  ;;  %v3446_v61 = vrot.slane %v11268_v55, 6  ;;  %v6436_v44 = vpop.f32.mrf.mxu1 }
 0x16b   : > { %6362 = vmatmul.mubr.bf16.gmra.mxu0 %v8481_v54  ;;  %v3928_v12 = vsel %vm11264_vm11, %v3919_v37, %v3927_v21  ;;  %v3938_v41 = vsel %vm11264_vm11, %v3929_v53, %v11272_v46  ;;  %v2954_v63 = vor.u32 %v2953_v23, %v2950_v43  ;;  %v13758_v62 = vrot.slane %v11232_v34, 6  ;;  %v3874_v15 = vld [vmem:[#allocation2 + $0x1c] sm:$0xf]  ;;  %v3875_v43 = vld [vmem:[#allocation2 + $0x20] sm:$0xf] }
 0x16c   : > { %v3442_v51 = vrot.slane %v13757_v57, 4  ;;  %6579 = vmatprep.mubr.bf16.mxu0 %v9410_v48  ;;  %4315 = vst [vmem:[#allocation3 + $0x1c] sm:$0xf] %v3928_v12  ;;  %4316 = vst [vmem:[#allocation3 + $0x40] sm:$0xf] %v3938_v41  ;;  %v2963_v13 = vrot.slane %v2961_v6, 6 }
 0x16d   : > { %v2659_v29 = vld [vmem:[#allocation2 + $0x98] sm:$0x1]  ;;  %v3697_v37 = vrot.slane %v13758_v62, 4  ;;  %v3445_v38 = vrot.slane %v3443_v19, 4  ;;  %v2955_v54 = vsel %vm11205_vm1, %v2946_v40, %v2954_v63  ;;  %v2956_v48 = vrot.slane %v2954_v63, 4 }
 0x16e   : > { %v2804_v27 = vrot.slane %v2659_v29, 5  ;;  %v3444_v21 = vsel %vm11210_vm3, %v3442_v51, %v3443_v19  ;;  %v3698_v9 = vrot.slane %v3619_v33, 6  ;;  %v13570_v53 = vrot.slane %v11279_v20, 6  ;;  %v9408_v23 = vld [vmem:[#allocation3 + $0x10] ss:$36 sps:$4 sm:$0xff]   ;;  %v6438_v33 = vpop.f32.mrf.mxu1  ;;  %v11302_v51 = vpop.f32.mrf.mxu0 }
 0x16f   : > { %3582 = vst [vmem:[#allocation3 + $0x5c] sm:$0xf] %v3444_v21  ;;  %v11295_v12 = vor.u32 %v2963_v13, %v2960_v42  ;;  %3324 = vst [vmem:[#allocation3 + $0x58] sm:$0xf] %v2955_v54  ;;  %v3447_v6 = vsel %vm11210_vm3, %v3445_v38, %v3446_v61  ;;  %v3939_v40 = vrot.slane %v11272_v46, 4  ;;  %v3941_v42 = vshrl.u32 %v3874_v15, 16 }
 0x170   : > { %v2805_v34 = vsel %vm9873_vm14, %v11258_v32, %v2804_v27  ;;  %v2883_v57 = vld [vmem:[#allocation2 + $0x1c] sm:$0xf]  ;;  %3583 = vst [vmem:[#allocation3 + $0x80] sm:$0xf] %v3447_v6  ;;  %v3699_v22 = vsel %vm11210_vm3, %v3697_v37, %v3698_v9  ;;  %v3700_v32 = vrot.slane %v3698_v9, 4  ;;  %v3944_v19 = vshll.u32 %v3874_v15, 16  ;;  %v6439_v13 = vpop.f32.mrf.mxu1  ;;  %v6269_v37 = vpop.f32.mrf.mxu0 }
 0x171   : > { %2877 = vst [vmem:[#allocation3 + $0x4f8] sm:$0xf] %v2805_v34  ;;  %v2884_v29 = vld [vmem:[#allocation2 + $0x20] sm:$0xf]  ;;  %v2965_v41 = vsel %vm11205_vm1, %v2956_v48, %v11295_v12  ;;  %3837 = vst [vmem:[#allocation3 + $0x60] sm:$0xf] %v3699_v22 }
 0x172   : > { %v3951_v63 = vshrl.u32 %v3875_v43, 16  ;;  %v3954_v46 = vshll.u32 %v3875_v43, 16  ;;  %v2966_v62 = vrot.slane %v11295_v12, 4  ;;  %v11313_v27 = vld [vmem:[%s13532_s3 + $0x230] sm:$0xff]   ;;  %3325 = vst [vmem:[#allocation3 + $0x7c] sm:$0xf] %v2965_v41  ;;  %v3702_v21 = vsel %vm11210_vm3, %v3700_v32, %v13570_v53  ;;  %v6441_v6 = vpop.f32.mrf.mxu1  ;;  %v11319_v33 = vpop.f32.mrf.mxu0 }
 0x173   : > { %v3943_v38 = vrot.slane %v3941_v42, 6  ;;  %v3946_v15 = vrot.slane %v3944_v19, 7  ;;  %v2968_v54 = vshrl.u32 %v2883_v57, 16  ;;  %v3363_v48 = vld [vmem:[#allocation2 + $0x1c] sm:$0xf]  ;;  %6580 = vmatmul.mubr.bf16.vlgmr.msra.gmra.mxu0 %v9408_v23  ;;  %v2971_v34 = vshll.u32 %v2883_v57, 16 }
 0x174   : > { %3838 = vst [vmem:[#allocation3 + $0x84] sm:$0xf] %v3702_v21  ;;  %v3953_v9 = vrot.slane %v3951_v63, 6  ;;  %v3956_v43 = vrot.slane %v3954_v46, 7  ;;  %v2978_v12 = vshrl.u32 %v2884_v29, 16  ;;  %v11324_v22 = vld [vmem:[%s13532_s3 + $0x238] sm:$0xff]   ;;  %v11330_v23 = vadd.f32 %v6436_v44, %v11252_v59  ;;  %v6272_v59 = vpop.f32.mrf.mxu0 }
 0x175   : > { %9011 = vmatpush3.bf16.msra.mxu0 %v11324_v22  ;;  %v3947_v32 = vor.u32 %v3946_v15, %v3943_v38  ;;  %v2970_v42 = vrot.slane %v2968_v54, 5  ;;  %v11327_v19 = vld [vmem:[#allocation2 + $0x20] sm:$0xf]  ;;  %v11333_v57 = vadd.f32 %v6439_v13, %v11270_v36  ;;  %v2973_v63 = vrot.slane %v2971_v34, 6  ;;  %v3621_v21 = vld [vmem:[#allocation2 + $0x24] sm:$0xf] }
 0x176   : > { %v11335_v41 = vor.u32 %v3956_v43, %v3953_v9  ;;  %v2980_v46 = vrot.slane %v2978_v12, 5  ;;  %v2981_v37 = vshll.u32 %v2884_v29, 16  ;;  %v11337_v6 = vld [vmem:[#allocation2 + $0x28] sm:$0xf]  ;;  %9012 = vmatprep.subr.bf16.mxu0 %v11313_v27  ;;  %v9413_v44 = vld [vmem:[#allocation3 + $0x1c] ss:$36 sps:$4 sm:$0xff]   ;;  %v11392_v31 = vpop.f32.mrf.mxu0 }
 0x177   : > { %v11343_v38 = vld [vmem:[%s13532_s3 + $0x228] sm:$0xff]   ;;  %v4621_v15 = vld [vmem:[#allocation3 + $0x58] sm:$0xff]  ;;  %v3948_v36 = vsel %vm11264_vm11, %v3939_v40, %v3947_v32  ;;  %v3949_v13 = vrot.slane %v3947_v32, 4  ;;  %v3448_v29 = vrot.slane %v3446_v61, 4  ;;  %v3449_v54 = vrot.slane %v3363_v48, 6 }
 0x178   : > { %v9402_v9 = vld [vmem:[#allocation3 + $0x4d4] ss:$36 sps:$4 sm:$0xff]   ;;  %4317 = vst [vmem:[#allocation3 + $0x64] sm:$0xf] %v3948_v36  ;;  %v2974_v34 = vor.u32 %v2973_v63, %v2970_v42  ;;  %v2983_v12 = vrot.slane %v2981_v37, 6  ;;  %v13575_v40 = vrot.slane %v11327_v19, 6 }
 0x179   : > { %v9404_v43 = vld [vmem:[#allocation3 + $0x4d0] ss:$36 sps:$4 sm:$0xff]   ;;  %v3958_v53 = vsel %vm11264_vm11, %v3949_v13, %v11335_v41  ;;  %v3450_v59 = vsel %vm11210_vm3, %v3448_v29, %v3449_v54  ;;  %v3451_v14 = vrot.slane %v3449_v54, 4  ;;  %v3876_v32 = vld [vmem:[#allocation2 + $0x24] sm:$0xf]  ;;  %9013 = vmatpush3.bf16.msra.mxu0 %v11313_v27  ;;  %6538 = vmatprep.mubr.bf16.mxu1 %v9402_v9  ;;  %v13759_v37 = vrot.slane %v11279_v20, 6 }
 0x17a   : > { %v4626_v55 = vld [vmem:[#allocation3 + $0x7c] sm:$0xff]  ;;  %4318 = vst [vmem:[#allocation3 + $0x88] sm:$0xf] %v3958_v53  ;;  %v2975_v48 = vsel %vm11205_vm1, %v2966_v62, %v2974_v34  ;;  %v2976_v42 = vrot.slane %v2974_v34, 4  ;;  %v11358_v63 = vor.u32 %v2983_v12, %v2980_v46  ;;  %3584 = vst [vmem:[#allocation3 + $0xa4] sm:$0xf] %v3450_v59  ;;  %9014 = vmatprep.subr.bf16.mxu0 %v11343_v38  ;;  %6539 = vmatmul.mubr.bf16.gmra.mxu1 %v9404_v43 }
 0x17b   : > { %v9415_v61 = vld [vmem:[#allocation3 + $0x5c] ss:$36 sps:$4 sm:$0xff]   ;;  %v3703_v36 = vrot.slane %v13759_v37, 4  ;;  %v8341_v13 = vcombine.low %v4621_v15, %v4626_v55  ;;  %3326 = vst [vmem:[#allocation3 + $0xa0] sm:$0xf] %v2975_v48  ;;  %v3453_v53 = vsel %vm11210_vm3, %v3451_v14, %v13575_v40  ;;  %v3704_v29 = vrot.slane %v3621_v21, 6  ;;  %6756 = vmatprep.mubr.bf16.mxu1 %v9413_v44  ;;  %v6444_v37 = vpop.f32.mrf.mxu1 }
 0x17c   : > { %v3707_v62 = vrot.slane %v11337_v6, 6  ;;  %v2885_v54 = vld [vmem:[#allocation2 + $0x24] sm:$0xf]  ;;  %6587 = vmatprep.mubr.bf16.mxu0 %v9415_v61  ;;  %v2985_v20 = vsel %vm11205_vm1, %v2976_v42, %v11358_v63  ;;  %3585 = vst [vmem:[#allocation3 + $0xc8] sm:$0xf] %v3453_v53  ;;  %v3961_v15 = vshrl.u32 %v3876_v32, 16 }
 0x17d   : > { %v11371_v46 = vld [vmem:[%s13532_s3 + $0x220] sm:$0xff]   ;;  %v3964_v9 = vshll.u32 %v3876_v32, 16  ;;  %6588 = vmatmul.mubr.bf16.gmra.mxu0 %v8341_v13  ;;  %3327 = vst [vmem:[#allocation3 + $0xc4] sm:$0xf] %v2985_v20  ;;  %v3705_v14 = vsel %vm11210_vm3, %v3703_v36, %v3704_v29  ;;  %v3706_v21 = vrot.slane %v3704_v29, 4  ;;  %v3971_v43 = vshrl.u32 %v3877_v39, 16  ;;  %v6446_v40 = vpop.f32.mrf.mxu1 }
 0x17e   : > { %v3974_v34 = vshll.u32 %v3877_v39, 16  ;;  %v2886_v12 = vld [vmem:[#allocation2 + $0x28] sm:$0xf]  ;;  %3839 = vst [vmem:[#allocation3 + $0xa8] sm:$0xf] %v3705_v14  ;;  %v3959_v44 = vrot.slane %v11335_v41, 4  ;;  %9015 = vmatpush3.bf16.msra.mxu0 %v11343_v38 }
 0x17f   : > { %v3963_v59 = vrot.slane %v3961_v15, 6  ;;  %v3966_v55 = vrot.slane %v3964_v9, 7  ;;  %v2988_v61 = vshrl.u32 %v2885_v54, 16  ;;  %v3365_v48 = vld [vmem:[#allocation2 + $0x24] sm:$0xf]  ;;  %v11385_v32 = vld [vmem:[%s13532_s3 + $0x218] sm:$0xff]   ;;  %v3708_v39 = vsel %vm11210_vm3, %v3706_v21, %v3707_v62  ;;  %9016 = vmatprep.subr.bf16.mxu0 %v11371_v46  ;;  %v11405_v40 = vpop.f32.mrf.mxu1 }
 0x180   : > { %v11379_v42 = vld [vmem:[#allocation2 + $0x28] sm:$0xf]  ;;  %v9411_v36 = vld [vmem:[#allocation3 + $0x18] ss:$36 sps:$4 sm:$0xff]   ;;  %v3973_v41 = vrot.slane %v3971_v43, 6  ;;  %v3976_v13 = vrot.slane %v3974_v34, 7  ;;  %v11398_v43 = vadd.f32 %v6444_v37, %v11302_v51 }
 0x181   : > { %v2991_v53 = vshll.u32 %v2885_v54, 16  ;;  %3840 = vst [vmem:[#allocation3 + $0xcc] sm:$0xf] %v3708_v39  ;;  %v3967_v29 = vor.u32 %v3966_v55, %v3963_v59  ;;  %v2990_v20 = vrot.slane %v2988_v61, 5  ;;  %v2998_v15 = vshrl.u32 %v2886_v12, 16  ;;  %v6277_v39 = vpop.f32.mrf.mxu0 }
 0x182   : > { %v3001_v9 = vshll.u32 %v2886_v12, 16  ;;  %v3623_v14 = vld [vmem:[#allocation2 + $0x2c] sm:$0xf]  ;;  %v11394_v35 = vor.u32 %v3976_v13, %v3973_v41  ;;  %v2986_v25 = vrot.slane %v11358_v63, 4  ;;  %v4631_v54 = vld [vmem:[#allocation3 + $0xa0] sm:$0xff]  ;;  %9017 = vmatpush3.bf16.msra.mxu0 %v11371_v46  ;;  %6757 = vmatmul.mubr.bf16.vlgmr.msra.gmra.mxu1 %v9411_v36  ;;  %v13760_v51 = vrot.slane %v11327_v19, 6 }
 0x183   : > { %v9417_v49 = vld [vmem:[#allocation3 + $0x64] ss:$36 sps:$4 sm:$0xff]   ;;  %v2993_v21 = vrot.slane %v2991_v53, 6  ;;  %v3968_v34 = vsel %vm11264_vm11, %v3959_v44, %v3967_v29  ;;  %v3969_v59 = vrot.slane %v3967_v29, 4  ;;  %v3000_v55 = vrot.slane %v2998_v15, 5  ;;  %9018 = vmatprep.subr.bf16.mxu0 %v11385_v32  ;;  %v11414_v53 = vld [vmem:[%s13532_s3 + $0x210] sm:$0xff]   ;;  %9070 = vmatpush3.bf16.msra.mxu1 %v11324_v22 }
 0x184   : > { %v3003_v12 = vrot.slane %v3001_v9, 6  ;;  %v11402_v61 = vld [vmem:[#allocation2 + $0x30] sm:$0xf]  ;;  %4319 = vst [vmem:[#allocation3 + $0xac] sm:$0xf] %v3968_v34  ;;  %v3454_v37 = vrot.slane %v13760_v51, 4  ;;  %6764 = vmatprep.mubr.bf16.mxu1 %v9417_v49  ;;  %v6449_v9 = vpop.f32.mrf.mxu1  ;;  %9063 = vmatprep.subr.bf16.mxu1 %v11313_v27 }
 0x185   : > { %v2994_v63 = vor.u32 %v2993_v21, %v2990_v20  ;;  %v3455_v41 = vrot.slane %v3365_v48, 6  ;;  %v3458_v13 = vrot.slane %v11379_v42, 6  ;;  %v3878_v44 = vld [vmem:[#allocation2 + $0x2c] sm:$0xf]  ;;  %v3978_v36 = vsel %vm11264_vm11, %v3969_v59, %v11394_v35  ;;  %v11424_v21 = vpop.f32.mrf.mxu0  ;;  %v11900_v8 = vld [vmem:[#allocation2 + $0x90] sm:$0xf] }
 0x186   : > { %v4636_v29 = vld [vmem:[#allocation3 + $0xc4] sm:$0xff]  ;;  %v11419_v19 = vor.u32 %v3003_v12, %v3000_v55  ;;  %v3709_v48 = vrot.slane %v3707_v62, 4  ;;  %v3710_v20 = vrot.slane %v3623_v14, 6  ;;  %4320 = vst [vmem:[#allocation3 + $0xd0] sm:$0xf] %v3978_v36  ;;  %v3713_v14 = vrot.slane %v11402_v61, 6  ;;  %9019 = vmatpush3.bf16.msra.mxu0 %v11385_v32 }
 0x187   : > { %v9420_v15 = vld [vmem:[#allocation3 + $0xa4] ss:$36 sps:$4 sm:$0xff]   ;;  %v8350_v34 = vcombine.low %v4631_v54, %v4636_v29  ;;  %v2995_v49 = vsel %vm11205_vm1, %v2986_v25, %v2994_v63  ;;  %v2996_v39 = vrot.slane %v2994_v63, 4  ;;  %v3456_v59 = vsel %vm11210_vm3, %v3454_v37, %v3455_v41  ;;  %v3879_v55 = vld [vmem:[#allocation2 + $0x30] sm:$0xf]  ;;  %v6280_v25 = vpop.f32.mrf.mxu0  ;;  %9020 = vmatprep.subr.bf16.mxu0 %v11414_v53  ;;  %9071 = vmatpush3.bf16.msra.mxu1 %v11313_v27 }
 0x188   : > { %v2887_v12 = vld [vmem:[#allocation2 + $0x2c] sm:$0xf]  ;;  %6595 = vmatprep.mubr.bf16.mxu0 %v9420_v15  ;;  %3328 = vst [vmem:[#allocation3 + $0xe8] sm:$0xf] %v2995_v49  ;;  %v3457_v6 = vrot.slane %v3455_v41, 4  ;;  %v3711_v22 = vsel %vm11210_vm3, %v3709_v48, %v3710_v20  ;;  %v3712_v62 = vrot.slane %v3710_v20, 4  ;;  %9064 = vmatprep.subr.bf16.mxu1 %v11343_v38 }
 0x189   : > { %3586 = vst [vmem:[#allocation3 + $0xec] sm:$0xf] %v3456_v59  ;;  %v2888_v54 = vld [vmem:[#allocation2 + $0x30] sm:$0xf]  ;;  %v9419_v63 = vld [vmem:[#allocation3 + $0x60] ss:$36 sps:$4 sm:$0xff]   ;;  %6596 = vmatmul.mubr.bf16.gmra.mxu0 %v8350_v34  ;;  %v3005_v51 = vsel %vm11205_vm1, %v2996_v39, %v11419_v19 }
 0x18a   : > { %3841 = vst [vmem:[#allocation3 + $0xf0] sm:$0xf] %v3711_v22  ;;  %v3979_v37 = vrot.slane %v11394_v35, 4  ;;  %v3981_v41 = vshrl.u32 %v3878_v44, 16  ;;  %v3984_v29 = vshll.u32 %v3878_v44, 16  ;;  %v11443_v61 = vld [vmem:[%s13532_s3 + $0x208] sm:$0xff]   ;;  %v3459_v15 = vsel %vm11210_vm3, %v3457_v6, %v3458_v13  ;;  %9021 = vmatpush3.bf16.msra.mxu0 %v11414_v53  ;;  %6765 = vmatmul.mubr.bf16.gmra.mxu1 %v9419_v63 }
 0x18b   : > { %3329 = vst [vmem:[#allocation3 + $0x10c] sm:$0xf] %v3005_v51  ;;  %v3714_v36 = vsel %vm11210_vm3, %v3712_v62, %v3713_v14  ;;  %v3991_v48 = vshrl.u32 %v3879_v55, 16  ;;  %v3994_v35 = vshll.u32 %v3879_v55, 16  ;;  %3587 = vst [vmem:[#allocation3 + $0x110] sm:$0xf] %v3459_v15  ;;  %9022 = vmatprep.subr.bf16.mxu0 %v11443_v61  ;;  %9072 = vmatpush3.bf16.msra.mxu1 %v11343_v38 }
 0x18c   : > { %3842 = vst [vmem:[#allocation3 + $0x114] sm:$0xf] %v3714_v36  ;;  %v3983_v44 = vrot.slane %v3981_v41, 6  ;;  %v3986_v20 = vrot.slane %v3984_v29, 7  ;;  %v3006_v9 = vrot.slane %v11419_v19, 4  ;;  %v3008_v34 = vshrl.u32 %v2887_v12, 16  ;;  %v6452_v41 = vpop.f32.mrf.mxu1  ;;  %9065 = vmatprep.subr.bf16.mxu1 %v11371_v46 }
 0x18d   : > { %v3367_v49 = vld [vmem:[#allocation2 + $0x2c] sm:$0xf]  ;;  %v11453_v39 = vld [vmem:[#allocation2 + $0x30] sm:$0xf]  ;;  %v3993_v59 = vrot.slane %v3991_v48, 6  ;;  %v3996_v6 = vrot.slane %v3994_v35, 7 }
 0x18e   : > { %v3011_v22 = vshll.u32 %v2887_v12, 16  ;;  %v3018_v62 = vshrl.u32 %v2888_v54, 16  ;;  %v3987_v27 = vor.u32 %v3986_v20, %v3983_v44  ;;  %v3010_v55 = vrot.slane %v3008_v34, 5  ;;  %v3625_v19 = vld [vmem:[#allocation2 + $0x34] sm:$0xf]  ;;  %v6454_v44 = vpop.f32.mrf.mxu1  ;;  %9023 = vmatpush3.bf16.msra.mxu0 %v11443_v61 }
 0x18f   : > { %v3021_v25 = vshll.u32 %v2888_v54, 16  ;;  %v3460_v51 = vrot.slane %v3458_v13, 4  ;;  %v9422_v29 = vld [vmem:[#allocation3 + $0xac] ss:$36 sps:$4 sm:$0xff]   ;;  %v11460_v15 = vor.u32 %v3996_v6, %v3993_v59  ;;  %v11462_v48 = vld [vmem:[#allocation2 + $0x38] sm:$0xf]  ;;  %v11467_v12 = vadd.f32 %v11405_v40, %v11319_v33  ;;  %9073 = vmatpush3.bf16.msra.mxu1 %v11371_v46 }
 0x190   : > { %v3013_v36 = vrot.slane %v3011_v22, 6  ;;  %v11470_v54 = vadd.f32 %v6452_v41, %v11392_v31  ;;  %v3988_v42 = vsel %vm11264_vm11, %v3979_v37, %v3987_v27  ;;  %v3989_v13 = vrot.slane %v3987_v27, 4  ;;  %6772 = vmatprep.mubr.bf16.mxu1 %v9422_v29  ;;  %v4641_v20 = vld [vmem:[#allocation3 + $0xe8] sm:$0xff]  ;;  %v3880_v59 = vld [vmem:[#allocation2 + $0x34] sm:$0xf]  ;;  %v11476_v31 = vpop.f32.mrf.mxu0  ;;  %9066 = vmatprep.subr.bf16.mxu1 %v11385_v32 }
 0x191   : > { %v3020_v63 = vrot.slane %v3018_v62, 5  ;;  %v3023_v35 = vrot.slane %v3021_v25, 6  ;;  %4321 = vst [vmem:[#allocation3 + $0xf4] sm:$0xf] %v3988_v42  ;;  %v3461_v34 = vrot.slane %v3367_v49, 6  ;;  %v3464_v33 = vrot.slane %v11453_v39, 6  ;;  %v6455_v49 = vpop.f32.mrf.mxu1 }
 0x192   : > { %v3014_v38 = vor.u32 %v3013_v36, %v3010_v55  ;;  %v3715_v40 = vrot.slane %v3713_v14, 4  ;;  %v9424_v37 = vld [vmem:[#allocation3 + $0xa8] ss:$36 sps:$4 sm:$0xff]   ;;  %v3998_v6 = vsel %vm11264_vm11, %v3989_v13, %v11460_v15  ;;  %v3716_v62 = vrot.slane %v3625_v19, 6  ;;  %v3881_v55 = vld [vmem:[#allocation2 + $0x38] sm:$0xf]  ;;  %v6285_v42 = vpop.f32.mrf.mxu0 }
 0x193   : > { %v11482_v22 = vor.u32 %v3023_v35, %v3020_v63  ;;  %v13584_v27 = vrot.slane %v11462_v48, 6  ;;  %v4646_v25 = vld [vmem:[#allocation3 + $0x10c] sm:$0xff]  ;;  %4322 = vst [vmem:[#allocation3 + $0x118] sm:$0xf] %v3998_v6  ;;  %v3462_v29 = vsel %vm11210_vm3, %v3460_v51, %v3461_v34  ;;  %v3463_v36 = vrot.slane %v3461_v34, 4  ;;  %v6457_v6 = vpop.f32.mrf.mxu1  ;;  %6773 = vmatmul.mubr.bf16.gmra.mxu1 %v9424_v37 }
 0x194   : > { %v9426_v39 = vld [vmem:[#allocation3 + $0xec] ss:$36 sps:$4 sm:$0xff]   ;;  %v3015_v14 = vsel %vm11205_vm1, %v3006_v9, %v3014_v38  ;;  %v3016_v41 = vrot.slane %v3014_v38, 4  ;;  %v8359_v13 = vcombine.low %v4641_v20, %v4646_v25  ;;  %3588 = vst [vmem:[#allocation3 + $0x134] sm:$0xf] %v3462_v29  ;;  %v3717_v19 = vsel %vm11210_vm3, %v3715_v40, %v3716_v62  ;;  %v11499_v34 = vpop.f32.mrf.mxu0  ;;  %9074 = vmatpush3.bf16.msra.mxu1 %v11385_v32 }
 0x195   : > { %3330 = vst [vmem:[#allocation3 + $0x130] sm:$0xf] %v3015_v14  ;;  %v3718_v63 = vrot.slane %v3716_v62, 4  ;;  %v3999_v35 = vrot.slane %v11460_v15, 4  ;;  %v2889_v44 = vld [vmem:[#allocation2 + $0x34] sm:$0xf]  ;;  %6603 = vmatprep.mubr.bf16.mxu0 %v9426_v39  ;;  %v3465_v46 = vsel %vm11210_vm3, %v3463_v36, %v3464_v33  ;;  %9067 = vmatprep.subr.bf16.mxu1 %v11414_v53 }
 0x196   : > { %v3025_v9 = vsel %vm11205_vm1, %v3016_v41, %v11482_v22  ;;  %3843 = vst [vmem:[#allocation3 + $0x138] sm:$0xf] %v3717_v19  ;;  %v4001_v51 = vshrl.u32 %v3880_v59, 16  ;;  %v4004_v20 = vshll.u32 %v3880_v59, 16  ;;  %v2890_v38 = vld [vmem:[#allocation2 + $0x38] sm:$0xf]  ;;  %6604 = vmatmul.mubr.bf16.gmra.mxu0 %v8359_v13  ;;  %v6288_v37 = vpop.f32.mrf.mxu0 }
 0x197   : > { %3331 = vst [vmem:[#allocation3 + $0x154] sm:$0xf] %v3025_v9  ;;  %3589 = vst [vmem:[#allocation3 + $0x158] sm:$0xf] %v3465_v46  ;;  %v3720_v15 = vsel %vm11210_vm3, %v3718_v63, %v13584_v27  ;;  %v4011_v40 = vshrl.u32 %v3881_v55, 16  ;;  %v4014_v62 = vshll.u32 %v3881_v55, 16  ;;  %v11513_v37 = vadd.f32 %v6455_v49, %v11424_v21 }
 0x198   : > { %v3026_v25 = vrot.slane %v11482_v22, 4  ;;  %3844 = vst [vmem:[#allocation3 + $0x15c] sm:$0xf] %v3720_v15  ;;  %v4003_v39 = vrot.slane %v4001_v51, 6  ;;  %v4006_v14 = vrot.slane %v4004_v20, 7  ;;  %v3028_v59 = vshrl.u32 %v2889_v44, 16  ;;  %9075 = vmatpush3.bf16.msra.mxu1 %v11414_v53 }
 0x199   : > { %v3031_v41 = vshll.u32 %v2889_v44, 16  ;;  %v3369_v29 = vld [vmem:[#allocation2 + $0x34] sm:$0xf]  ;;  %v11506_v36 = vld [vmem:[#allocation2 + $0x38] sm:$0xf]  ;;  %v4013_v42 = vrot.slane %v4011_v40, 6  ;;  %9068 = vmatprep.subr.bf16.mxu1 %v11443_v61 }
 0x19a   : > { %v4016_v13 = vrot.slane %v4014_v62, 7  ;;  %v3038_v19 = vshrl.u32 %v2890_v38, 16  ;;  %v3041_v6 = vshll.u32 %v2890_v38, 16  ;;  %v4007_v55 = vor.u32 %v4006_v14, %v4003_v39  ;;  %v3627_v46 = vld [vmem:[#allocation2 + $0x3c] sm:$0xf] }
 0x19b   : > { %v3030_v63 = vrot.slane %v3028_v59, 5  ;;  %v3033_v22 = vrot.slane %v3031_v41, 6  ;;  %v3466_v9 = vrot.slane %v3464_v33, 4  ;;  %v9428_v51 = vld [vmem:[#allocation3 + $0xf4] ss:$36 sps:$4 sm:$0xff]   ;;  %v3467_v33 = vrot.slane %v3369_v29, 6 }
 0x19c   : > { %v9430_v20 = vld [vmem:[#allocation3 + $0xf0] ss:$36 sps:$4 sm:$0xff]   ;;  %v11510_v44 = vor.u32 %v4016_v13, %v4013_v42  ;;  %v3040_v15 = vrot.slane %v3038_v19, 5  ;;  %v4008_v40 = vsel %vm11264_vm11, %v3999_v35, %v4007_v55  ;;  %v4009_v38 = vrot.slane %v4007_v55, 4  ;;  %v11517_v39 = vld [vmem:[#allocation2 + $0x40] sm:$0xf]  ;;  %6780 = vmatprep.mubr.bf16.mxu1 %v9428_v51  ;;  %v6460_v55 = vpop.f32.mrf.mxu1  ;;  %9076 = vmatpush3.bf16.msra.mxu1 %v11443_v61 }
 0x19d   : > { %v4651_v32 = vld [vmem:[#allocation3 + $0x130] sm:$0xff]  ;;  %v3034_v62 = vor.u32 %v3033_v22, %v3030_v63  ;;  %v3043_v27 = vrot.slane %v3041_v6, 6  ;;  %4323 = vst [vmem:[#allocation3 + $0x13c] sm:$0xf] %v4008_v40  ;;  %v3470_v14 = vrot.slane %v11506_v36, 6  ;;  %v13761_v59 = vrot.slane %v11462_v48, 6  ;;  %6781 = vmatmul.mubr.bf16.gmra.mxu1 %v9430_v20  ;;  %v11543_v40 = vpop.f32.mrf.mxu0 }
 0x19e   : > { %v3722_v49 = vrot.slane %v3627_v46, 6  ;;  %v3882_v41 = vld [vmem:[#allocation2 + $0x3c] sm:$0xf]  ;;  %v4018_v13 = vsel %vm11264_vm11, %v4009_v38, %v11510_v44  ;;  %v3883_v6 = vld [vmem:[#allocation2 + $0x40] sm:$0xf]  ;;  %v3468_v63 = vsel %vm11210_vm3, %v3466_v9, %v3467_v33  ;;  %v3469_v22 = vrot.slane %v3467_v33, 4 }
 0x19f   : > { %v3721_v21 = vrot.slane %v13761_v59, 4  ;;  %v4656_v35 = vld [vmem:[#allocation3 + $0x154] sm:$0xff]  ;;  %v3035_v53 = vsel %vm11205_vm1, %v3026_v25, %v3034_v62  ;;  %v3036_v19 = vrot.slane %v3034_v62, 4  ;;  %v11529_v29 = vor.u32 %v3043_v27, %v3040_v15  ;;  %4324 = vst [vmem:[#allocation3 + $0x160] sm:$0xf] %v4018_v13  ;;  %v9502_v25 = vld [vmem:[%s13532_s3 + $0x200] sm:$0xff]   ;;  %v6293_v13 = vpop.f32.mrf.mxu0 }
 0x1a0   : > { %v9431_v42 = vld [vmem:[#allocation3 + $0x134] ss:$36 sps:$4 sm:$0xff]   ;;  %v8368_v48 = vcombine.low %v4651_v32, %v4656_v35  ;;  %3332 = vst [vmem:[#allocation3 + $0x178] sm:$0xf] %v3035_v53  ;;  %3590 = vst [vmem:[#allocation3 + $0x17c] sm:$0xf] %v3468_v63  ;;  %v6462_v32 = vpop.f32.mrf.mxu1  ;;  %v3471_v38 = vsel %vm11210_vm3, %v3469_v22, %v3470_v14  ;;  %9024 = vmatprep.subr.bf16.mxu0 %v9502_v25  ;;  %9069 = vmatprep.subr.bf16.mxu1 %v9502_v25 }
 0x1a1   : > { %v3723_v46 = vsel %vm11210_vm3, %v3721_v21, %v3722_v49  ;;  %v2891_v51 = vld [vmem:[#allocation2 + $0x3c] sm:$0xf]  ;;  %6611 = vmatprep.mubr.bf16.mxu0 %v9431_v42  ;;  %v3045_v27 = vsel %vm11205_vm1, %v3036_v19, %v11529_v29  ;;  %v3724_v20 = vrot.slane %v3722_v49, 4  ;;  %v3725_v15 = vrot.slane %v11517_v39, 6  ;;  %v2892_v21 = vld [vmem:[#allocation2 + $0x40] sm:$0xf]  ;;  %9025 = vmatpush3.bf16.msra.mxu0 %v9502_v25  ;;  %v11555_v32 = vpop.f32.mrf.mxu0 }
 0x1a2   : > { %3845 = vst [vmem:[#allocation3 + $0x180] sm:$0xf] %v3723_v46  ;;  %v4019_v9 = vrot.slane %v11510_v44, 4  ;;  %6612 = vmatmul.mubr.bf16.gmra.mxu0 %v8368_v48  ;;  %3333 = vst [vmem:[#allocation3 + $0x19c] sm:$0xf] %v3045_v27  ;;  %v4021_v62 = vshrl.u32 %v3882_v41, 16  ;;  %v6463_v42 = vpop.f32.mrf.mxu1  ;;  %9077 = vmatpush3.bf16.msra.mxu1 %v9502_v25 }
 0x1a3   : > { %v4024_v33 = vshll.u32 %v3882_v41, 16  ;;  %v4031_v59 = vshrl.u32 %v3883_v6, 16  ;;  %3591 = vst [vmem:[#allocation3 + $0x1a0] sm:$0xf] %v3471_v38  ;;  %v3726_v44 = vsel %vm11210_vm3, %v3724_v20, %v3725_v15  ;;  %v4034_v39 = vshll.u32 %v3883_v6, 16 }
 0x1a4   : > { %v3046_v49 = vrot.slane %v11529_v29, 4  ;;  %v3048_v61 = vshrl.u32 %v2891_v51, 16  ;;  %v3371_v35 = vld [vmem:[#allocation2 + $0x3c] sm:$0xf]  ;;  %3846 = vst [vmem:[#allocation3 + $0x1a4] sm:$0xf] %v3726_v44  ;;  %v6465_v6 = vpop.f32.mrf.mxu1 }
 0x1a5   : > { %v4023_v53 = vrot.slane %v4021_v62, 6  ;;  %v4026_v19 = vrot.slane %v4024_v33, 7  ;;  %v4033_v41 = vrot.slane %v4031_v59, 6  ;;  %v3051_v48 = vshll.u32 %v2891_v51, 16  ;;  %v11553_v63 = vld [vmem:[#allocation2 + $0x40] sm:$0xf] }
 0x1a6   : > { %v4036_v22 = vrot.slane %v4034_v39, 7  ;;  %v3050_v46 = vrot.slane %v3048_v61, 5  ;;  %v3058_v27 = vshrl.u32 %v2892_v21, 16  ;;  %v3061_v20 = vshll.u32 %v2892_v21, 16  ;;  %v3629_v62 = vld [vmem:[#allocation2 + $0x44] sm:$0xf]  ;;  %v6296_v61 = vpop.f32.mrf.mxu0 }
 0x1a7   : > { %v4027_v29 = vor.u32 %v4026_v19, %v4023_v53  ;;  %v3053_v38 = vrot.slane %v3051_v48, 6  ;;  %v3472_v13 = vrot.slane %v3470_v14, 4  ;;  %v3473_v44 = vrot.slane %v3371_v35, 6  ;;  %v9433_v33 = vld [vmem:[#allocation3 + $0x13c] ss:$36 sps:$4 sm:$0xff]  }
 0x1a8   : > { %v9435_v59 = vld [vmem:[#allocation3 + $0x138] ss:$36 sps:$4 sm:$0xff]   ;;  %v11559_v51 = vor.u32 %v4036_v22, %v4033_v41  ;;  %v3060_v26 = vrot.slane %v3058_v27, 5  ;;  %v11562_v39 = vadd.f32 %v6460_v55, %v11476_v31  ;;  %v11565_v21 = vadd.f32 %v6463_v42, %v11499_v34  ;;  %v11569_v19 = vld [vmem:[#allocation2 + $0x48] sm:$0xf]  ;;  %6788 = vmatprep.mubr.bf16.mxu1 %v9433_v33 }
 0x1a9   : > { %v4661_v25 = vld [vmem:[#allocation3 + $0x178] sm:$0xff]  ;;  %v4028_v53 = vsel %vm11264_vm11, %v4019_v9, %v4027_v29  ;;  %v4029_v36 = vrot.slane %v4027_v29, 4  ;;  %v3054_v14 = vor.u32 %v3053_v38, %v3050_v46  ;;  %v3063_v35 = vrot.slane %v3061_v20, 6  ;;  %v3884_v42 = vld [vmem:[#allocation2 + $0x44] sm:$0xf]  ;;  %6789 = vmatmul.mubr.bf16.gmra.mxu1 %v9435_v59 }
 0x1aa   : > { %4325 = vst [vmem:[#allocation3 + $0x184] sm:$0xf] %v4028_v53  ;;  %v3474_v41 = vsel %vm11210_vm3, %v3472_v13, %v3473_v44  ;;  %v3475_v31 = vrot.slane %v3473_v44, 4  ;;  %v3476_v55 = vrot.slane %v11553_v63, 6  ;;  %v3727_v34 = vrot.slane %v3725_v15, 4  ;;  %v4666_v48 = vld [vmem:[#allocation3 + $0x19c] sm:$0xff] }
 0x1ab   : > { %v9437_v22 = vld [vmem:[#allocation3 + $0x17c] ss:$36 sps:$4 sm:$0xff]   ;;  %v4038_v9 = vsel %vm11264_vm11, %v4029_v36, %v11559_v51  ;;  %v3055_v46 = vsel %vm11205_vm1, %v3046_v49, %v3054_v14  ;;  %v3056_v27 = vrot.slane %v3054_v14, 4  ;;  %v11579_v20 = vor.u32 %v3063_v35, %v3060_v26  ;;  %3592 = vst [vmem:[#allocation3 + $0x1c4] sm:$0xf] %v3474_v41 }
 0x1ac   : > { %v3885_v6 = vld [vmem:[#allocation2 + $0x48] sm:$0xf]  ;;  %4326 = vst [vmem:[#allocation3 + $0x1a8] sm:$0xf] %v4038_v9  ;;  %v8377_v29 = vcombine.low %v4661_v25, %v4666_v48  ;;  %3334 = vst [vmem:[#allocation3 + $0x1c0] sm:$0xf] %v3055_v46  ;;  %v3477_v15 = vsel %vm11210_vm3, %v3475_v31, %v3476_v55  ;;  %6619 = vmatprep.mubr.bf16.mxu0 %v9437_v22 }
 0x1ad   : > { %v3728_v63 = vrot.slane %v3629_v62, 6  ;;  %v3731_v38 = vrot.slane %v11569_v19, 6  ;;  %v2893_v13 = vld [vmem:[#allocation2 + $0x44] sm:$0xf]  ;;  %v3065_v49 = vsel %vm11205_vm1, %v3056_v27, %v11579_v20  ;;  %3593 = vst [vmem:[#allocation3 + $0x1e8] sm:$0xf] %v3477_v15 }
 0x1ae   : > { %v4039_v26 = vrot.slane %v11559_v51, 4  ;;  %v4041_v44 = vshrl.u32 %v3884_v42, 16  ;;  %v4044_v33 = vshll.u32 %v3884_v42, 16  ;;  %6620 = vmatmul.mubr.bf16.gmra.mxu0 %v8377_v29  ;;  %3335 = vst [vmem:[#allocation3 + $0x1e4] sm:$0xf] %v3065_v49  ;;  %v4051_v62 = vshrl.u32 %v3885_v6, 16 }
 0x1af   : > { %v3729_v59 = vsel %vm11210_vm3, %v3727_v34, %v3728_v63  ;;  %v3730_v61 = vrot.slane %v3728_v63, 4  ;;  %v4054_v25 = vshll.u32 %v3885_v6, 16  ;;  %v2894_v53 = vld [vmem:[#allocation2 + $0x48] sm:$0xf]  ;;  %v3066_v35 = vrot.slane %v11579_v20, 4 }
 0x1b0   : > { %3847 = vst [vmem:[#allocation3 + $0x1c8] sm:$0xf] %v3729_v59  ;;  %v4043_v36 = vrot.slane %v4041_v44, 6  ;;  %v4046_v14 = vrot.slane %v4044_v33, 7  ;;  %v3068_v19 = vshrl.u32 %v2893_v13, 16  ;;  %v4053_v31 = vrot.slane %v4051_v62, 6  ;;  %v6468_v44 = vpop.f32.mrf.mxu1 }
 0x1b1   : > { %v3373_v41 = vld [vmem:[#allocation2 + $0x44] sm:$0xf]  ;;  %v3732_v51 = vsel %vm11210_vm3, %v3730_v61, %v3731_v38  ;;  %v4056_v42 = vrot.slane %v4054_v25, 7  ;;  %v3071_v48 = vshll.u32 %v2893_v13, 16  ;;  %v3078_v9 = vshrl.u32 %v2894_v53, 16 }
 0x1b2   : > { %3848 = vst [vmem:[#allocation3 + $0x1ec] sm:$0xf] %v3732_v51  ;;  %v4047_v22 = vor.u32 %v4046_v14, %v4043_v36  ;;  %v3070_v34 = vrot.slane %v3068_v19, 5  ;;  %v3081_v46 = vshll.u32 %v2894_v53, 16  ;;  %v11593_v27 = vld [vmem:[#allocation2 + $0x48] sm:$0xf]  ;;  %v11602_v25 = vadd.f32 %v6468_v44, %v11543_v40  ;;  %v6470_v51 = vpop.f32.mrf.mxu1 }
 0x1b3   : > { %v11595_v6 = vor.u32 %v4056_v42, %v4053_v31  ;;  %v3073_v29 = vrot.slane %v3071_v48, 6  ;;  %v3478_v15 = vrot.slane %v3476_v55, 4  ;;  %v3479_v20 = vrot.slane %v3373_v41, 6  ;;  %v3631_v63 = vld [vmem:[#allocation2 + $0x4c] sm:$0xf]  ;;  %v4671_v53 = vld [vmem:[#allocation3 + $0x1c0] sm:$0xff]  ;;  %v11606_v31 = vpop.f32.mrf.mxu0 }
 0x1b4   : > { %v11597_v49 = vld [vmem:[#allocation2 + $0x50] sm:$0xf]  ;;  %v9439_v33 = vld [vmem:[#allocation3 + $0x184] ss:$36 sps:$4 sm:$0xff]   ;;  %v4048_v13 = vsel %vm11264_vm11, %v4039_v26, %v4047_v22  ;;  %v4049_v61 = vrot.slane %v4047_v22, 4  ;;  %v3080_v14 = vrot.slane %v3078_v9, 5  ;;  %v6471_v44 = vpop.f32.mrf.mxu1 }
 0x1b5   : > { %v9441_v59 = vld [vmem:[#allocation3 + $0x180] ss:$36 sps:$4 sm:$0xff]   ;;  %v3886_v62 = vld [vmem:[#allocation2 + $0x4c] sm:$0xf]  ;;  %4327 = vst [vmem:[#allocation3 + $0x1cc] sm:$0xf] %v4048_v13  ;;  %v3074_v36 = vor.u32 %v3073_v29, %v3070_v34  ;;  %v3480_v19 = vsel %vm11210_vm3, %v3478_v15, %v3479_v20  ;;  %6796 = vmatprep.mubr.bf16.mxu1 %v9439_v33  ;;  %v6301_v33 = vpop.f32.mrf.mxu0 }
 0x1b6   : > { %v3083_v55 = vrot.slane %v3081_v46, 6  ;;  %v3887_v41 = vld [vmem:[#allocation2 + $0x50] sm:$0xf]  ;;  %v4676_v42 = vld [vmem:[#allocation3 + $0x1e4] sm:$0xff]  ;;  %v4058_v40 = vsel %vm11264_vm11, %v4049_v61, %v11595_v6  ;;  %v3481_v48 = vrot.slane %v3479_v20, 4  ;;  %v3482_v22 = vrot.slane %v11593_v27, 6  ;;  %6797 = vmatmul.mubr.bf16.gmra.mxu1 %v9441_v59 }
 0x1b7   : > { %v9442_v26 = vld [vmem:[#allocation3 + $0x1c4] ss:$36 sps:$4 sm:$0xff]   ;;  %3594 = vst [vmem:[#allocation3 + $0x20c] sm:$0xf] %v3480_v19  ;;  %v3733_v34 = vrot.slane %v3731_v38, 4  ;;  %v8386_v9 = vcombine.low %v4671_v53, %v4676_v42  ;;  %v3075_v46 = vsel %vm11205_vm1, %v3066_v35, %v3074_v36  ;;  %v3076_v29 = vrot.slane %v3074_v36, 4  ;;  %v11623_v19 = vpop.f32.mrf.mxu0 }
 0x1b8   : > { %4328 = vst [vmem:[#allocation3 + $0x1f0] sm:$0xf] %v4058_v40  ;;  %v11614_v15 = vor.u32 %v3083_v55, %v3080_v14  ;;  %6627 = vmatprep.mubr.bf16.mxu0 %v9442_v26  ;;  %3336 = vst [vmem:[#allocation3 + $0x208] sm:$0xf] %v3075_v46  ;;  %v3483_v20 = vsel %vm11210_vm3, %v3481_v48, %v3482_v22  ;;  %v3734_v13 = vrot.slane %v3631_v63, 6  ;;  %v3737_v27 = vrot.slane %v11597_v49, 6  ;;  %v6473_v55 = vpop.f32.mrf.mxu1 }
 0x1b9   : > { %v4059_v38 = vrot.slane %v11595_v6, 4  ;;  %v2895_v59 = vld [vmem:[#allocation2 + $0x4c] sm:$0xf]  ;;  %6628 = vmatmul.mubr.bf16.gmra.mxu0 %v8386_v9  ;;  %3595 = vst [vmem:[#allocation3 + $0x230] sm:$0xf] %v3483_v20  ;;  %v4061_v61 = vshrl.u32 %v3886_v62, 16  ;;  %v6304_v46 = vpop.f32.mrf.mxu0 }
 0x1ba   : > { %v3085_v35 = vsel %vm11205_vm1, %v3076_v29, %v11614_v15  ;;  %v4064_v53 = vshll.u32 %v3886_v62, 16  ;;  %v4071_v36 = vshrl.u32 %v3887_v41, 16  ;;  %v2896_v14 = vld [vmem:[#allocation2 + $0x50] sm:$0xf]  ;;  %v3735_v63 = vsel %vm11210_vm3, %v3733_v34, %v3734_v13  ;;  %v3375_v9 = vld [vmem:[#allocation2 + $0x4c] sm:$0xf] }
 0x1bb   : > { %3337 = vst [vmem:[#allocation3 + $0x22c] sm:$0xf] %v3085_v35  ;;  %v3736_v49 = vrot.slane %v3734_v13, 4  ;;  %v4074_v6 = vshll.u32 %v3887_v41, 16  ;;  %v3086_v51 = vrot.slane %v11614_v15, 4  ;;  %v4063_v42 = vrot.slane %v4061_v61, 6 }
 0x1bc   : > { %3849 = vst [vmem:[#allocation3 + $0x210] sm:$0xf] %v3735_v63  ;;  %v4066_v26 = vrot.slane %v4064_v53, 7  ;;  %v4073_v40 = vrot.slane %v4071_v36, 6  ;;  %v3088_v48 = vshrl.u32 %v2895_v59, 16  ;;  %v3091_v20 = vshll.u32 %v2895_v59, 16 }
 0x1bd   : > { %v11628_v62 = vld [vmem:[#allocation2 + $0x50] sm:$0xf]  ;;  %v3738_v29 = vsel %vm11210_vm3, %v3736_v49, %v3737_v27  ;;  %v4076_v33 = vrot.slane %v4074_v6, 7  ;;  %v3098_v35 = vshrl.u32 %v2896_v14, 16  ;;  %v3633_v34 = vld [vmem:[#allocation2 + $0x54] sm:$0xf]  ;;  %v11637_v46 = vadd.f32 %v6471_v44, %v11555_v32 }
 0x1be   : > { %3850 = vst [vmem:[#allocation3 + $0x234] sm:$0xf] %v3738_v29  ;;  %v4067_v41 = vor.u32 %v4066_v26, %v4063_v42  ;;  %v3090_v13 = vrot.slane %v3088_v48, 5  ;;  %v3101_v15 = vshll.u32 %v2896_v14, 16  ;;  %v3484_v55 = vrot.slane %v3482_v22, 4 }
 0x1bf   : > { %v11632_v61 = vld [vmem:[#allocation2 + $0x58] sm:$0xf]  ;;  %v9444_v53 = vld [vmem:[#allocation3 + $0x1cc] ss:$36 sps:$4 sm:$0xff]   ;;  %v11634_v63 = vor.u32 %v4076_v33, %v4073_v40  ;;  %v3093_v30 = vrot.slane %v3091_v20, 6  ;;  %v3100_v29 = vrot.slane %v3098_v35, 5 }
 0x1c0   : > { %v9446_v36 = vld [vmem:[#allocation3 + $0x1c8] ss:$36 sps:$4 sm:$0xff]   ;;  %v4068_v59 = vsel %vm11264_vm11, %v4059_v38, %v4067_v41  ;;  %v4069_v6 = vrot.slane %v4067_v41, 4  ;;  %v3103_v42 = vrot.slane %v3101_v15, 6  ;;  %v3888_v26 = vld [vmem:[#allocation2 + $0x54] sm:$0xf]  ;;  %6804 = vmatprep.mubr.bf16.mxu1 %v9444_v53 }
 0x1c1   : > { %v4681_v49 = vld [vmem:[#allocation3 + $0x208] sm:$0xff]  ;;  %4329 = vst [vmem:[#allocation3 + $0x214] sm:$0xf] %v4068_v59  ;;  %v3094_v22 = vor.u32 %v3093_v30, %v3090_v13  ;;  %v3485_v14 = vrot.slane %v3375_v9, 6  ;;  %v3488_v48 = vrot.slane %v11628_v62, 6  ;;  %v3739_v40 = vrot.slane %v3737_v27, 4  ;;  %6805 = vmatmul.mubr.bf16.gmra.mxu1 %v9446_v36 }
 0x1c2   : > { %v3889_v33 = vld [vmem:[#allocation2 + $0x58] sm:$0xf]  ;;  %v4686_v20 = vld [vmem:[#allocation3 + $0x22c] sm:$0xff]  ;;  %v4078_v44 = vsel %vm11264_vm11, %v4069_v6, %v11634_v63  ;;  %v11645_v38 = vor.u32 %v3103_v42, %v3100_v29  ;;  %v3740_v35 = vrot.slane %v3633_v34, 6  ;;  %v13589_v41 = vrot.slane %v11632_v61, 6  ;;  %v6476_v29 = vpop.f32.mrf.mxu1 }
 0x1c3   : > { %v9448_v32 = vld [vmem:[#allocation3 + $0x20c] ss:$36 sps:$4 sm:$0xff]   ;;  %4330 = vst [vmem:[#allocation3 + $0x238] sm:$0xf] %v4078_v44  ;;  %v8395_v15 = vcombine.low %v4681_v49, %v4686_v20  ;;  %v3095_v30 = vsel %vm11205_vm1, %v3086_v51, %v3094_v22  ;;  %v3096_v9 = vrot.slane %v3094_v22, 4  ;;  %v3486_v27 = vsel %vm11210_vm3, %v3484_v55, %v3485_v14 }
 0x1c4   : > { %6635 = vmatprep.mubr.bf16.mxu0 %v9448_v32  ;;  %3338 = vst [vmem:[#allocation3 + $0x250] sm:$0xf] %v3095_v30  ;;  %v3487_v62 = vrot.slane %v3485_v14, 4  ;;  %3596 = vst [vmem:[#allocation3 + $0x254] sm:$0xf] %v3486_v27  ;;  %v3741_v13 = vsel %vm11210_vm3, %v3739_v40, %v3740_v35  ;;  %v3742_v53 = vrot.slane %v3740_v35, 4  ;;  %v11667_v30 = vpop.f32.mrf.mxu0 }
 0x1c5   : > { %v4079_v34 = vrot.slane %v11634_v63, 4  ;;  %v2897_v36 = vld [vmem:[#allocation2 + $0x54] sm:$0xf]  ;;  %6636 = vmatmul.mubr.bf16.gmra.mxu0 %v8395_v15  ;;  %v3105_v51 = vsel %vm11205_vm1, %v3096_v9, %v11645_v38  ;;  %3851 = vst [vmem:[#allocation3 + $0x258] sm:$0xf] %v3741_v13  ;;  %v4081_v49 = vshrl.u32 %v3888_v26, 16  ;;  %v6478_v15 = vpop.f32.mrf.mxu1 }
 0x1c6   : > { %v4084_v59 = vshll.u32 %v3888_v26, 16  ;;  %v4091_v55 = vshrl.u32 %v3889_v33, 16  ;;  %v2898_v6 = vld [vmem:[#allocation2 + $0x58] sm:$0xf]  ;;  %3339 = vst [vmem:[#allocation3 + $0x274] sm:$0xf] %v3105_v51  ;;  %v3489_v42 = vsel %vm11210_vm3, %v3487_v62, %v3488_v48  ;;  %v3744_v63 = vsel %vm11210_vm3, %v3742_v53, %v13589_v41 }
 0x1c7   : > { %v4094_v22 = vshll.u32 %v3889_v33, 16  ;;  %v3106_v14 = vrot.slane %v11645_v38, 4  ;;  %v3377_v40 = vld [vmem:[#allocation2 + $0x54] sm:$0xf]  ;;  %3597 = vst [vmem:[#allocation3 + $0x278] sm:$0xf] %v3489_v42  ;;  %v6479_v42 = vpop.f32.mrf.mxu1  ;;  %v11672_v15 = vadd.f32 %v6476_v29, %v11606_v31 }
 0x1c8   : > { %3852 = vst [vmem:[#allocation3 + $0x27c] sm:$0xf] %v3744_v63  ;;  %v4083_v20 = vrot.slane %v4081_v49, 6  ;;  %v4086_v26 = vrot.slane %v4084_v59, 7  ;;  %v4093_v32 = vrot.slane %v4091_v55, 6  ;;  %v3108_v44 = vshrl.u32 %v2897_v36, 16  ;;  %v6309_v63 = vpop.f32.mrf.mxu0 }
 0x1c9   : > { %v11665_v35 = vld [vmem:[#allocation2 + $0x58] sm:$0xf]  ;;  %v4096_v9 = vrot.slane %v4094_v22, 7  ;;  %v3111_v27 = vshll.u32 %v2897_v36, 16  ;;  %v3118_v62 = vshrl.u32 %v2898_v6, 16  ;;  %v3121_v13 = vshll.u32 %v2898_v6, 16 }
 0x1ca   : > { %v4087_v53 = vor.u32 %v4086_v26, %v4083_v20  ;;  %v3110_v33 = vrot.slane %v3108_v44, 5  ;;  %v3490_v51 = vrot.slane %v3488_v48, 4  ;;  %v3491_v38 = vrot.slane %v3377_v40, 6  ;;  %v3635_v41 = vld [vmem:[#allocation2 + $0x5c] sm:$0xf]  ;;  %v6481_v26 = vpop.f32.mrf.mxu1  ;;  %v11681_v44 = vpop.f32.mrf.mxu0 }
 0x1cb   : > { %v9450_v49 = vld [vmem:[#allocation3 + $0x214] ss:$36 sps:$4 sm:$0xff]   ;;  %v11669_v55 = vor.u32 %v4096_v9, %v4093_v32  ;;  %v3113_v60 = vrot.slane %v3111_v27, 6  ;;  %v11675_v22 = vadd.f32 %v6479_v42, %v11623_v19  ;;  %v3120_v48 = vrot.slane %v3118_v62, 5  ;;  %v11679_v20 = vld [vmem:[#allocation2 + $0x60] sm:$0xf] }
 0x1cc   : > { %v9452_v59 = vld [vmem:[#allocation3 + $0x210] ss:$36 sps:$4 sm:$0xff]   ;;  %v4088_v36 = vsel %vm11264_vm11, %v4079_v34, %v4087_v53  ;;  %v4089_v6 = vrot.slane %v4087_v53, 4  ;;  %v3123_v40 = vrot.slane %v3121_v13, 6  ;;  %6812 = vmatprep.mubr.bf16.mxu1 %v9450_v49  ;;  %v3492_v31 = vsel %vm11210_vm3, %v3490_v51, %v3491_v38  ;;  %v3890_v27 = vld [vmem:[#allocation2 + $0x5c] sm:$0xf]  ;;  %v6312_v63 = vpop.f32.mrf.mxu0 }
 0x1cd   : > { %v4691_v32 = vld [vmem:[#allocation3 + $0x250] sm:$0xff]  ;;  %4331 = vst [vmem:[#allocation3 + $0x25c] sm:$0xf] %v4088_v36  ;;  %v3114_v9 = vor.u32 %v3113_v60, %v3110_v33  ;;  %v3493_v19 = vrot.slane %v3491_v38, 4  ;;  %v3494_v29 = vrot.slane %v11665_v35, 6  ;;  %6813 = vmatmul.mubr.bf16.gmra.mxu1 %v9452_v59  ;;  %v13762_v13 = vrot.slane %v11632_v61, 6 }
 0x1ce   : > { %v4098_v34 = vsel %vm11264_vm11, %v4089_v6, %v11669_v55  ;;  %v11689_v62 = vor.u32 %v3123_v40, %v3120_v48  ;;  %3598 = vst [vmem:[#allocation3 + $0x29c] sm:$0xf] %v3492_v31  ;;  %v3746_v42 = vrot.slane %v3635_v41, 6  ;;  %v3891_v60 = vld [vmem:[#allocation2 + $0x60] sm:$0xf]  ;;  %v4696_v51 = vld [vmem:[#allocation3 + $0x274] sm:$0xff] }
 0x1cf   : > { %v3745_v53 = vrot.slane %v13762_v13, 4  ;;  %v2899_v33 = vld [vmem:[#allocation2 + $0x5c] sm:$0xf]  ;;  %4332 = vst [vmem:[#allocation3 + $0x280] sm:$0xf] %v4098_v34  ;;  %v3115_v35 = vsel %vm11205_vm1, %v3106_v14, %v3114_v9  ;;  %v3116_v49 = vrot.slane %v3114_v9, 4  ;;  %v3495_v59 = vsel %vm11210_vm3, %v3493_v19, %v3494_v29 }
 0x1d0   : > { %v9453_v38 = vld [vmem:[#allocation3 + $0x254] ss:$36 sps:$4 sm:$0xff]   ;;  %v3749_v36 = vrot.slane %v11679_v20, 6  ;;  %v8404_v6 = vcombine.low %v4691_v32, %v4696_v51  ;;  %3340 = vst [vmem:[#allocation3 + $0x298] sm:$0xf] %v3115_v35  ;;  %v3748_v41 = vrot.slane %v3746_v42, 4 }
 0x1d1   : > { %3599 = vst [vmem:[#allocation3 + $0x2c0] sm:$0xf] %v3495_v59  ;;  %v3747_v61 = vsel %vm11210_vm3, %v3745_v53, %v3746_v42  ;;  %v4099_v48 = vrot.slane %v11669_v55, 4  ;;  %6643 = vmatprep.mubr.bf16.mxu0 %v9453_v38  ;;  %v3125_v14 = vsel %vm11205_vm1, %v3116_v49, %v11689_v62  ;;  %v4101_v40 = vshrl.u32 %v3890_v27, 16  ;;  %v2900_v31 = vld [vmem:[#allocation2 + $0x60] sm:$0xf] }
 0x1d2   : > { %3853 = vst [vmem:[#allocation3 + $0x2a0] sm:$0xf] %v3747_v61  ;;  %v4104_v26 = vshll.u32 %v3890_v27, 16  ;;  %v4111_v9 = vshrl.u32 %v3891_v60, 16  ;;  %6644 = vmatmul.mubr.bf16.gmra.mxu0 %v8404_v6  ;;  %3341 = vst [vmem:[#allocation3 + $0x2bc] sm:$0xf] %v3125_v14  ;;  %v3750_v20 = vsel %vm11210_vm3, %v3748_v41, %v3749_v36  ;;  %v6484_v27 = vpop.f32.mrf.mxu1 }
 0x1d3   : > { %v4114_v32 = vshll.u32 %v3891_v60, 16  ;;  %v3126_v19 = vrot.slane %v11689_v62, 4  ;;  %v3128_v34 = vshrl.u32 %v2899_v33, 16  ;;  %v3379_v55 = vld [vmem:[#allocation2 + $0x5c] sm:$0xf]  ;;  %v4103_v13 = vrot.slane %v4101_v40, 6 }
 0x1d4   : > { %3854 = vst [vmem:[#allocation3 + $0x2c4] sm:$0xf] %v3750_v20  ;;  %v4106_v53 = vrot.slane %v4104_v26, 7  ;;  %v4113_v42 = vrot.slane %v4111_v9, 6  ;;  %v3131_v63 = vshll.u32 %v2899_v33, 16  ;;  %v3138_v49 = vshrl.u32 %v2900_v31, 16  ;;  %v6486_v62 = vpop.f32.mrf.mxu1  ;;  %v11714_v26 = vpop.f32.mrf.mxu0 }
 0x1d5   : > { %v11707_v51 = vld [vmem:[#allocation2 + $0x60] sm:$0xf]  ;;  %v4116_v38 = vrot.slane %v4114_v32, 7  ;;  %v3130_v35 = vrot.slane %v3128_v34, 5  ;;  %v3141_v59 = vshll.u32 %v2900_v31, 16  ;;  %v3496_v41 = vrot.slane %v3494_v29, 4 }
 0x1d6   : > { %v4107_v6 = vor.u32 %v4106_v53, %v4103_v13  ;;  %v3133_v61 = vrot.slane %v3131_v63, 6  ;;  %v3497_v60 = vrot.slane %v3379_v55, 6  ;;  %v3637_v14 = vld [vmem:[#allocation2 + $0x64] sm:$0xf]  ;;  %v9457_v45 = vld [vmem:[#allocation3 + $0x258] ss:$36 sps:$4 sm:$0xff]   ;;  %v11712_v33 = vadd.f32 %v6484_v27, %v11667_v30  ;;  %v11720_v13 = vpop.f32.mrf.mxu1 }
 0x1d7   : > { %v9455_v24 = vld [vmem:[#allocation3 + $0x25c] ss:$36 sps:$4 sm:$0xff]   ;;  %v11709_v20 = vor.u32 %v4116_v38, %v4113_v42  ;;  %v3140_v40 = vrot.slane %v3138_v49, 5  ;;  %v3143_v29 = vrot.slane %v3141_v59, 6  ;;  %v11718_v55 = vld [vmem:[#allocation2 + $0x68] sm:$0xf]  ;;  %v6317_v38 = vpop.f32.mrf.mxu0 }
 0x1d8   : > { %v4701_v9 = vld [vmem:[#allocation3 + $0x298] sm:$0xff]  ;;  %v4108_v31 = vsel %vm11264_vm11, %v4099_v48, %v4107_v6  ;;  %v4109_v32 = vrot.slane %v4107_v6, 4  ;;  %v3134_v34 = vor.u32 %v3133_v61, %v3130_v35  ;;  %6820 = vmatprep.mubr.bf16.mxu1 %v9455_v24  ;;  %v3498_v53 = vsel %vm11210_vm3, %v3496_v41, %v3497_v60  ;;  %v3892_v27 = vld [vmem:[#allocation2 + $0x64] sm:$0xf]  ;;  %v3893_v61 = vld [vmem:[#allocation2 + $0x68] sm:$0xf]  ;;  %v6489_v41 = vpop.f32.mrf.mxu1 }
 0x1d9   : > { %4333 = vst [vmem:[#allocation3 + $0x2a4] sm:$0xf] %v4108_v31  ;;  %v3499_v30 = vrot.slane %v3497_v60, 4  ;;  %v3500_v42 = vrot.slane %v11707_v51, 6  ;;  %v3751_v63 = vrot.slane %v3749_v36, 4  ;;  %6821 = vmatmul.mubr.bf16.gmra.mxu1 %v9457_v45  ;;  %v4706_v48 = vld [vmem:[#allocation3 + $0x2bc] sm:$0xff]  ;;  %v11730_v6 = vor.u32 %v3143_v29, %v3140_v40  ;;  %v11735_v31 = vpop.f32.mrf.mxu0 }
 0x1da   : > { %v9458_v49 = vld [vmem:[#allocation3 + $0x29c] ss:$36 sps:$4 sm:$0xff]   ;;  %v4118_v35 = vsel %vm11264_vm11, %v4109_v32, %v11709_v20  ;;  %v3135_v24 = vsel %vm11205_vm1, %v3126_v19, %v3134_v34  ;;  %v3136_v59 = vrot.slane %v3134_v34, 4  ;;  %3600 = vst [vmem:[#allocation3 + $0x2e4] sm:$0xf] %v3498_v53  ;;  %v8413_v36 = vcombine.low %v4701_v9, %v4706_v48 }
 0x1db   : > { %4334 = vst [vmem:[#allocation3 + $0x2c8] sm:$0xf] %v4118_v35  ;;  %3342 = vst [vmem:[#allocation3 + $0x2e0] sm:$0xf] %v3135_v24  ;;  %v3501_v45 = vsel %vm11210_vm3, %v3499_v30, %v3500_v42  ;;  %v3752_v51 = vrot.slane %v3637_v14, 6  ;;  %v3755_v60 = vrot.slane %v11718_v55, 6  ;;  %6651 = vmatprep.mubr.bf16.mxu0 %v9458_v49  ;;  %v6320_v38 = vpop.f32.mrf.mxu0 }
 0x1dc   : > { %v2901_v62 = vld [vmem:[#allocation2 + $0x64] sm:$0xf]  ;;  %v3145_v19 = vsel %vm11205_vm1, %v3136_v59, %v11730_v6  ;;  %3601 = vst [vmem:[#allocation3 + $0x308] sm:$0xf] %v3501_v45  ;;  %v4119_v40 = vrot.slane %v11709_v20, 4  ;;  %v4121_v32 = vshrl.u32 %v3892_v27, 16  ;;  %6652 = vmatmul.mubr.bf16.gmra.mxu0 %v8413_v36 }
 0x1dd   : > { %v4124_v9 = vshll.u32 %v3892_v27, 16  ;;  %3343 = vst [vmem:[#allocation3 + $0x304] sm:$0xf] %v3145_v19  ;;  %v3753_v14 = vsel %vm11210_vm3, %v3751_v63, %v3752_v51  ;;  %v3754_v34 = vrot.slane %v3752_v51, 4  ;;  %v4131_v29 = vshrl.u32 %v3893_v61, 16 }
 0x1de   : > { %v4134_v53 = vshll.u32 %v3893_v61, 16  ;;  %v2902_v30 = vld [vmem:[#allocation2 + $0x68] sm:$0xf]  ;;  %3855 = vst [vmem:[#allocation3 + $0x2e8] sm:$0xf] %v3753_v14  ;;  %v4123_v48 = vrot.slane %v4121_v32, 6 }
 0x1df   : > { %v4126_v49 = vrot.slane %v4124_v9, 7  ;;  %v3146_v35 = vrot.slane %v11730_v6, 4  ;;  %v3148_v24 = vshrl.u32 %v2901_v62, 16  ;;  %v3381_v59 = vld [vmem:[#allocation2 + $0x64] sm:$0xf]  ;;  %v3756_v20 = vsel %vm11210_vm3, %v3754_v34, %v3755_v60 }
 0x1e0   : > { %v4133_v27 = vrot.slane %v4131_v29, 6  ;;  %v4136_v41 = vrot.slane %v4134_v53, 7  ;;  %v3151_v63 = vshll.u32 %v2901_v62, 16  ;;  %3856 = vst [vmem:[#allocation3 + $0x30c] sm:$0xf] %v3756_v20  ;;  %v3158_v45 = vshrl.u32 %v2902_v30, 16 }
 0x1e1   : > { %v4127_v36 = vor.u32 %v4126_v49, %v4123_v48  ;;  %v3150_v61 = vrot.slane %v3148_v24, 5  ;;  %v3161_v51 = vshll.u32 %v2902_v30, 16  ;;  %v11748_v19 = vld [vmem:[#allocation2 + $0x68] sm:$0xf]  ;;  %v3502_v9 = vrot.slane %v3500_v42, 4 }
 0x1e2   : > { %v11750_v32 = vor.u32 %v4136_v41, %v4133_v27  ;;  %v3153_v6 = vrot.slane %v3151_v63, 6  ;;  %v3503_v14 = vrot.slane %v3381_v59, 6  ;;  %v3639_v38 = vld [vmem:[#allocation2 + $0x6c] sm:$0xf]  ;;  %v9462_v34 = vld [vmem:[#allocation3 + $0x2a0] ss:$36 sps:$4 sm:$0xff]   ;;  %v11758_v53 = vadd.f32 %v11720_v13, %v11681_v44  ;;  %v6492_v59 = vpop.f32.mrf.mxu1 }
 0x1e3   : > { %v9460_v10 = vld [vmem:[#allocation3 + $0x2a4] ss:$36 sps:$4 sm:$0xff]   ;;  %v4128_v62 = vsel %vm11264_vm11, %v4119_v40, %v4127_v36  ;;  %v4129_v29 = vrot.slane %v4127_v36, 4  ;;  %v3160_v48 = vrot.slane %v3158_v45, 5  ;;  %v3163_v49 = vrot.slane %v3161_v51, 6  ;;  %v11773_v51 = vpop.f32.mrf.mxu0 }
 0x1e4   : > { %4335 = vst [vmem:[#allocation3 + $0x2ec] sm:$0xf] %v4128_v62  ;;  %v3154_v30 = vor.u32 %v3153_v6, %v3150_v61  ;;  %v3504_v42 = vsel %vm11210_vm3, %v3502_v9, %v3503_v14  ;;  %v3894_v24 = vld [vmem:[#allocation2 + $0x6c] sm:$0xf]  ;;  %6828 = vmatprep.mubr.bf16.mxu1 %v9460_v10  ;;  %v9464_v20 = vld [vmem:[#allocation3 + $0x2e0] ss:$36 sps:$4 sm:$0xff]   ;;  %v11766_v44 = vadd.f32 %v6492_v59, %v11714_v26  ;;  %v6494_v45 = vpop.f32.mrf.mxu1 }
 0x1e5   : > { %v9466_v27 = vld [vmem:[#allocation3 + $0x2e4] ss:$36 sps:$4 sm:$0xff]   ;;  %v4138_v40 = vsel %vm11264_vm11, %v4129_v29, %v11750_v32  ;;  %v3505_v41 = vrot.slane %v3503_v14, 4  ;;  %3602 = vst [vmem:[#allocation3 + $0x32c] sm:$0xf] %v3504_v42  ;;  %6829 = vmatmul.mubr.bf16.gmra.mxu1 %v9462_v34  ;;  %v11770_v36 = vor.u32 %v3163_v49, %v3160_v48  ;;  %v3506_v10 = vrot.slane %v11748_v19, 6  ;;  %v6325_v48 = vpop.f32.mrf.mxu0 }
 0x1e6   : > { %4336 = vst [vmem:[#allocation3 + $0x310] sm:$0xf] %v4138_v40  ;;  %v3155_v13 = vsel %vm11205_vm1, %v3146_v35, %v3154_v30  ;;  %v3156_v63 = vrot.slane %v3154_v30, 4  ;;  %v3895_v61 = vld [vmem:[#allocation2 + $0x70] sm:$0xf]  ;;  %6659 = vmatprep.mubr.bf16.mxu0 %v9466_v27  ;;  %v3757_v26 = vrot.slane %v3755_v60, 4  ;;  %v6495_v30 = vpop.f32.mrf.mxu1 }
 0x1e7   : > { %3344 = vst [vmem:[#allocation3 + $0x328] sm:$0xf] %v3155_v13  ;;  %v3758_v6 = vrot.slane %v3639_v38, 6  ;;  %v3761_v9 = vrot.slane %v11752_v28, 6  ;;  %v4139_v14 = vrot.slane %v11750_v32, 4  ;;  %6660 = vmatmul.mubr.bf16.gmra.mxu0 %v9464_v20  ;;  %v3507_v34 = vsel %vm11210_vm3, %v3505_v41, %v3506_v10  ;;  %v11787_v40 = vpop.f32.mrf.mxu0 }
 0x1e8   : > { %v2903_v35 = vld [vmem:[#allocation2 + $0x6c] sm:$0xf]  ;;  %v3165_v19 = vsel %vm11205_vm1, %v3156_v63, %v11770_v36  ;;  %v4141_v62 = vshrl.u32 %v3894_v24, 16  ;;  %v4144_v29 = vshll.u32 %v3894_v24, 16  ;;  %3603 = vst [vmem:[#allocation3 + $0x350] sm:$0xf] %v3507_v34  ;;  %v6497_v27 = vpop.f32.mrf.mxu1 }
 0x1e9   : > { %3345 = vst [vmem:[#allocation3 + $0x34c] sm:$0xf] %v3165_v19  ;;  %v3759_v28 = vsel %vm11210_vm3, %v3757_v26, %v3758_v6  ;;  %v3760_v55 = vrot.slane %v3758_v6, 4  ;;  %v4151_v60 = vshrl.u32 %v3895_v61, 16  ;;  %v4154_v32 = vshll.u32 %v3895_v61, 16 }
 0x1ea   : > { %v2904_v38 = vld [vmem:[#allocation2 + $0x70] sm:$0xf]  ;;  %3857 = vst [vmem:[#allocation3 + $0x330] sm:$0xf] %v3759_v28  ;;  %v4143_v49 = vrot.slane %v4141_v62, 6  ;;  %v4146_v42 = vrot.slane %v4144_v29, 7  ;;  %v6328_v62 = vpop.f32.mrf.mxu0 }
 0x1eb   : > { %v3166_v59 = vrot.slane %v11770_v36, 4  ;;  %v3168_v20 = vshrl.u32 %v2903_v35, 16  ;;  %v3762_v24 = vsel %vm11210_vm3, %v3760_v55, %v3761_v9  ;;  %v4153_v41 = vrot.slane %v4151_v60, 6  ;;  %v3383_v45 = vld [vmem:[#allocation2 + $0x6c] sm:$0xf] }
 0x1ec   : > { %v4156_v13 = vrot.slane %v4154_v32, 7  ;;  %v3171_v63 = vshll.u32 %v2903_v35, 16  ;;  %3858 = vst [vmem:[#allocation3 + $0x354] sm:$0xf] %v3762_v24  ;;  %v4147_v26 = vor.u32 %v4146_v42, %v4143_v49  ;;  %v3178_v6 = vshrl.u32 %v2904_v38, 16 }
 0x1ed   : > { %v3170_v61 = vrot.slane %v3168_v20, 5  ;;  %v3181_v19 = vshll.u32 %v2904_v38, 16  ;;  %v11791_v34 = vld [vmem:[#allocation2 + $0x70] sm:$0xf]  ;;  %v3641_v27 = vld [vmem:[#allocation2 + $0x74] sm:$0xf]  ;;  %v11798_v55 = vadd.f32 %v6495_v30, %v11735_v31 }
 0x1ee   : > { %v9467_v36 = vld [vmem:[#allocation3 + $0x2e8] ss:$36 sps:$4 sm:$0xff]   ;;  %v11793_v48 = vor.u32 %v4156_v13, %v4153_v41  ;;  %v3173_v28 = vrot.slane %v3171_v63, 6  ;;  %v4148_v35 = vsel %vm11264_vm11, %v4139_v14, %v4147_v26  ;;  %v4149_v60 = vrot.slane %v4147_v26, 4  ;;  %v3896_v49 = vld [vmem:[#allocation2 + $0x74] sm:$0xf] }
 0x1ef   : > { %v9469_v29 = vld [vmem:[#allocation3 + $0x2ec] ss:$36 sps:$4 sm:$0xff]   ;;  %v3180_v32 = vrot.slane %v3178_v6, 5  ;;  %v3183_v38 = vrot.slane %v3181_v19, 6  ;;  %4337 = vst [vmem:[#allocation3 + $0x334] sm:$0xf] %v4148_v35 }
 0x1f0   : > { %6836 = vmatprep.mubr.bf16.mxu1 %v9469_v29  ;;  %v3174_v42 = vor.u32 %v3173_v28, %v3170_v61  ;;  %v3508_v20 = vrot.slane %v3506_v10, 4  ;;  %v3509_v24 = vrot.slane %v3383_v45, 6  ;;  %v3512_v41 = vrot.slane %v11791_v34, 6  ;;  %v3897_v13 = vld [vmem:[#allocation2 + $0x78] sm:$0xf] }
 0x1f1   : > { %6837 = vmatmul.mubr.bf16.gmra.mxu1 %v9467_v36  ;;  %v9470_v63 = vld [vmem:[#allocation3 + $0x328] ss:$36 sps:$4 sm:$0xff]   ;;  %v4158_v31 = vsel %vm11264_vm11, %v4149_v60, %v11793_v48  ;;  %v11806_v14 = vor.u32 %v3183_v38, %v3180_v32  ;;  %v3763_v30 = vrot.slane %v3761_v9, 4  ;;  %v3764_v6 = vrot.slane %v3641_v27, 6  ;;  %v2905_v29 = vld [vmem:[#allocation2 + $0x74] sm:$0xf] }
 0x1f2   : > { %v9472_v62 = vld [vmem:[#allocation3 + $0x32c] ss:$36 sps:$4 sm:$0xff]   ;;  %4338 = vst [vmem:[#allocation3 + $0x358] sm:$0xf] %v4158_v31  ;;  %v3175_v26 = vsel %vm11205_vm1, %v3166_v59, %v3174_v42  ;;  %v3176_v61 = vrot.slane %v3174_v42, 4  ;;  %v3510_v10 = vsel %vm11210_vm3, %v3508_v20, %v3509_v24  ;;  %v3511_v45 = vrot.slane %v3509_v24, 4 }
 0x1f3   : > { %6667 = vmatprep.mubr.bf16.mxu0 %v9472_v62  ;;  %3346 = vst [vmem:[#allocation3 + $0x370] sm:$0xf] %v3175_v26  ;;  %3604 = vst [vmem:[#allocation3 + $0x374] sm:$0xf] %v3510_v10  ;;  %v3767_v19 = vrot.slane %v11795_v0, 6  ;;  %v4159_v34 = vrot.slane %v11793_v48, 4  ;;  %v3765_v0 = vsel %vm11210_vm3, %v3763_v30, %v3764_v6  ;;  %v6500_v10 = vpop.f32.mrf.mxu1 }
 0x1f4   : > { %v4161_v36 = vshrl.u32 %v3896_v49, 16  ;;  %6668 = vmatmul.mubr.bf16.gmra.mxu0 %v9470_v63  ;;  %v3185_v9 = vsel %vm11205_vm1, %v3176_v61, %v11806_v14  ;;  %v3513_v59 = vsel %vm11210_vm3, %v3511_v45, %v3512_v41  ;;  %v4164_v28 = vshll.u32 %v3896_v49, 16  ;;  %v2906_v60 = vld [vmem:[#allocation2 + $0x78] sm:$0xf]  ;;  %3859 = vst [vmem:[#allocation3 + $0x378] sm:$0xf] %v3765_v0 }
 0x1f5   : > { %v4171_v35 = vshrl.u32 %v3897_v13, 16  ;;  %3347 = vst [vmem:[#allocation3 + $0x394] sm:$0xf] %v3185_v9  ;;  %3605 = vst [vmem:[#allocation3 + $0x398] sm:$0xf] %v3513_v59  ;;  %v3766_v27 = vrot.slane %v3764_v6, 4  ;;  %v6502_v0 = vpop.f32.mrf.mxu1 }
 0x1f6   : > { %v4163_v48 = vrot.slane %v4161_v36, 6  ;;  %v4174_v32 = vshll.u32 %v3897_v13, 16  ;;  %v4166_v38 = vrot.slane %v4164_v28, 7  ;;  %v3186_v20 = vrot.slane %v11806_v14, 4  ;;  %v3385_v63 = vld [vmem:[#allocation2 + $0x74] sm:$0xf] }
 0x1f7   : > { %v4173_v42 = vrot.slane %v4171_v35, 6  ;;  %v3188_v24 = vshrl.u32 %v2905_v29, 16  ;;  %v3768_v49 = vsel %vm11210_vm3, %v3766_v27, %v3767_v19  ;;  %v3191_v31 = vshll.u32 %v2905_v29, 16  ;;  %v11824_v61 = vld [vmem:[#allocation2 + $0x78] sm:$0xf]  ;;  %v11831_v29 = vpop.f32.mrf.mxu0 }
 0x1f8   : > { %v4176_v62 = vrot.slane %v4174_v32, 7  ;;  %v3198_v26 = vshrl.u32 %v2906_v60, 16  ;;  %3860 = vst [vmem:[#allocation3 + $0x39c] sm:$0xf] %v3768_v49  ;;  %v4167_v30 = vor.u32 %v4166_v38, %v4163_v48  ;;  %v3201_v13 = vshll.u32 %v2906_v60, 16 }
 0x1f9   : > { %v3190_v45 = vrot.slane %v3188_v24, 5  ;;  %v3514_v6 = vrot.slane %v3512_v41, 4  ;;  %v3643_v36 = vld [vmem:[#allocation2 + $0x7c] sm:$0xf]  ;;  %v9473_v9 = vld [vmem:[#allocation3 + $0x330] ss:$36 sps:$4 sm:$0xff]   ;;  %v11829_v35 = vadd.f32 %v6500_v10, %v11773_v51 }
 0x1fa   : > { %v9475_v59 = vld [vmem:[#allocation3 + $0x334] ss:$36 sps:$4 sm:$0xff]   ;;  %v11826_v14 = vor.u32 %v4176_v62, %v4173_v42  ;;  %v3193_v28 = vrot.slane %v3191_v31, 6  ;;  %v4168_v27 = vsel %vm11264_vm11, %v4159_v34, %v4167_v30  ;;  %v4169_v32 = vrot.slane %v4167_v30, 4  ;;  %v11835_v60 = vld [vmem:[#allocation2 + $0x80] sm:$0xf]  ;;  %v6503_v62 = vpop.f32.mrf.mxu1  ;;  %v6333_v31 = vpop.f32.mrf.mxu0 }
 0x1fb   : > { %13763 = vst [vmem:[#allocation37_spill] sm:$0xff] %v11829_v35  ;;  %v3200_v48 = vrot.slane %v3198_v26, 5  ;;  %v3203_v38 = vrot.slane %v3201_v13, 6  ;;  %6844 = vmatprep.mubr.bf16.mxu1 %v9475_v59  ;;  %4339 = vst [vmem:[#allocation3 + $0x37c] sm:$0xf] %v4168_v27  ;;  %v3515_v42 = vrot.slane %v3385_v63, 6  ;;  %v11844_v13 = vadd.f32 %v6503_v62, %v11787_v40 }
 0x1fc   : > { %v3194_v41 = vor.u32 %v3193_v28, %v3190_v45  ;;  %v3518_v24 = vrot.slane %v11824_v61, 6  ;;  %v3769_v49 = vrot.slane %v3767_v19, 4  ;;  %v3898_v51 = vld [vmem:[#allocation2 + $0x7c] sm:$0xf]  ;;  %6845 = vmatmul.mubr.bf16.gmra.mxu1 %v9473_v9  ;;  %v9477_v10 = vld [vmem:[#allocation3 + $0x370] ss:$36 sps:$4 sm:$0xff]   ;;  %v4178_v34 = vsel %vm11264_vm11, %v4169_v32, %v11826_v14  ;;  %v6505_v59 = vpop.f32.mrf.mxu1  ;;  %v11850_v28 = vpop.f32.mrf.mxu0 }
 0x1fd   : > { %v9479_v0 = vld [vmem:[#allocation3 + $0x374] ss:$36 sps:$4 sm:$0xff]   ;;  %v11841_v26 = vor.u32 %v3203_v38, %v3200_v48  ;;  %v3770_v30 = vrot.slane %v3643_v36, 6  ;;  %13764 = vst [vmem:[#allocation38_spill] sm:$0xff] %v11844_v13  ;;  %4340 = vst [vmem:[#allocation3 + $0x3a0] sm:$0xf] %v4178_v34  ;;  %v3516_v61 = vsel %vm11210_vm3, %v3514_v6, %v3515_v42 }
 0x1fe   : > { %v3195_v19 = vsel %vm11205_vm1, %v3186_v20, %v3194_v41  ;;  %v3196_v63 = vrot.slane %v3194_v41, 4  ;;  %v3517_v45 = vrot.slane %v3515_v42, 4  ;;  %v3899_v9 = vld [vmem:[#allocation2 + $0x80] sm:$0xf]  ;;  %6675 = vmatprep.mubr.bf16.mxu0 %v9479_v0  ;;  %3606 = vst [vmem:[#allocation3 + $0x3bc] sm:$0xf] %v3516_v61  ;;  %v6336_v62 = vpop.f32.mrf.mxu0 }
 0x1ff   : > { %3348 = vst [vmem:[#allocation3 + $0x3b8] sm:$0xf] %v3195_v19  ;;  %v3771_v40 = vsel %vm11210_vm3, %v3769_v49, %v3770_v30  ;;  %v3772_v36 = vrot.slane %v3770_v30, 4  ;;  %v3773_v27 = vrot.slane %v11835_v60, 6  ;;  %v4179_v20 = vrot.slane %v11826_v14, 4  ;;  %6676 = vmatmul.mubr.bf16.gmra.mxu0 %v9477_v10 }
 0x200   : > { %v2907_v32 = vld [vmem:[#allocation2 + $0x7c] sm:$0xf]  ;;  %v3205_v6 = vsel %vm11205_vm1, %v3196_v63, %v11841_v26  ;;  %v3519_v48 = vsel %vm11210_vm3, %v3517_v45, %v3518_v24  ;;  %3861 = vst [vmem:[#allocation3 + $0x3c0] sm:$0xf] %v3771_v40  ;;  %v4181_v38 = vshrl.u32 %v3898_v51, 16  ;;  %v4184_v41 = vshll.u32 %v3898_v51, 16 }
 0x201   : > { %v2908_v42 = vld [vmem:[#allocation2 + $0x80] sm:$0xf]  ;;  %3349 = vst [vmem:[#allocation3 + $0x3dc] sm:$0xf] %v3205_v6  ;;  %3607 = vst [vmem:[#allocation3 + $0x3e0] sm:$0xf] %v3519_v48  ;;  %v3774_v60 = vsel %vm11210_vm3, %v3772_v36, %v3773_v27 }
 0x202   : > { %v4191_v14 = vshrl.u32 %v3899_v9, 16  ;;  %v4194_v49 = vshll.u32 %v3899_v9, 16  ;;  %v3206_v31 = vrot.slane %v11841_v26, 4  ;;  %3862 = vst [vmem:[#allocation3 + $0x3e4] sm:$0xf] %v3774_v60  ;;  %v4183_v10 = vrot.slane %v4181_v38, 6 }
 0x203   : > { %v4186_v0 = vrot.slane %v4184_v41, 7  ;;  %v3208_v34 = vshrl.u32 %v2907_v32, 16  ;;  %v3211_v30 = vshll.u32 %v2907_v32, 16  ;;  %v3387_v19 = vld [vmem:[#allocation2 + $0x7c] sm:$0xf]  ;;  %v3218_v45 = vshrl.u32 %v2908_v42, 16 }
 0x204   : > { %v11864_v63 = vld [vmem:[#allocation2 + $0x80] sm:$0xf]  ;;  %v4193_v51 = vrot.slane %v4191_v14, 6  ;;  %v4196_v61 = vrot.slane %v4194_v49, 7  ;;  %v3221_v59 = vshll.u32 %v2908_v42, 16  ;;  %v3520_v36 = vrot.slane %v3518_v24, 4 }
 0x205   : > { %v4187_v40 = vor.u32 %v4186_v0, %v4183_v10  ;;  %v3210_v6 = vrot.slane %v3208_v34, 5  ;;  %v3213_v48 = vrot.slane %v3211_v30, 6  ;;  %v3645_v62 = vld [vmem:[#allocation2 + $0x84] sm:$0xf]  ;;  %v9480_v9 = vld [vmem:[#allocation3 + $0x378] ss:$36 sps:$4 sm:$0xff]  }
 0x206   : > { %v9482_v13 = vld [vmem:[#allocation3 + $0x37c] ss:$36 sps:$4 sm:$0xff]   ;;  %v11866_v26 = vor.u32 %v4196_v61, %v4193_v51  ;;  %v3220_v38 = vrot.slane %v3218_v45, 5  ;;  %v11868_v41 = vld [vmem:[#allocation2 + $0x88] sm:$0xf]  ;;  %v3223_v49 = vrot.slane %v3221_v59, 6 }
 0x207   : > { %v4188_v32 = vsel %vm11264_vm11, %v4179_v20, %v4187_v40  ;;  %v4189_v60 = vrot.slane %v4187_v40, 4  ;;  %v3214_v14 = vor.u32 %v3213_v48, %v3210_v6  ;;  %6852 = vmatprep.mubr.bf16.mxu1 %v9482_v13  ;;  %v3521_v42 = vrot.slane %v3387_v19, 6  ;;  %v3901_v34 = vld [vmem:[#allocation2 + $0x88] sm:$0xf]  ;;  %v2909_v40 = vld [vmem:[#allocation2 + $0x84] sm:$0xf]  ;;  %v6508_v6 = vpop.f32.mrf.mxu1 }
 0x208   : > { %4341 = vst [vmem:[#allocation3 + $0x3c4] sm:$0xf] %v4188_v32  ;;  %v3524_v24 = vrot.slane %v11864_v63, 6  ;;  %v3775_v10 = vrot.slane %v3773_v27, 4  ;;  %v3776_v0 = vrot.slane %v3645_v62, 6  ;;  %6853 = vmatmul.mubr.bf16.gmra.mxu1 %v9480_v9  ;;  %v11878_v59 = vor.u32 %v3223_v49, %v3220_v38 }
 0x209   : > { %v9483_v30 = vld [vmem:[#allocation3 + $0x3b8] ss:$36 sps:$4 sm:$0xff]   ;;  %v4198_v61 = vsel %vm11264_vm11, %v4189_v60, %v11866_v26  ;;  %v3215_v20 = vsel %vm11205_vm1, %v3206_v31, %v3214_v14  ;;  %v3216_v45 = vrot.slane %v3214_v14, 4  ;;  %v3522_v13 = vsel %vm11210_vm3, %v3520_v36, %v3521_v42  ;;  %v2910_v14 = vld [vmem:[#allocation2 + $0x88] sm:$0xf]  ;;  %v6510_v49 = vpop.f32.mrf.mxu1 }
 0x20a   : > { %v9485_v51 = vld [vmem:[#allocation3 + $0x3bc] ss:$36 sps:$4 sm:$0xff]   ;;  %4342 = vst [vmem:[#allocation3 + $0x3e8] sm:$0xf] %v4198_v61  ;;  %3350 = vst [vmem:[#allocation3 + $0x400] sm:$0xf] %v3215_v20  ;;  %v3777_v19 = vsel %vm11210_vm3, %v3775_v10, %v3776_v0 }
 0x20b   : > { %v3523_v27 = vrot.slane %v3521_v42, 4  ;;  %v3778_v63 = vrot.slane %v3776_v0, 4  ;;  %6683 = vmatprep.mubr.bf16.mxu0 %v9485_v51  ;;  %v3225_v31 = vsel %vm11205_vm1, %v3216_v45, %v11878_v59  ;;  %3608 = vst [vmem:[#allocation3 + $0x404] sm:$0xf] %v3522_v13  ;;  %v3779_v48 = vrot.slane %v11868_v41, 6  ;;  %v11891_v42 = vpop.f32.mrf.mxu0 }
 0x20c   : > { %3863 = vst [vmem:[#allocation3 + $0x408] sm:$0xf] %v3777_v19  ;;  %v4199_v62 = vrot.slane %v11866_v26, 4  ;;  %v4201_v9 = vshrl.u32 %v3900_v17, 16  ;;  %6684 = vmatmul.mubr.bf16.gmra.mxu0 %v9483_v30  ;;  %3351 = vst [vmem:[#allocation3 + $0x424] sm:$0xf] %v3225_v31 }
 0x20d   : > { %v3525_v36 = vsel %vm11210_vm3, %v3523_v27, %v3524_v24  ;;  %v4204_v38 = vshll.u32 %v3900_v17, 16  ;;  %v4211_v32 = vshrl.u32 %v3901_v34, 16  ;;  %v4214_v60 = vshll.u32 %v3901_v34, 16  ;;  %v3389_v30 = vld [vmem:[#allocation2 + $0x84] sm:$0xf]  ;;  %v6511_v34 = vpop.f32.mrf.mxu1  ;;  %v6341_v13 = vpop.f32.mrf.mxu0 }
 0x20e   : > { %3609 = vst [vmem:[#allocation3 + $0x428] sm:$0xf] %v3525_v36  ;;  %v3780_v41 = vsel %vm11210_vm3, %v3778_v63, %v3779_v48  ;;  %v4203_v10 = vrot.slane %v4201_v9, 6  ;;  %v3226_v26 = vrot.slane %v11878_v59, 4  ;;  %v3228_v0 = vshrl.u32 %v2909_v40, 16 }
 0x20f   : > { %3864 = vst [vmem:[#allocation3 + $0x42c] sm:$0xf] %v3780_v41  ;;  %v4206_v51 = vrot.slane %v4204_v38, 7  ;;  %v4213_v61 = vrot.slane %v4211_v32, 6  ;;  %v4216_v20 = vrot.slane %v4214_v60, 7  ;;  %v3231_v17 = vshll.u32 %v2909_v40, 16  ;;  %v6513_v38 = vpop.f32.mrf.mxu1  ;;  %v11902_v32 = vpop.f32.mrf.mxu0 }
 0x210   : > { %v11896_v45 = vld [vmem:[#allocation2 + $0x88] sm:$0xf]  ;;  %v3230_v27 = vrot.slane %v3228_v0, 5  ;;  %v3238_v19 = vshrl.u32 %v2910_v14, 16  ;;  %v3241_v31 = vshll.u32 %v2910_v14, 16  ;;  %v3526_v36 = vrot.slane %v3524_v24, 4 }
 0x211   : > { %v4207_v49 = vor.u32 %v4206_v51, %v4203_v10  ;;  %v11898_v63 = vor.u32 %v4216_v20, %v4213_v61  ;;  %v3233_v9 = vrot.slane %v3231_v17, 6  ;;  %v3527_v59 = vrot.slane %v3389_v30, 6  ;;  %v9486_v40 = vld [vmem:[#allocation3 + $0x3c0] ss:$36 sps:$4 sm:$0xff]   ;;  %v3902_v51 = vld [vmem:[#allocation2 + $0x8c] sm:$0xf]  ;;  %v6344_v61 = vpop.f32.mrf.mxu0 }
 0x212   : > { %v9488_v60 = vld [vmem:[#allocation3 + $0x3c4] ss:$36 sps:$4 sm:$0xff]   ;;  %v3240_v41 = vrot.slane %v3238_v19, 5  ;;  %v11905_v13 = vadd.f32 %v6508_v6, %v11831_v29  ;;  %v11908_v14 = vadd.f32 %v6511_v34, %v11850_v28  ;;  %v3243_v30 = vrot.slane %v3241_v31, 6  ;;  %v3903_v19 = vld [vmem:[#allocation2 + $0x90] sm:$0xf] }
 0x213   : > { %v4208_v24 = vsel %vm11264_vm11, %v4199_v62, %v4207_v49  ;;  %v4209_v10 = vrot.slane %v4207_v49, 4  ;;  %v3234_v0 = vor.u32 %v3233_v9, %v3230_v27  ;;  %6860 = vmatprep.mubr.bf16.mxu1 %v9488_v60  ;;  %v3528_v20 = vsel %vm11210_vm3, %v3526_v36, %v3527_v59  ;;  %v9490_v28 = vld [vmem:[#allocation3 + $0x400] ss:$36 sps:$4 sm:$0xff]   ;;  %v11942_v35 = vld [vmem:[#allocation2 + $0x98] sm:$0xf] }
 0x214   : > { %13765 = vst [vmem:[#allocation39_spill] sm:$0xff] %v11905_v13  ;;  %13766 = vst [vmem:[#allocation40_spill] sm:$0xff] %v11908_v14  ;;  %v3529_v17 = vrot.slane %v3527_v59, 4  ;;  %v3530_v29 = vrot.slane %v11896_v45, 6  ;;  %v3781_v6 = vrot.slane %v3779_v48, 4  ;;  %6861 = vmatmul.mubr.bf16.gmra.mxu1 %v9486_v40  ;;  %v11920_v49 = vor.u32 %v3243_v30, %v3240_v41 }
 0x215   : > { %4343 = vst [vmem:[#allocation3 + $0x40c] sm:$0xf] %v4208_v24  ;;  %v9492_v34 = vld [vmem:[#allocation3 + $0x404] ss:$36 sps:$4 sm:$0xff]   ;;  %v4218_v62 = vsel %vm11264_vm11, %v4209_v10, %v11898_v63  ;;  %v3235_v27 = vsel %vm11205_vm1, %v3226_v26, %v3234_v0  ;;  %v3236_v31 = vrot.slane %v3234_v0, 4  ;;  %v3782_v45 = vrot.slane %v3647_v47, 6  ;;  %v6516_v24 = vpop.f32.mrf.mxu1 }
 0x216   : > { %3610 = vst [vmem:[#allocation3 + $0x44c] sm:$0xf] %v3528_v20  ;;  %4344 = vst [vmem:[#allocation3 + $0x430] sm:$0xf] %v4218_v62  ;;  %v3531_v48 = vsel %vm11210_vm3, %v3529_v17, %v3530_v29  ;;  %v3785_v36 = vrot.slane %v11900_v8, 6  ;;  %v4219_v9 = vrot.slane %v11898_v63, 4  ;;  %6691 = vmatprep.mubr.bf16.mxu0 %v9492_v34 }
 0x217   : > { %3352 = vst [vmem:[#allocation3 + $0x448] sm:$0xf] %v3235_v27  ;;  %v2911_v59 = vld [vmem:[#allocation2 + $0x8c] sm:$0xf]  ;;  %v3245_v26 = vsel %vm11205_vm1, %v3236_v31, %v11920_v49  ;;  %3611 = vst [vmem:[#allocation3 + $0x470] sm:$0xf] %v3531_v48  ;;  %6692 = vmatmul.mubr.bf16.gmra.mxu0 %v9490_v28  ;;  %v3783_v47 = vsel %vm11210_vm3, %v3781_v6, %v3782_v45  ;;  %v6518_v62 = vpop.f32.mrf.mxu1 }
 0x218   : > { %v4221_v38 = vshrl.u32 %v3902_v51, 16  ;;  %v4224_v40 = vshll.u32 %v3902_v51, 16  ;;  %v4231_v60 = vshrl.u32 %v3903_v19, 16  ;;  %v2912_v41 = vld [vmem:[#allocation2 + $0x90] sm:$0xf]  ;;  %v3784_v10 = vrot.slane %v3782_v45, 4  ;;  %v11932_v51 = vpop.f32.mrf.mxu0 }
 0x219   : > { %3353 = vst [vmem:[#allocation3 + $0x46c] sm:$0xf] %v3245_v26  ;;  %v4234_v0 = vshll.u32 %v3903_v19, 16  ;;  %v3246_v63 = vrot.slane %v11920_v49, 4  ;;  %3865 = vst [vmem:[#allocation3 + $0x450] sm:$0xf] %v3783_v47 }
 0x21a   : > { %v4223_v30 = vrot.slane %v4221_v38, 6  ;;  %v4226_v61 = vrot.slane %v4224_v40, 7  ;;  %v4233_v20 = vrot.slane %v4231_v60, 6  ;;  %v3248_v17 = vshrl.u32 %v2911_v59, 16  ;;  %v3391_v34 = vld [vmem:[#allocation2 + $0x8c] sm:$0xf]  ;;  %v6519_v38 = vpop.f32.mrf.mxu1  ;;  %v6349_v40 = vpop.f32.mrf.mxu0 }
 0x21b   : > { %v3786_v28 = vsel %vm11210_vm3, %v3784_v10, %v3785_v36  ;;  %v4236_v27 = vrot.slane %v4234_v0, 7  ;;  %v3251_v6 = vshll.u32 %v2911_v59, 16  ;;  %v3258_v31 = vshrl.u32 %v2912_v41, 16  ;;  %v11938_v45 = vld [vmem:[#allocation2 + $0x90] sm:$0xf] }
 0x21c   : > { %3866 = vst [vmem:[#allocation3 + $0x474] sm:$0xf] %v3786_v28  ;;  %v4227_v19 = vor.u32 %v4226_v61, %v4223_v30  ;;  %v3250_v49 = vrot.slane %v3248_v17, 5  ;;  %v3261_v48 = vshll.u32 %v2912_v41, 16  ;;  %v3532_v26 = vrot.slane %v3530_v29, 4  ;;  %v11952_v17 = vpop.f32.mrf.mxu0 }
 0x21d   : > { %v11940_v60 = vor.u32 %v4236_v27, %v4233_v20  ;;  %v3253_v47 = vrot.slane %v3251_v6, 6  ;;  %v3260_v62 = vrot.slane %v3258_v31, 5  ;;  %v3533_v14 = vrot.slane %v3391_v34, 6  ;;  %v3649_v13 = vld [vmem:[#allocation2 + $0x94] sm:$0xf]  ;;  %v6521_v20 = vpop.f32.mrf.mxu1 }
 0x21e   : > { %v9493_v10 = vld [vmem:[#allocation3 + $0x408] ss:$36 sps:$4 sm:$0xff]   ;;  %v4228_v0 = vsel %vm11264_vm11, %v4219_v9, %v4227_v19  ;;  %v4229_v30 = vrot.slane %v4227_v19, 4  ;;  %v3904_v41 = vld [vmem:[#allocation2 + $0x94] sm:$0xf]  ;;  %v11947_v61 = vadd.f32 %v6516_v24, %v11891_v42  ;;  %v11950_v29 = vadd.f32 %v6519_v38, %v11902_v32  ;;  %v6352_v24 = vpop.f32.mrf.mxu0 }
 0x21f   : > { %v9495_v59 = vld [vmem:[#allocation3 + $0x40c] ss:$36 sps:$4 sm:$0xff]   ;;  %4345 = vst [vmem:[#allocation3 + $0x454] sm:$0xf] %v4228_v0  ;;  %v3254_v34 = vor.u32 %v3253_v47, %v3250_v49  ;;  %v3263_v28 = vrot.slane %v3261_v48, 6  ;;  %v3534_v27 = vsel %vm11210_vm3, %v3532_v26, %v3533_v14  ;;  %v3535_v6 = vrot.slane %v3533_v14, 4 }
 0x220   : > { %v3905_v31 = vld [vmem:[#allocation2 + $0x98] sm:$0xf]  ;;  %6868 = vmatprep.mubr.bf16.mxu1 %v9495_v59  ;;  %v9496_v9 = vld [vmem:[#allocation3 + $0x448] ss:$36 sps:$4 sm:$0xff]   ;;  %v4238_v42 = vsel %vm11264_vm11, %v4229_v30, %v11940_v60  ;;  %v3536_v32 = vrot.slane %v11938_v45, 6  ;;  %v3787_v14 = vrot.slane %v3785_v36, 4 }
 0x221   : > { %v9498_v19 = vld [vmem:[#allocation3 + $0x44c] ss:$36 sps:$4 sm:$0xff]   ;;  %3612 = vst [vmem:[#allocation3 + $0x494] sm:$0xf] %v3534_v27  ;;  %6869 = vmatmul.mubr.bf16.gmra.mxu1 %v9493_v10  ;;  %4346 = vst [vmem:[#allocation3 + $0x478] sm:$0xf] %v4238_v42  ;;  %v3255_v49 = vsel %vm11205_vm1, %v3246_v63, %v3254_v34  ;;  %v11962_v26 = vor.u32 %v3263_v28, %v3260_v62 }
 0x222   : > { %v3256_v48 = vrot.slane %v3254_v34, 4  ;;  %6699 = vmatprep.mubr.bf16.mxu0 %v9498_v19  ;;  %3354 = vst [vmem:[#allocation3 + $0x490] sm:$0xf] %v3255_v49  ;;  %v3537_v38 = vsel %vm11210_vm3, %v3535_v6, %v3536_v32  ;;  %v3788_v40 = vrot.slane %v3649_v13, 6  ;;  %v3791_v45 = vrot.slane %v11942_v35, 6  ;;  %v6524_v6 = vpop.f32.mrf.mxu1 }
 0x223   : > { %v4239_v47 = vrot.slane %v11940_v60, 4  ;;  %v2913_v10 = vld [vmem:[#allocation2 + $0x94] sm:$0xf]  ;;  %6700 = vmatmul.mubr.bf16.gmra.mxu0 %v9496_v9  ;;  %3613 = vst [vmem:[#allocation3 + $0x4b8] sm:$0xf] %v3537_v38  ;;  %v4241_v62 = vshrl.u32 %v3904_v41, 16 }
 0x224   : > { %v3265_v63 = vsel %vm11205_vm1, %v3256_v48, %v11962_v26  ;;  %v4244_v8 = vshll.u32 %v3904_v41, 16  ;;  %v4251_v36 = vshrl.u32 %v3905_v31, 16  ;;  %v2914_v59 = vld [vmem:[#allocation2 + $0x98] sm:$0x3]  ;;  %v3789_v0 = vsel %vm11210_vm3, %v3787_v14, %v3788_v40  ;;  %v3393_v27 = vld [vmem:[#allocation2 + $0x94] sm:$0xf]  ;;  %v6526_v38 = vpop.f32.mrf.mxu1 }
 0x225   : > { %3355 = vst [vmem:[#allocation3 + $0x4b4] sm:$0xf] %v3265_v63  ;;  %v3790_v13 = vrot.slane %v3788_v40, 4  ;;  %v4254_v30 = vshll.u32 %v3905_v31, 16  ;;  %v3266_v35 = vrot.slane %v11962_v26, 4  ;;  %v4243_v60 = vrot.slane %v4241_v62, 6 }
 0x226   : > { %3867 = vst [vmem:[#allocation3 + $0x498] sm:$0xf] %v3789_v0  ;;  %v4246_v20 = vrot.slane %v4244_v8, 7  ;;  %v4253_v34 = vrot.slane %v4251_v36, 6  ;;  %v3268_v28 = vshrl.u32 %v2913_v10, 16  ;;  %v3271_v19 = vshll.u32 %v2913_v10, 16 }
 0x227   : > { %v3792_v41 = vsel %vm11210_vm3, %v3790_v13, %v3791_v45  ;;  %v4256_v9 = vrot.slane %v4254_v30, 7  ;;  %v3278_v42 = vshrl.u32 %v2914_v59, 16  ;;  %v3394_v24 = vld [vmem:[#allocation2 + $0x98] sm:$0x3]  ;;  %v3281_v31 = vshll.u32 %v2914_v59, 16  ;;  %v11983_v13 = vpop.f32.mrf.mxu0 }
 0x228   : > { %3868 = vst [vmem:[#allocation3 + $0x4bc] sm:$0xf] %v3792_v41  ;;  %v4247_v49 = vor.u32 %v4246_v20, %v4243_v60  ;;  %v3270_v48 = vrot.slane %v3268_v28, 5  ;;  %v3538_v14 = vrot.slane %v3536_v32, 4  ;;  %v3651_v26 = vld [vmem:[#allocation2 + $0x9c] sm:$0xf]  ;;  %v11981_v0 = vadd.f32 %v6524_v6, %v11932_v51  ;;  %v6527_v20 = vpop.f32.mrf.mxu1 }
 0x229   : > { %v9499_v40 = vld [vmem:[#allocation3 + $0x450] ss:$36 sps:$4 sm:$0xff]   ;;  %v11978_v62 = vor.u32 %v4256_v9, %v4253_v34  ;;  %v3273_v8 = vrot.slane %v3271_v19, 6  ;;  %v3652_v36 = vld [vmem:[#allocation2 + $0xa0] sm:$0x3]  ;;  %v3280_v60 = vrot.slane %v3278_v42, 5  ;;  %v6357_v38 = vpop.f32.mrf.mxu0 }
 0x22a   : > { %v9501_v63 = vld [vmem:[#allocation3 + $0x454] ss:$36 sps:$4 sm:$0xff]   ;;  %13767 = vst [vmem:[#allocation41_spill] sm:$0xff] %v11981_v0  ;;  %v4248_v10 = vsel %vm11264_vm11, %v4239_v47, %v4247_v49  ;;  %v4249_v30 = vrot.slane %v4247_v49, 4  ;;  %v3283_v59 = vrot.slane %v3281_v31, 6  ;;  %v3539_v34 = vrot.slane %v3393_v27, 6 }
 0x22b   : > { %v3906_v32 = vld [vmem:[#allocation2 + $0x9c] sm:$0xf]  ;;  %6876 = vmatprep.mubr.bf16.mxu1 %v9501_v63  ;;  %4347 = vst [vmem:[#allocation3 + $0x49c] sm:$0xf] %v4248_v10  ;;  %v3274_v28 = vor.u32 %v3273_v8, %v3270_v48  ;;  %v3542_v41 = vrot.slane %v3394_v24, 6  ;;  %v3793_v9 = vrot.slane %v3791_v45, 4  ;;  %v11991_v31 = vadd.f32 %v6527_v20, %v11952_v17  ;;  %v6529_v63 = vpop.f32.mrf.mxu1  ;;  %v11997_v10 = vpop.f32.mrf.mxu0 }
 0x22c   : > { %v3907_v19 = vld [vmem:[#allocation2 + $0xa0] sm:$0x7]  ;;  %6877 = vmatmul.mubr.bf16.gmra.mxu1 %v9499_v40  ;;  %v9503_v51 = vld [vmem:[#allocation3 + $0x490] ss:$36 sps:$4 sm:$0xff]   ;;  %v4258_v47 = vsel %vm11264_vm11, %v4249_v30, %v11978_v62  ;;  %v3284_v49 = vor.u32 %v3283_v59, %v3280_v60  ;;  %v3794_v42 = vrot.slane %v3651_v26, 6  ;;  %v3540_v24 = vsel %vm11210_vm3, %v3538_v14, %v3539_v34 }
 0x22d   : > { %v9505_v6 = vld [vmem:[#allocation3 + $0x494] ss:$36 sps:$4 sm:$0xff]   ;;  %13768 = vst [vmem:[#allocation42_spill] sm:$0xff] %v11991_v31  ;;  %4348 = vst [vmem:[#allocation3 + $0x4c0] sm:$0xf] %v4258_v47  ;;  %v3275_v27 = vsel %vm11205_vm1, %v3266_v35, %v3274_v28  ;;  %v3276_v45 = vrot.slane %v3274_v28, 4 }
 0x22e   : > { %v3541_v48 = vrot.slane %v3539_v34, 4  ;;  %v4351_v40 = vld [vmem:[#allocation2 + $0x10] sm:$0x8]  ;;  %v4352_v8 = vld [vmem:[#allocation2 + $0x14] sm:$0xf]  ;;  %6707 = vmatprep.mubr.bf16.mxu0 %v9505_v6  ;;  %v3795_v17 = vsel %vm11210_vm3, %v3793_v9, %v3794_v42  ;;  %v3796_v26 = vrot.slane %v3794_v42, 4  ;;  %v6360_v6 = vpop.f32.mrf.mxu0 }
 0x22f   : > { %3356 = vst [vmem:[#allocation3 + $0x4d8] sm:$0xf] %v3275_v27  ;;  %3614 = vst [vmem:[#allocation3 + $0x4dc] sm:$0xf] %v3540_v24  ;;  %v3797_v30 = vrot.slane %v3652_v36, 6  ;;  %v4259_v60 = vrot.slane %v11978_v62, 4  ;;  %6708 = vmatmul.mubr.bf16.gmra.mxu0 %v9503_v51  ;;  %v3285_v14 = vsel %vm11205_vm1, %v3276_v45, %v3284_v49 }
 0x230   : > { %v4353_v35 = vld [vmem:[#allocation2 + $0x18] sm:$0xf]  ;;  %v3543_v59 = vsel %vm11210_vm3, %v3541_v48, %v3542_v41  ;;  %3869 = vst [vmem:[#allocation3 + $0x4e0] sm:$0xf] %v3795_v17  ;;  %v4261_v20 = vshrl.u32 %v3906_v32, 16  ;;  %v4264_v28 = vshll.u32 %v3906_v32, 16 }
 0x231   : > { %v4354_v34 = vld [vmem:[#allocation2 + $0x1c] sm:$0xf]  ;;  %v12006_v38 = vld [vmem:[#allocation2 + $0x60] sm:$0xf]  ;;  %3357 = vst [vmem:[#allocation3 + $0x4fc] sm:$0xf] %v3285_v14  ;;  %v3798_v62 = vsel %vm11210_vm3, %v3796_v26, %v3797_v30 }
 0x232   : > { %3615 = vst [vmem:[#allocation3 + $0x500] sm:$0xf] %v3543_v59  ;;  %v4271_v36 = vshrl.u32 %v3907_v19, 16  ;;  %v4274_v9 = vshll.u32 %v3907_v19, 16  ;;  %vm13610_vm14 = vcmask 1040384   ;;  %v4263_v51 = vrot.slane %v4261_v20, 6 }
 0x233   : > { %3870 = vst [vmem:[#allocation3 + $0x504] sm:$0xf] %v3798_v62  ;;  %v4266_v47 = vrot.slane %v4264_v28, 7  ;;  %v8327_v41 = vrot.slane %v4351_v40, 11  ;;  %v4373_v49 = vld [vmem:[#allocation2 + $0x68] sm:$0xf]  ;;  %vm12011_vm13 = vmor %vm13610_vm14, %vm4426_vm12 }
 0x234   : > { %v4273_v32 = vrot.slane %v4271_v36, 6  ;;  %v4276_v42 = vrot.slane %v4274_v9, 7  ;;  %v4430_v27 = vrot.slane %v4352_v8, 7  ;;  %v4433_v3 = vrot.slane %v4353_v35, 7  ;;  %v4374_v45 = vld [vmem:[#allocation2 + $0x6c] sm:$0xf] }
 0x235   : > { %v4267_v24 = vor.u32 %v4266_v47, %v4263_v51  ;;  %v4436_v19 = vrot.slane %v4354_v34, 7  ;;  %v4487_v48 = vrot.slane %v12006_v38, 7  ;;  %v4490_v17 = vrot.slane %v4372_v5, 7  ;;  %v4355_v26 = vld [vmem:[#allocation2 + $0x20] sm:$0xf] }
 0x236   : > { %v9506_v30 = vld [vmem:[#allocation3 + $0x498] ss:$36 sps:$4 sm:$0xff]   ;;  %v4277_v40 = vor.u32 %v4276_v42, %v4273_v32  ;;  %v4431_v59 = vsel %vm12011_vm13, %v8327_v41, %v4430_v27  ;;  %v4432_v20 = vrot.slane %v4430_v27, 4  ;;  %v4375_v28 = vld [vmem:[#allocation2 + $0x70] sm:$0xf]  ;;  %v4435_v62 = vrot.slane %v4433_v3, 4 }
 0x237   : > { %v9508_v14 = vld [vmem:[#allocation3 + $0x49c] ss:$36 sps:$4 sm:$0xff]   ;;  %v4268_v8 = vsel %vm11264_vm11, %v4259_v60, %v4267_v24  ;;  %v4269_v35 = vrot.slane %v4267_v24, 4  ;;  %v4438_v36 = vrot.slane %v4436_v19, 4  ;;  %4573 = vst [vmem:[#allocation3 + $0x20] sm:$0xf] %v4431_v59 }
 0x238   : > { %v4356_v6 = vld [vmem:[#allocation2 + $0x24] sm:$0xf]  ;;  %v4357_v34 = vld [vmem:[#allocation2 + $0x28] sm:$0xf]  ;;  %6884 = vmatprep.mubr.bf16.mxu1 %v9508_v14  ;;  %4349 = vst [vmem:[#allocation3 + $0x4e4] sm:$0xf] %v4268_v8  ;;  %v4434_v9 = vsel %vm12011_vm13, %v4432_v20, %v4433_v3  ;;  %v4437_v27 = vsel %vm12011_vm13, %v4435_v62, %v4436_v19 }
 0x239   : > { %v4489_v5 = vrot.slane %v4487_v48, 4  ;;  %v4492_v51 = vrot.slane %v4490_v17, 4  ;;  %v4493_v47 = vrot.slane %v4373_v49, 7  ;;  %v4376_v41 = vld [vmem:[#allocation2 + $0x74] sm:$0xf]  ;;  %6885 = vmatmul.mubr.bf16.gmra.mxu1 %v9506_v30  ;;  %v4278_v60 = vsel %vm11264_vm11, %v4269_v35, %v4277_v40 }
 0x23a   : > { %v9509_v32 = vld [vmem:[#allocation3 + $0x4d8] ss:$36 sps:$4 sm:$0xff]   ;;  %4574 = vst [vmem:[#allocation3 + $0x44] sm:$0xf] %v4434_v9  ;;  %v4496_v24 = vrot.slane %v4374_v45, 7  ;;  %v4439_v30 = vrot.slane %v4355_v26, 7 }
 0x23b   : > { %v9511_v42 = vld [vmem:[#allocation3 + $0x4dc] ss:$36 sps:$4 sm:$0xff]   ;;  %4350 = vst [vmem:[#allocation3 + $0x508] sm:$0xf] %v4278_v60  ;;  %4575 = vst [vmem:[#allocation3 + $0x68] sm:$0xf] %v4437_v27  ;;  %v4491_v3 = vsel %vm12011_vm13, %v4489_v5, %v4490_v17  ;;  %v4494_v49 = vsel %vm12011_vm13, %v4492_v51, %v4493_v47  ;;  %v6532_v51 = vpop.f32.mrf.mxu1 }
 0x23c   : > { %v4495_v14 = vrot.slane %v4493_v47, 4  ;;  %v4377_v59 = vld [vmem:[#allocation2 + $0x78] sm:$0xf]  ;;  %6715 = vmatprep.mubr.bf16.mxu0 %v9511_v42  ;;  %v4498_v20 = vrot.slane %v4496_v24, 4  ;;  %4593 = vst [vmem:[#allocation3 + $0x2f0] sm:$0xf] %v4491_v3  ;;  %v4440_v17 = vsel %vm12011_vm13, %v4438_v36, %v4439_v30 }
 0x23d   : > { %4594 = vst [vmem:[#allocation3 + $0x314] sm:$0xf] %v4494_v49  ;;  %v4499_v52 = vrot.slane %v4375_v28, 7  ;;  %v4442_v40 = vrot.slane %v4356_v6, 7  ;;  %v4445_v19 = vrot.slane %v4357_v34, 7  ;;  %6716 = vmatmul.mubr.bf16.gmra.mxu0 %v9509_v32  ;;  %v4441_v35 = vrot.slane %v4439_v30, 4  ;;  %v6534_v30 = vpop.f32.mrf.mxu1 }
 0x23e   : > { %v4358_v8 = vld [vmem:[#allocation2 + $0x2c] sm:$0xf]  ;;  %v4497_v45 = vsel %vm12011_vm13, %v4495_v14, %v4496_v24  ;;  %v4502_v62 = vrot.slane %v4376_v41, 7  ;;  %v4359_v9 = vld [vmem:[#allocation2 + $0x30] sm:$0xf]  ;;  %v4505_v42 = vrot.slane %v4377_v59, 7 }
 0x23f   : > { %v4378_v26 = vld [vmem:[#allocation2 + $0x7c] sm:$0xf]  ;;  %4595 = vst [vmem:[#allocation3 + $0x338] sm:$0xf] %v4497_v45  ;;  %4576 = vst [vmem:[#allocation3 + $0x8c] sm:$0xf] %v4440_v17  ;;  %v4500_v5 = vsel %vm12011_vm13, %v4498_v20, %v4499_v52  ;;  %v4443_v47 = vsel %vm12011_vm13, %v4441_v35, %v4442_v40  ;;  %v12044_v20 = vpop.f32.mrf.mxu0 }
 0x240   : > { %v4444_v28 = vrot.slane %v4442_v40, 4  ;;  %v4447_v6 = vrot.slane %v4445_v19, 4  ;;  %v4501_v34 = vrot.slane %v4499_v52, 4  ;;  %4596 = vst [vmem:[#allocation3 + $0x35c] sm:$0xf] %v4500_v5  ;;  %v4504_v32 = vrot.slane %v4502_v62, 4 }
 0x241   : > { %v4448_v36 = vrot.slane %v4358_v8, 7  ;;  %v4379_v60 = vld [vmem:[#allocation2 + $0x80] sm:$0xf]  ;;  %v4360_v41 = vld [vmem:[#allocation2 + $0x34] sm:$0xf]  ;;  %v4451_v3 = vrot.slane %v4359_v9, 7  ;;  %v12051_v5 = vadd.f32 %v6532_v51, %v11983_v13 }
 0x242   : > { %v4446_v27 = vsel %vm12011_vm13, %v4444_v28, %v4445_v19  ;;  %4577 = vst [vmem:[#allocation3 + $0xb0] sm:$0xf] %v4443_v47  ;;  %v4503_v24 = vsel %vm12011_vm13, %v4501_v34, %v4502_v62  ;;  %v4508_v49 = vrot.slane %v4378_v26, 7  ;;  %v4361_v14 = vld [vmem:[#allocation2 + $0x38] sm:$0xf]  ;;  %v4506_v59 = vsel %vm12011_vm13, %v4504_v32, %v4505_v42  ;;  %v6535_v28 = vpop.f32.mrf.mxu1  ;;  %v6365_v34 = vpop.f32.mrf.mxu0 }
 0x243   : > { %v9515_v52 = vld [vmem:[#allocation3 + $0x20] ss:$36 sps:$4 sm:$0xff]   ;;  %4578 = vst [vmem:[#allocation3 + $0xd4] sm:$0xf] %v4446_v27  ;;  %v4507_v40 = vrot.slane %v4505_v42, 4  ;;  %v4449_v19 = vsel %vm12011_vm13, %v4447_v6, %v4448_v36  ;;  %v4450_v8 = vrot.slane %v4448_v36, 4  ;;  %v12058_v42 = vadd.f32 %v6535_v28, %v11997_v10 }
 0x244   : > { %4597 = vst [vmem:[#allocation3 + $0x380] sm:$0xf] %v4503_v24  ;;  %v9512_v45 = vld [vmem:[#allocation3 + $0x4e0] ss:$36 sps:$4 sm:$0xff]   ;;  %4598 = vst [vmem:[#allocation3 + $0x3a4] sm:$0xf] %v4506_v59  ;;  %9026 = vmatprep.mubr.bf16.mxu0 %v9515_v52  ;;  %v6537_v24 = vpop.f32.mrf.mxu1  ;;  %v12060_v30 = vpop.f32.mrf.mxu0 }
 0x245   : > { %v9514_v17 = vld [vmem:[#allocation3 + $0x4e4] ss:$36 sps:$4 sm:$0xff]   ;;  %4579 = vst [vmem:[#allocation3 + $0xf8] sm:$0xf] %v4449_v19  ;;  %v4510_v35 = vrot.slane %v4508_v49, 4  ;;  %13771 = vst [vmem:[#allocation43_spill] sm:$0xff] %v12051_v5  ;;  %v4452_v32 = vsel %vm12011_vm13, %v4450_v8, %v4451_v3  ;;  %v4509_v6 = vsel %vm12011_vm13, %v4507_v40, %v4508_v49 }
 0x246   : > { %v4380_v62 = vld [vmem:[#allocation2 + $0x84] sm:$0xf]  ;;  %v4381_v9 = vld [vmem:[#allocation2 + $0x88] sm:$0xf]  ;;  %v4362_v26 = vld [vmem:[#allocation2 + $0x3c] sm:$0xf]  ;;  %6892 = vmatprep.mubr.bf16.mxu1 %v9514_v17 }
 0x247   : > { %v9516_v47 = vld [vmem:[#allocation3 + $0x2f0] ss:$36 sps:$4 sm:$0xff]   ;;  %13772 = vst [vmem:[#allocation44_spill] sm:$0xff] %v12058_v42  ;;  %4580 = vst [vmem:[#allocation3 + $0x11c] sm:$0xf] %v4452_v32  ;;  %v4511_v36 = vrot.slane %v4379_v60, 7  ;;  %6893 = vmatmul.mubr.bf16.gmra.mxu1 %v9512_v45  ;;  %v6368_v60 = vpop.f32.mrf.mxu0 }
 0x248   : > { %4599 = vst [vmem:[#allocation3 + $0x3c8] sm:$0xf] %v4509_v6  ;;  %v4453_v27 = vrot.slane %v4451_v3, 4  ;;  %v4454_v13 = vrot.slane %v4360_v41, 7  ;;  %v4457_v51 = vrot.slane %v4361_v14, 7  ;;  %9046 = vmatprep.mubr.bf16.mxu1 %v9516_v47  ;;  %v4514_v3 = vrot.slane %v4380_v62, 7 }
 0x249   : > { %v9517_v52 = vld [vmem:[#allocation3 + $0x68] ss:$36 sps:$4 sm:$0xff]   ;;  %v4512_v59 = vsel %vm12011_vm13, %v4510_v35, %v4511_v36  ;;  %v4363_v19 = vld [vmem:[#allocation2 + $0x40] sm:$0xf]  ;;  %v4513_v41 = vrot.slane %v4511_v36, 4  ;;  %v4517_v14 = vrot.slane %v4381_v9, 7  ;;  %v6581_v6 = vpop.f32.mrf.mxu0 }
 0x24a   : > { %v4455_v10 = vsel %vm12011_vm13, %v4453_v27, %v4454_v13  ;;  %v4456_v49 = vrot.slane %v4454_v13, 4  ;;  %v4459_v40 = vrot.slane %v4457_v51, 4  ;;  %9027 = vmatmul.mubr.bf16.vlgmr.msra.gmra.mxu0 %v9517_v52  ;;  %4600 = vst [vmem:[#allocation3 + $0x3ec] sm:$0xf] %v4512_v59  ;;  %v4460_v8 = vrot.slane %v4362_v26, 7 }
 0x24b   : > { %4581 = vst [vmem:[#allocation3 + $0x140] sm:$0xf] %v4455_v10  ;;  %v4382_v45 = vld [vmem:[#allocation2 + $0x8c] sm:$0xf]  ;;  %v4383_v17 = vld [vmem:[#allocation2 + $0x90] sm:$0xf]  ;;  %v4515_v13 = vsel %vm12011_vm13, %v4513_v41, %v4514_v3  ;;  %v12073_v9 = vadd.f32 %v6581_v6, %v11107_v50  ;;  %v6583_v59 = vpop.f32.mrf.mxu0 }
 0x24c   : > { %v9519_v28 = vld [vmem:[#allocation3 + $0xb0] ss:$36 sps:$4 sm:$0xff]   ;;  %v4458_v35 = vsel %vm12011_vm13, %v4456_v49, %v4457_v51  ;;  %v4364_v34 = vld [vmem:[#allocation2 + $0x44] sm:$0xf]  ;;  %v4365_v47 = vld [vmem:[#allocation2 + $0x48] sm:$0xf]  ;;  %v4461_v62 = vsel %vm12011_vm13, %v4459_v40, %v4460_v8 }
 0x24d   : > { %v4384_v32 = vld [vmem:[#allocation2 + $0x94] sm:$0xf]  ;;  %v9518_v27 = vld [vmem:[#allocation3 + $0x338] ss:$36 sps:$4 sm:$0xff]   ;;  %4582 = vst [vmem:[#allocation3 + $0x164] sm:$0xf] %v4458_v35  ;;  %9030 = vmatprep.mubr.bf16.mxu0 %v9519_v28  ;;  %v6584_v28 = vpop.f32.mrf.mxu0 }
 0x24e   : > { %v9520_v26 = vld [vmem:[#allocation3 + $0x380] ss:$36 sps:$4 sm:$0xff]   ;;  %v4516_v36 = vrot.slane %v4514_v3, 4  ;;  %v4519_v24 = vrot.slane %v4517_v14, 4  ;;  %4601 = vst [vmem:[#allocation3 + $0x410] sm:$0xf] %v4515_v13 }
 0x24f   : > { %v4462_v51 = vrot.slane %v4460_v8, 4  ;;  %v4463_v52 = vrot.slane %v4363_v19, 7  ;;  %4583 = vst [vmem:[#allocation3 + $0x188] sm:$0xf] %v4461_v62  ;;  %v9521_v10 = vld [vmem:[#allocation3 + $0xf8] ss:$36 sps:$4 sm:$0xff]   ;;  %9047 = vmatmul.mubr.bf16.vlgmr.msra.gmra.mxu1 %v9518_v27 }
 0x250   : > { %v4518_v49 = vsel %vm12011_vm13, %v4516_v36, %v4517_v14  ;;  %v4520_v40 = vrot.slane %v4382_v45, 7  ;;  %v4523_v41 = vrot.slane %v4383_v17, 7  ;;  %v4385_v50 = vld [vmem:[#allocation2 + $0x98] sm:$0xf]  ;;  %v4366_v35 = vld [vmem:[#allocation2 + $0x4c] sm:$0xf]  ;;  %9050 = vmatprep.mubr.bf16.mxu1 %v9520_v26  ;;  %v12082_v45 = vadd.f32 %v6584_v28, %v11121_v16  ;;  %v6586_v17 = vpop.f32.mrf.mxu0 }
 0x251   : > { %v4464_v60 = vsel %vm12011_vm13, %v4462_v51, %v4463_v52  ;;  %4602 = vst [vmem:[#allocation3 + $0x434] sm:$0xf] %v4518_v49  ;;  %v4465_v3 = vrot.slane %v4463_v52, 4  ;;  %v4466_v8 = vrot.slane %v4364_v34, 7  ;;  %v4469_v19 = vrot.slane %v4365_v47, 7  ;;  %v6540_v52 = vpop.f32.mrf.mxu1 }
 0x252   : > { %4584 = vst [vmem:[#allocation3 + $0x1ac] sm:$0xf] %v4464_v60  ;;  %v4526_v6 = vrot.slane %v4384_v32, 7  ;;  %v4367_v13 = vld [vmem:[#allocation2 + $0x50] sm:$0xf]  ;;  %v4521_v14 = vsel %vm12011_vm13, %v4519_v24, %v4520_v40  ;;  %9031 = vmatmul.mubr.bf16.gmra.mxu0 %v9521_v10  ;;  %v4522_v27 = vrot.slane %v4520_v40, 4  ;;  %v12087_v24 = vadd.f32 %v6540_v52, %v12044_v20 }
 0x253   : > { %v4386_v62 = vld [vmem:[#allocation2 + $0x9c] sm:$0xf]  ;;  %v4387_v36 = vld [vmem:[#allocation2 + $0xa0] sm:$0x7]  ;;  %v9522_v51 = vld [vmem:[#allocation3 + $0x3c8] ss:$36 sps:$4 sm:$0xff]   ;;  %v4467_v34 = vsel %vm12011_vm13, %v4465_v3, %v4466_v8  ;;  %v6542_v28 = vpop.f32.mrf.mxu1  ;;  %v6589_v3 = vpop.f32.mrf.mxu0 }
 0x254   : > { %4603 = vst [vmem:[#allocation3 + $0x458] sm:$0xf] %v4521_v14  ;;  %v4468_v47 = vrot.slane %v4466_v8, 4  ;;  %v4471_v32 = vrot.slane %v4469_v19, 4  ;;  %v9523_v59 = vld [vmem:[#allocation3 + $0x140] ss:$36 sps:$4 sm:$0xff]   ;;  %v4524_v16 = vsel %vm12011_vm13, %v4522_v27, %v4523_v41 }
 0x255   : > { %4585 = vst [vmem:[#allocation3 + $0x1d0] sm:$0xf] %v4467_v34  ;;  %v4525_v26 = vrot.slane %v4523_v41, 4  ;;  %v4528_v49 = vrot.slane %v4526_v6, 4  ;;  %13773 = vst [vmem:[#allocation45_spill] sm:$0xff] %v12087_v24  ;;  %v4529_v60 = vrot.slane %v4385_v50, 7  ;;  %9034 = vmatprep.mubr.bf16.mxu0 %v9523_v59  ;;  %v6543_v52 = vpop.f32.mrf.mxu1  ;;  %v6591_v59 = vpop.f32.mrf.mxu0 }
 0x256   : > { %v4470_v10 = vsel %vm12011_vm13, %v4468_v47, %v4469_v19  ;;  %v4472_v40 = vrot.slane %v4366_v35, 7  ;;  %4604 = vst [vmem:[#allocation3 + $0x47c] sm:$0xf] %v4524_v16  ;;  %v4475_v14 = vrot.slane %v4367_v13, 7  ;;  %v4532_v17 = vrot.slane %v4386_v62, 7 }
 0x257   : > { %4586 = vst [vmem:[#allocation3 + $0x1f4] sm:$0xf] %v4470_v10  ;;  %v4527_v8 = vsel %vm12011_vm13, %v4525_v26, %v4526_v6  ;;  %v4535_v20 = vrot.slane %v4387_v36, 7  ;;  %v4368_v34 = vld [vmem:[#allocation2 + $0x54] sm:$0xf]  ;;  %v4530_v41 = vsel %vm12011_vm13, %v4528_v49, %v4529_v60  ;;  %v4531_v27 = vrot.slane %v4529_v60, 4  ;;  %9051 = vmatmul.mubr.bf16.gmra.mxu1 %v9522_v51  ;;  %v6545_v10 = vpop.f32.mrf.mxu1  ;;  %v6592_v60 = vpop.f32.mrf.mxu0 }
 0x258   : > { %4605 = vst [vmem:[#allocation3 + $0x4a0] sm:$0xf] %v4527_v8  ;;  %v4473_v50 = vsel %vm12011_vm13, %v4471_v32, %v4472_v40  ;;  %v4474_v35 = vrot.slane %v4472_v40, 4  ;;  %v4369_v19 = vld [vmem:[#allocation2 + $0x58] sm:$0xf]  ;;  %v12100_v6 = vadd.f32 %v6543_v52, %v12060_v30  ;;  %v6590_v13 = vadd.f32 %v6589_v3, %v11154_v58 }
 0x259   : > { %v4370_v47 = vld [vmem:[#allocation2 + $0x5c] sm:$0xf]  ;;  %v9524_v16 = vld [vmem:[#allocation3 + $0x410] ss:$36 sps:$4 sm:$0xff]   ;;  %4606 = vst [vmem:[#allocation3 + $0x4c4] sm:$0xf] %v4530_v41  ;;  %v4533_v32 = vsel %vm12011_vm13, %v4531_v27, %v4532_v17  ;;  %v6593_v58 = vadd.f32 %v6592_v60, %v11165_v7  ;;  %v6758_v3 = vpop.f32.mrf.mxu1  ;;  %v6594_v8 = vpop.f32.mrf.mxu0 }
 0x25a   : > { %4587 = vst [vmem:[#allocation3 + $0x218] sm:$0xf] %v4473_v50  ;;  %13774 = vst [vmem:[#allocation46_spill] sm:$0xff] %v12100_v6  ;;  %v9525_v62 = vld [vmem:[#allocation3 + $0x188] ss:$36 sps:$4 sm:$0xff]   ;;  %v4476_v36 = vsel %vm12011_vm13, %v4474_v35, %v4475_v14  ;;  %v4534_v26 = vrot.slane %v4532_v17, 4  ;;  %9054 = vmatprep.mubr.bf16.mxu1 %v9524_v16 }
 0x25b   : > { %v4477_v49 = vrot.slane %v4475_v14, 4  ;;  %4588 = vst [vmem:[#allocation3 + $0x23c] sm:$0xf] %v4476_v36  ;;  %4607 = vst [vmem:[#allocation3 + $0x4e8] sm:$0xf] %v4533_v32  ;;  %v4478_v40 = vrot.slane %v4368_v34, 7  ;;  %9035 = vmatmul.mubr.bf16.gmra.mxu0 %v9525_v62  ;;  %v12113_v34 = vadd.f32 %v6758_v3, %v12073_v9  ;;  %v6760_v35 = vpop.f32.mrf.mxu1  ;;  %v6597_v9 = vpop.f32.mrf.mxu0 }
 0x25c   : > { %v4481_v30 = vrot.slane %v4369_v19, 7  ;;  %v4484_v28 = vrot.slane %v4370_v47, 7  ;;  %v4536_v51 = vsel %vm12011_vm13, %v4534_v26, %v4535_v20  ;;  %v6598_v62 = vadd.f32 %v6597_v9, %v11186_v2 }
 0x25d   : > { %4608 = vst [vmem:[#allocation3 + $0x50c] sm:$0xf] %v4536_v51  ;;  %v4479_v14 = vsel %vm12011_vm13, %v4477_v49, %v4478_v40  ;;  %v4480_v17 = vrot.slane %v4478_v40, 4  ;;  %v9526_v50 = vld [vmem:[#allocation3 + $0x458] ss:$36 sps:$4 sm:$0xff]   ;;  %v6761_v59 = vpop.f32.mrf.mxu1  ;;  %v6599_v26 = vpop.f32.mrf.mxu0 }
 0x25e   : > { %v4483_v41 = vrot.slane %v4481_v30, 4  ;;  %v4486_v27 = vrot.slane %v4484_v28, 4  ;;  %4589 = vst [vmem:[#allocation3 + $0x260] sm:$0xf] %v4479_v14  ;;  %v9527_v7 = vld [vmem:[#allocation3 + $0x1d0] ss:$36 sps:$4 sm:$0xff]   ;;  %v12124_v16 = vadd.f32 %v6761_v59, %v12082_v45 }
 0x25f   : > { %v4482_v19 = vsel %vm12011_vm13, %v4480_v17, %v4481_v30  ;;  %9038 = vmatprep.mubr.bf16.mxu0 %v9527_v7  ;;  %9055 = vmatmul.mubr.bf16.gmra.mxu1 %v9526_v50  ;;  %v6763_v32 = vpop.f32.mrf.mxu1  ;;  %v6600_v63 = vpop.f32.mrf.mxu0 }
 0x260   : > { %v4485_v20 = vsel %vm12011_vm13, %v4483_v41, %v4484_v28  ;;  %v4488_v47 = vsel %vm12011_vm13, %v4486_v27, %v4487_v48  ;;  %v9528_v52 = vld [vmem:[#allocation3 + $0x4a0] ss:$36 sps:$4 sm:$0xff]   ;;  %4590 = vst [vmem:[#allocation3 + $0x284] sm:$0xf] %v4482_v19  ;;  %13775 = vst [vmem:[#allocation47_spill] sm:$0xff] %v12124_v16  ;;  %v6601_v49 = vadd.f32 %v6600_v63, %v11221_v1 }
 0x261   : > { %4591 = vst [vmem:[#allocation3 + $0x2a8] sm:$0xf] %v4485_v20  ;;  %4592 = vst [vmem:[#allocation3 + $0x2cc] sm:$0xf] %v4488_v47  ;;  %9058 = vmatprep.mubr.bf16.mxu1 %v9528_v52  ;;  %v6766_v38 = vpop.f32.mrf.mxu1  ;;  %v6602_v40 = vpop.f32.mrf.mxu0 }
 0x262   : > { %v9529_v36 = vld [vmem:[#allocation3 + $0x218] ss:$36 sps:$4 sm:$0xff]   ;;  %v12127_v48 = vadd.f32 %v6766_v38, %v6590_v13 }
 0x263   : > { %9039 = vmatmul.mubr.bf16.gmra.mxu0 %v9529_v36  ;;  %v6768_v60 = vpop.f32.mrf.mxu1  ;;  %v6605_v8 = vpop.f32.mrf.mxu0 }
 0x264   : > { %v9530_v10 = vld [vmem:[#allocation3 + $0x4e8] ss:$36 sps:$4 sm:$0xff]   ;;  %v6606_v13 = vadd.f32 %v6605_v8, %v11223_v4 }
 0x265   : > { %v6769_v28 = vpop.f32.mrf.mxu1  ;;  %v6607_v1 = vpop.f32.mrf.mxu0 }
 0x266   : > { %v12130_v2 = vadd.f32 %v6769_v28, %v6593_v58 }
 0x267   : > { %v9531_v30 = vld [vmem:[#allocation3 + $0x260] ss:$36 sps:$4 sm:$0xff]   ;;  %9059 = vmatmul.mubr.bf16.gmra.mxu1 %v9530_v10  ;;  %v6771_v51 = vpop.f32.mrf.mxu1  ;;  %v6608_v27 = vpop.f32.mrf.mxu0 }
 0x268   : > { %v9532_v45 = vld [vmem:[#allocation3 + $0x2a8] ss:$36 sps:$4 sm:$0xff]   ;;  %9042 = vmatprep.mubr.bf16.mxu0 %v9531_v30  ;;  %v6609_v35 = vadd.f32 %v6608_v27, %v11260_v56 }
 0x269   : > { %v6774_v3 = vpop.f32.mrf.mxu1  ;;  %v6610_v58 = vpop.f32.mrf.mxu0 }
 0x26a   : > { %v12132_v14 = vadd.f32 %v6774_v3, %v6598_v62 }
 0x26b   : > { %9043 = vmatmul.mubr.bf16.gmra.mxu0 %v9532_v45  ;;  %v6776_v17 = vpop.f32.mrf.mxu1  ;;  %v6613_v52 = vpop.f32.mrf.mxu0 }
 0x26c   : > { %13776 = vst [vmem:[#allocation48_spill] sm:$0xff] %v12132_v14  ;;  %v6614_v59 = vadd.f32 %v6613_v52, %v11330_v23 }
 0x26d   : > { %v6777_v41 = vpop.f32.mrf.mxu1  ;;  %v6615_v62 = vpop.f32.mrf.mxu0 }
 0x26e   : > { %v12135_v50 = vadd.f32 %v6777_v41, %v6601_v49 }
 0x26f   : > { %v6779_v7 = vpop.f32.mrf.mxu1  ;;  %v6616_v32 = vpop.f32.mrf.mxu0 }
 0x270   : > { %13777 = vst [vmem:[#allocation49_spill] sm:$0xff] %v12135_v50  ;;  %v6617_v26 = vadd.f32 %v6616_v32, %v11333_v57  ;;  %v13843_v50 = vld [vmem:[#allocation28_spill] sm:$0xff] }
 0x271   : > { %v6782_v19 = vpop.f32.mrf.mxu1  ;;  %v6618_v38 = vpop.f32.mrf.mxu0 }
 0x272   : > { %v12138_v20 = vadd.f32 %v6782_v19, %v6606_v13 }
 0x273   : > { %v6784_v47 = vpop.f32.mrf.mxu1  ;;  %v6621_v10 = vpop.f32.mrf.mxu0 }
 0x274   : > { %13778 = vst [vmem:[#allocation50_spill] sm:$0xff] %v12138_v20  ;;  %v6622_v40 = vadd.f32 %v6621_v10, %v11398_v43 }
 0x275   : > { %v6785_v9 = vpop.f32.mrf.mxu1  ;;  %v6623_v23 = vpop.f32.mrf.mxu0 }
 0x276   : > { %v12141_v4 = vadd.f32 %v6785_v9, %v6609_v35 }
 0x277   : > { %v6787_v36 = vpop.f32.mrf.mxu1  ;;  %v6624_v28 = vpop.f32.mrf.mxu0 }
 0x278   : > { %13779 = vst [vmem:[#allocation51_spill] sm:$0xff] %v12141_v4  ;;  %v6625_v51 = vadd.f32 %v6624_v28, %v11467_v12  ;;  %v13860_v4 = vld [vmem:[#allocation11_spill] sm:$0xff] }
 0x279   : > { %v6790_v63 = vpop.f32.mrf.mxu1  ;;  %v6626_v3 = vpop.f32.mrf.mxu0 }
 0x27a   : > { %v12144_v56 = vadd.f32 %v6790_v63, %v6614_v59 }
 0x27b   : > { %v6792_v49 = vpop.f32.mrf.mxu1  ;;  %v6629_v17 = vpop.f32.mrf.mxu0 }
 0x27c   : > { %13780 = vst [vmem:[#allocation52_spill] sm:$0xff] %v12144_v56  ;;  %v6630_v1 = vadd.f32 %v6629_v17, %v11470_v54 }
 0x27d   : > { %v6793_v60 = vpop.f32.mrf.mxu1  ;;  %v6631_v27 = vpop.f32.mrf.mxu0 }
 0x27e   : > { %v12147_v30 = vadd.f32 %v6793_v60, %v6617_v26 }
 0x27f   : > { %v6795_v45 = vpop.f32.mrf.mxu1  ;;  %v6632_v7 = vpop.f32.mrf.mxu0 }
 0x280   : > { %13781 = vst [vmem:[#allocation53_spill] sm:$0xff] %v12147_v30  ;;  %v6633_v58 = vadd.f32 %v6632_v7, %v11513_v37 }
 0x281   : > { %v6798_v8 = vpop.f32.mrf.mxu1  ;;  %v6634_v19 = vpop.f32.mrf.mxu0 }
 0x282   : > { %v12150_v13 = vadd.f32 %v6798_v8, %v6622_v40 }
 0x283   : > { %v6800_v57 = vpop.f32.mrf.mxu1 }
 0x284   : > { %13782 = vst [vmem:[#allocation54_spill] sm:$0xff] %v12150_v13 }
 0x285   : > { %v6801_v41 = vpop.f32.mrf.mxu1  ;;  %v6637_v59 = vpop.f32.mrf.mxu0 }
 0x286   : > { %v12153_v35 = vadd.f32 %v6801_v41, %v6625_v51  ;;  %v6638_v62 = vadd.f32 %v6637_v59, %v11562_v39 }
 0x287   : > { %v6803_v43 = vpop.f32.mrf.mxu1  ;;  %v6639_v54 = vpop.f32.mrf.mxu0 }
 0x288   : > { %13783 = vst [vmem:[#allocation55_spill] sm:$0xff] %v12153_v35  ;;  %v13836_v35 = vld [vmem:[#allocation26_spill] sm:$0xff] }
 0x289   : > { %v6806_v47 = vpop.f32.mrf.mxu1  ;;  %v6640_v26 = vpop.f32.mrf.mxu0 }
 0x28a   : > { %v12156_v52 = vadd.f32 %v6806_v47, %v6630_v1  ;;  %v6641_v38 = vadd.f32 %v6640_v26, %v11565_v21 }
 0x28b   : > { %v6808_v12 = vpop.f32.mrf.mxu1  ;;  %v6642_v63 = vpop.f32.mrf.mxu0 }
 0x28c   : > { %13784 = vst [vmem:[#allocation56_spill] sm:$0xff] %v12156_v52  ;;  %v13831_v52 = vld [vmem:[#allocation7_spill] sm:$0xff] }
 0x28d   : > { %v6809_v9 = vpop.f32.mrf.mxu1  ;;  %v12371_v6 = vmul.u32.u64.low 3817748708, %v13831_v52  ;;  %v12372_v24 = vmul.u32.u64.high 3817748708, %v13831_v52, %v12371_v6 }
 0x28e   : > { %v12159_v36 = vadd.f32 %v6809_v9, %v6633_v58 }
 0x28f   : > { %v6811_v32 = vpop.f32.mrf.mxu1 }
 0x290   : > { %13785 = vst [vmem:[#allocation57_spill] sm:$0xff] %v12159_v36 }
 0x291   : > { %v6814_v49 = vpop.f32.mrf.mxu1 }
 0x292   : > { %v12162_v10 = vadd.f32 %v6814_v49, %v6638_v62  ;;  %v6645_v40 = vpop.f32.mrf.mxu0 }
 0x293   : > { %v6816_v37 = vpop.f32.mrf.mxu1  ;;  %v6646_v45 = vadd.f32 %v6645_v40, %v11602_v25 }
 0x294   : > { %13786 = vst [vmem:[#allocation58_spill] sm:$0xff] %v12162_v10  ;;  %v6647_v39 = vpop.f32.mrf.mxu0 }
 0x295   : > { %v6817_v60 = vpop.f32.mrf.mxu1 }
 0x296   : > { %v12164_v23 = vadd.f32 %v6817_v60, %v6641_v38  ;;  %v6648_v51 = vpop.f32.mrf.mxu0 }
 0x297   : > { %v6819_v28 = vpop.f32.mrf.mxu1  ;;  %v6649_v3 = vadd.f32 %v6648_v51, %v11637_v46 }
 0x298   : > { %13787 = vst [vmem:[#allocation59_spill] sm:$0xff] %v12164_v23  ;;  %v6650_v8 = vpop.f32.mrf.mxu0 }
 0x299   : > { %v6822_v57 = vpop.f32.mrf.mxu1 }
 0x29a   : > { %v12168_v17 = vadd.f32 %v6822_v57, %v6646_v45 }
 0x29b   : > { %v6824_v21 = vpop.f32.mrf.mxu1 }
 0x29c   : > { %13788 = vst [vmem:[#allocation60_spill] sm:$0xff] %v12168_v17  ;;  %v6653_v1 = vpop.f32.mrf.mxu0 }
 0x29d   : > { %v6825_v41 = vpop.f32.mrf.mxu1  ;;  %v6654_v27 = vadd.f32 %v6653_v1, %v11672_v15 }
 0x29e   : > { %v12171_v43 = vadd.f32 %v6825_v41, %v6649_v3  ;;  %v6655_v7 = vpop.f32.mrf.mxu0 }
 0x29f   : > { %v6827_v58 = vpop.f32.mrf.mxu1 }
 0x2a0   : > { %13789 = vst [vmem:[#allocation61_spill] sm:$0xff] %v12171_v43  ;;  %v6656_v19 = vpop.f32.mrf.mxu0  ;;  %v12193_v7 = vmul.u32.u64.low 3817748708, %v10546_v18  ;;  %v12194_v58 = vmul.u32.u64.high 3817748708, %v10546_v18, %v12193_v7 }
 0x2a1   : > { %v6657_v25 = vadd.f32 %v6656_v19, %v11675_v22 }
 0x2a2   : > { %v6658_v47 = vpop.f32.mrf.mxu0  ;;  %v7326_v7 = vshrl.u32 %v12194_v58, 4 }
 0x2a5   : > { %v6830_v12 = vpop.f32.mrf.mxu1 }
 0x2a6   : > { %v12174_v59 = vadd.f32 %v6830_v12, %v6654_v27  ;;  %v13796_v12 = vld [vmem:[#allocation4_spill] sm:$0xff] }
 0x2a7   : > { %v6832_v46 = vpop.f32.mrf.mxu1  ;;  %v6661_v9 = vpop.f32.mrf.mxu0 }
 0x2a8   : > { %13790 = vst [vmem:[#allocation62_spill] sm:$0xff] %v12174_v59  ;;  %v6662_v62 = vadd.f32 %v6661_v9, %v11712_v33 }
 0x2a9   : > { %v6833_v54 = vpop.f32.mrf.mxu1  ;;  %v6663_v32 = vpop.f32.mrf.mxu0 }
 0x2aa   : > { %v12177_v26 = vadd.f32 %v6833_v54, %v6657_v25  ;;  %v13795_v25 = vld [vmem:[#allocation37_spill] sm:$0xff]  ;;  %v13798_v54 = vld [vmem:[#allocation22_spill] sm:$0xff] }
 0x2ab   : > { %v6835_v15 = vpop.f32.mrf.mxu1  ;;  %v6664_v38 = vpop.f32.mrf.mxu0 }
 0x2ac   : > { %13791 = vst [vmem:[#allocation63_spill] sm:$0xff] %v12177_v26  ;;  %v6665_v63 = vadd.f32 %v6664_v38, %v11758_v53  ;;  %v12187_v21 = vmul.u32.u64.low 3817748708, %v9653_v11  ;;  %v12188_v53 = vmul.u32.u64.high 3817748708, %v9653_v11, %v12187_v21  ;;  %v12208_v38 = vadd.s32 8, %v13796_v12 }
 0x2ad   : > { %v6666_v49 = vpop.f32.mrf.mxu0  ;;  %v12204_v32 = vmul.u32.u64.low 3817748708, %v13798_v54  ;;  %v12205_v15 = vmul.u32.u64.high 3817748708, %v13798_v54, %v12204_v32 }
 0x2ae   : > { %v7106_v49 = vshrl.u32 %v12188_v53, 4 }
 0x2b1   : > { %v6838_v37 = vpop.f32.mrf.mxu1 }
 0x2b2   : > { %v12180_v60 = vadd.f32 %v6838_v37, %v6662_v62  ;;  %v13799_v37 = vld [vmem:[#allocation5_spill] sm:$0xff] }
 0x2b3   : > { %v6840_v22 = vpop.f32.mrf.mxu1 }
 0x2b4   : > { %13792 = vst [vmem:[#allocation64_spill] sm:$0xff] %v12180_v60  ;;  %v6669_v40 = vpop.f32.mrf.mxu0 }
 0x2b5   : > { %v6841_v45 = vpop.f32.mrf.mxu1  ;;  %v6670_v28 = vadd.f32 %v6669_v40, %v11766_v44  ;;  %v12212_v22 = vmul.u32.u64.low 3817748708, %v13799_v37  ;;  %v12213_v40 = vmul.u32.u64.high 3817748708, %v13799_v37, %v12212_v22 }
 0x2b6   : > { %v12183_v39 = vadd.f32 %v6841_v45, %v6665_v63  ;;  %v6671_v33 = vpop.f32.mrf.mxu0 }
 0x2b7   : > { %v6843_v51 = vpop.f32.mrf.mxu1  ;;  %v7117_v22 = vshrl.u32 %v12213_v40, 4 }
 0x2b8   : > { %13793 = vst [vmem:[#allocation65_spill] sm:$0xff] %v12183_v39  ;;  %v6672_v3 = vpop.f32.mrf.mxu0  ;;  %v13874_v39 = vld [vmem:[#allocation14_spill] sm:$0xff] }
 0x2b9   : > { %v6673_v8 = vadd.f32 %v6672_v3, %v11798_v55  ;;  %v12198_v46 = vmul.u32.u64.low 3817748708, %v13796_v12  ;;  %v12199_v55 = vmul.u32.u64.high 3817748708, %v13796_v12, %v12198_v46  ;;  %v13801_v3 = vld [vmem:[#allocation38_spill] sm:$0xff] }
 0x2ba   : > { %v6674_v57 = vpop.f32.mrf.mxu0  ;;  %v7304_v46 = vshrl.u32 %v12205_v15, 4 }
 0x2bc   : > { %v6846_v1 = vpop.f32.mrf.mxu1  ;;  %v7305_v40 = vmul.u32 18, %v7304_v46 }
 0x2bd   : > { %v12190_v41 = vadd.f32 %v6846_v1, %v6670_v28  ;;  %v13800_v28 = vld [vmem:[#allocation24_spill] sm:$0xff]  ;;  %v12221_v21 = vmul.u32.u64.low 3817748708, %v12208_v38  ;;  %v12222_v1 = vmul.u32.u64.high 3817748708, %v12208_v38, %v12221_v21 }
 0x2be   : > { %v6848_v27 = vpop.f32.mrf.mxu1  ;;  %v12216_v33 = vmul.u32.u64.low 3817748708, %v13800_v28  ;;  %v12217_v51 = vmul.u32.u64.high 3817748708, %v13800_v28, %v12216_v33  ;;  %v12266_v46 = vsub.s32 %v13798_v54, %v7305_v40 }
 0x2bf   : > { %13794 = vst [vmem:[#allocation66_spill] sm:$0xff] %v12190_v41  ;;  %v6677_v44 = vpop.f32.mrf.mxu0  ;;  %v7107_v27 = vmul.u32 18, %v7106_v49  ;;  %v13803_v33 = vld [vmem:[#allocation39_spill] sm:$0xff] }
 0x2c0   : > { %v6849_v19 = vpop.f32.mrf.mxu1  ;;  %v6678_v47 = vadd.f32 %v6677_v44, %v13795_v25  ;;  %v7337_v58 = vshrl.u32 %v12217_v51, 4  ;;  %13810 = vst [vmem:[#allocation24_spill] sm:$0xff] %v12266_v46  ;;  %vm7494_vm5 = vcmp.ne.s32.totalorder %v12266_v46, 0  ;;  %vm7530_vm6 = vcmp.lt.s32.totalorder %v12266_v46, 0 }
 0x2c1   : > { %v12201_v9 = vadd.f32 %v6849_v19, %v6673_v8  ;;  %v6679_v62 = vpop.f32.mrf.mxu0  ;;  %v7084_v19 = vshrl.u32 %v12199_v55, 4  ;;  %v12230_v32 = vsub.s32 %v9653_v11, %v7107_v27 }
 0x2c2   : > { %v6851_v63 = vpop.f32.mrf.mxu1  ;;  %v7338_v26 = vmul.u32 18, %v7337_v58 }
 0x2c3   : > { %13797 = vst [vmem:[#allocation37_spill] sm:$0xff] %v12201_v9  ;;  %v6680_v45 = vpop.f32.mrf.mxu0  ;;  %v7327_v63 = vmul.u32 18, %v7326_v7  ;;  %v7085_v21 = vmul.u32 18, %v7084_v19  ;;  %vm7476_vm15 = vcmp.ne.s32.totalorder %v12230_v32, 0  ;;  %vm7512_vm0 = vcmp.lt.s32.totalorder %v12230_v32, 0  ;;  %v13876_v9 = vld [vmem:[#allocation17_spill] sm:$0xff] }
 0x2c4   : > { %v6681_v8 = vadd.f32 %v6680_v45, %v13801_v3  ;;  %v12287_v58 = vsub.s32 %v13800_v28, %v7338_v26  ;;  %vm12311_vm7 = vmand %vm7512_vm0, %vm7476_vm15 }
 0x2c5   : > { %v6682_v57 = vpop.f32.mrf.mxu0  ;;  %vm12352_vm15 = vmand %vm7530_vm6, %vm7494_vm5 }
 0x2c6   : > { %13813 = vst [vmem:[#allocation39_spill] sm:$0xff] %v12287_v58  ;;  %vm7497_vm11 = vcmp.ne.s32.totalorder %v12287_v58, 0  ;;  %vm7533_vm13 = vcmp.lt.s32.totalorder %v12287_v58, 0  ;;  %v12368_v23 = vadd.s32 18, %v12287_v58 }
 0x2c8   : > { %v6854_v53 = vpop.f32.mrf.mxu1 }
 0x2c9   : > { %v12225_v44 = vadd.f32 %v6854_v53, %v6678_v47  ;;  %v13804_v47 = vld [vmem:[#allocation23_spill] sm:$0xff]  ;;  %v13806_v53 = vld [vmem:[#allocation8_spill] sm:$0xff] }
 0x2ca   : > { %v6856_v25 = vpop.f32.mrf.mxu1  ;;  %v12238_v3 = vmul.u32.u64.low 3817748708, %v13804_v47  ;;  %v12239_v57 = vmul.u32.u64.high 3817748708, %v13804_v47, %v12238_v3  ;;  %v12244_v11 = vmul.u32.u64.low 3817748708, %v13806_v53  ;;  %v12245_v27 = vmul.u32.u64.high 3817748708, %v13806_v53, %v12244_v11 }
 0x2cb   : > { %13802 = vst [vmem:[#allocation4_spill] sm:$0xff] %v12225_v44  ;;  %v7095_v25 = vshrl.u32 %v12222_v1, 4  ;;  %v12255_v3 = vsub.s32 %v10546_v18, %v7327_v63  ;;  %v12263_v1 = vsub.s32 %v13796_v12, %v7085_v21 }
 0x2cc   : > { %v6685_v62 = vpop.f32.mrf.mxu0  ;;  %v6857_v45 = vpop.f32.mrf.mxu1 }
 0x2cd   : > { %v12234_v49 = vadd.f32 %v6685_v62, %v13803_v33  ;;  %v12241_v55 = vadd.f32 %v6857_v45, %v6681_v8  ;;  %v13807_v62 = vld [vmem:[#allocation27_spill] sm:$0xff]  ;;  %13808 = vst [vmem:[#allocation5_spill] sm:$0xff] %v12255_v3  ;;  %v7118_v8 = vmul.u32 18, %v7117_v22  ;;  %v13809_v45 = vld [vmem:[#allocation6_spill] sm:$0xff]  ;;  %v12276_v22 = vadd.s32 18, %v12230_v32 }
 0x2ce   : > { %v6687_v15 = vpop.f32.mrf.mxu0  ;;  %v6859_v7 = vpop.f32.mrf.mxu1  ;;  %v12249_v33 = vmul.u32.u64.low 3817748708, %v13807_v62  ;;  %v12250_v43 = vmul.u32.u64.high 3817748708, %v13807_v62, %v12249_v33  ;;  %vm7496_vm1 = vcmp.ne.s32.totalorder %v12255_v3, 0  ;;  %vm7532_vm2 = vcmp.lt.s32.totalorder %v12255_v3, 0 }
 0x2cf   : > { %13805 = vst [vmem:[#allocation22_spill] sm:$0xff] %v12241_v55  ;;  %v12258_v19 = vmul.u32.u64.low 3817748708, %v13809_v45  ;;  %v12259_v15 = vmul.u32.u64.high 3817748708, %v13809_v45, %v12258_v19  ;;  %v7096_v7 = vmul.u32 18, %v7095_v25  ;;  %v13811_v33 = vld [vmem:[#allocation25_spill] sm:$0xff]  ;;  %v12280_v12 = vsub.s32 %v13799_v37, %v7118_v8  ;;  %vm12324_vm8 = vmand %vm7532_vm2, %vm7496_vm1  ;;  %v13840_v55 = vld [vmem:[#allocation12_spill] sm:$0xff] }
 0x2d0   : > { %v12252_v51 = vpop.f32.mrf.mxu0  ;;  %v12269_v59 = vmul.u32.u64.low 3817748708, %v13811_v33  ;;  %v12270_v18 = vmul.u32.u64.high 3817748708, %v13811_v33, %v12269_v59  ;;  %v12284_v54 = vadd.s32 18, %v12255_v3  ;;  %vm7474_vm3 = vcmp.ne.s32.totalorder %v12263_v1, 0 }
 0x2d1   : > { %v7315_v59 = vshrl.u32 %v12239_v57, 4  ;;  %vm7510_vm4 = vcmp.lt.s32.totalorder %v12263_v1, 0  ;;  %v12293_v40 = vadd.s32 18, %v12263_v1  ;;  %v7150_v37 = vshrl.u32 %v12245_v27, 4 }
 0x2d2   : > { %v6690_v11 = vpop.f32.mrf.mxu0  ;;  %13812 = vst [vmem:[#allocation38_spill] sm:$0xff] %v12284_v54  ;;  %v12299_v26 = vsub.s32 %v12208_v38, %v7096_v7  ;;  %v7370_v28 = vshrl.u32 %v12250_v43, 4  ;;  %v12316_v19 = vadd.s32 18, %v12266_v46  ;;  %vm7477_vm9 = vcmp.ne.s32.totalorder %v12280_v12, 0  ;;  %vm12337_vm12 = vmand %vm7510_vm4, %vm7474_vm3 }
 0x2d3   : > { %v7128_v43 = vshrl.u32 %v12259_v15, 4  ;;  %vm7513_vm10 = vcmp.lt.s32.totalorder %v12280_v12, 0  ;;  %v12330_v11 = vadd.s32 18, %v12280_v12  ;;  %v7316_v7 = vmul.u32 18, %v7315_v59  ;;  %vm12376_vm3 = vmand %vm7533_vm13, %vm7497_vm11 }
 0x2d4   : > { %v12272_v63 = vpop.f32.mrf.mxu1  ;;  %13817 = vst [vmem:[#allocation8_spill] sm:$0xff] %v12316_v19  ;;  %v13825_v59 = vmov 0  ;;  %vm7475_vm0 = vcmp.ne.s32.totalorder %v12299_v26, 0  ;;  %vm7511_vm1 = vcmp.lt.s32.totalorder %v12299_v26, 0  ;;  %vm12363_vm2 = vmand %vm7513_vm10, %vm7477_vm9 }
 0x2d5   : > { %v13826_v59 = vsel %vm12352_vm15, 4294967295, %v13825_v59  ;;  %v7129_v5 = vmul.u32 18, %v7128_v43  ;;  %v12384_v30 = vsub.s32 %v13804_v47, %v7316_v7  ;;  %vm12394_vm4 = vmand %vm7511_vm1, %vm7475_vm0 }
 0x2d6   : > { %v6864_v21 = vpop.f32.mrf.mxu1  ;;  %13827 = vst [vmem:[#allocation25_spill] sm:$0xff] %v13826_v59  ;;  %v12387_v56 = vmul.u32.u64.low 3817748708, %v13836_v35  ;;  %v12388_v43 = vmul.u32.u64.high 3817748708, %v13836_v35, %v12387_v56  ;;  %v12402_v44 = vmul.u32.u64.low 3817748708, %v13840_v55  ;;  %v12403_v47 = vmul.u32.u64.high 3817748708, %v13840_v55, %v12402_v44  ;;  %v13859_v59 = vld [vmem:[#allocation31_spill] sm:$0xff] }
 0x2d7   : > { %v6693_v25 = vpop.f32.mrf.mxu0  ;;  %13835 = vst [vmem:[#allocation67_spill] sm:$0xff] %v12384_v30  ;;  %vm7495_vm5 = vcmp.ne.s32.totalorder %v12384_v30, 0  ;;  %vm7531_vm6 = vcmp.lt.s32.totalorder %v12384_v30, 0 }
 0x2d8   : > { %v12302_v57 = vpop.f32.mrf.mxu1  ;;  %v12305_v8 = vadd.f32 %v6693_v25, %v11947_v61  ;;  %v13818_v61 = vmov 0  ;;  %v7151_v25 = vmul.u32 18, %v7150_v37  ;;  %v7348_v37 = vshrl.u32 %v12270_v18, 4  ;;  %vm12472_vm1 = vmand %vm7531_vm6, %vm7495_vm5 }
 0x2d9   : > { %v6695_v38 = vpop.f32.mrf.mxu0  ;;  %v13819_v61 = vsel %vm12324_vm8, 4294967295, %v13818_v61  ;;  %v13832_v18 = vmov 0  ;;  %v7194_v54 = vshrl.u32 %v12403_v47, 4 }
 0x2da   : > { %13814 = vst [vmem:[#allocation23_spill] sm:$0xff] %v12305_v8  ;;  %13820 = vst [vmem:[#allocation27_spill] sm:$0xff] %v13819_v61  ;;  %v6867_v21 = vpop.f32.mrf.mxu1  ;;  %v13823_v38 = vld [vmem:[#allocation9_spill] sm:$0xff]  ;;  %v13833_v18 = vsel %vm12376_vm3, 4294967295, %v13832_v18  ;;  %v12399_v13 = vsub.s32 %v13806_v53, %v7151_v25  ;;  %v7349_v31 = vmul.u32 18, %v7348_v37  ;;  %v12427_v25 = vsub.s32 %v13809_v45, %v7129_v5 }
 0x2db   : > { %v12343_v17 = vmul.u32.u64.low 3817748708, %v13823_v38  ;;  %v12344_v36 = vmul.u32.u64.high 3817748708, %v13823_v38, %v12343_v17  ;;  %v12346_v10 = vpop.f32.mrf.mxu0  ;;  %v7371_v21 = vmul.u32 18, %v7370_v28  ;;  %13830 = vst [vmem:[#allocation9_spill] sm:$0xff] %v12368_v23  ;;  %13834 = vst [vmem:[#allocation7_spill] sm:$0xff] %v13833_v18  ;;  %v12381_v28 = vadd.s32 18, %v12299_v26 }
 0x2dc   : > { %13824 = vst [vmem:[#allocation6_spill] sm:$0xff] %v12346_v10  ;;  %13839 = vst [vmem:[#allocation26_spill] sm:$0xff] %v12399_v13  ;;  %v12446_v5 = vadd.s32 18, %v12384_v30  ;;  %vm7480_vm9 = vcmp.ne.s32.totalorder %v12399_v13, 0  ;;  %vm7516_vm10 = vcmp.lt.s32.totalorder %v12399_v13, 0  ;;  %v12454_v53 = vadd.s32 18, %v12399_v13 }
 0x2dd   : > { %v6698_v42 = vpop.f32.mrf.mxu0  ;;  %v12408_v56 = vsub.s32 %v13807_v62, %v7371_v21  ;;  %v7161_v45 = vshrl.u32 %v12344_v36, 4  ;;  %v12458_v62 = vsub.s32 %v13811_v33, %v7349_v31  ;;  %v7139_v36 = vshrl.u32 %v12372_v24, 4  ;;  %v13854_v33 = vld [vmem:[#allocation10_spill] sm:$0xff]  ;;  %vm12486_vm0 = vmand %vm7516_vm10, %vm7480_vm9  ;;  %v13858_v61 = vld [vmem:[#allocation13_spill] sm:$0xff] }
 0x2de   : > { %v12411_v0 = vmul.u32.u64.low 3817748708, %v13843_v50  ;;  %v12412_v42 = vmul.u32.u64.high 3817748708, %v13843_v50, %v12411_v0  ;;  %13845 = vst [vmem:[#allocation69_spill] sm:$0xff] %v12446_v5  ;;  %13847 = vst [vmem:[#allocation71_spill] sm:$0xff] %v12454_v53  ;;  %v13851_v23 = vmov 0  ;;  %vm7514_vm14 = vcmp.lt.s32.totalorder %v12427_v25, 0 }
 0x2df   : > { %13842 = vst [vmem:[#allocation68_spill] sm:$0xff] %v12408_v56  ;;  %vm7500_vm11 = vcmp.ne.s32.totalorder %v12408_v56, 0  ;;  %13848 = vst [vmem:[#allocation72_spill] sm:$0xff] %v12458_v62  ;;  %vm7536_vm13 = vcmp.lt.s32.totalorder %v12408_v56, 0  ;;  %v12462_v44 = vadd.s32 18, %v12408_v56  ;;  %v13852_v23 = vsel %vm12472_vm1, 4294967295, %v13851_v23 }
 0x2e0   : > { %13853 = vst [vmem:[#allocation75_spill] sm:$0xff] %v13852_v23  ;;  %v7359_v31 = vshrl.u32 %v12388_v43, 4  ;;  %v12479_v18 = vmul.u32.u64.low 3817748708, %v13854_v33  ;;  %v12480_v3 = vmul.u32.u64.high 3817748708, %v13854_v33, %v12479_v18  ;;  %v13855_v24 = vmov 0  ;;  %vm12520_vm9 = vmand %vm7536_vm13, %vm7500_vm11  ;;  %v13869_v30 = vld [vmem:[#allocation16_spill] sm:$0xff] }
 0x2e1   : > { %v12405_v7 = vpop.f32.mrf.mxu1  ;;  %13849 = vst [vmem:[#allocation73_spill] sm:$0xff] %v12462_v44  ;;  %v13856_v24 = vsel %vm12486_vm0, 4294967295, %v13855_v24  ;;  %v12492_v46 = vmul.u32.u64.low 3817748708, %v13858_v61  ;;  %v12493_v19 = vmul.u32.u64.high 3817748708, %v13858_v61, %v12492_v46  ;;  %vm7498_vm5 = vcmp.ne.s32.totalorder %v12458_v62, 0  ;;  %v13938_v17 = vld [vmem:[#allocation19_spill] sm:$0xff] }
 0x2e2   : > { %13841 = vst [vmem:[#allocation12_spill] sm:$0xff] %v12405_v7  ;;  %13857 = vst [vmem:[#allocation10_spill] sm:$0xff] %v13856_v24  ;;  %v7381_v18 = vshrl.u32 %v12412_v42, 4  ;;  %vm13865_vm10 = vcmp.ne.s32.totalorder %v12427_v25, 0  ;;  %v12536_v46 = vadd.s32 18, %v12458_v62  ;;  %v7195_v42 = vmul.u32 18, %v7194_v54 }
 0x2e3   : > { %v6872_v21 = vpop.f32.mrf.mxu1  ;;  %v12429_v0 = vpop.f32.mrf.mxu0  ;;  %vm12531_vm6 = vmand %vm7514_vm14, %vm13865_vm10  ;;  %v12539_v5 = vmul.u32.u64.low 3817748708, %v13869_v30  ;;  %v12540_v23 = vmul.u32.u64.high 3817748708, %v13869_v30, %v12539_v5  ;;  %vm13870_vm11 = vcmp.lt.s32.totalorder %v12458_v62, 0  ;;  %v13902_v24 = vld [vmem:[#allocation32_spill] sm:$0xff] }
 0x2e4   : > { %13844 = vst [vmem:[#allocation28_spill] sm:$0xff] %v12429_v0  ;;  %v7140_v0 = vmul.u32 18, %v7139_v36  ;;  %v12525_v36 = vadd.s32 18, %v12427_v25  ;;  %13868 = vst [vmem:[#allocation11_spill] sm:$0xff] %v12536_v46  ;;  %v7382_v8 = vmul.u32 18, %v7381_v18  ;;  %v13879_v18 = vld [vmem:[#allocation29_spill] sm:$0xff] }
 0x2e5   : > { %v12450_v21 = vpop.f32.mrf.mxu1  ;;  %v6703_v37 = vpop.f32.mrf.mxu0  ;;  %vm12546_vm13 = vmand %vm13870_vm11, %vm7498_vm5  ;;  %v12554_v60 = vmul.u32.u64.low 3817748708, %v13874_v39  ;;  %v12555_v54 = vmul.u32.u64.high 3817748708, %v13874_v39, %v12554_v60  ;;  %v12567_v41 = vmul.u32.u64.low 3817748708, %v13876_v9  ;;  %v12568_v13 = vmul.u32.u64.high 3817748708, %v13876_v9, %v12567_v41 }
 0x2e6   : > { %13846 = vst [vmem:[#allocation70_spill] sm:$0xff] %v12450_v21  ;;  %v7172_v60 = vshrl.u32 %v12480_v3, 4  ;;  %v7205_v3 = vshrl.u32 %v12493_v19, 4  ;;  %v7238_v41 = vshrl.u32 %v12540_v23, 4 }
 0x2e7   : > { %v6875_v37 = vpop.f32.mrf.mxu1  ;;  %v12466_v58 = vpop.f32.mrf.mxu0 }
 0x2e8   : > { %13850 = vst [vmem:[#allocation74_spill] sm:$0xff] %v12466_v58  ;;  %v7162_v37 = vmul.u32 18, %v7161_v45  ;;  %v12498_v21 = vmul.u32.u64.low 3817748708, %v13859_v59  ;;  %v12499_v58 = vmul.u32.u64.high 3817748708, %v13859_v59, %v12498_v21 }
 0x2e9   : > { %v6706_v43 = vpop.f32.mrf.mxu0  ;;  %v12503_v45 = vmul.u32.u64.low 3817748708, %v13860_v4  ;;  %v12504_v20 = vmul.u32.u64.high 3817748708, %v13860_v4, %v12503_v45  ;;  %v13862_v21 = vmov 0  ;;  %v7206_v5 = vmul.u32 18, %v7205_v3 }
 0x2ea   : > { %v13863_v21 = vsel %vm12520_vm9, 4294967295, %v13862_v21  ;;  %v7360_v43 = vmul.u32 18, %v7359_v31  ;;  %v13871_v31 = vmov 0  ;;  %v12551_v7 = vsub.s32 %v13823_v38, %v7162_v37 }
 0x2eb   : > { %13864 = vst [vmem:[#allocation31_spill] sm:$0xff] %v13863_v21  ;;  %v13872_v31 = vsel %vm12546_vm13, 4294967295, %v13871_v31  ;;  %v7183_v19 = vshrl.u32 %v12504_v20, 4  ;;  %v13885_v20 = vmov 0 }
 0x2ec   : > { %v12506_v47 = vpop.f32.mrf.mxu1  ;;  %13873 = vst [vmem:[#allocation16_spill] sm:$0xff] %v13872_v31  ;;  %v12573_v37 = vsub.s32 %v13836_v35, %v7360_v43  ;;  %v12589_v35 = vsub.s32 %v13840_v55, %v7195_v42  ;;  %v7414_v55 = vshrl.u32 %v12499_v58, 4  ;;  %vm13883_vm11 = vcmp.ne.s32.totalorder %v12551_v7, 0 }
 0x2ed   : > { %13861 = vst [vmem:[#allocation13_spill] sm:$0xff] %v12506_v47  ;;  %vm13884_vm9 = vcmp.lt.s32.totalorder %v12551_v7, 0  ;;  %v7216_v58 = vshrl.u32 %v12555_v54, 4  ;;  %v7184_v62 = vmul.u32 18, %v7183_v19  ;;  %v7249_v54 = vshrl.u32 %v12568_v13, 4 }
 0x2ee   : > { %v6880_v47 = vpop.f32.mrf.mxu1  ;;  %13878 = vst [vmem:[#allocation76_spill] sm:$0xff] %v12573_v37  ;;  %vm12620_vm13 = vmand %vm13884_vm9, %vm13883_vm11  ;;  %vm7520_vm14 = vcmp.lt.s32.totalorder %v12589_v35, 0  ;;  %v12641_v3 = vadd.s32 18, %v12589_v35  ;;  %v7415_v44 = vmul.u32 18, %v7414_v55  ;;  %vm13893_vm9 = vcmp.ne.s32.totalorder %v12573_v37, 0 }
 0x2ef   : > { %v12557_v14 = vpop.f32.mrf.mxu0  ;;  %v12564_v47 = vsub.s32 %v13831_v52, %v7140_v0  ;;  %v13886_v20 = vsel %vm12620_vm13, 4294967295, %v13885_v20  ;;  %vm13894_vm11 = vcmp.lt.s32.totalorder %v12573_v37, 0  ;;  %v13900_v13 = vmov 0 }
 0x2f0   : > { %13875 = vst [vmem:[#allocation14_spill] sm:$0xff] %v12557_v14  ;;  %v12570_v38 = vpop.f32.mrf.mxu1  ;;  %v12577_v14 = vmul.u32.u64.low 3817748708, %v13879_v18  ;;  %v12578_v53 = vmul.u32.u64.high 3817748708, %v13879_v18, %v12577_v14  ;;  %vm12648_vm8 = vmand %vm13894_vm11, %vm13893_vm9  ;;  %v12667_v19 = vsub.s32 %v13858_v61, %v7206_v5  ;;  %v7217_v5 = vmul.u32 18, %v7216_v58 }
 0x2f1   : > { %13877 = vst [vmem:[#allocation17_spill] sm:$0xff] %v12570_v38  ;;  %v6711_v21 = vpop.f32.mrf.mxu0  ;;  %v12595_v14 = vadd.s32 18, %v12551_v7  ;;  %v12607_v42 = vadd.s32 18, %v12564_v47  ;;  %vm13889_vm10 = vcmp.ne.s32.totalorder %v12564_v47, 0  ;;  %vm13890_vm5 = vcmp.lt.s32.totalorder %v12564_v47, 0 }
 0x2f2   : > { %v6883_v0 = vpop.f32.mrf.mxu1  ;;  %v12598_v21 = vsub.s32 %v13843_v50, %v7382_v8  ;;  %v12612_v8 = vadd.s32 18, %v12573_v37  ;;  %vm12636_vm3 = vmand %vm13890_vm5, %vm13889_vm10  ;;  %v7392_v31 = vshrl.u32 %v12578_v53, 4  ;;  %vm13899_vm5 = vcmp.ne.s32.totalorder %v12589_v35, 0 }
 0x2f3   : > { %v12600_v43 = vpop.f32.mrf.mxu0  ;;  %v7173_v0 = vmul.u32 18, %v7172_v60  ;;  %v13887_v60 = vld [vmem:[#allocation15_spill] sm:$0xff]  ;;  %vm12662_vm10 = vmand %vm7520_vm14, %vm13899_vm5  ;;  %v12719_v58 = vsub.s32 %v13874_v39, %v7217_v5  ;;  %v13912_v39 = vsel %vm12337_vm12, %v12293_v40, %v12263_v1  ;;  %v13917_v40 = vsel %vm12311_vm7, %v12276_v22, %v12230_v32  ;;  %v14005_v32 = vld [vmem:[#allocation4_spill] sm:$0xff] }
 0x2f4   : > { %13880 = vst [vmem:[#allocation29_spill] sm:$0xff] %v12598_v21  ;;  %13881 = vst [vmem:[#allocation77_spill] sm:$0xff] %v12600_v43  ;;  %v13901_v13 = vsel %vm12662_vm10, 4294967295, %v13900_v13  ;;  %vm12739_vm11 = vcmp.lt.s32.totalorder %v13912_v39, 16  ;;  %vm13923_vm7 = vcmp.ne.s32.totalorder %v12667_v19, 0  ;;  %vm13924_vm12 = vcmp.lt.s32.totalorder %v12667_v19, 0 }
 0x2f5   : > { %v6714_v50 = vpop.f32.mrf.mxu0  ;;  %13882 = vst [vmem:[#allocation78_spill] sm:$0xff] %v12612_v8  ;;  %v12653_v46 = vsub.s32 %v13854_v33, %v7173_v0  ;;  %v12670_v16 = vmul.u32.u64.low 3817748708, %v13902_v24  ;;  %v12671_v33 = vmul.u32.u64.high 3817748708, %v13902_v24, %v12670_v16  ;;  %v7239_v0 = vmul.u32 18, %v7238_v41 }
 0x2f6   : > { %v12627_v50 = vmul.u32.u64.low 3817748708, %v13887_v60  ;;  %v12628_v52 = vmul.u32.u64.high 3817748708, %v13887_v60, %v12627_v50  ;;  %v12693_v41 = vsub.s32 %v13859_v59, %v7415_v44  ;;  %v7393_v59 = vmul.u32 18, %v7392_v31 }
 0x2f7   : > { %v13895_v50 = vmov 0  ;;  %vm7482_vm14 = vcmp.ne.s32.totalorder %v12653_v46, 0  ;;  %vm7518_vm9 = vcmp.lt.s32.totalorder %v12653_v46, 0  ;;  %v12705_v61 = vadd.s32 18, %v12653_v46 }
 0x2f8   : > { %v13896_v50 = vsel %vm12648_vm8, 4294967295, %v13895_v50  ;;  %13905 = vst [vmem:[#allocation81_spill] sm:$0xff] %v12693_v41  ;;  %v7227_v37 = vshrl.u32 %v12628_v52, 4  ;;  %vm12722_vm8 = vmand %vm7518_vm9, %vm7482_vm14  ;;  %v7425_v15 = vshrl.u32 %v12671_v33, 4  ;;  %vm12762_vm14 = vcmp.lt.s32.totalorder %v13917_v40, 16 }
 0x2f9   : > { %v12630_v56 = vpop.f32.mrf.mxu1  ;;  %13897 = vst [vmem:[#allocation79_spill] sm:$0xff] %v13896_v50  ;;  %v13920_v33 = vsel %vm12394_vm4, %v12381_v28, %v12299_v26  ;;  %vm12783_vm9 = vmand %vm13924_vm12, %vm13923_vm7  ;;  %v12826_v50 = vmul.u32.u64.low 3817748708, %v13938_v17  ;;  %v12827_v41 = vmul.u32.u64.high 3817748708, %v13938_v17, %v12826_v50  ;;  %v13962_v52 = vsel %vm12636_vm3, %v12607_v42, %v12564_v47 }
 0x2fa   : > { %13888 = vst [vmem:[#allocation15_spill] sm:$0xff] %v12630_v56  ;;  %v13898_v56 = vld [vmem:[#allocation20_spill] sm:$0xff]  ;;  %vm12771_vm5 = vcmp.lt.s32.totalorder %v13920_v33, 16  ;;  %v7228_v22 = vmul.u32 18, %v7227_v37 }
 0x2fb   : > { %v12657_v43 = vmul.u32.u64.low 3817748708, %v13898_v56  ;;  %v12658_v38 = vmul.u32.u64.high 3817748708, %v13898_v56, %v12657_v43  ;;  %v6888_v55 = vpop.f32.mrf.mxu1 }
 0x2fc   : > { %v12680_v55 = vadd.s32 18, %v12598_v21  ;;  %v12696_v43 = vsub.s32 %v13860_v4, %v7184_v62  ;;  %v12710_v4 = vsub.s32 %v13869_v30, %v7239_v0  ;;  %v13906_v62 = vld [vmem:[#allocation30_spill] sm:$0xff] }
 0x2fd   : > { %v12673_v53 = vpop.f32.mrf.mxu0  ;;  %v12686_v10 = vpop.f32.mrf.mxu1  ;;  %v13911_v0 = vld [vmem:[#allocation18_spill] sm:$0xff]  ;;  %v7282_v5 = vshrl.u32 %v12658_v38, 4 }
 0x2fe   : > { %13903 = vst [vmem:[#allocation20_spill] sm:$0xff] %v12680_v55  ;;  %13904 = vst [vmem:[#allocation80_spill] sm:$0xff] %v12686_v10  ;;  %v7250_v55 = vmul.u32 18, %v7249_v54  ;;  %vm13927_vm15 = vcmp.ne.s32.totalorder %v12696_v43, 0  ;;  %vm13928_vm10 = vcmp.lt.s32.totalorder %v12696_v43, 0  ;;  %v12798_v28 = vadd.s32 18, %v12696_v43 }
 0x2ff   : > { %v6719_v24 = vpop.f32.mrf.mxu0  ;;  %v6891_v16 = vpop.f32.mrf.mxu1  ;;  %vm12793_vm13 = vmand %vm13928_vm10, %vm13927_vm15  ;;  %v12801_v6 = vadd.s32 18, %v12710_v4  ;;  %vm13934_vm10 = vcmp.ne.s32.totalorder %v12710_v4, 0  ;;  %vm13935_vm4 = vcmp.lt.s32.totalorder %v12710_v4, 0  ;;  %v7283_v27 = vmul.u32 18, %v7282_v5 }
 0x300   : > { %v12715_v24 = vmul.u32.u64.low 3817748708, %v13906_v62  ;;  %v12716_v54 = vmul.u32.u64.high 3817748708, %v13906_v62, %v12715_v24  ;;  %v12728_v30 = vsub.s32 %v13876_v9, %v7250_v55  ;;  %v13915_v9 = vld [vmem:[#allocation21_spill] sm:$0xff]  ;;  %vm12818_vm1 = vmand %vm13935_vm4, %vm13934_vm10  ;;  %vm13942_vm4 = vcmp.lt.s32.totalorder %v12719_v58, 0 }
 0x301   : > { %v12712_v44 = vpop.f32.mrf.mxu0  ;;  %v12731_v16 = vmul.u32.u64.low 3817748708, %v13911_v0  ;;  %v12732_v8 = vmul.u32.u64.high 3817748708, %v13911_v0, %v12731_v16  ;;  %v12746_v55 = vmul.u32.u64.low 3817748708, %v13915_v9  ;;  %v12747_v24 = vmul.u32.u64.high 3817748708, %v13915_v9, %v12746_v55 }
 0x302   : > { %13907 = vst [vmem:[#allocation82_spill] sm:$0xff] %v12716_v54  ;;  %13910 = vst [vmem:[#allocation83_spill] sm:$0xff] %v12728_v30  ;;  %v12750_v16 = vadd.s32 18, %v12667_v19  ;;  %vm7489_vm12 = vcmp.ne.s32.totalorder %v12728_v30, 0  ;;  %vm7525_vm7 = vcmp.lt.s32.totalorder %v12728_v30, 0  ;;  %v13931_v55 = vsel %vm12363_vm2, %v12330_v11, %v12280_v12 }
 0x303   : > { %v6722_v62 = vpop.f32.mrf.mxu0  ;;  %vm12810_vm15 = vcmp.lt.s32.totalorder %v13931_v55, 16  ;;  %v12830_v12 = vsub.s32 %v13879_v18, %v7393_v59  ;;  %v12836_v55 = vmul.u32 18, %v7425_v15  ;;  %vm13941_vm2 = vcmp.ne.s32.totalorder %v12719_v58, 0  ;;  %v13945_v18 = vld [vmem:[#allocation40_spill] sm:$0xff]  ;;  %v13947_v15 = vld [vmem:[#allocation33_spill] sm:$0xff] }
 0x304   : > { %vm12842_vm10 = vmand %vm13942_vm4, %vm13941_vm2  ;;  %v12847_v50 = vadd.s32 18, %v12728_v30  ;;  %v6689_v59 = vadd.f32 %v12252_v51, %v13945_v18  ;;  %v13951_v18 = vsel %vm12531_vm6, %v12525_v36, %v12427_v25  ;;  %v12894_v36 = vsub.s32 %v13898_v56, %v7283_v27  ;;  %v13992_v30 = vld [vmem:[#allocation49_spill] sm:$0xff] }
 0x305   : > { %13939 = vst [vmem:[#allocation21_spill] sm:$0xff] %v12830_v12  ;;  %13940 = vst [vmem:[#allocation19_spill] sm:$0xff] %v12836_v55  ;;  %v12855_v11 = vmul.u32.u64.low 3817748708, %v13947_v15  ;;  %v12856_v55 = vmul.u32.u64.high 3817748708, %v13947_v15, %v12855_v11  ;;  %vm12876_vm4 = vcmp.lt.s32.totalorder %v13951_v18, 16  ;;  %v12900_v18 = vadd.f32 %v12272_v63, %v12234_v49  ;;  %v13955_v63 = vld [vmem:[#allocation47_spill] sm:$0xff] }
 0x306   : > { %vm12863_vm2 = vmand %vm7525_vm7, %vm7489_vm12  ;;  %v12909_v56 = vadd.f32 %v12302_v57, %v6689_v59  ;;  %v7271_v54 = vshrl.u32 %v12827_v41, 4  ;;  %vm7528_vm3 = vcmp.lt.s32.totalorder %v12894_v36, 0  ;;  %v12964_v62 = vadd.s32 18, %v12894_v36  ;;  %v13986_v11 = vld [vmem:[#allocation23_spill] sm:$0xff]  ;;  %v14003_v15 = vld [vmem:[#allocation42_spill] sm:$0xff] }
 0x307   : > { %v12755_v1 = vpop.f32.mrf.mxu1  ;;  %13948 = vst [vmem:[#allocation84_spill] sm:$0xff] %v12856_v55 }
 0x308   : > { %13916 = vst [vmem:[#allocation18_spill] sm:$0xff] %v12755_v1  ;;  %v12868_v1 = vsub.s32 %v13887_v60, %v7228_v22  ;;  %v7260_v60 = vshrl.u32 %v12732_v8, 4  ;;  %v7293_v22 = vshrl.u32 %v12747_v24, 4  ;;  %v13954_v8 = vld [vmem:[#allocation6_spill] sm:$0xff] }
 0x309   : > { %v6896_v37 = vpop.f32.mrf.mxu1  ;;  %v12913_v27 = vadd.f32 %v13954_v8, %v11950_v29  ;;  %v13957_v8 = vld [vmem:[#allocation71_spill] sm:$0xff] }
 0x30a   : > { %v9028_v39 = vpop.f32.mrf.mxu0  ;;  %v12823_v37 = vadd.s32 18, %v12719_v58  ;;  %vm7487_vm6 = vcmp.ne.s32.totalorder %v12868_v1, 0  ;;  %v12926_v29 = vadd.s32 18, %v12868_v1 }
 0x30b   : > { %v12851_v12 = vpop.f32.mrf.mxu1  ;;  %v6944_v55 = vadd.f32 %v9028_v39, %v12127_v48 }
 0x30c   : > { %13946 = vst [vmem:[#allocation40_spill] sm:$0xff] %v12851_v12  ;;  %v6935_v21 = vpop.f32.mrf.mxu0 }
 0x30d   : > { %v6936_v51 = vadd.f32 %v6935_v21, %v12113_v34  ;;  %v6899_v45 = vpop.f32.mrf.mxu1  ;;  %v13958_v34 = vld [vmem:[#allocation26_spill] sm:$0xff] }
 0x30e   : > { %v9029_v21 = vpop.f32.mrf.mxu0  ;;  %v13959_v25 = vsel %vm12486_vm0, %v13957_v8, %v13958_v34  ;;  %v7764_v34 = vsel %vm12762_vm14, %v6944_v55, 0.0  ;;  %vm13965_vm0 = vnez %v13886_v20  ;;  %v13973_v20 = vld [vmem:[#allocation48_spill] sm:$0xff] }
 0x30f   : > { %v6947_v45 = vadd.f32 %v9029_v21, %v12130_v2  ;;  %v9048_v24 = vpop.f32.mrf.mxu1  ;;  %v7762_v2 = vsel %vm12739_vm11, %v6936_v51, 0.0  ;;  %vm12933_vm7 = vcmp.lt.s32.totalorder %v13959_v25, 16  ;;  %vm12942_vm11 = vcmp.lt.s32.totalorder %v13962_v52, 16 }
 0x310   : > { %v6938_v48 = vpop.f32.mrf.mxu0  ;;  %v7294_v21 = vmul.u32 18, %v7293_v22  ;;  %v7839_v47 = vmul.f32 %v7762_v2, %v7762_v2  ;;  %v13966_v41 = vsel %vm13965_vm0, %v12595_v14, %v12551_v7  ;;  %v13971_v22 = vld [vmem:[#allocation37_spill] sm:$0xff]  ;;  %v7841_v7 = vmul.f32 %v7764_v34, %v7764_v34 }
 0x311   : > { %v8848_v49 = vpack.c.bf16 %v6947_v45, %v6944_v55  ;;  %v6939_v57 = vadd.f32 %v6938_v48, %v13955_v63  ;;  %v7015_v39 = vpop.f32.mrf.mxu1  ;;  %v7261_v63 = vmul.u32 18, %v7260_v60  ;;  %vm12959_vm12 = vcmp.lt.s32.totalorder %v13966_v41, 16  ;;  %v13969_v55 = vld [vmem:[#allocation66_spill] sm:$0xff] }
 0x312   : > { %v9032_v59 = vpop.f32.mrf.mxu0  ;;  %v7765_v60 = vsel %vm12810_vm15, %v6947_v45, 0.0 }
 0x313   : > { %8967 = vst [vmem:[%s12918_s27 + $0x8] sm:$0xff] %v8848_v49   ;;  %v7763_v23 = vsel %vm12771_vm5, %v6939_v57, 0.0  ;;  %v8843_v25 = vpack.c.bf16 %v6939_v57, %v6936_v51  ;;  %v9049_v42 = vpop.f32.mrf.mxu1  ;;  %v12967_v51 = vadd.f32 %v9048_v24, %v13969_v55  ;;  %vm13974_vm5 = vcmp.lt.s32.totalorder %v12868_v1, 0  ;;  %v13977_v24 = vld [vmem:[#allocation64_spill] sm:$0xff] }
 0x314   : > { %v7798_v8 = vadd.f32 %v7763_v23, %v7762_v2  ;;  %v7840_v52 = vmul.f32 %v7763_v23, %v7763_v23  ;;  %v6951_v12 = vpop.f32.mrf.mxu0  ;;  %v12972_v2 = vadd.f32 %v9049_v42, %v13971_v22  ;;  %vm12982_vm14 = vmand %vm13974_vm5, %vm7487_vm6  ;;  %v12987_v45 = vsub.s32 %v13911_v0, %v7261_v63  ;;  %v14019_v63 = vld [vmem:[#allocation45_spill] sm:$0xff] }
 0x315   : > { %13970 = vst [vmem:[#allocation6_spill] sm:$0xff] %v12967_v51  ;;  %8844 = vst [vmem:[%s12918_s27] sm:$0xff] %v8843_v25   ;;  %v12976_v49 = vadd.f32 %v6951_v12, %v13973_v20  ;;  %v7018_v23 = vpop.f32.mrf.mxu1  ;;  %v12990_v12 = vadd.f32 %v7015_v39, %v13977_v24  ;;  %v13978_v25 = vld [vmem:[#allocation65_spill] sm:$0xff]  ;;  %v7272_v42 = vmul.u32 18, %v7271_v54  ;;  %v13980_v39 = vsel %vm12722_vm8, %v12705_v61, %v12653_v46  ;;  %v13988_v61 = vld [vmem:[#allocation50_spill] sm:$0xff] }
 0x316   : > { %13972 = vst [vmem:[#allocation47_spill] sm:$0xff] %v12972_v2  ;;  %v7799_v14 = vadd.f32 %v7798_v8, %v7764_v34  ;;  %v7875_v57 = vadd.f32 %v7840_v52, %v7839_v47  ;;  %v9033_v41 = vpop.f32.mrf.mxu0  ;;  %v8898_v34 = vpack.c.bf16 %v12972_v2, %v12967_v51  ;;  %v12995_v47 = vadd.f32 %v7018_v23, %v13978_v25  ;;  %v14081_v54 = vld [vmem:[#allocation7_spill] sm:$0xff] }
 0x317   : > { %v7842_v8 = vmul.f32 %v7765_v60, %v7765_v60  ;;  %v9052_v55 = vpop.f32.mrf.mxu1  ;;  %v7766_v22 = vsel %vm12876_vm4, %v12976_v49, 0.0  ;;  %vm13005_vm15 = vcmp.lt.s32.totalorder %v13980_v39, 16  ;;  %vm13983_vm6 = vcmp.ne.s32.totalorder %v12894_v36, 0  ;;  %v13989_v39 = vld [vmem:[#allocation51_spill] sm:$0xff] }
 0x318   : > { %13979 = vst [vmem:[#allocation10_spill] sm:$0xff] %v12995_v47  ;;  %v7876_v52 = vadd.f32 %v7875_v57, %v7841_v7  ;;  %v7800_v20 = vadd.f32 %v7799_v14, %v7765_v60  ;;  %v6954_v0 = vpop.f32.mrf.mxu0  ;;  %vm13013_vm0 = vmand %vm7528_vm3, %vm13983_vm6  ;;  %v13987_v60 = vld [vmem:[#allocation12_spill] sm:$0xff]  ;;  %v8893_v46 = vpack.c.bf16 %v12995_v47, %v12990_v12  ;;  %v6960_v31 = vadd.f32 %v9032_v59, %v13988_v61 }
 0x319   : > { %v13019_v7 = vadd.f32 %v13987_v60, %v13986_v11  ;;  %8977 = vst [vmem:[%s12918_s27 + $0x58] sm:$0xff] %v8898_v34   ;;  %v7631_v14 = vsel %vm12982_vm14, %v12926_v29, %v12868_v1  ;;  %v7843_v23 = vmul.f32 %v7766_v22, %v7766_v22  ;;  %v7031_v25 = vpop.f32.mrf.mxu1  ;;  %v6963_v2 = vadd.f32 %v9033_v41, %v13989_v39  ;;  %v13990_v11 = vld [vmem:[#allocation41_spill] sm:$0xff]  ;;  %v13991_v60 = vld [vmem:[#allocation28_spill] sm:$0xff] }
 0x31a   : > { %v7801_v57 = vadd.f32 %v7800_v20, %v7766_v22  ;;  %v7877_v24 = vadd.f32 %v7876_v52, %v7842_v8  ;;  %v6702_v34 = vadd.f32 %v13991_v60, %v13990_v11  ;;  %8976 = vst [vmem:[%s12918_s27 + $0x50] sm:$0xff] %v8893_v46   ;;  %v6955_v47 = vadd.f32 %v6954_v0, %v13992_v30 }
 0x31b   : > { %v9036_v51 = vpop.f32.mrf.mxu0  ;;  %vm13993_vm8 = vnez %v13901_v13  ;;  %v13997_v41 = vsel %vm12793_vm13, %v12798_v28, %v12696_v43  ;;  %v7636_v13 = vsel %vm13013_vm0, %v12964_v62, %v12894_v36  ;;  %v8858_v30 = vpack.c.bf16 %v6963_v2, %v6960_v31  ;;  %v9053_v52 = vpop.f32.mrf.mxu1  ;;  %v14083_v36 = vld [vmem:[#allocation9_spill] sm:$0xff]  ;;  %v14084_v62 = vld [vmem:[#allocation39_spill] sm:$0xff] }
 0x31c   : > { %v13994_v59 = vsel %vm13993_vm8, %v12641_v3, %v12589_v35  ;;  %vm13048_vm3 = vcmp.lt.s32.totalorder %v13997_v41, 16  ;;  %v13057_v35 = vsub.s32 %v13915_v9, %v7294_v21  ;;  %v7878_v3 = vadd.f32 %v7877_v24, %v7843_v23  ;;  %v14006_v24 = vld [vmem:[#allocation22_spill] sm:$0xff] }
 0x31d   : > { %vm13039_vm4 = vcmp.lt.s32.totalorder %v13994_v59, 16  ;;  %v6967_v26 = vpop.f32.mrf.mxu0  ;;  %vm7490_vm5 = vcmp.ne.s32.totalorder %v12987_v45, 0  ;;  %vm7526_vm13 = vcmp.lt.s32.totalorder %v12987_v45, 0  ;;  %v13062_v43 = vadd.s32 18, %v12987_v45  ;;  %8969 = vst [vmem:[%s12918_s27 + $0x18] sm:$0xff] %v8858_v30   ;;  %v7034_v46 = vpop.f32.mrf.mxu1  ;;  %v14009_v30 = vld [vmem:[#allocation52_spill] sm:$0xff] }
 0x31e   : > { %v13065_v28 = vsub.s32 %v13938_v17, %v7272_v42  ;;  %v7768_v22 = vsel %vm12933_vm7, %v6960_v31, 0.0  ;;  %v13070_v9 = vadd.f32 %v9052_v55, %v12900_v18  ;;  %v13073_v21 = vadd.f32 %v9053_v52, %v12909_v56  ;;  %v14004_v42 = vld [vmem:[#allocation74_spill] sm:$0xff] }
 0x31f   : > { %v7767_v20 = vsel %vm12942_vm11, %v6955_v47, 0.0  ;;  %v14000_v0 = vsel %vm12783_vm9, %v12750_v16, %v12667_v19  ;;  %v6705_v18 = vadd.f32 %v14004_v42, %v14003_v15  ;;  %v8853_v48 = vpack.c.bf16 %v6955_v47, %v12976_v49  ;;  %v9037_v31 = vpop.f32.mrf.mxu0  ;;  %v9056_v47 = vpop.f32.mrf.mxu1  ;;  %v14013_v42 = vld [vmem:[#allocation55_spill] sm:$0xff] }
 0x320   : > { %vm13082_vm6 = vcmp.lt.s32.totalorder %v14000_v0, 16  ;;  %v7802_v55 = vadd.f32 %v7801_v57, %v7767_v20  ;;  %v7844_v56 = vmul.f32 %v7767_v20, %v7767_v20  ;;  %v13091_v23 = vadd.f32 %v7031_v25, %v14005_v32  ;;  %v14007_v57 = vld [vmem:[#allocation70_spill] sm:$0xff] }
 0x321   : > { %v7769_v19 = vsel %vm12959_vm12, %v6963_v2, 0.0  ;;  %v8908_v16 = vpack.c.bf16 %v13073_v21, %v13070_v9  ;;  %v13098_v39 = vadd.f32 %v7034_v46, %v14006_v24  ;;  %v6874_v11 = vadd.f32 %v14007_v57, %v12913_v27  ;;  %8968 = vst [vmem:[%s12918_s27 + $0x10] sm:$0xff] %v8853_v48   ;;  %v6970_v25 = vpop.f32.mrf.mxu0  ;;  %v14008_v2 = vld [vmem:[#allocation54_spill] sm:$0xff]  ;;  %v7047_v15 = vpop.f32.mrf.mxu1  ;;  %v14015_v48 = vld [vmem:[#allocation17_spill] sm:$0xff] }
 0x322   : > { %v7845_v60 = vmul.f32 %v7768_v22, %v7768_v22  ;;  %v7803_v59 = vadd.f32 %v7802_v55, %v7768_v22  ;;  %v7879_v49 = vadd.f32 %v7878_v3, %v7844_v56  ;;  %v6976_v41 = vadd.f32 %v9036_v51, %v14008_v2  ;;  %v14014_v56 = vld [vmem:[#allocation13_spill] sm:$0xff] }
 0x323   : > { %8979 = vst [vmem:[%s12918_s27 + $0x68] sm:$0xff] %v8908_v16   ;;  %v8903_v38 = vpack.c.bf16 %v13098_v39, %v13091_v23  ;;  %v6968_v52 = vadd.f32 %v6967_v26, %v14009_v30  ;;  %v14010_v27 = vsel %vm12842_vm10, %v12823_v37, %v12719_v58  ;;  %vm7491_vm12 = vcmp.ne.s32.totalorder %v13065_v28, 0  ;;  %v9040_v51 = vpop.f32.mrf.mxu0  ;;  %v14016_v37 = vld [vmem:[#allocation53_spill] sm:$0xff]  ;;  %v9057_v57 = vpop.f32.mrf.mxu1 }
 0x324   : > { %vm13113_vm9 = vcmp.lt.s32.totalorder %v14010_v27, 16  ;;  %v7846_v3 = vmul.f32 %v7769_v19, %v7769_v19  ;;  %v7880_v20 = vadd.f32 %v7879_v49, %v7845_v60  ;;  %v7804_v0 = vadd.f32 %v7803_v59, %v7769_v19  ;;  %v14017_v19 = vld [vmem:[#allocation44_spill] sm:$0xff] }
 0x325   : > { %v6979_v55 = vadd.f32 %v9037_v31, %v14013_v42  ;;  %v6879_v26 = vadd.f32 %v14014_v56, %v6702_v34  ;;  %v6882_v5 = vadd.f32 %v14015_v48, %v6705_v18  ;;  %8978 = vst [vmem:[%s12918_s27 + $0x60] sm:$0xff] %v8903_v38   ;;  %v7770_v58 = vsel %vm13005_vm15, %v6968_v52, 0.0  ;;  %v6983_v60 = vpop.f32.mrf.mxu0  ;;  %v14018_v31 = vld [vmem:[#allocation77_spill] sm:$0xff]  ;;  %v7050_v27 = vpop.f32.mrf.mxu1 }
 0x326   : > { %v6971_v46 = vadd.f32 %v6970_v25, %v14016_v37  ;;  %v7805_v32 = vadd.f32 %v7804_v0, %v7770_v58  ;;  %v7847_v16 = vmul.f32 %v7770_v58, %v7770_v58  ;;  %v7881_v24 = vadd.f32 %v7880_v20, %v7846_v3  ;;  %v14028_v0 = vld [vmem:[#allocation83_spill] sm:$0xff] }
 0x327   : > { %vm7527_vm10 = vcmp.lt.s32.totalorder %v13065_v28, 0  ;;  %v6713_v59 = vadd.f32 %v14018_v31, %v14017_v19  ;;  %v13128_v34 = vadd.f32 %v9056_v47, %v6879_v26  ;;  %v8868_v18 = vpack.c.bf16 %v6979_v55, %v6976_v41  ;;  %v9041_v20 = vpop.f32.mrf.mxu0  ;;  %v14035_v58 = vld [vmem:[#allocation59_spill] sm:$0xff]  ;;  %v14037_v31 = vld [vmem:[#allocation18_spill] sm:$0xff] }
 0x328   : > { %v13130_v49 = vadd.f32 %v9057_v57, %v6882_v5  ;;  %v6718_v38 = vadd.f32 %v12673_v53, %v14019_v63  ;;  %v7772_v25 = vsel %vm13039_vm4, %v6976_v41, 0.0  ;;  %v7882_v2 = vadd.f32 %v7881_v24, %v7847_v16  ;;  %v9060_v41 = vpop.f32.mrf.mxu1  ;;  %v14036_v57 = vld [vmem:[#allocation58_spill] sm:$0xff]  ;;  %v14038_v63 = vld [vmem:[#allocation40_spill] sm:$0xff] }
 0x329   : > { %v7771_v30 = vsel %vm13048_vm3, %v6971_v46, 0.0  ;;  %v14020_v47 = vsel %vm12818_vm1, %v12801_v6, %v12710_v4  ;;  %vm13152_vm11 = vcmp.lt.s32.totalorder %v7631_v14, 16  ;;  %vm7493_vm15 = vcmp.ne.s32.totalorder %v13057_v35, 0  ;;  %v14025_v4 = vld [vmem:[#allocation46_spill] sm:$0xff]  ;;  %8971 = vst [vmem:[%s12918_s27 + $0x28] sm:$0xff] %v8868_v18   ;;  %vm13167_vm1 = vmand %vm7526_vm13, %vm7490_vm5  ;;  %v6986_v26 = vpop.f32.mrf.mxu0 }
 0x32a   : > { %vm13143_vm7 = vcmp.lt.s32.totalorder %v14020_v47, 16  ;;  %vm7529_vm8 = vcmp.lt.s32.totalorder %v13057_v35, 0  ;;  %v6721_v6 = vadd.f32 %v12712_v44, %v14025_v4  ;;  %v8918_v33 = vpack.c.bf16 %v13130_v49, %v13128_v34 }
 0x32b   : > { %v7806_v40 = vadd.f32 %v7805_v32, %v7771_v30  ;;  %v7848_v61 = vmul.f32 %v7771_v30, %v7771_v30  ;;  %v13172_v29 = vadd.f32 %v7047_v15, %v13019_v7  ;;  %v7773_v44 = vsel %vm13082_vm6, %v6979_v55, 0.0  ;;  %v14032_v15 = vld [vmem:[#allocation56_spill] sm:$0xff]  ;;  %v14034_v55 = vld [vmem:[#allocation14_spill] sm:$0xff] }
 0x32c   : > { %v8863_v14 = vpack.c.bf16 %v6971_v46, %v6968_v52  ;;  %v13176_v8 = vadd.f32 %v7050_v27, %v6874_v11  ;;  %v14029_v42 = vsel %vm12863_vm2, %v12847_v50, %v14028_v0  ;;  %v7849_v48 = vmul.f32 %v7772_v25, %v7772_v25  ;;  %8981 = vst [vmem:[%s12918_s27 + $0x78] sm:$0xff] %v8918_v33   ;;  %v14033_v11 = vld [vmem:[#allocation43_spill] sm:$0xff]  ;;  %v7063_v50 = vpop.f32.mrf.mxu1  ;;  %v9044_v46 = vpop.f32.mrf.mxu0  ;;  %vm13210_vm2 = vmand %vm7527_vm10, %vm7491_vm12  ;;  %v14043_v33 = vld [vmem:[#allocation29_spill] sm:$0xff] }
 0x32d   : > { %vm13183_vm14 = vcmp.lt.s32.totalorder %v14029_v42, 16  ;;  %v7807_v7 = vadd.f32 %v7806_v40, %v7772_v25  ;;  %v7883_v17 = vadd.f32 %v7882_v2, %v7848_v61  ;;  %v6984_v52 = vadd.f32 %v6983_v60, %v14032_v15  ;;  %v14044_v42 = vld [vmem:[#allocation57_spill] sm:$0xff]  ;;  %vm13250_vm12 = vmand %vm7529_vm8, %vm7493_vm15 }
 0x32e   : > { %v6710_v5 = vadd.f32 %v14034_v55, %v14033_v11  ;;  %8970 = vst [vmem:[%s12918_s27 + $0x20] sm:$0xff] %v8863_v14   ;;  %v8913_v10 = vpack.c.bf16 %v13176_v8, %v13172_v29  ;;  %v6995_v37 = vadd.f32 %v9041_v20, %v14035_v58  ;;  %v7634_v32 = vsel %vm13167_vm1, %v13062_v43, %v12987_v45  ;;  %v9061_v27 = vpop.f32.mrf.mxu1  ;;  %v6999_v47 = vpop.f32.mrf.mxu0  ;;  %v14041_v43 = vld [vmem:[#allocation80_spill] sm:$0xff]  ;;  %v14062_v45 = vld [vmem:[#allocation75_spill] sm:$0xff] }
 0x32f   : > { %v7850_v16 = vmul.f32 %v7773_v44, %v7773_v44  ;;  %v7884_v24 = vadd.f32 %v7883_v17, %v7849_v48  ;;  %v6992_v60 = vadd.f32 %v9040_v51, %v14036_v57  ;;  %v7599_v19 = vadd.s32 18, %v13065_v28  ;;  %v14045_v17 = vld [vmem:[#allocation81_spill] sm:$0xff]  ;;  %v14049_v58 = vld [vmem:[#allocation60_spill] sm:$0xff] }
 0x330   : > { %v6895_v18 = vadd.f32 %v14037_v31, %v6718_v38  ;;  %v6898_v25 = vadd.f32 %v14038_v63, %v6721_v6  ;;  %8980 = vst [vmem:[%s12918_s27 + $0x70] sm:$0xff] %v8913_v10   ;;  %v7774_v2 = vsel %vm13113_vm9, %v6984_v52, 0.0  ;;  %v7808_v30 = vadd.f32 %v7807_v7, %v7773_v44  ;;  %v14042_v6 = vld [vmem:[#allocation15_spill] sm:$0xff]  ;;  %v7066_v44 = vpop.f32.mrf.mxu1  ;;  %v9045_v14 = vpop.f32.mrf.mxu0  ;;  %v14054_v57 = vld [vmem:[#allocation8_spill] sm:$0xff]  ;;  %v14059_v63 = vld [vmem:[#allocation62_spill] sm:$0xff] }
 0x331   : > { %v6890_v51 = vadd.f32 %v14041_v43, %v6713_v59  ;;  %v7851_v38 = vmul.f32 %v7774_v2, %v7774_v2  ;;  %v7885_v20 = vadd.f32 %v7884_v24, %v7850_v16  ;;  %v8878_v4 = vpack.c.bf16 %v6995_v37, %v6992_v60  ;;  %v14052_v24 = vld [vmem:[#allocation25_spill] sm:$0xff] }
 0x332   : > { %v6887_v22 = vadd.f32 %v14042_v6, %v6710_v5  ;;  %vm7501_vm4 = vcmp.ne.s32.totalorder %v14043_v33, 0  ;;  %vm7537_vm3 = vcmp.lt.s32.totalorder %v14043_v33, 0  ;;  %v13218_v40 = vadd.f32 %v9060_v41, %v6895_v18  ;;  %v7002_v55 = vpop.f32.mrf.mxu0  ;;  %v14048_v5 = vld [vmem:[#allocation21_spill] sm:$0xff] }
 0x333   : > { %v7809_v61 = vadd.f32 %v7808_v30, %v7774_v2  ;;  %v13220_v1 = vadd.f32 %v9061_v27, %v6898_v25  ;;  %v7886_v0 = vadd.f32 %v7885_v20, %v7851_v38  ;;  %8973 = vst [vmem:[%s12918_s27 + $0x38] sm:$0xff] %v8878_v4   ;;  %v6987_v59 = vadd.f32 %v6986_v26, %v14044_v42  ;;  %v14060_v2 = vld [vmem:[#allocation63_spill] sm:$0xff]  ;;  %v14061_v27 = vld [vmem:[#allocation61_spill] sm:$0xff]  ;;  %v14071_v42 = vld [vmem:[#allocation38_spill] sm:$0xff] }
 0x334   : > { %v13224_v48 = vadd.f32 %v7066_v44, %v6890_v51  ;;  %v7635_v7 = vsel %vm13210_vm2, %v7599_v19, %v13065_v28  ;;  %vm7504_vm5 = vcmp.ne.s32.totalorder %v14045_v17, 0  ;;  %vm7540_vm13 = vcmp.lt.s32.totalorder %v14045_v17, 0  ;;  %v14055_v19 = vld [vmem:[#allocation24_spill] sm:$0xff]  ;;  %v14064_v43 = vld [vmem:[#allocation69_spill] sm:$0xff]  ;;  %v14065_v51 = vld [vmem:[#allocation67_spill] sm:$0xff] }
 0x335   : > { %v13231_v41 = vadd.f32 %v7063_v50, %v6887_v22  ;;  %v8928_v15 = vpack.c.bf16 %v13220_v1, %v13218_v40  ;;  %vm13235_vm6 = vcmp.lt.s32.totalorder %v7634_v32, 16  ;;  %v7601_v26 = vadd.s32 18, %v13057_v35 }
 0x336   : > { %vm7502_vm9 = vcmp.ne.s32.totalorder %v14048_v5, 0  ;;  %v7776_v28 = vsel %vm13143_vm7, %v6992_v60, 0.0  ;;  %v7775_v10 = vsel %vm13152_vm11, %v6987_v59, 0.0  ;;  %v8873_v50 = vpack.c.bf16 %v6987_v59, %v6984_v52  ;;  %v14072_v59 = vld [vmem:[#allocation5_spill] sm:$0xff] }
 0x337   : > { %v7000_v16 = vadd.f32 %v6999_v47, %v14049_v58  ;;  %vm14053_vm10 = vnez %v14052_v24  ;;  %8983 = vst [vmem:[%s12918_s27 + $0x88] sm:$0xff] %v8928_v15   ;;  %v7810_v52 = vadd.f32 %v7809_v61, %v7775_v10  ;;  %v7852_v60 = vmul.f32 %v7775_v10, %v7775_v10 }
 0x338   : > { %v14056_v3 = vsel %vm14053_vm10, %v14054_v57, %v14055_v19  ;;  %v8923_v31 = vpack.c.bf16 %v13224_v48, %v13231_v41  ;;  %vm7671_vm11 = vcmp.lt.s32.totalorder %v7635_v7, 16  ;;  %v7777_v18 = vsel %vm13183_vm14, %v6995_v37, 0.0  ;;  %8972 = vst [vmem:[%s12918_s27 + $0x30] sm:$0xff] %v8873_v50   ;;  %v14110_v50 = vld [vmem:[#allocation78_spill] sm:$0xff]  ;;  %v14120_v19 = vld [vmem:[#allocation68_spill] sm:$0xff] }
 0x339   : > { %vm13259_vm7 = vcmp.lt.s32.totalorder %v14056_v3, 16  ;;  %v7008_v25 = vadd.f32 %v9044_v46, %v14059_v63  ;;  %v7011_v30 = vadd.f32 %v9045_v14, %v14060_v2  ;;  %v7003_v47 = vadd.f32 %v7002_v55, %v14061_v27  ;;  %v14069_v14 = vld [vmem:[#allocation27_spill] sm:$0xff]  ;;  %v14090_v3 = vld [vmem:[#allocation82_spill] sm:$0xff]  ;;  %v14093_v27 = vld [vmem:[#allocation16_spill] sm:$0xff] }
 0x33a   : > { %vm14063_vm15 = vnez %v14062_v45  ;;  %v7853_v4 = vmul.f32 %v7776_v28, %v7776_v28  ;;  %v7811_v6 = vadd.f32 %v7810_v52, %v7776_v28  ;;  %v7887_v56 = vadd.f32 %v7886_v0, %v7852_v60  ;;  %8982 = vst [vmem:[%s12918_s27 + $0x80] sm:$0xff] %v8923_v31   ;;  %v14092_v31 = vld [vmem:[#allocation35_spill] sm:$0xff]  ;;  %v14096_v45 = vld [vmem:[#allocation72_spill] sm:$0xff] }
 0x33b   : > { %v14066_v38 = vsel %vm14063_vm15, %v14064_v43, %v14065_v51  ;;  %v7637_v37 = vsel %vm13250_vm12, %v7601_v26, %v13057_v35  ;;  %v7778_v46 = vsel %vm13235_vm6, %v7000_v16, 0.0  ;;  %v8888_v22 = vpack.c.bf16 %v7011_v30, %v7008_v25  ;;  %v14078_v26 = vld [vmem:[#allocation34_spill] sm:$0xff] }
 0x33c   : > { %vm13277_vm8 = vcmp.lt.s32.totalorder %v14066_v38, 16  ;;  %v7779_v61 = vsel %vm7671_vm11, %v7003_v47, 0.0  ;;  %v8883_v44 = vpack.c.bf16 %v7003_v47, %v7000_v16  ;;  %vm14070_vm1 = vnez %v14069_v14  ;;  %vm13329_vm11 = vmand %vm7537_vm3, %vm7501_vm4  ;;  %v14095_v47 = vld [vmem:[#allocation11_spill] sm:$0xff] }
 0x33d   : > { %v14073_v7 = vsel %vm14070_vm1, %v14071_v42, %v14072_v59  ;;  %v7854_v0 = vmul.f32 %v7777_v18, %v7777_v18  ;;  %v7888_v55 = vadd.f32 %v7887_v56, %v7853_v4  ;;  %vm13301_vm2 = vcmp.lt.s32.totalorder %v7636_v13, 16  ;;  %8975 = vst [vmem:[%s12918_s27 + $0x48] sm:$0xff] %v8888_v22   ;;  %vm13356_vm4 = vmand %vm7540_vm13, %vm7504_vm5 }
 0x33e   : > { %vm13292_vm14 = vcmp.lt.s32.totalorder %v14073_v7, 16  ;;  %v7812_v11 = vadd.f32 %v7811_v6, %v7777_v18  ;;  %vm7538_vm6 = vcmp.lt.s32.totalorder %v14048_v5, 0  ;;  %vm13310_vm12 = vcmp.lt.s32.totalorder %v7637_v37, 16  ;;  %8974 = vst [vmem:[%s12918_s27 + $0x40] sm:$0xff] %v8883_v44   ;;  %v14102_v37 = vld [vmem:[#allocation19_spill] sm:$0xff]  ;;  %v14104_v44 = vld [vmem:[#allocation36_spill] sm:$0xff] }
 0x33f   : > { %v13307_v28 = vmul.u32.u64.low 3817748708, %v14078_v26  ;;  %v13308_v10 = vmul.u32.u64.high 3817748708, %v14078_v26, %v13307_v28  ;;  %vm14082_vm10 = vnez %v14081_v54  ;;  %v7855_v32 = vmul.f32 %v7778_v46, %v7778_v46  ;;  %vm13378_vm3 = vmand %vm7538_vm6, %vm7502_vm9  ;;  %v14111_v54 = vld [vmem:[#allocation76_spill] sm:$0xff] }
 0x340   : > { %v14085_v13 = vsel %vm14082_vm10, %v14083_v36, %v14084_v62  ;;  %v7813_v16 = vadd.f32 %v7812_v11, %v7778_v46  ;;  %v7889_v24 = vadd.f32 %v7888_v55, %v7854_v0  ;;  %v7856_v57 = vmul.f32 %v7779_v61, %v7779_v61  ;;  %v14103_v46 = vld [vmem:[#allocation32_spill] sm:$0xff]  ;;  %v14108_v28 = vld [vmem:[#allocation79_spill] sm:$0xff]  ;;  %v14115_v62 = vld [vmem:[#allocation30_spill] sm:$0xff] }
 0x341   : > { %vm13321_vm0 = vcmp.lt.s32.totalorder %v14085_v13, 16  ;;  %v14091_v52 = vshrl.u32 %v14090_v3, 4  ;;  %v13336_v18 = vmul.u32.u64.low 3817748708, %v14092_v31  ;;  %v13337_v63 = vmul.u32.u64.high 3817748708, %v14092_v31, %v13336_v18 }
 0x342   : > { %v7780_v2 = vsel %vm13301_vm2, %v7008_v25, 0.0  ;;  %vm14094_vm15 = vnez %v14093_v27  ;;  %v7612_v38 = vadd.s32 18, %v14045_v17  ;;  %v7610_v4 = vadd.s32 18, %v14048_v5 }
 0x343   : > { %v7404_v60 = vmul.u32 18, %v14091_v52  ;;  %v14097_v43 = vsel %vm14094_vm15, %v14095_v47, %v14096_v45  ;;  %v7890_v6 = vadd.f32 %v7889_v24, %v7855_v32  ;;  %v7814_v56 = vadd.f32 %v7813_v16, %v7779_v61  ;;  %v14105_v61 = vld [vmem:[#allocation20_spill] sm:$0xff]  ;;  %v14117_v24 = vld [vmem:[#allocation31_spill] sm:$0xff] }
 0x344   : > { %vm13346_vm1 = vcmp.lt.s32.totalorder %v14097_v43, 16  ;;  %v13362_v22 = vsub.s32 %v14103_v46, %v14102_v37  ;;  %v13365_v14 = vmul.u32.u64.low 3817748708, %v14104_v44  ;;  %v13366_v42 = vmul.u32.u64.high 3817748708, %v14104_v44, %v13365_v14  ;;  %v14116_v16 = vld [vmem:[#allocation84_spill] sm:$0xff] }
 0x345   : > { %v7781_v59 = vsel %vm13310_vm12, %v7011_v30, 0.0  ;;  %v7645_v7 = vsel %vm13329_vm11, %v14105_v61, %v14043_v33  ;;  %v7857_v55 = vmul.f32 %v7780_v2, %v7780_v2  ;;  %v7815_v35 = vadd.f32 %v7814_v56, %v7780_v2 }
 0x346   : > { %v7891_v11 = vadd.f32 %v7890_v6, %v7856_v57  ;;  %v7782_v30 = vsel %vm13259_vm7, %v12990_v12, 0.0  ;;  %vm14109_vm5 = vnez %v14108_v28  ;;  %v13395_v13 = vsub.s32 %v14115_v62, %v7404_v60  ;;  %v14119_v57 = vld [vmem:[#allocation73_spill] sm:$0xff]  ;;  %v14124_v60 = vld [vmem:[#allocation10_spill] sm:$0xff] }
 0x347   : > { %v14112_v33 = vsel %vm14109_vm5, %v14110_v50, %v14111_v54  ;;  %v7436_v32 = vshrl.u32 %v14116_v16, 4  ;;  %vm14118_vm9 = vnez %v14117_v24  ;;  %v7648_v3 = vsel %vm13356_vm4, %v7612_v38, %v14045_v17  ;;  %v14125_v38 = vld [vmem:[#allocation6_spill] sm:$0xff]  ;;  %v14133_v28 = vld [vmem:[#allocation33_spill] sm:$0xff] }
 0x348   : > { %vm13390_vm13 = vcmp.lt.s32.totalorder %v14112_v33, 16  ;;  %v14121_v53 = vsel %vm14118_vm9, %v14119_v57, %v14120_v19  ;;  %v7858_v52 = vmul.f32 %v7781_v59, %v7781_v59  ;;  %v7816_v18 = vadd.f32 %v7815_v35, %v7781_v59 }
 0x349   : > { %vm13403_vm7 = vcmp.lt.s32.totalorder %v14121_v53, 16  ;;  %v7892_v2 = vadd.f32 %v7891_v11, %v7857_v55  ;;  %v7783_v27 = vsel %vm13277_vm8, %v14124_v60, 0.0  ;;  %v7646_v47 = vsel %vm13378_vm3, %v7610_v4, %v14048_v5 }
 0x34a   : > { %vm7505_vm2 = vcmp.ne.s32.totalorder %v13362_v22, 0  ;;  %v7447_v45 = vshrl.u32 %v13308_v10, 4  ;;  %v7859_v43 = vmul.f32 %v7782_v30, %v7782_v30  ;;  %vm7541_vm6 = vcmp.lt.s32.totalorder %v13362_v22, 0  ;;  %v14126_v10 = vld [vmem:[#allocation47_spill] sm:$0xff] }
 0x34b   : > { %v7817_v6 = vadd.f32 %v7816_v18, %v7782_v30  ;;  %v7893_v17 = vadd.f32 %v7892_v2, %v7858_v52  ;;  %v7784_v56 = vsel %vm13292_vm14, %v14125_v38, 0.0  ;;  %vm7503_vm12 = vcmp.ne.s32.totalorder %v13395_v13, 0  ;;  %vm13434_vm14 = vmand %vm7541_vm6, %vm7505_vm2 }
 0x34c   : > { %v7458_v20 = vshrl.u32 %v13337_v63, 4  ;;  %v7437_v25 = vmul.u32 18, %v7436_v32  ;;  %v7860_v37 = vmul.f32 %v7783_v27, %v7783_v27  ;;  %vm7539_vm8 = vcmp.lt.s32.totalorder %v13395_v13, 0 }
 0x34d   : > { %v7818_v5 = vadd.f32 %v7817_v6, %v7783_v27  ;;  %v7894_v4 = vadd.f32 %v7893_v17, %v7859_v43  ;;  %v7785_v46 = vsel %vm13321_vm0, %v14126_v10, 0.0  ;;  %v7613_v14 = vadd.s32 18, %v13362_v22  ;;  %vm13448_vm0 = vmand %vm7539_vm8, %vm7503_vm12 }
 0x34e   : > { %v7469_v59 = vshrl.u32 %v13366_v42, 4  ;;  %v7448_v15 = vmul.u32 18, %v7447_v45  ;;  %v7861_v61 = vmul.f32 %v7784_v56, %v7784_v56  ;;  %v7611_v0 = vadd.s32 18, %v13395_v13 }
 0x34f   : > { %v7819_v55 = vadd.f32 %v7818_v5, %v7784_v56  ;;  %v7895_v35 = vadd.f32 %v7894_v4, %v7860_v37  ;;  %v7786_v58 = vsel %vm13346_vm1, %v13091_v23, 0.0  ;;  %vm13442_vm10 = vcmp.lt.s32.totalorder %v7645_v7, 16 }
 0x350   : > { %v7459_v30 = vmul.u32 18, %v7458_v20  ;;  %v7438_v50 = vsub.s32 %v14133_v28, %v7437_v25  ;;  %v7862_v54 = vmul.f32 %v7785_v46, %v7785_v46  ;;  %vm13453_vm11 = vcmp.lt.s32.totalorder %v7648_v3, 16 }
 0x351   : > { %vm13457_vm15 = vcmp.lt.s32.totalorder %v7646_v47, 16  ;;  %v7820_v51 = vadd.f32 %v7819_v55, %v7785_v46  ;;  %v7896_v7 = vadd.f32 %v7895_v35, %v7861_v61  ;;  %v7787_v62 = vsel %vm13390_vm13, %v13098_v39, 0.0 }
 0x352   : > { %v7649_v16 = vsel %vm13434_vm14, %v7613_v14, %v13362_v22  ;;  %v7470_v32 = vmul.u32 18, %v7469_v59  ;;  %v7449_v24 = vsub.s32 %v14078_v26, %v7448_v15  ;;  %v7863_v57 = vmul.f32 %v7786_v58, %v7786_v58 }
 0x353   : > { %v7647_v19 = vsel %vm13448_vm0, %v7611_v0, %v13395_v13  ;;  %v7821_v53 = vadd.f32 %v7820_v51, %v7786_v58  ;;  %v7897_v3 = vadd.f32 %v7896_v7, %v7862_v54  ;;  %v7788_v52 = vsel %vm13403_vm7, %v13070_v9, 0.0 }
 0x354   : > { %v7460_v39 = vsub.s32 %v14092_v31, %v7459_v30  ;;  %vm7506_vm1 = vcmp.ne.s32.totalorder %v7438_v50, 0  ;;  %vm7542_vm4 = vcmp.lt.s32.totalorder %v7438_v50, 0  ;;  %v7864_v36 = vmul.f32 %v7787_v62, %v7787_v62 }
 0x355   : > { %v7614_v22 = vadd.s32 18, %v7438_v50  ;;  %v7822_v18 = vadd.f32 %v7821_v53, %v7787_v62  ;;  %v7898_v2 = vadd.f32 %v7897_v3, %v7863_v57  ;;  %v7789_v26 = vsel %vm13442_vm10, %v13073_v21, 0.0  ;;  %vm13479_vm9 = vmand %vm7542_vm4, %vm7506_vm1 }
 0x356   : > { %v7471_v13 = vsub.s32 %v14104_v44, %v7470_v32  ;;  %vm7507_vm3 = vcmp.ne.s32.totalorder %v7449_v24, 0  ;;  %vm7543_vm5 = vcmp.lt.s32.totalorder %v7449_v24, 0  ;;  %v7865_v60 = vmul.f32 %v7788_v52, %v7788_v52 }
 0x357   : > { %vm7683_vm13 = vcmp.lt.s32.totalorder %v7647_v19, 16  ;;  %v7823_v31 = vadd.f32 %v7822_v18, %v7788_v52  ;;  %v7899_v12 = vadd.f32 %v7898_v2, %v7864_v36  ;;  %v7790_v27 = vsel %vm13457_vm15, %v13172_v29, 0.0  ;;  %vm13486_vm6 = vmand %vm7543_vm5, %vm7507_vm3 }
 0x358   : > { %vm7508_vm7 = vcmp.ne.s32.totalorder %v7460_v39, 0  ;;  %vm7544_vm2 = vcmp.lt.s32.totalorder %v7460_v39, 0  ;;  %v7615_v47 = vadd.s32 18, %v7449_v24  ;;  %v7866_v21 = vmul.f32 %v7789_v26, %v7789_v26 }
 0x359   : > { %v7616_v45 = vadd.s32 18, %v7460_v39  ;;  %v7824_v43 = vadd.f32 %v7823_v31, %v7789_v26  ;;  %v7900_v6 = vadd.f32 %v7899_v12, %v7865_v60  ;;  %v7791_v17 = vsel %vm7683_vm13, %v13176_v8, 0.0  ;;  %vm13493_vm10 = vmand %vm7544_vm2, %vm7508_vm7 }
 0x35a   : > { %v7650_v38 = vsel %vm13479_vm9, %v7614_v22, %v7438_v50  ;;  %vm7509_vm12 = vcmp.ne.s32.totalorder %v7471_v13, 0  ;;  %vm7545_vm8 = vcmp.lt.s32.totalorder %v7471_v13, 0  ;;  %v7867_v56 = vmul.f32 %v7790_v27, %v7790_v27 }
 0x35b   : > { %vm7685_vm14 = vcmp.lt.s32.totalorder %v7649_v16, 16  ;;  %v7825_v20 = vadd.f32 %v7824_v43, %v7790_v27  ;;  %v7901_v25 = vadd.f32 %v7900_v6, %v7866_v21  ;;  %v7792_v37 = vsel %vm13453_vm11, %v13128_v34, 0.0  ;;  %vm13502_vm15 = vmand %vm7545_vm8, %vm7509_vm12 }
 0x35c   : > { %v7617_v5 = vadd.s32 18, %v7471_v13  ;;  %v7651_v8 = vsel %vm13486_vm6, %v7615_v47, %v7449_v24  ;;  %v7868_v4 = vmul.f32 %v7791_v17, %v7791_v17  ;;  %vm7686_vm0 = vcmp.lt.s32.totalorder %v7650_v38, 16 }
 0x35d   : > { %v7826_v46 = vadd.f32 %v7825_v20, %v7791_v17  ;;  %v7902_v14 = vadd.f32 %v7901_v25, %v7867_v56  ;;  %v7793_v59 = vsel %vm7685_vm14, %v13130_v49, 0.0  ;;  %v7652_v15 = vsel %vm13493_vm10, %v7616_v45, %v7460_v39 }
 0x35e   : > { %v7869_v61 = vmul.f32 %v7792_v37, %v7792_v37  ;;  %vm7687_vm1 = vcmp.lt.s32.totalorder %v7651_v8, 16  ;;  %v7794_v0 = vsel %vm7686_vm0, %v13231_v41, 0.0  ;;  %v7653_v55 = vsel %vm13502_vm15, %v7617_v5, %v7471_v13 }
 0x35f   : > { %v7827_v34 = vadd.f32 %v7826_v46, %v7792_v37  ;;  %v7903_v63 = vadd.f32 %v7902_v14, %v7868_v4  ;;  %v7870_v35 = vmul.f32 %v7793_v59, %v7793_v59  ;;  %vm7688_vm11 = vcmp.lt.s32.totalorder %v7652_v15, 16 }
 0x360   : > { %v7795_v11 = vsel %vm7687_vm1, %v13224_v48, 0.0  ;;  %v7871_v30 = vmul.f32 %v7794_v0, %v7794_v0  ;;  %vm7689_vm4 = vcmp.lt.s32.totalorder %v7653_v55, 16  ;;  %v7796_v50 = vsel %vm7688_vm11, %v13218_v40, 0.0 }
 0x361   : > { %v7828_v58 = vadd.f32 %v7827_v34, %v7793_v59  ;;  %v7904_v42 = vadd.f32 %v7903_v63, %v7869_v61  ;;  %v7872_v54 = vmul.f32 %v7795_v11, %v7795_v11  ;;  %v7797_v41 = vsel %vm7689_vm4, %v13220_v1, 0.0 }
 0x362   : > { %v7873_v51 = vmul.f32 %v7796_v50, %v7796_v50  ;;  %v7874_v16 = vmul.f32 %v7797_v41, %v7797_v41  ;;  %vm14146_vm3 = vcmask 1040384  }
 0x363   : > { %v7829_v49 = vadd.f32 %v7828_v58, %v7794_v0  ;;  %v7905_v28 = vadd.f32 %v7904_v42, %v7870_v35 }
 0x365   : > { %v7830_v33 = vadd.f32 %v7829_v49, %v7795_v11  ;;  %v7906_v23 = vadd.f32 %v7905_v28, %v7871_v30 }
 0x367   : > { %v7831_v7 = vadd.f32 %v7830_v33, %v7796_v50  ;;  %v7907_v62 = vadd.f32 %v7906_v23, %v7872_v54 }
 0x369   : > { %v7832_v32 = vadd.f32 %v7831_v7, %v7797_v41  ;;  %v7908_v24 = vadd.f32 %v7907_v62, %v7873_v51 }
 0x36b   : > { %v7833_v57 = vrot.slane %v7832_v32, 4  ;;  %v7909_v48 = vadd.f32 %v7908_v24, %v7874_v16 }
 0x36d   : > { %v7834_v19 = vadd.f32 %v7833_v57, %v7832_v32  ;;  %v7910_v53 = vrot.slane %v7909_v48, 4 }
 0x36f   : > { %v7835_v3 = vrot.slane %v7834_v19, 2  ;;  %v7911_v52 = vadd.f32 %v7910_v53, %v7909_v48 }
 0x371   : > { %v7836_v39 = vadd.f32 %v7835_v3, %v7834_v19  ;;  %v7912_v40 = vrot.slane %v7911_v52, 2 }
 0x373   : > { %v7837_v36 = vrot.slane %v7836_v39, 1  ;;  %v7913_v22 = vadd.f32 %v7912_v40, %v7911_v52 }
 0x375   : > { %v7914_v18 = vrot.slane %v7913_v22, 1  ;;  %v7838_v1 = vadd.f32 %v7837_v36, %v7836_v39 }
 0x377   : > { %v7915_v2 = vadd.f32 %v7914_v18, %v7913_v22 }
 0x379   : > { %v7917_v26 = vsel %vm14146_vm3, %v7838_v1, %v7915_v2 }
 0x37a   : > { %7918 = vst [vmem:[%s280_s6] sm:$0x3] %v7917_v26 }
 0x37b PF: > { %s16_s20 = sadd.s32 1, %s9562_s20   ;;  %s14147_s18 = smov %s9558_s19 }
 0x37c   : > { %p13_p5 = scmp.ge.s32.totalorder %s16_s20, 4   ;;  %s14148_s19 = smov %s14150_s21 }
 0x37e   :  { %15 = sbr.rel (!%p13_p5) target bundleno = 2 (0x2), region = 78 }

</bundles_post_ra>
